<compile_context>
chip_gen: v5e
topology: v5e:2x2
jax: 0.10.0
libtpu: 0.0.40
codegen_flags: <defaults>
</compile_context>

<pallas_src>
import math
import functools

import jax
import jax.numpy as jnp
from jax.experimental import pallas as pl
from jax.experimental.pallas import tpu as pltpu

LN_EPS = 1e-6
# MXU operand dtype: bf16 with f32 accumulation (v6e/v7x MXU-native; on v5e the
# elementwise math stays f32 so no extra VPU cast traffic).
MXU_DTYPE = jnp.bfloat16
_NEG_BIG = -1e30      # finite "-inf" for masked logsumexp (no NaN propagation)


def _gelu(x):
    # TODO(synk): PyTorch F.gelu defaults to the exact erf form; the tanh
    # approximation is used for robust Mosaic lowering (~1e-3 max divergence).
    c = math.sqrt(2.0 / math.pi)
    return 0.5 * x * (1.0 + jnp.tanh(c * (x + 0.044715 * x * x * x)))


def _layernorm(t, g, b):
    mu = jnp.mean(t, axis=-1, keepdims=True)
    var = jnp.mean((t - mu) ** 2, axis=-1, keepdims=True)
    return (t - mu) * jax.lax.rsqrt(var + LN_EPS) * g + b


def _mxu(a, w):
    """2-D matmul on the MXU: bf16 operands, f32 accumulate."""
    return jnp.dot(a.astype(MXU_DTYPE), w.astype(MXU_DTYPE),
                   preferred_element_type=jnp.float32)


# --------------------------------------------------------------------------
# Fused CoarseI2P kernel (per batch item)
# --------------------------------------------------------------------------
def coarse_i2p_kernel(img_ref, pt_ref, gt_ref, bin_ref,
                      ln1g_ref, ln1b_ref, wqkv_ref, bqkv_ref, wo_ref, bo_ref,
                      ln2g_ref, ln2b_ref, w1_ref, b1_ref, w2_ref, b2_ref,
                      img_out_ref, pt_out_ref, scores_out_ref,
                      loss_num_ref, loss_den_ref,
                      *, num_heads, num_layers, sinkhorn_iters):
    N, D = img_ref.shape[1], img_ref.shape[2]
    M = pt_ref.shape[1]
    Np, Mp = scores_out_ref.shape[1], scores_out_ref.shape[2]   # lane-dense pad
    H = num_heads
    hd = D // H
    inv_sqrt_hd = 1.0 / math.sqrt(hd)

    def block(x, y, idx, self_attn):
        # Block.forward applies the *same* attention_norm to both x and y.
        g1, be1 = ln1g_ref[idx], ln1b_ref[idx]                  # (1, D)
        xn = _layernorm(x, g1, be1)
        wqkv = wqkv_ref[idx]                                    # (D, 3D) bf16
        bqkv = bqkv_ref[idx]                                    # (1, 3D) f32
        if self_attn:
            # fused Q|K|V projection: a single (D, 3D) MXU push
            qkv = _mxu(xn, wqkv) + bqkv
            q, kv = qkv[:, :D], qkv[:, D:]
        else:
            yn = _layernorm(y, g1, be1)
            q = _mxu(xn, wqkv[:, :D]) + bqkv[:, :D]
            kv = _mxu(yn, wqkv[:, D:]) + bqkv[:, D:]

        # Head-batched attention: stack heads onto a leading batch dim once and
        # run two batched einsums instead of 3 tiny MXU pushes per head.
        q3 = jnp.stack([q[:, h * hd:(h + 1) * hd] for h in range(H)], axis=0)
        k3 = jnp.stack([kv[:, h * hd:(h + 1) * hd] for h in range(H)], axis=0)
        v3 = jnp.stack([kv[:, D + h * hd:D + (h + 1) * hd] for h in range(H)], axis=0)
        s = jnp.einsum('hnd,hmd->hnm', q3.astype(MXU_DTYPE), k3.astype(MXU_DTYPE),
                       preferred_element_type=jnp.float32) * inv_sqrt_hd
        s = s - jnp.max(s, axis=-1, keepdims=True)
        p = jnp.exp(s)
        p = p * pl.reciprocal(jnp.sum(p, axis=-1, keepdims=True), approx=True)
        ctx = jnp.einsum('hnm,hmd->hnd', p.astype(MXU_DTYPE), v3.astype(MXU_DTYPE),
                         preferred_element_type=jnp.float32)    # (H, Nx, hd)
        # lane-concat heads, then ONE (Nx, D) @ (D, D) output projection
        ctx = jnp.concatenate([ctx[h] for h in range(H)], axis=1)
        x1 = x + _mxu(ctx, wo_ref[idx]) + bo_ref[idx]           # first residual

        x1n = _layernorm(x1, ln2g_ref[idx], ln2b_ref[idx])
        hmid = _gelu(_mxu(x1n, w1_ref[idx]) + b1_ref[idx])
        return x1 + _mxu(hmid, w2_ref[idx]) + b2_ref[idx]       # second residual

    img = img_ref[0].astype(jnp.float32)                        # (N, D)
    pt = pt_ref[0].astype(jnp.float32)                          # (M, D)

    # layer chain: all activations stay in VMEM / vregs
    for l in range(num_layers):                                 # small static unroll
        img = block(img, pt, 4 * l + 0, False)                  # p2i cross-attn
        pt = block(pt, img, 4 * l + 1, False)                   # i2p cross-attn
        img = block(img, img, 4 * l + 2, True)                  # img self-attn
        pt = block(pt, pt, 4 * l + 3, True)                     # pt self-attn

    img_out_ref[0] = img.astype(img_out_ref.dtype)
    pt_out_ref[0] = pt.astype(pt_out_ref.dtype)

    # ---- scores -> log_optimal_transport (Sinkhorn) -> exp scores / loss ----
    # Build the coupling matrix lane-dense ((Np, Mp) >= (N+1, M+1)) directly in
    # registers: zero-pad img/pt rows so the scores matmul itself produces the
    # padded slab, then select bin_score outside the (N, M) block.  No VMEM
    # scratch round-trip, no masked partial stores on a 9-lane buffer.
    img_p = jnp.concatenate([img, jnp.zeros((Np - N, D), jnp.float32)], axis=0)
    pt_p = jnp.concatenate([pt, jnp.zeros((Mp - M, D), jnp.float32)], axis=0)
    raw = jax.lax.dot_general(img_p.astype(MXU_DTYPE), pt_p.astype(MXU_DTYPE),
                              (((1,), (1,)), ((), ())),
                              preferred_element_type=jnp.float32) * (1.0 / math.sqrt(D))

    bin_s = bin_ref[0]                                          # learnable bin score (SMEM)
    row_i = jax.lax.broadcasted_iota(jnp.int32, (Np, Mp), 0)
    col_i = jax.lax.broadcasted_iota(jnp.int32, (Np, Mp), 1)
    # valid (N+1, M+1) region: scores / bin_score; pad region: finite filler
    Z = jnp.where((row_i < N) & (col_i < M), raw, bin_s)

    rvec = jax.lax.broadcasted_iota(jnp.int32, (Np, 1), 0)
    cvec = jax.lax.broadcasted_iota(jnp.int32, (1, Mp), 1)
    row_valid = rvec <= N
    col_valid = cvec <= M
    norm = -math.log(N + M)
    log_mu = jnp.where(rvec == N, jnp.float32(math.log(M) + norm), jnp.float32(norm))
    log_nu = jnp.where(cvec == M, jnp.float32(math.log(N) + norm), jnp.float32(norm))

    u = jnp.zeros((Np, 1), jnp.float32)
    v = jnp.zeros((1, Mp), jnp.float32)
    for _ in range(sinkhorn_iters):                             # small static iter count
        zv = jnp.where(col_valid, Z + v, _NEG_BIG)              # mask pad columns
        mr = jnp.max(zv, axis=1, keepdims=True)
        u = log_mu - (mr + jnp.log(jnp.sum(jnp.exp(zv - mr), axis=1, keepdims=True)))
        zu = jnp.where(row_valid, Z + u, _NEG_BIG)              # mask pad rows
        mc = jnp.max(zu, axis=0, keepdims=True)
        v = log_nu - (mc + jnp.log(jnp.sum(jnp.exp(zu - mc), axis=0, keepdims=True)))
    log_scores = Z + u + v - norm

    # lane-dense (unmasked vst) writeback; host slices back to (N+1, M+1)
    scores_out_ref[0] = jnp.exp(log_scores).astype(scores_out_ref.dtype)

    # per-batch loss partials: numerator / denominator emitted separately; the
    # ratio + mean over B is done on the host (matches PyTorch mean-of-ratios,
    # avoids an in-kernel 0/0 if sum(gt) == 0).
    g = gt_ref[0].astype(jnp.float32)                           # zero in the pad region
    y = jnp.where(row_valid & col_valid, -g * log_scores, 0.0)
    loss_num_ref[0] = jnp.sum(jnp.sum(y, axis=1, keepdims=True), axis=0, keepdims=True)
    loss_den_ref[0] = jnp.sum(jnp.sum(g, axis=1, keepdims=True), axis=0, keepdims=True)


# --------------------------------------------------------------------------
# parameter init (deterministic, shapes per module __init__) and stacking
# --------------------------------------------------------------------------
def init_block_params(key, embed_dim, mlp_dim):
    keys = jax.random.split(key, 12)

    def linear(kw, kb, fin, fout):                              # nn.Linear default init
        lim = 1.0 / math.sqrt(fin)
        w = jax.random.uniform(kw, (fin, fout), jnp.float32, -lim, lim)
        b = jax.random.uniform(kb, (1, fout), jnp.float32, -lim, lim)
        return w, b

    def xavier(kw, kb, fin, fout):                              # Mlp._init_weights
        lim = math.sqrt(6.0 / (fin + fout))
        w = jax.random.uniform(kw, (fin, fout), jnp.float32, -lim, lim)
        b = 1e-6 * jax.random.normal(kb, (1, fout), jnp.float32)
        return w, b

    wq, bq = linear(keys[0], keys[1], embed_dim, embed_dim)
    wk, bk = linear(keys[2], keys[3], embed_dim, embed_dim)
    wv, bv = linear(keys[4], keys[5], embed_dim, embed_dim)
    wo, bo = linear(keys[6], keys[7], embed_dim, embed_dim)
    w1, b1 = xavier(keys[8], keys[9], embed_dim, mlp_dim)
    w2, b2 = xavier(keys[10], keys[11], mlp_dim, embed_dim)
    return dict(
        ln1_g=jnp.ones((1, embed_dim), jnp.float32),
        ln1_b=jnp.zeros((1, embed_dim), jnp.float32),
        wq=wq, bq=bq, wk=wk, bk=bk, wv=wv, bv=bv, wo=wo, bo=bo,
        ln2_g=jnp.ones((1, embed_dim), jnp.float32),
        ln2_b=jnp.zeros((1, embed_dim), jnp.float32),
        w1=w1, b1=b1, w2=w2, b2=b2,
    )


def stack_block_params(layer_params):
    """Stack per-block params on a leading block-slot axis.

    Slot order per layer: [p2i, i2p, img_sa, pt_sa] (matches CoarseI2P.forward).
    Q, K and V projections are fused into (D, 3D)/(1, 3D); weight matrices are
    stored as bf16 (MXU operand dtype), biases / LN params stay f32.
    """
    blocks = []
    for lp in layer_params:
        blocks += [lp["p2i"], lp["i2p"], lp["img_sa"], lp["pt_sa"]]

    def st(name, dtype=jnp.float32):
        return jnp.stack([b[name] for b in blocks], axis=0).astype(dtype)

    wqkv = jnp.stack([jnp.concatenate([b["wq"], b["wk"], b["wv"]], axis=1)
                      for b in blocks], axis=0)
    bqkv = jnp.stack([jnp.concatenate([b["bq"], b["bk"], b["bv"]], axis=1)
                      for b in blocks], axis=0)
    return dict(
        ln1_g=st("ln1_g"), ln1_b=st("ln1_b"),
        wqkv=wqkv.astype(MXU_DTYPE), bqkv=bqkv,
        wo=st("wo", MXU_DTYPE), bo=st("bo"),
        ln2_g=st("ln2_g"), ln2_b=st("ln2_b"),
        w1=st("w1", MXU_DTYPE), b1=st("b1"),
        w2=st("w2", MXU_DTYPE), b2=st("b2"),
    )


_PARAM_ORDER = ("ln1_g", "ln1_b", "wqkv", "bqkv", "wo", "bo",
                "ln2_g", "ln2_b", "w1", "b1", "w2", "b2")


def _cost_estimate(B, N, M, D, mlp_dim, H, L, iters, Np, Mp, in_bytes, out_bytes):
    hd = D // H
    flops = 0
    trans = 0
    for nx, ny, self_attn in ((N, M, False), (M, N, False), (N, N, True), (M, M, True)):
        proj = 2 * nx * D * 3 * D if self_attn else 2 * nx * D * D + 2 * ny * D * 2 * D
        attn = 2 * H * nx * ny * hd * 2                          # q@k.T and p@v
        outp = 2 * nx * D * D
        ffn = 2 * nx * D * mlp_dim * 2
        flops += proj + attn + outp + ffn
        trans += H * nx * ny + nx * mlp_dim                      # softmax exp + gelu tanh
    flops *= L
    trans *= L
    flops += 2 * Np * Mp * D                                     # coupling scores matmul
    trans += (2 * iters + 1) * Np * Mp                           # Sinkhorn exps + final exp
    return pl.CostEstimate(flops=int(B * flops), transcendentals=int(B * trans),
                           bytes_accessed=int(in_bytes + out_bytes))


# --------------------------------------------------------------------------
# CoarseI2P forward (from proxies onward) — single fused pallas_call
# --------------------------------------------------------------------------
def coarse_i2p_forward(img_proxy, pt_proxy, stacked_params, bin_score, scores_gt,
                       *, num_heads, num_layers, sinkhorn_iters):
    B, N, D = img_proxy.shape
    M = pt_proxy.shape[1]
    assert stacked_params["wqkv"].shape[0] == 4 * num_layers

    # lane-dense padding of the Sinkhorn / scores path: rows to a multiple of 8,
    # cols to a multiple of 128 (unmasked stores on writeback, full-lane VPU/XLU
    # occupancy inside the Sinkhorn loop).  Sliced back to (N+1, M+1) below.
    Np = ((N + 1 + 7) // 8) * 8
    Mp = ((M + 1 + 127) // 128) * 128
    gt_pad = jnp.pad(scores_gt.astype(jnp.float32),
                     ((0, 0), (0, Np - (N + 1)), (0, Mp - (M + 1))))

    plist = [stacked_params[k] for k in _PARAM_ORDER]
    # Grid-invariant parameter blocks (constant index_map).
    # TODO(synk): at production dims, single-buffer these (pipeline_mode) or
    # stream block-slots via a second "arbitrary" grid axis for v7x's 64 MiB VMEM.
    pspecs = [pl.BlockSpec(p.shape, lambda b, nd=p.ndim: (0,) * nd) for p in plist]
    bin_arr = jnp.reshape(jnp.asarray(bin_score, jnp.float32), (1,))

    in_bytes = sum(int(a.size) * a.dtype.itemsize
                   for a in [img_proxy, pt_proxy, gt_pad, bin_arr] + plist)
    out_bytes = (B * N * D + B * M * D + B * Np * Mp + 2 * B) * 4
    cost = _cost_estimate(B, N, M, D, int(stacked_params["w1"].shape[2]), num_heads,
                          num_layers, sinkhorn_iters, Np, Mp, in_bytes, out_bytes)

    kernel = functools.partial(coarse_i2p_kernel, num_heads=num_heads,
                               num_layers=num_layers, sinkhorn_iters=sinkhorn_iters)

    img_o, pt_o, scores_pad, num_p, den_p = pl.pallas_call(
        kernel,
        out_shape=(
            jax.ShapeDtypeStruct((B, N, D), img_proxy.dtype),
            jax.ShapeDtypeStruct((B, M, D), pt_proxy.dtype),
            jax.ShapeDtypeStruct((B, Np, Mp), jnp.float32),
            jax.ShapeDtypeStruct((B, 1, 1), jnp.float32),
            jax.ShapeDtypeStruct((B, 1, 1), jnp.float32),
        ),
        grid=(B,),
        in_specs=[
            pl.BlockSpec((1, N, D), lambda b: (b, 0, 0)),
            pl.BlockSpec((1, M, D), lambda b: (b, 0, 0)),
            pl.BlockSpec((1, Np, Mp), lambda b: (b, 0, 0)),
            pl.BlockSpec(memory_space=pltpu.MemorySpace.SMEM),   # bin_score scalar
        ] + pspecs,
        out_specs=(
            pl.BlockSpec((1, N, D), lambda b: (b, 0, 0)),
            pl.BlockSpec((1, M, D), lambda b: (b, 0, 0)),
            pl.BlockSpec((1, Np, Mp), lambda b: (b, 0, 0)),
            pl.BlockSpec((1, 1, 1), lambda b: (b, 0, 0)),
            pl.BlockSpec((1, 1, 1), lambda b: (b, 0, 0)),
        ),
        compiler_params=pltpu.CompilerParams(
            dimension_semantics=("parallel",),          # even B fills both v7x TCs
            vmem_limit_bytes=32 * 1024 * 1024),
        cost_estimate=cost,
    )(img_proxy, pt_proxy, gt_pad, bin_arr, *plist)

    # PyTorch reference: per-batch ratio sum(-gt*logP)/sum(gt), then mean over B.
    coarse_loss = jnp.mean(num_p[:, 0, 0] / den_p[:, 0, 0])
    scores = scores_pad[:, :N + 1, :M + 1]
    return dict(img_proxy=img_o, pt_proxy=pt_o, scores=scores, coarse_loss=coarse_loss)


if __name__ == "__main__":
    # small config consistent with the module
    B = 2
    embed_dim = 32          # config.embed_dim
    num_heads = 4           # config.num_head
    mlp_dim = 64            # config.mlp_dim
    num_layers = 2          # config.num_ca_layer_coarse
    sinkhorn_iters = 3      # config.sinkhorn_iters
    n_img = 16              # (image_H // patch_size) * (image_W // patch_size)
    n_pt = 8                # config.num_proxy

    key = jax.random.PRNGKey(0)
    k_img, k_pt, k_gt, k_params = jax.random.split(key, 4)

    # TODO(synk): ImageTransformer / PointTransformer backbones and the
    # torch_scatter-based calculate_coarse_ground_truth are external code not
    # provided; img_proxy / pt_proxy / scores_gt are synthetic inputs here.
    img_proxy = jax.random.normal(k_img, (B, n_img, embed_dim), jnp.float32)
    pt_proxy = jax.random.normal(k_pt, (B, n_pt, embed_dim), jnp.float32)
    scores_gt = jax.random.uniform(k_gt, (B, n_img + 1, n_pt + 1), jnp.float32)

    layer_keys = jax.random.split(k_params, num_layers * 4)
    layer_params = []
    for i in range(num_layers):
        layer_params.append(dict(
            p2i=init_block_params(layer_keys[4 * i + 0], embed_dim, mlp_dim),
            i2p=init_block_params(layer_keys[4 * i + 1], embed_dim, mlp_dim),
            img_sa=init_block_params(layer_keys[4 * i + 2], embed_dim, mlp_dim),
            pt_sa=init_block_params(layer_keys[4 * i + 3], embed_dim, mlp_dim),
        ))
    stacked = stack_block_params(layer_params)   # done once, outside the forward
    bin_score = jnp.float32(1.0)

    out = coarse_i2p_forward(img_proxy, pt_proxy, stacked, bin_score, scores_gt,
                             num_heads=num_heads, num_layers=num_layers,
                             sinkhorn_iters=sinkhorn_iters)
    jax.block_until_ready(out)
    print("KERNEL_OK")
</pallas_src>

<mosaic_0001>
module attributes {stable_mosaic.version = 11 : i64} {
  func.func @coarse_i2p_kernel(%arg0: i32, %arg1: memref<1x16x32xf32, #tpu.memory_space<vmem>>, %arg2: memref<1x8x32xf32, #tpu.memory_space<vmem>>, %arg3: memref<1x24x128xf32, #tpu.memory_space<vmem>>, %arg4: memref<1xf32, #tpu.memory_space<smem>>, %arg5: memref<8x1x32xf32, #tpu.memory_space<vmem>>, %arg6: memref<8x1x32xf32, #tpu.memory_space<vmem>>, %arg7: memref<8x32x96xbf16, #tpu.memory_space<vmem>>, %arg8: memref<8x1x96xf32, #tpu.memory_space<vmem>>, %arg9: memref<8x32x32xbf16, #tpu.memory_space<vmem>>, %arg10: memref<8x1x32xf32, #tpu.memory_space<vmem>>, %arg11: memref<8x1x32xf32, #tpu.memory_space<vmem>>, %arg12: memref<8x1x32xf32, #tpu.memory_space<vmem>>, %arg13: memref<8x32x64xbf16, #tpu.memory_space<vmem>>, %arg14: memref<8x1x64xf32, #tpu.memory_space<vmem>>, %arg15: memref<8x64x32xbf16, #tpu.memory_space<vmem>>, %arg16: memref<8x1x32xf32, #tpu.memory_space<vmem>>, %arg17: memref<1x16x32xf32, #tpu.memory_space<vmem>>, %arg18: memref<1x8x32xf32, #tpu.memory_space<vmem>>, %arg19: memref<1x24x128xf32, #tpu.memory_space<vmem>>, %arg20: memref<1x1x1xf32, #tpu.memory_space<vmem>>, %arg21: memref<1x1x1xf32, #tpu.memory_space<vmem>>) attributes {dimension_semantics = [#tpu.dimension_semantics<parallel>], iteration_bounds = array<i64: 2>, scalar_prefetch = 0 : i64, scratch_operands = 0 : i64, tpu.core_type = #tpu.core_type<tc>, window_params = [{transform_indices = @transform_0, window_bounds = array<i64: 1, 16, 32>}, {transform_indices = @transform_1, window_bounds = array<i64: 1, 8, 32>}, {transform_indices = @transform_2, window_bounds = array<i64: 1, 24, 128>}, {transform_indices = @transform_3, window_bounds = array<i64: 1>}, {pipeline_mode = #tpu.pipeline_mode<synchronous>, transform_indices = @transform_4, window_bounds = array<i64: 8, 1, 32>}, {pipeline_mode = #tpu.pipeline_mode<synchronous>, transform_indices = @transform_5, window_bounds = array<i64: 8, 1, 32>}, {pipeline_mode = #tpu.pipeline_mode<synchronous>, transform_indices = @transform_6, window_bounds = array<i64: 8, 32, 96>}, {pipeline_mode = #tpu.pipeline_mode<synchronous>, transform_indices = @transform_7, window_bounds = array<i64: 8, 1, 96>}, {pipeline_mode = #tpu.pipeline_mode<synchronous>, transform_indices = @transform_8, window_bounds = array<i64: 8, 32, 32>}, {pipeline_mode = #tpu.pipeline_mode<synchronous>, transform_indices = @transform_9, window_bounds = array<i64: 8, 1, 32>}, {pipeline_mode = #tpu.pipeline_mode<synchronous>, transform_indices = @transform_10, window_bounds = array<i64: 8, 1, 32>}, {pipeline_mode = #tpu.pipeline_mode<synchronous>, transform_indices = @transform_11, window_bounds = array<i64: 8, 1, 32>}, {pipeline_mode = #tpu.pipeline_mode<synchronous>, transform_indices = @transform_12, window_bounds = array<i64: 8, 32, 64>}, {pipeline_mode = #tpu.pipeline_mode<synchronous>, transform_indices = @transform_13, window_bounds = array<i64: 8, 1, 64>}, {pipeline_mode = #tpu.pipeline_mode<synchronous>, transform_indices = @transform_14, window_bounds = array<i64: 8, 64, 32>}, {pipeline_mode = #tpu.pipeline_mode<synchronous>, transform_indices = @transform_15, window_bounds = array<i64: 8, 1, 32>}, {transform_indices = @transform_16, window_bounds = array<i64: 1, 16, 32>}, {transform_indices = @transform_17, window_bounds = array<i64: 1, 8, 32>}, {transform_indices = @transform_18, window_bounds = array<i64: 1, 24, 128>}, {transform_indices = @transform_19, window_bounds = array<i64: 1, 1, 1>}, {transform_indices = @transform_20, window_bounds = array<i64: 1, 1, 1>}]} {
    %c0 = arith.constant 0 : index
    %c0_0 = arith.constant 0 : index
    %c0_1 = arith.constant 0 : index
    %0 = vector.load %arg1[%c0, %c0_0, %c0_1] : memref<1x16x32xf32, #tpu.memory_space<vmem>>, vector<1x16x32xf32>
    %1 = vector.shape_cast %0 : vector<1x16x32xf32> to vector<16x32xf32>
    %c0_2 = arith.constant 0 : index
    %c0_3 = arith.constant 0 : index
    %c0_4 = arith.constant 0 : index
    %2 = vector.load %arg2[%c0_2, %c0_3, %c0_4] : memref<1x8x32xf32, #tpu.memory_space<vmem>>, vector<1x8x32xf32>
    %3 = vector.shape_cast %2 : vector<1x8x32xf32> to vector<8x32xf32>
    %c0_5 = arith.constant 0 : index
    %c0_6 = arith.constant 0 : index
    %c0_7 = arith.constant 0 : index
    %4 = vector.load %arg5[%c0_5, %c0_6, %c0_7] : memref<8x1x32xf32, #tpu.memory_space<vmem>>, vector<1x1x32xf32>
    %5 = vector.shape_cast %4 : vector<1x1x32xf32> to vector<1x32xf32>
    %c0_8 = arith.constant 0 : index
    %c0_9 = arith.constant 0 : index
    %c0_10 = arith.constant 0 : index
    %6 = vector.load %arg6[%c0_8, %c0_9, %c0_10] : memref<8x1x32xf32, #tpu.memory_space<vmem>>, vector<1x1x32xf32>
    %7 = vector.shape_cast %6 : vector<1x1x32xf32> to vector<1x32xf32>
    %cst = arith.constant dense<0.000000e+00> : vector<16xf32>
    %8 = vector.multi_reduction <add>, %1, %cst [1] : vector<16x32xf32> to vector<16xf32>
    %9 = vector.shape_cast %8 : vector<16xf32> to vector<16x1xf32>
    %cst_11 = arith.constant 3.200000e+01 : f32
    %10 = vector.broadcast %cst_11 : f32 to vector<16x1xf32>
    %11 = arith.divf %9, %10 : vector<16x1xf32>
    %12 = vector.broadcast %11 : vector<16x1xf32> to vector<16x32xf32>
    %13 = arith.subf %1, %12 : vector<16x32xf32>
    %14 = arith.mulf %13, %13 : vector<16x32xf32>
    %cst_12 = arith.constant dense<0.000000e+00> : vector<16xf32>
    %15 = vector.multi_reduction <add>, %14, %cst_12 [1] : vector<16x32xf32> to vector<16xf32>
    %16 = vector.shape_cast %15 : vector<16xf32> to vector<16x1xf32>
    %cst_13 = arith.constant 3.200000e+01 : f32
    %17 = vector.broadcast %cst_13 : f32 to vector<16x1xf32>
    %18 = arith.divf %16, %17 : vector<16x1xf32>
    %19 = vector.broadcast %11 : vector<16x1xf32> to vector<16x32xf32>
    %20 = arith.subf %1, %19 : vector<16x32xf32>
    %cst_14 = arith.constant 9.99999997E-7 : f32
    %21 = vector.broadcast %cst_14 : f32 to vector<16x1xf32>
    %22 = arith.addf %18, %21 : vector<16x1xf32>
    %23 = math.rsqrt %22 : vector<16x1xf32>
    %24 = vector.broadcast %23 : vector<16x1xf32> to vector<16x32xf32>
    %25 = arith.mulf %20, %24 : vector<16x32xf32>
    %26 = vector.broadcast %5 : vector<1x32xf32> to vector<16x32xf32>
    %27 = arith.mulf %25, %26 : vector<16x32xf32>
    %28 = vector.broadcast %7 : vector<1x32xf32> to vector<16x32xf32>
    %29 = arith.addf %27, %28 : vector<16x32xf32>
    %c0_15 = arith.constant 0 : index
    %c0_16 = arith.constant 0 : index
    %c0_17 = arith.constant 0 : index
    %30 = vector.load %arg7[%c0_15, %c0_16, %c0_17] : memref<8x32x96xbf16, #tpu.memory_space<vmem>>, vector<1x32x96xbf16>
    %31 = vector.shape_cast %30 : vector<1x32x96xbf16> to vector<32x96xbf16>
    %c0_18 = arith.constant 0 : index
    %c0_19 = arith.constant 0 : index
    %c0_20 = arith.constant 0 : index
    %32 = vector.load %arg8[%c0_18, %c0_19, %c0_20] : memref<8x1x96xf32, #tpu.memory_space<vmem>>, vector<1x1x96xf32>
    %33 = vector.shape_cast %32 : vector<1x1x96xf32> to vector<1x96xf32>
    %cst_21 = arith.constant dense<0.000000e+00> : vector<8xf32>
    %34 = vector.multi_reduction <add>, %3, %cst_21 [1] : vector<8x32xf32> to vector<8xf32>
    %35 = vector.shape_cast %34 : vector<8xf32> to vector<8x1xf32>
    %cst_22 = arith.constant 3.200000e+01 : f32
    %36 = vector.broadcast %cst_22 : f32 to vector<8x1xf32>
    %37 = arith.divf %35, %36 : vector<8x1xf32>
    %38 = vector.broadcast %37 : vector<8x1xf32> to vector<8x32xf32>
    %39 = arith.subf %3, %38 : vector<8x32xf32>
    %40 = arith.mulf %39, %39 : vector<8x32xf32>
    %cst_23 = arith.constant dense<0.000000e+00> : vector<8xf32>
    %41 = vector.multi_reduction <add>, %40, %cst_23 [1] : vector<8x32xf32> to vector<8xf32>
    %42 = vector.shape_cast %41 : vector<8xf32> to vector<8x1xf32>
    %cst_24 = arith.constant 3.200000e+01 : f32
    %43 = vector.broadcast %cst_24 : f32 to vector<8x1xf32>
    %44 = arith.divf %42, %43 : vector<8x1xf32>
    %45 = vector.broadcast %37 : vector<8x1xf32> to vector<8x32xf32>
    %46 = arith.subf %3, %45 : vector<8x32xf32>
    %cst_25 = arith.constant 9.99999997E-7 : f32
    %47 = vector.broadcast %cst_25 : f32 to vector<8x1xf32>
    %48 = arith.addf %44, %47 : vector<8x1xf32>
    %49 = math.rsqrt %48 : vector<8x1xf32>
    %50 = vector.broadcast %49 : vector<8x1xf32> to vector<8x32xf32>
    %51 = arith.mulf %46, %50 : vector<8x32xf32>
    %52 = vector.broadcast %5 : vector<1x32xf32> to vector<8x32xf32>
    %53 = arith.mulf %51, %52 : vector<8x32xf32>
    %54 = vector.broadcast %7 : vector<1x32xf32> to vector<8x32xf32>
    %55 = arith.addf %53, %54 : vector<8x32xf32>
    %56 = vector.extract_strided_slice %31 {offsets = [0, 0], sizes = [32, 32], strides = [1, 1]} : vector<32x96xbf16> to vector<32x32xbf16>
    %57 = arith.truncf %29 : vector<16x32xf32> to vector<16x32xbf16>
    %cst_26 = arith.constant dense<0.000000e+00> : vector<16x32xf32>
    %58 = tpu.matmul %57, %56, %cst_26 {dimension_numbers = #tpu.dot_dimension_numbers<[1], [0], [0], [1], [0, 0, 1, 1], [], []>} : vector<16x32xbf16>, vector<32x32xbf16>, vector<16x32xf32> -> vector<16x32xf32>
    %59 = vector.extract_strided_slice %33 {offsets = [0, 0], sizes = [1, 32], strides = [1, 1]} : vector<1x96xf32> to vector<1x32xf32>
    %60 = vector.broadcast %59 : vector<1x32xf32> to vector<16x32xf32>
    %61 = arith.addf %58, %60 : vector<16x32xf32>
    %62 = vector.extract_strided_slice %31 {offsets = [0, 32], sizes = [32, 64], strides = [1, 1]} : vector<32x96xbf16> to vector<32x64xbf16>
    %63 = arith.truncf %55 : vector<8x32xf32> to vector<8x32xbf16>
    %cst_27 = arith.constant dense<0.000000e+00> : vector<8x64xf32>
    %64 = tpu.matmul %63, %62, %cst_27 {dimension_numbers = #tpu.dot_dimension_numbers<[1], [0], [0], [1], [0, 0, 1, 1], [], []>} : vector<8x32xbf16>, vector<32x64xbf16>, vector<8x64xf32> -> vector<8x64xf32>
    %65 = vector.extract_strided_slice %33 {offsets = [0, 32], sizes = [1, 64], strides = [1, 1]} : vector<1x96xf32> to vector<1x64xf32>
    %66 = vector.broadcast %65 : vector<1x64xf32> to vector<8x64xf32>
    %67 = arith.addf %64, %66 : vector<8x64xf32>
    %68 = vector.extract_strided_slice %61 {offsets = [0, 0], sizes = [16, 8], strides = [1, 1]} : vector<16x32xf32> to vector<16x8xf32>
    %69 = vector.extract_strided_slice %61 {offsets = [0, 8], sizes = [16, 8], strides = [1, 1]} : vector<16x32xf32> to vector<16x8xf32>
    %70 = vector.extract_strided_slice %61 {offsets = [0, 16], sizes = [16, 8], strides = [1, 1]} : vector<16x32xf32> to vector<16x8xf32>
    %71 = vector.extract_strided_slice %61 {offsets = [0, 24], sizes = [16, 8], strides = [1, 1]} : vector<16x32xf32> to vector<16x8xf32>
    %72 = vector.shape_cast %68 : vector<16x8xf32> to vector<1x16x8xf32>
    %73 = vector.shape_cast %69 : vector<16x8xf32> to vector<1x16x8xf32>
    %74 = vector.shape_cast %70 : vector<16x8xf32> to vector<1x16x8xf32>
    %75 = vector.shape_cast %71 : vector<16x8xf32> to vector<1x16x8xf32>
    %76 = tpu.concatenate %72, %73, %74, %75 in 0 : vector<1x16x8xf32>, vector<1x16x8xf32>, vector<1x16x8xf32>, vector<1x16x8xf32> -> vector<4x16x8xf32>
    %77 = vector.extract_strided_slice %67 {offsets = [0, 0], sizes = [8, 8], strides = [1, 1]} : vector<8x64xf32> to vector<8x8xf32>
    %78 = vector.extract_strided_slice %67 {offsets = [0, 8], sizes = [8, 8], strides = [1, 1]} : vector<8x64xf32> to vector<8x8xf32>
    %79 = vector.extract_strided_slice %67 {offsets = [0, 16], sizes = [8, 8], strides = [1, 1]} : vector<8x64xf32> to vector<8x8xf32>
    %80 = vector.extract_strided_slice %67 {offsets = [0, 24], sizes = [8, 8], strides = [1, 1]} : vector<8x64xf32> to vector<8x8xf32>
    %81 = vector.shape_cast %77 : vector<8x8xf32> to vector<1x8x8xf32>
    %82 = vector.shape_cast %78 : vector<8x8xf32> to vector<1x8x8xf32>
    %83 = vector.shape_cast %79 : vector<8x8xf32> to vector<1x8x8xf32>
    %84 = vector.shape_cast %80 : vector<8x8xf32> to vector<1x8x8xf32>
    %85 = tpu.concatenate %81, %82, %83, %84 in 0 : vector<1x8x8xf32>, vector<1x8x8xf32>, vector<1x8x8xf32>, vector<1x8x8xf32> -> vector<4x8x8xf32>
    %86 = vector.extract_strided_slice %67 {offsets = [0, 32], sizes = [8, 8], strides = [1, 1]} : vector<8x64xf32> to vector<8x8xf32>
    %87 = vector.extract_strided_slice %67 {offsets = [0, 40], sizes = [8, 8], strides = [1, 1]} : vector<8x64xf32> to vector<8x8xf32>
    %88 = vector.extract_strided_slice %67 {offsets = [0, 48], sizes = [8, 8], strides = [1, 1]} : vector<8x64xf32> to vector<8x8xf32>
    %89 = vector.extract_strided_slice %67 {offsets = [0, 56], sizes = [8, 8], strides = [1, 1]} : vector<8x64xf32> to vector<8x8xf32>
    %90 = vector.shape_cast %86 : vector<8x8xf32> to vector<1x8x8xf32>
    %91 = vector.shape_cast %87 : vector<8x8xf32> to vector<1x8x8xf32>
    %92 = vector.shape_cast %88 : vector<8x8xf32> to vector<1x8x8xf32>
    %93 = vector.shape_cast %89 : vector<8x8xf32> to vector<1x8x8xf32>
    %94 = tpu.concatenate %90, %91, %92, %93 in 0 : vector<1x8x8xf32>, vector<1x8x8xf32>, vector<1x8x8xf32>, vector<1x8x8xf32> -> vector<4x8x8xf32>
    %95 = arith.truncf %76 : vector<4x16x8xf32> to vector<4x16x8xbf16>
    %96 = arith.truncf %85 : vector<4x8x8xf32> to vector<4x8x8xbf16>
    "tpu.trace_start"() <{level = 10 : i32, message = "hnd,hmd->hnm"}> : () -> ()
    %cst_28 = arith.constant dense<0.000000e+00> : vector<4x16x8xf32>
    %97 = tpu.matmul %95, %96, %cst_28 {dimension_numbers = #tpu.dot_dimension_numbers<[2], [2], [1], [1], [0, 0, 0, 1, 1, 1], [0], [0]>} : vector<4x16x8xbf16>, vector<4x8x8xbf16>, vector<4x16x8xf32> -> vector<4x16x8xf32>
    "tpu.trace_stop"() : () -> ()
    %cst_29 = arith.constant 0.353553385 : f32
    %98 = vector.broadcast %cst_29 : f32 to vector<4x16x8xf32>
    %99 = arith.mulf %97, %98 : vector<4x16x8xf32>
    %cst_30 = arith.constant dense<0xFF800000> : vector<4x16xf32>
    %100 = vector.multi_reduction <maximumf>, %99, %cst_30 [2] : vector<4x16x8xf32> to vector<4x16xf32>
    %101 = vector.shape_cast %100 : vector<4x16xf32> to vector<4x16x1xf32>
    %102 = vector.broadcast %101 : vector<4x16x1xf32> to vector<4x16x8xf32>
    %103 = arith.subf %99, %102 : vector<4x16x8xf32>
    %104 = math.exp %103 : vector<4x16x8xf32>
    %cst_31 = arith.constant dense<0.000000e+00> : vector<4x16xf32>
    %105 = vector.multi_reduction <add>, %104, %cst_31 [2] : vector<4x16x8xf32> to vector<4x16xf32>
    %106 = vector.shape_cast %105 : vector<4x16xf32> to vector<4x16x1xf32>
    %107 = tpu.reciprocal %106 {approx = true} : vector<4x16x1xf32> -> vector<4x16x1xf32>
    %108 = vector.broadcast %107 : vector<4x16x1xf32> to vector<4x16x8xf32>
    %109 = arith.mulf %104, %108 : vector<4x16x8xf32>
    %110 = arith.truncf %109 : vector<4x16x8xf32> to vector<4x16x8xbf16>
    %111 = arith.truncf %94 : vector<4x8x8xf32> to vector<4x8x8xbf16>
    "tpu.trace_start"() <{level = 10 : i32, message = "hnm,hmd->hnd"}> : () -> ()
    %cst_32 = arith.constant dense<0.000000e+00> : vector<4x16x8xf32>
    %112 = tpu.matmul %110, %111, %cst_32 {dimension_numbers = #tpu.dot_dimension_numbers<[2], [1], [1], [2], [0, 0, 0, 1, 1, 2], [0], [0]>} : vector<4x16x8xbf16>, vector<4x8x8xbf16>, vector<4x16x8xf32> -> vector<4x16x8xf32>
    "tpu.trace_stop"() : () -> ()
    %113 = vector.extract_strided_slice %112 {offsets = [0, 0, 0], sizes = [1, 16, 8], strides = [1, 1, 1]} : vector<4x16x8xf32> to vector<1x16x8xf32>
    %114 = vector.shape_cast %113 : vector<1x16x8xf32> to vector<16x8xf32>
    %115 = vector.extract_strided_slice %112 {offsets = [1, 0, 0], sizes = [1, 16, 8], strides = [1, 1, 1]} : vector<4x16x8xf32> to vector<1x16x8xf32>
    %116 = vector.shape_cast %115 : vector<1x16x8xf32> to vector<16x8xf32>
    %117 = vector.extract_strided_slice %112 {offsets = [2, 0, 0], sizes = [1, 16, 8], strides = [1, 1, 1]} : vector<4x16x8xf32> to vector<1x16x8xf32>
    %118 = vector.shape_cast %117 : vector<1x16x8xf32> to vector<16x8xf32>
    %119 = vector.extract_strided_slice %112 {offsets = [3, 0, 0], sizes = [1, 16, 8], strides = [1, 1, 1]} : vector<4x16x8xf32> to vector<1x16x8xf32>
    %120 = vector.shape_cast %119 : vector<1x16x8xf32> to vector<16x8xf32>
    %121 = tpu.concatenate %114, %116, %118, %120 in 1 : vector<16x8xf32>, vector<16x8xf32>, vector<16x8xf32>, vector<16x8xf32> -> vector<16x32xf32>
    %c0_33 = arith.constant 0 : index
    %c0_34 = arith.constant 0 : index
    %c0_35 = arith.constant 0 : index
    %122 = vector.load %arg9[%c0_33, %c0_34, %c0_35] : memref<8x32x32xbf16, #tpu.memory_space<vmem>>, vector<1x32x32xbf16>
    %123 = vector.shape_cast %122 : vector<1x32x32xbf16> to vector<32x32xbf16>
    %124 = arith.truncf %121 : vector<16x32xf32> to vector<16x32xbf16>
    %cst_36 = arith.constant dense<0.000000e+00> : vector<16x32xf32>
    %125 = tpu.matmul %124, %123, %cst_36 {dimension_numbers = #tpu.dot_dimension_numbers<[1], [0], [0], [1], [0, 0, 1, 1], [], []>} : vector<16x32xbf16>, vector<32x32xbf16>, vector<16x32xf32> -> vector<16x32xf32>
    %126 = arith.addf %1, %125 : vector<16x32xf32>
    %c0_37 = arith.constant 0 : index
    %c0_38 = arith.constant 0 : index
    %c0_39 = arith.constant 0 : index
    %127 = vector.load %arg10[%c0_37, %c0_38, %c0_39] : memref<8x1x32xf32, #tpu.memory_space<vmem>>, vector<1x1x32xf32>
    %128 = vector.shape_cast %127 : vector<1x1x32xf32> to vector<1x32xf32>
    %129 = vector.broadcast %128 : vector<1x32xf32> to vector<16x32xf32>
    %130 = arith.addf %126, %129 : vector<16x32xf32>
    %c0_40 = arith.constant 0 : index
    %c0_41 = arith.constant 0 : index
    %c0_42 = arith.constant 0 : index
    %131 = vector.load %arg11[%c0_40, %c0_41, %c0_42] : memref<8x1x32xf32, #tpu.memory_space<vmem>>, vector<1x1x32xf32>
    %132 = vector.shape_cast %131 : vector<1x1x32xf32> to vector<1x32xf32>
    %c0_43 = arith.constant 0 : index
    %c0_44 = arith.constant 0 : index
    %c0_45 = arith.constant 0 : index
    %133 = vector.load %arg12[%c0_43, %c0_44, %c0_45] : memref<8x1x32xf32, #tpu.memory_space<vmem>>, vector<1x1x32xf32>
    %134 = vector.shape_cast %133 : vector<1x1x32xf32> to vector<1x32xf32>
    %cst_46 = arith.constant dense<0.000000e+00> : vector<16xf32>
    %135 = vector.multi_reduction <add>, %130, %cst_46 [1] : vector<16x32xf32> to vector<16xf32>
    %136 = vector.shape_cast %135 : vector<16xf32> to vector<16x1xf32>
    %cst_47 = arith.constant 3.200000e+01 : f32
    %137 = vector.broadcast %cst_47 : f32 to vector<16x1xf32>
    %138 = arith.divf %136, %137 : vector<16x1xf32>
    %139 = vector.broadcast %138 : vector<16x1xf32> to vector<16x32xf32>
    %140 = arith.subf %130, %139 : vector<16x32xf32>
    %141 = arith.mulf %140, %140 : vector<16x32xf32>
    %cst_48 = arith.constant dense<0.000000e+00> : vector<16xf32>
    %142 = vector.multi_reduction <add>, %141, %cst_48 [1] : vector<16x32xf32> to vector<16xf32>
    %143 = vector.shape_cast %142 : vector<16xf32> to vector<16x1xf32>
    %cst_49 = arith.constant 3.200000e+01 : f32
    %144 = vector.broadcast %cst_49 : f32 to vector<16x1xf32>
    %145 = arith.divf %143, %144 : vector<16x1xf32>
    %146 = vector.broadcast %138 : vector<16x1xf32> to vector<16x32xf32>
    %147 = arith.subf %130, %146 : vector<16x32xf32>
    %cst_50 = arith.constant 9.99999997E-7 : f32
    %148 = vector.broadcast %cst_50 : f32 to vector<16x1xf32>
    %149 = arith.addf %145, %148 : vector<16x1xf32>
    %150 = math.rsqrt %149 : vector<16x1xf32>
    %151 = vector.broadcast %150 : vector<16x1xf32> to vector<16x32xf32>
    %152 = arith.mulf %147, %151 : vector<16x32xf32>
    %153 = vector.broadcast %132 : vector<1x32xf32> to vector<16x32xf32>
    %154 = arith.mulf %152, %153 : vector<16x32xf32>
    %155 = vector.broadcast %134 : vector<1x32xf32> to vector<16x32xf32>
    %156 = arith.addf %154, %155 : vector<16x32xf32>
    %c0_51 = arith.constant 0 : index
    %c0_52 = arith.constant 0 : index
    %c0_53 = arith.constant 0 : index
    %157 = vector.load %arg13[%c0_51, %c0_52, %c0_53] : memref<8x32x64xbf16, #tpu.memory_space<vmem>>, vector<1x32x64xbf16>
    %158 = vector.shape_cast %157 : vector<1x32x64xbf16> to vector<32x64xbf16>
    %159 = arith.truncf %156 : vector<16x32xf32> to vector<16x32xbf16>
    %cst_54 = arith.constant dense<0.000000e+00> : vector<16x64xf32>
    %160 = tpu.matmul %159, %158, %cst_54 {dimension_numbers = #tpu.dot_dimension_numbers<[1], [0], [0], [1], [0, 0, 1, 1], [], []>} : vector<16x32xbf16>, vector<32x64xbf16>, vector<16x64xf32> -> vector<16x64xf32>
    %c0_55 = arith.constant 0 : index
    %c0_56 = arith.constant 0 : index
    %c0_57 = arith.constant 0 : index
    %161 = vector.load %arg14[%c0_55, %c0_56, %c0_57] : memref<8x1x64xf32, #tpu.memory_space<vmem>>, vector<1x1x64xf32>
    %162 = vector.shape_cast %161 : vector<1x1x64xf32> to vector<1x64xf32>
    %163 = vector.broadcast %162 : vector<1x64xf32> to vector<16x64xf32>
    %164 = arith.addf %160, %163 : vector<16x64xf32>
    %cst_58 = arith.constant 5.000000e-01 : f32
    %165 = vector.broadcast %cst_58 : f32 to vector<16x64xf32>
    %166 = arith.mulf %165, %164 : vector<16x64xf32>
    %cst_59 = arith.constant 4.471500e-02 : f32
    %167 = vector.broadcast %cst_59 : f32 to vector<16x64xf32>
    %168 = arith.mulf %167, %164 : vector<16x64xf32>
    %169 = arith.mulf %168, %164 : vector<16x64xf32>
    %170 = arith.mulf %169, %164 : vector<16x64xf32>
    %171 = arith.addf %164, %170 : vector<16x64xf32>
    %cst_60 = arith.constant 0.797884583 : f32
    %172 = vector.broadcast %cst_60 : f32 to vector<16x64xf32>
    %173 = arith.mulf %172, %171 : vector<16x64xf32>
    %174 = math.tanh %173 : vector<16x64xf32>
    %cst_61 = arith.constant 1.000000e+00 : f32
    %175 = vector.broadcast %cst_61 : f32 to vector<16x64xf32>
    %176 = arith.addf %175, %174 : vector<16x64xf32>
    %177 = arith.mulf %166, %176 : vector<16x64xf32>
    %c0_62 = arith.constant 0 : index
    %c0_63 = arith.constant 0 : index
    %c0_64 = arith.constant 0 : index
    %178 = vector.load %arg15[%c0_62, %c0_63, %c0_64] : memref<8x64x32xbf16, #tpu.memory_space<vmem>>, vector<1x64x32xbf16>
    %179 = vector.shape_cast %178 : vector<1x64x32xbf16> to vector<64x32xbf16>
    %180 = arith.truncf %177 : vector<16x64xf32> to vector<16x64xbf16>
    %cst_65 = arith.constant dense<0.000000e+00> : vector<16x32xf32>
    %181 = tpu.matmul %180, %179, %cst_65 {dimension_numbers = #tpu.dot_dimension_numbers<[1], [0], [0], [1], [0, 0, 1, 1], [], []>} : vector<16x64xbf16>, vector<64x32xbf16>, vector<16x32xf32> -> vector<16x32xf32>
    %182 = arith.addf %130, %181 : vector<16x32xf32>
    %c0_66 = arith.constant 0 : index
    %c0_67 = arith.constant 0 : index
    %c0_68 = arith.constant 0 : index
    %183 = vector.load %arg16[%c0_66, %c0_67, %c0_68] : memref<8x1x32xf32, #tpu.memory_space<vmem>>, vector<1x1x32xf32>
    %184 = vector.shape_cast %183 : vector<1x1x32xf32> to vector<1x32xf32>
    %185 = vector.broadcast %184 : vector<1x32xf32> to vector<16x32xf32>
    %186 = arith.addf %182, %185 : vector<16x32xf32>
    %c1 = arith.constant 1 : index
    %c0_69 = arith.constant 0 : index
    %c0_70 = arith.constant 0 : index
    %187 = vector.load %arg5[%c1, %c0_69, %c0_70] : memref<8x1x32xf32, #tpu.memory_space<vmem>>, vector<1x1x32xf32>
    %188 = vector.shape_cast %187 : vector<1x1x32xf32> to vector<1x32xf32>
    %c1_71 = arith.constant 1 : index
    %c0_72 = arith.constant 0 : index
    %c0_73 = arith.constant 0 : index
    %189 = vector.load %arg6[%c1_71, %c0_72, %c0_73] : memref<8x1x32xf32, #tpu.memory_space<vmem>>, vector<1x1x32xf32>
    %190 = vector.shape_cast %189 : vector<1x1x32xf32> to vector<1x32xf32>
    %cst_74 = arith.constant dense<0.000000e+00> : vector<8xf32>
    %191 = vector.multi_reduction <add>, %3, %cst_74 [1] : vector<8x32xf32> to vector<8xf32>
    %192 = vector.shape_cast %191 : vector<8xf32> to vector<8x1xf32>
    %cst_75 = arith.constant 3.200000e+01 : f32
    %193 = vector.broadcast %cst_75 : f32 to vector<8x1xf32>
    %194 = arith.divf %192, %193 : vector<8x1xf32>
    %195 = vector.broadcast %194 : vector<8x1xf32> to vector<8x32xf32>
    %196 = arith.subf %3, %195 : vector<8x32xf32>
    %197 = arith.mulf %196, %196 : vector<8x32xf32>
    %cst_76 = arith.constant dense<0.000000e+00> : vector<8xf32>
    %198 = vector.multi_reduction <add>, %197, %cst_76 [1] : vector<8x32xf32> to vector<8xf32>
    %199 = vector.shape_cast %198 : vector<8xf32> to vector<8x1xf32>
    %cst_77 = arith.constant 3.200000e+01 : f32
    %200 = vector.broadcast %cst_77 : f32 to vector<8x1xf32>
    %201 = arith.divf %199, %200 : vector<8x1xf32>
    %202 = vector.broadcast %194 : vector<8x1xf32> to vector<8x32xf32>
    %203 = arith.subf %3, %202 : vector<8x32xf32>
    %cst_78 = arith.constant 9.99999997E-7 : f32
    %204 = vector.broadcast %cst_78 : f32 to vector<8x1xf32>
    %205 = arith.addf %201, %204 : vector<8x1xf32>
    %206 = math.rsqrt %205 : vector<8x1xf32>
    %207 = vector.broadcast %206 : vector<8x1xf32> to vector<8x32xf32>
    %208 = arith.mulf %203, %207 : vector<8x32xf32>
    %209 = vector.broadcast %188 : vector<1x32xf32> to vector<8x32xf32>
    %210 = arith.mulf %208, %209 : vector<8x32xf32>
    %211 = vector.broadcast %190 : vector<1x32xf32> to vector<8x32xf32>
    %212 = arith.addf %210, %211 : vector<8x32xf32>
    %c1_79 = arith.constant 1 : index
    %c0_80 = arith.constant 0 : index
    %c0_81 = arith.constant 0 : index
    %213 = vector.load %arg7[%c1_79, %c0_80, %c0_81] : memref<8x32x96xbf16, #tpu.memory_space<vmem>>, vector<1x32x96xbf16>
    %214 = vector.shape_cast %213 : vector<1x32x96xbf16> to vector<32x96xbf16>
    %c1_82 = arith.constant 1 : index
    %c0_83 = arith.constant 0 : index
    %c0_84 = arith.constant 0 : index
    %215 = vector.load %arg8[%c1_82, %c0_83, %c0_84] : memref<8x1x96xf32, #tpu.memory_space<vmem>>, vector<1x1x96xf32>
    %216 = vector.shape_cast %215 : vector<1x1x96xf32> to vector<1x96xf32>
    %cst_85 = arith.constant dense<0.000000e+00> : vector<16xf32>
    %217 = vector.multi_reduction <add>, %186, %cst_85 [1] : vector<16x32xf32> to vector<16xf32>
    %218 = vector.shape_cast %217 : vector<16xf32> to vector<16x1xf32>
    %cst_86 = arith.constant 3.200000e+01 : f32
    %219 = vector.broadcast %cst_86 : f32 to vector<16x1xf32>
    %220 = arith.divf %218, %219 : vector<16x1xf32>
    %221 = vector.broadcast %220 : vector<16x1xf32> to vector<16x32xf32>
    %222 = arith.subf %186, %221 : vector<16x32xf32>
    %223 = arith.mulf %222, %222 : vector<16x32xf32>
    %cst_87 = arith.constant dense<0.000000e+00> : vector<16xf32>
    %224 = vector.multi_reduction <add>, %223, %cst_87 [1] : vector<16x32xf32> to vector<16xf32>
    %225 = vector.shape_cast %224 : vector<16xf32> to vector<16x1xf32>
    %cst_88 = arith.constant 3.200000e+01 : f32
    %226 = vector.broadcast %cst_88 : f32 to vector<16x1xf32>
    %227 = arith.divf %225, %226 : vector<16x1xf32>
    %228 = vector.broadcast %220 : vector<16x1xf32> to vector<16x32xf32>
    %229 = arith.subf %186, %228 : vector<16x32xf32>
    %cst_89 = arith.constant 9.99999997E-7 : f32
    %230 = vector.broadcast %cst_89 : f32 to vector<16x1xf32>
    %231 = arith.addf %227, %230 : vector<16x1xf32>
    %232 = math.rsqrt %231 : vector<16x1xf32>
    %233 = vector.broadcast %232 : vector<16x1xf32> to vector<16x32xf32>
    %234 = arith.mulf %229, %233 : vector<16x32xf32>
    %235 = vector.broadcast %188 : vector<1x32xf32> to vector<16x32xf32>
    %236 = arith.mulf %234, %235 : vector<16x32xf32>
    %237 = vector.broadcast %190 : vector<1x32xf32> to vector<16x32xf32>
    %238 = arith.addf %236, %237 : vector<16x32xf32>
    %239 = vector.extract_strided_slice %214 {offsets = [0, 0], sizes = [32, 32], strides = [1, 1]} : vector<32x96xbf16> to vector<32x32xbf16>
    %240 = arith.truncf %212 : vector<8x32xf32> to vector<8x32xbf16>
    %cst_90 = arith.constant dense<0.000000e+00> : vector<8x32xf32>
    %241 = tpu.matmul %240, %239, %cst_90 {dimension_numbers = #tpu.dot_dimension_numbers<[1], [0], [0], [1], [0, 0, 1, 1], [], []>} : vector<8x32xbf16>, vector<32x32xbf16>, vector<8x32xf32> -> vector<8x32xf32>
    %242 = vector.extract_strided_slice %216 {offsets = [0, 0], sizes = [1, 32], strides = [1, 1]} : vector<1x96xf32> to vector<1x32xf32>
    %243 = vector.broadcast %242 : vector<1x32xf32> to vector<8x32xf32>
    %244 = arith.addf %241, %243 : vector<8x32xf32>
    %245 = vector.extract_strided_slice %214 {offsets = [0, 32], sizes = [32, 64], strides = [1, 1]} : vector<32x96xbf16> to vector<32x64xbf16>
    %246 = arith.truncf %238 : vector<16x32xf32> to vector<16x32xbf16>
    %cst_91 = arith.constant dense<0.000000e+00> : vector<16x64xf32>
    %247 = tpu.matmul %246, %245, %cst_91 {dimension_numbers = #tpu.dot_dimension_numbers<[1], [0], [0], [1], [0, 0, 1, 1], [], []>} : vector<16x32xbf16>, vector<32x64xbf16>, vector<16x64xf32> -> vector<16x64xf32>
    %248 = vector.extract_strided_slice %216 {offsets = [0, 32], sizes = [1, 64], strides = [1, 1]} : vector<1x96xf32> to vector<1x64xf32>
    %249 = vector.broadcast %248 : vector<1x64xf32> to vector<16x64xf32>
    %250 = arith.addf %247, %249 : vector<16x64xf32>
    %251 = vector.extract_strided_slice %244 {offsets = [0, 0], sizes = [8, 8], strides = [1, 1]} : vector<8x32xf32> to vector<8x8xf32>
    %252 = vector.extract_strided_slice %244 {offsets = [0, 8], sizes = [8, 8], strides = [1, 1]} : vector<8x32xf32> to vector<8x8xf32>
    %253 = vector.extract_strided_slice %244 {offsets = [0, 16], sizes = [8, 8], strides = [1, 1]} : vector<8x32xf32> to vector<8x8xf32>
    %254 = vector.extract_strided_slice %244 {offsets = [0, 24], sizes = [8, 8], strides = [1, 1]} : vector<8x32xf32> to vector<8x8xf32>
    %255 = vector.shape_cast %251 : vector<8x8xf32> to vector<1x8x8xf32>
    %256 = vector.shape_cast %252 : vector<8x8xf32> to vector<1x8x8xf32>
    %257 = vector.shape_cast %253 : vector<8x8xf32> to vector<1x8x8xf32>
    %258 = vector.shape_cast %254 : vector<8x8xf32> to vector<1x8x8xf32>
    %259 = tpu.concatenate %255, %256, %257, %258 in 0 : vector<1x8x8xf32>, vector<1x8x8xf32>, vector<1x8x8xf32>, vector<1x8x8xf32> -> vector<4x8x8xf32>
    %260 = vector.extract_strided_slice %250 {offsets = [0, 0], sizes = [16, 8], strides = [1, 1]} : vector<16x64xf32> to vector<16x8xf32>
    %261 = vector.extract_strided_slice %250 {offsets = [0, 8], sizes = [16, 8], strides = [1, 1]} : vector<16x64xf32> to vector<16x8xf32>
    %262 = vector.extract_strided_slice %250 {offsets = [0, 16], sizes = [16, 8], strides = [1, 1]} : vector<16x64xf32> to vector<16x8xf32>
    %263 = vector.extract_strided_slice %250 {offsets = [0, 24], sizes = [16, 8], strides = [1, 1]} : vector<16x64xf32> to vector<16x8xf32>
    %264 = vector.shape_cast %260 : vector<16x8xf32> to vector<1x16x8xf32>
    %265 = vector.shape_cast %261 : vector<16x8xf32> to vector<1x16x8xf32>
    %266 = vector.shape_cast %262 : vector<16x8xf32> to vector<1x16x8xf32>
    %267 = vector.shape_cast %263 : vector<16x8xf32> to vector<1x16x8xf32>
    %268 = tpu.concatenate %264, %265, %266, %267 in 0 : vector<1x16x8xf32>, vector<1x16x8xf32>, vector<1x16x8xf32>, vector<1x16x8xf32> -> vector<4x16x8xf32>
    %269 = vector.extract_strided_slice %250 {offsets = [0, 32], sizes = [16, 8], strides = [1, 1]} : vector<16x64xf32> to vector<16x8xf32>
    %270 = vector.extract_strided_slice %250 {offsets = [0, 40], sizes = [16, 8], strides = [1, 1]} : vector<16x64xf32> to vector<16x8xf32>
    %271 = vector.extract_strided_slice %250 {offsets = [0, 48], sizes = [16, 8], strides = [1, 1]} : vector<16x64xf32> to vector<16x8xf32>
    %272 = vector.extract_strided_slice %250 {offsets = [0, 56], sizes = [16, 8], strides = [1, 1]} : vector<16x64xf32> to vector<16x8xf32>
    %273 = vector.shape_cast %269 : vector<16x8xf32> to vector<1x16x8xf32>
    %274 = vector.shape_cast %270 : vector<16x8xf32> to vector<1x16x8xf32>
    %275 = vector.shape_cast %271 : vector<16x8xf32> to vector<1x16x8xf32>
    %276 = vector.shape_cast %272 : vector<16x8xf32> to vector<1x16x8xf32>
    %277 = tpu.concatenate %273, %274, %275, %276 in 0 : vector<1x16x8xf32>, vector<1x16x8xf32>, vector<1x16x8xf32>, vector<1x16x8xf32> -> vector<4x16x8xf32>
    %278 = arith.truncf %259 : vector<4x8x8xf32> to vector<4x8x8xbf16>
    %279 = arith.truncf %268 : vector<4x16x8xf32> to vector<4x16x8xbf16>
    "tpu.trace_start"() <{level = 10 : i32, message = "hnd,hmd->hnm"}> : () -> ()
    %cst_92 = arith.constant dense<0.000000e+00> : vector<4x8x16xf32>
    %280 = tpu.matmul %278, %279, %cst_92 {dimension_numbers = #tpu.dot_dimension_numbers<[2], [2], [1], [1], [0, 0, 0, 1, 1, 1], [0], [0]>} : vector<4x8x8xbf16>, vector<4x16x8xbf16>, vector<4x8x16xf32> -> vector<4x8x16xf32>
    "tpu.trace_stop"() : () -> ()
    %cst_93 = arith.constant 0.353553385 : f32
    %281 = vector.broadcast %cst_93 : f32 to vector<4x8x16xf32>
    %282 = arith.mulf %280, %281 : vector<4x8x16xf32>
    %cst_94 = arith.constant dense<0xFF800000> : vector<4x8xf32>
    %283 = vector.multi_reduction <maximumf>, %282, %cst_94 [2] : vector<4x8x16xf32> to vector<4x8xf32>
    %284 = vector.shape_cast %283 : vector<4x8xf32> to vector<4x8x1xf32>
    %285 = vector.broadcast %284 : vector<4x8x1xf32> to vector<4x8x16xf32>
    %286 = arith.subf %282, %285 : vector<4x8x16xf32>
    %287 = math.exp %286 : vector<4x8x16xf32>
    %cst_95 = arith.constant dense<0.000000e+00> : vector<4x8xf32>
    %288 = vector.multi_reduction <add>, %287, %cst_95 [2] : vector<4x8x16xf32> to vector<4x8xf32>
    %289 = vector.shape_cast %288 : vector<4x8xf32> to vector<4x8x1xf32>
    %290 = tpu.reciprocal %289 {approx = true} : vector<4x8x1xf32> -> vector<4x8x1xf32>
    %291 = vector.broadcast %290 : vector<4x8x1xf32> to vector<4x8x16xf32>
    %292 = arith.mulf %287, %291 : vector<4x8x16xf32>
    %293 = arith.truncf %292 : vector<4x8x16xf32> to vector<4x8x16xbf16>
    %294 = arith.truncf %277 : vector<4x16x8xf32> to vector<4x16x8xbf16>
    "tpu.trace_start"() <{level = 10 : i32, message = "hnm,hmd->hnd"}> : () -> ()
    %cst_96 = arith.constant dense<0.000000e+00> : vector<4x8x8xf32>
    %295 = tpu.matmul %293, %294, %cst_96 {dimension_numbers = #tpu.dot_dimension_numbers<[2], [1], [1], [2], [0, 0, 0, 1, 1, 2], [0], [0]>} : vector<4x8x16xbf16>, vector<4x16x8xbf16>, vector<4x8x8xf32> -> vector<4x8x8xf32>
    "tpu.trace_stop"() : () -> ()
    %296 = vector.extract_strided_slice %295 {offsets = [0, 0, 0], sizes = [1, 8, 8], strides = [1, 1, 1]} : vector<4x8x8xf32> to vector<1x8x8xf32>
    %297 = vector.shape_cast %296 : vector<1x8x8xf32> to vector<8x8xf32>
    %298 = vector.extract_strided_slice %295 {offsets = [1, 0, 0], sizes = [1, 8, 8], strides = [1, 1, 1]} : vector<4x8x8xf32> to vector<1x8x8xf32>
    %299 = vector.shape_cast %298 : vector<1x8x8xf32> to vector<8x8xf32>
    %300 = vector.extract_strided_slice %295 {offsets = [2, 0, 0], sizes = [1, 8, 8], strides = [1, 1, 1]} : vector<4x8x8xf32> to vector<1x8x8xf32>
    %301 = vector.shape_cast %300 : vector<1x8x8xf32> to vector<8x8xf32>
    %302 = vector.extract_strided_slice %295 {offsets = [3, 0, 0], sizes = [1, 8, 8], strides = [1, 1, 1]} : vector<4x8x8xf32> to vector<1x8x8xf32>
    %303 = vector.shape_cast %302 : vector<1x8x8xf32> to vector<8x8xf32>
    %304 = tpu.concatenate %297, %299, %301, %303 in 1 : vector<8x8xf32>, vector<8x8xf32>, vector<8x8xf32>, vector<8x8xf32> -> vector<8x32xf32>
    %c1_97 = arith.constant 1 : index
    %c0_98 = arith.constant 0 : index
    %c0_99 = arith.constant 0 : index
    %305 = vector.load %arg9[%c1_97, %c0_98, %c0_99] : memref<8x32x32xbf16, #tpu.memory_space<vmem>>, vector<1x32x32xbf16>
    %306 = vector.shape_cast %305 : vector<1x32x32xbf16> to vector<32x32xbf16>
    %307 = arith.truncf %304 : vector<8x32xf32> to vector<8x32xbf16>
    %cst_100 = arith.constant dense<0.000000e+00> : vector<8x32xf32>
    %308 = tpu.matmul %307, %306, %cst_100 {dimension_numbers = #tpu.dot_dimension_numbers<[1], [0], [0], [1], [0, 0, 1, 1], [], []>} : vector<8x32xbf16>, vector<32x32xbf16>, vector<8x32xf32> -> vector<8x32xf32>
    %309 = arith.addf %3, %308 : vector<8x32xf32>
    %c1_101 = arith.constant 1 : index
    %c0_102 = arith.constant 0 : index
    %c0_103 = arith.constant 0 : index
    %310 = vector.load %arg10[%c1_101, %c0_102, %c0_103] : memref<8x1x32xf32, #tpu.memory_space<vmem>>, vector<1x1x32xf32>
    %311 = vector.shape_cast %310 : vector<1x1x32xf32> to vector<1x32xf32>
    %312 = vector.broadcast %311 : vector<1x32xf32> to vector<8x32xf32>
    %313 = arith.addf %309, %312 : vector<8x32xf32>
    %c1_104 = arith.constant 1 : index
    %c0_105 = arith.constant 0 : index
    %c0_106 = arith.constant 0 : index
    %314 = vector.load %arg11[%c1_104, %c0_105, %c0_106] : memref<8x1x32xf32, #tpu.memory_space<vmem>>, vector<1x1x32xf32>
    %315 = vector.shape_cast %314 : vector<1x1x32xf32> to vector<1x32xf32>
    %c1_107 = arith.constant 1 : index
    %c0_108 = arith.constant 0 : index
    %c0_109 = arith.constant 0 : index
    %316 = vector.load %arg12[%c1_107, %c0_108, %c0_109] : memref<8x1x32xf32, #tpu.memory_space<vmem>>, vector<1x1x32xf32>
    %317 = vector.shape_cast %316 : vector<1x1x32xf32> to vector<1x32xf32>
    %cst_110 = arith.constant dense<0.000000e+00> : vector<8xf32>
    %318 = vector.multi_reduction <add>, %313, %cst_110 [1] : vector<8x32xf32> to vector<8xf32>
    %319 = vector.shape_cast %318 : vector<8xf32> to vector<8x1xf32>
    %cst_111 = arith.constant 3.200000e+01 : f32
    %320 = vector.broadcast %cst_111 : f32 to vector<8x1xf32>
    %321 = arith.divf %319, %320 : vector<8x1xf32>
    %322 = vector.broadcast %321 : vector<8x1xf32> to vector<8x32xf32>
    %323 = arith.subf %313, %322 : vector<8x32xf32>
    %324 = arith.mulf %323, %323 : vector<8x32xf32>
    %cst_112 = arith.constant dense<0.000000e+00> : vector<8xf32>
    %325 = vector.multi_reduction <add>, %324, %cst_112 [1] : vector<8x32xf32> to vector<8xf32>
    %326 = vector.shape_cast %325 : vector<8xf32> to vector<8x1xf32>
    %cst_113 = arith.constant 3.200000e+01 : f32
    %327 = vector.broadcast %cst_113 : f32 to vector<8x1xf32>
    %328 = arith.divf %326, %327 : vector<8x1xf32>
    %329 = vector.broadcast %321 : vector<8x1xf32> to vector<8x32xf32>
    %330 = arith.subf %313, %329 : vector<8x32xf32>
    %cst_114 = arith.constant 9.99999997E-7 : f32
    %331 = vector.broadcast %cst_114 : f32 to vector<8x1xf32>
    %332 = arith.addf %328, %331 : vector<8x1xf32>
    %333 = math.rsqrt %332 : vector<8x1xf32>
    %334 = vector.broadcast %333 : vector<8x1xf32> to vector<8x32xf32>
    %335 = arith.mulf %330, %334 : vector<8x32xf32>
    %336 = vector.broadcast %315 : vector<1x32xf32> to vector<8x32xf32>
    %337 = arith.mulf %335, %336 : vector<8x32xf32>
    %338 = vector.broadcast %317 : vector<1x32xf32> to vector<8x32xf32>
    %339 = arith.addf %337, %338 : vector<8x32xf32>
    %c1_115 = arith.constant 1 : index
    %c0_116 = arith.constant 0 : index
    %c0_117 = arith.constant 0 : index
    %340 = vector.load %arg13[%c1_115, %c0_116, %c0_117] : memref<8x32x64xbf16, #tpu.memory_space<vmem>>, vector<1x32x64xbf16>
    %341 = vector.shape_cast %340 : vector<1x32x64xbf16> to vector<32x64xbf16>
    %342 = arith.truncf %339 : vector<8x32xf32> to vector<8x32xbf16>
    %cst_118 = arith.constant dense<0.000000e+00> : vector<8x64xf32>
    %343 = tpu.matmul %342, %341, %cst_118 {dimension_numbers = #tpu.dot_dimension_numbers<[1], [0], [0], [1], [0, 0, 1, 1], [], []>} : vector<8x32xbf16>, vector<32x64xbf16>, vector<8x64xf32> -> vector<8x64xf32>
    %c1_119 = arith.constant 1 : index
    %c0_120 = arith.constant 0 : index
    %c0_121 = arith.constant 0 : index
    %344 = vector.load %arg14[%c1_119, %c0_120, %c0_121] : memref<8x1x64xf32, #tpu.memory_space<vmem>>, vector<1x1x64xf32>
    %345 = vector.shape_cast %344 : vector<1x1x64xf32> to vector<1x64xf32>
    %346 = vector.broadcast %345 : vector<1x64xf32> to vector<8x64xf32>
    %347 = arith.addf %343, %346 : vector<8x64xf32>
    %cst_122 = arith.constant 5.000000e-01 : f32
    %348 = vector.broadcast %cst_122 : f32 to vector<8x64xf32>
    %349 = arith.mulf %348, %347 : vector<8x64xf32>
    %cst_123 = arith.constant 4.471500e-02 : f32
    %350 = vector.broadcast %cst_123 : f32 to vector<8x64xf32>
    %351 = arith.mulf %350, %347 : vector<8x64xf32>
    %352 = arith.mulf %351, %347 : vector<8x64xf32>
    %353 = arith.mulf %352, %347 : vector<8x64xf32>
    %354 = arith.addf %347, %353 : vector<8x64xf32>
    %cst_124 = arith.constant 0.797884583 : f32
    %355 = vector.broadcast %cst_124 : f32 to vector<8x64xf32>
    %356 = arith.mulf %355, %354 : vector<8x64xf32>
    %357 = math.tanh %356 : vector<8x64xf32>
    %cst_125 = arith.constant 1.000000e+00 : f32
    %358 = vector.broadcast %cst_125 : f32 to vector<8x64xf32>
    %359 = arith.addf %358, %357 : vector<8x64xf32>
    %360 = arith.mulf %349, %359 : vector<8x64xf32>
    %c1_126 = arith.constant 1 : index
    %c0_127 = arith.constant 0 : index
    %c0_128 = arith.constant 0 : index
    %361 = vector.load %arg15[%c1_126, %c0_127, %c0_128] : memref<8x64x32xbf16, #tpu.memory_space<vmem>>, vector<1x64x32xbf16>
    %362 = vector.shape_cast %361 : vector<1x64x32xbf16> to vector<64x32xbf16>
    %363 = arith.truncf %360 : vector<8x64xf32> to vector<8x64xbf16>
    %cst_129 = arith.constant dense<0.000000e+00> : vector<8x32xf32>
    %364 = tpu.matmul %363, %362, %cst_129 {dimension_numbers = #tpu.dot_dimension_numbers<[1], [0], [0], [1], [0, 0, 1, 1], [], []>} : vector<8x64xbf16>, vector<64x32xbf16>, vector<8x32xf32> -> vector<8x32xf32>
    %365 = arith.addf %313, %364 : vector<8x32xf32>
    %c1_130 = arith.constant 1 : index
    %c0_131 = arith.constant 0 : index
    %c0_132 = arith.constant 0 : index
    %366 = vector.load %arg16[%c1_130, %c0_131, %c0_132] : memref<8x1x32xf32, #tpu.memory_space<vmem>>, vector<1x1x32xf32>
    %367 = vector.shape_cast %366 : vector<1x1x32xf32> to vector<1x32xf32>
    %368 = vector.broadcast %367 : vector<1x32xf32> to vector<8x32xf32>
    %369 = arith.addf %365, %368 : vector<8x32xf32>
    %c2 = arith.constant 2 : index
    %c0_133 = arith.constant 0 : index
    %c0_134 = arith.constant 0 : index
    %370 = vector.load %arg5[%c2, %c0_133, %c0_134] : memref<8x1x32xf32, #tpu.memory_space<vmem>>, vector<1x1x32xf32>
    %371 = vector.shape_cast %370 : vector<1x1x32xf32> to vector<1x32xf32>
    %c2_135 = arith.constant 2 : index
    %c0_136 = arith.constant 0 : index
    %c0_137 = arith.constant 0 : index
    %372 = vector.load %arg6[%c2_135, %c0_136, %c0_137] : memref<8x1x32xf32, #tpu.memory_space<vmem>>, vector<1x1x32xf32>
    %373 = vector.shape_cast %372 : vector<1x1x32xf32> to vector<1x32xf32>
    %cst_138 = arith.constant dense<0.000000e+00> : vector<16xf32>
    %374 = vector.multi_reduction <add>, %186, %cst_138 [1] : vector<16x32xf32> to vector<16xf32>
    %375 = vector.shape_cast %374 : vector<16xf32> to vector<16x1xf32>
    %cst_139 = arith.constant 3.200000e+01 : f32
    %376 = vector.broadcast %cst_139 : f32 to vector<16x1xf32>
    %377 = arith.divf %375, %376 : vector<16x1xf32>
    %378 = vector.broadcast %377 : vector<16x1xf32> to vector<16x32xf32>
    %379 = arith.subf %186, %378 : vector<16x32xf32>
    %380 = arith.mulf %379, %379 : vector<16x32xf32>
    %cst_140 = arith.constant dense<0.000000e+00> : vector<16xf32>
    %381 = vector.multi_reduction <add>, %380, %cst_140 [1] : vector<16x32xf32> to vector<16xf32>
    %382 = vector.shape_cast %381 : vector<16xf32> to vector<16x1xf32>
    %cst_141 = arith.constant 3.200000e+01 : f32
    %383 = vector.broadcast %cst_141 : f32 to vector<16x1xf32>
    %384 = arith.divf %382, %383 : vector<16x1xf32>
    %385 = vector.broadcast %377 : vector<16x1xf32> to vector<16x32xf32>
    %386 = arith.subf %186, %385 : vector<16x32xf32>
    %cst_142 = arith.constant 9.99999997E-7 : f32
    %387 = vector.broadcast %cst_142 : f32 to vector<16x1xf32>
    %388 = arith.addf %384, %387 : vector<16x1xf32>
    %389 = math.rsqrt %388 : vector<16x1xf32>
    %390 = vector.broadcast %389 : vector<16x1xf32> to vector<16x32xf32>
    %391 = arith.mulf %386, %390 : vector<16x32xf32>
    %392 = vector.broadcast %371 : vector<1x32xf32> to vector<16x32xf32>
    %393 = arith.mulf %391, %392 : vector<16x32xf32>
    %394 = vector.broadcast %373 : vector<1x32xf32> to vector<16x32xf32>
    %395 = arith.addf %393, %394 : vector<16x32xf32>
    %c2_143 = arith.constant 2 : index
    %c0_144 = arith.constant 0 : index
    %c0_145 = arith.constant 0 : index
    %396 = vector.load %arg7[%c2_143, %c0_144, %c0_145] : memref<8x32x96xbf16, #tpu.memory_space<vmem>>, vector<1x32x96xbf16>
    %397 = vector.shape_cast %396 : vector<1x32x96xbf16> to vector<32x96xbf16>
    %c2_146 = arith.constant 2 : index
    %c0_147 = arith.constant 0 : index
    %c0_148 = arith.constant 0 : index
    %398 = vector.load %arg8[%c2_146, %c0_147, %c0_148] : memref<8x1x96xf32, #tpu.memory_space<vmem>>, vector<1x1x96xf32>
    %399 = vector.shape_cast %398 : vector<1x1x96xf32> to vector<1x96xf32>
    %400 = arith.truncf %395 : vector<16x32xf32> to vector<16x32xbf16>
    %cst_149 = arith.constant dense<0.000000e+00> : vector<16x96xf32>
    %401 = tpu.matmul %400, %397, %cst_149 {dimension_numbers = #tpu.dot_dimension_numbers<[1], [0], [0], [1], [0, 0, 1, 1], [], []>} : vector<16x32xbf16>, vector<32x96xbf16>, vector<16x96xf32> -> vector<16x96xf32>
    %402 = vector.broadcast %399 : vector<1x96xf32> to vector<16x96xf32>
    %403 = arith.addf %401, %402 : vector<16x96xf32>
    %404 = vector.extract_strided_slice %403 {offsets = [0, 0], sizes = [16, 32], strides = [1, 1]} : vector<16x96xf32> to vector<16x32xf32>
    %405 = vector.extract_strided_slice %403 {offsets = [0, 32], sizes = [16, 64], strides = [1, 1]} : vector<16x96xf32> to vector<16x64xf32>
    %406 = vector.extract_strided_slice %404 {offsets = [0, 0], sizes = [16, 8], strides = [1, 1]} : vector<16x32xf32> to vector<16x8xf32>
    %407 = vector.extract_strided_slice %404 {offsets = [0, 8], sizes = [16, 8], strides = [1, 1]} : vector<16x32xf32> to vector<16x8xf32>
    %408 = vector.extract_strided_slice %404 {offsets = [0, 16], sizes = [16, 8], strides = [1, 1]} : vector<16x32xf32> to vector<16x8xf32>
    %409 = vector.extract_strided_slice %404 {offsets = [0, 24], sizes = [16, 8], strides = [1, 1]} : vector<16x32xf32> to vector<16x8xf32>
    %410 = vector.shape_cast %406 : vector<16x8xf32> to vector<1x16x8xf32>
    %411 = vector.shape_cast %407 : vector<16x8xf32> to vector<1x16x8xf32>
    %412 = vector.shape_cast %408 : vector<16x8xf32> to vector<1x16x8xf32>
    %413 = vector.shape_cast %409 : vector<16x8xf32> to vector<1x16x8xf32>
    %414 = tpu.concatenate %410, %411, %412, %413 in 0 : vector<1x16x8xf32>, vector<1x16x8xf32>, vector<1x16x8xf32>, vector<1x16x8xf32> -> vector<4x16x8xf32>
    %415 = vector.extract_strided_slice %405 {offsets = [0, 0], sizes = [16, 8], strides = [1, 1]} : vector<16x64xf32> to vector<16x8xf32>
    %416 = vector.extract_strided_slice %405 {offsets = [0, 8], sizes = [16, 8], strides = [1, 1]} : vector<16x64xf32> to vector<16x8xf32>
    %417 = vector.extract_strided_slice %405 {offsets = [0, 16], sizes = [16, 8], strides = [1, 1]} : vector<16x64xf32> to vector<16x8xf32>
    %418 = vector.extract_strided_slice %405 {offsets = [0, 24], sizes = [16, 8], strides = [1, 1]} : vector<16x64xf32> to vector<16x8xf32>
    %419 = vector.shape_cast %415 : vector<16x8xf32> to vector<1x16x8xf32>
    %420 = vector.shape_cast %416 : vector<16x8xf32> to vector<1x16x8xf32>
    %421 = vector.shape_cast %417 : vector<16x8xf32> to vector<1x16x8xf32>
    %422 = vector.shape_cast %418 : vector<16x8xf32> to vector<1x16x8xf32>
    %423 = tpu.concatenate %419, %420, %421, %422 in 0 : vector<1x16x8xf32>, vector<1x16x8xf32>, vector<1x16x8xf32>, vector<1x16x8xf32> -> vector<4x16x8xf32>
    %424 = vector.extract_strided_slice %405 {offsets = [0, 32], sizes = [16, 8], strides = [1, 1]} : vector<16x64xf32> to vector<16x8xf32>
    %425 = vector.extract_strided_slice %405 {offsets = [0, 40], sizes = [16, 8], strides = [1, 1]} : vector<16x64xf32> to vector<16x8xf32>
    %426 = vector.extract_strided_slice %405 {offsets = [0, 48], sizes = [16, 8], strides = [1, 1]} : vector<16x64xf32> to vector<16x8xf32>
    %427 = vector.extract_strided_slice %405 {offsets = [0, 56], sizes = [16, 8], strides = [1, 1]} : vector<16x64xf32> to vector<16x8xf32>
    %428 = vector.shape_cast %424 : vector<16x8xf32> to vector<1x16x8xf32>
    %429 = vector.shape_cast %425 : vector<16x8xf32> to vector<1x16x8xf32>
    %430 = vector.shape_cast %426 : vector<16x8xf32> to vector<1x16x8xf32>
    %431 = vector.shape_cast %427 : vector<16x8xf32> to vector<1x16x8xf32>
    %432 = tpu.concatenate %428, %429, %430, %431 in 0 : vector<1x16x8xf32>, vector<1x16x8xf32>, vector<1x16x8xf32>, vector<1x16x8xf32> -> vector<4x16x8xf32>
    %433 = arith.truncf %414 : vector<4x16x8xf32> to vector<4x16x8xbf16>
    %434 = arith.truncf %423 : vector<4x16x8xf32> to vector<4x16x8xbf16>
    "tpu.trace_start"() <{level = 10 : i32, message = "hnd,hmd->hnm"}> : () -> ()
    %cst_150 = arith.constant dense<0.000000e+00> : vector<4x16x16xf32>
    %435 = tpu.matmul %433, %434, %cst_150 {dimension_numbers = #tpu.dot_dimension_numbers<[2], [2], [1], [1], [0, 0, 0, 1, 1, 1], [0], [0]>} : vector<4x16x8xbf16>, vector<4x16x8xbf16>, vector<4x16x16xf32> -> vector<4x16x16xf32>
    "tpu.trace_stop"() : () -> ()
    %cst_151 = arith.constant 0.353553385 : f32
    %436 = vector.broadcast %cst_151 : f32 to vector<4x16x16xf32>
    %437 = arith.mulf %435, %436 : vector<4x16x16xf32>
    %cst_152 = arith.constant dense<0xFF800000> : vector<4x16xf32>
    %438 = vector.multi_reduction <maximumf>, %437, %cst_152 [2] : vector<4x16x16xf32> to vector<4x16xf32>
    %439 = vector.shape_cast %438 : vector<4x16xf32> to vector<4x16x1xf32>
    %440 = vector.broadcast %439 : vector<4x16x1xf32> to vector<4x16x16xf32>
    %441 = arith.subf %437, %440 : vector<4x16x16xf32>
    %442 = math.exp %441 : vector<4x16x16xf32>
    %cst_153 = arith.constant dense<0.000000e+00> : vector<4x16xf32>
    %443 = vector.multi_reduction <add>, %442, %cst_153 [2] : vector<4x16x16xf32> to vector<4x16xf32>
    %444 = vector.shape_cast %443 : vector<4x16xf32> to vector<4x16x1xf32>
    %445 = tpu.reciprocal %444 {approx = true} : vector<4x16x1xf32> -> vector<4x16x1xf32>
    %446 = vector.broadcast %445 : vector<4x16x1xf32> to vector<4x16x16xf32>
    %447 = arith.mulf %442, %446 : vector<4x16x16xf32>
    %448 = arith.truncf %447 : vector<4x16x16xf32> to vector<4x16x16xbf16>
    %449 = arith.truncf %432 : vector<4x16x8xf32> to vector<4x16x8xbf16>
    "tpu.trace_start"() <{level = 10 : i32, message = "hnm,hmd->hnd"}> : () -> ()
    %cst_154 = arith.constant dense<0.000000e+00> : vector<4x16x8xf32>
    %450 = tpu.matmul %448, %449, %cst_154 {dimension_numbers = #tpu.dot_dimension_numbers<[2], [1], [1], [2], [0, 0, 0, 1, 1, 2], [0], [0]>} : vector<4x16x16xbf16>, vector<4x16x8xbf16>, vector<4x16x8xf32> -> vector<4x16x8xf32>
    "tpu.trace_stop"() : () -> ()
    %451 = vector.extract_strided_slice %450 {offsets = [0, 0, 0], sizes = [1, 16, 8], strides = [1, 1, 1]} : vector<4x16x8xf32> to vector<1x16x8xf32>
    %452 = vector.shape_cast %451 : vector<1x16x8xf32> to vector<16x8xf32>
    %453 = vector.extract_strided_slice %450 {offsets = [1, 0, 0], sizes = [1, 16, 8], strides = [1, 1, 1]} : vector<4x16x8xf32> to vector<1x16x8xf32>
    %454 = vector.shape_cast %453 : vector<1x16x8xf32> to vector<16x8xf32>
    %455 = vector.extract_strided_slice %450 {offsets = [2, 0, 0], sizes = [1, 16, 8], strides = [1, 1, 1]} : vector<4x16x8xf32> to vector<1x16x8xf32>
    %456 = vector.shape_cast %455 : vector<1x16x8xf32> to vector<16x8xf32>
    %457 = vector.extract_strided_slice %450 {offsets = [3, 0, 0], sizes = [1, 16, 8], strides = [1, 1, 1]} : vector<4x16x8xf32> to vector<1x16x8xf32>
    %458 = vector.shape_cast %457 : vector<1x16x8xf32> to vector<16x8xf32>
    %459 = tpu.concatenate %452, %454, %456, %458 in 1 : vector<16x8xf32>, vector<16x8xf32>, vector<16x8xf32>, vector<16x8xf32> -> vector<16x32xf32>
    %c2_155 = arith.constant 2 : index
    %c0_156 = arith.constant 0 : index
    %c0_157 = arith.constant 0 : index
    %460 = vector.load %arg9[%c2_155, %c0_156, %c0_157] : memref<8x32x32xbf16, #tpu.memory_space<vmem>>, vector<1x32x32xbf16>
    %461 = vector.shape_cast %460 : vector<1x32x32xbf16> to vector<32x32xbf16>
    %462 = arith.truncf %459 : vector<16x32xf32> to vector<16x32xbf16>
    %cst_158 = arith.constant dense<0.000000e+00> : vector<16x32xf32>
    %463 = tpu.matmul %462, %461, %cst_158 {dimension_numbers = #tpu.dot_dimension_numbers<[1], [0], [0], [1], [0, 0, 1, 1], [], []>} : vector<16x32xbf16>, vector<32x32xbf16>, vector<16x32xf32> -> vector<16x32xf32>
    %464 = arith.addf %186, %463 : vector<16x32xf32>
    %c2_159 = arith.constant 2 : index
    %c0_160 = arith.constant 0 : index
    %c0_161 = arith.constant 0 : index
    %465 = vector.load %arg10[%c2_159, %c0_160, %c0_161] : memref<8x1x32xf32, #tpu.memory_space<vmem>>, vector<1x1x32xf32>
    %466 = vector.shape_cast %465 : vector<1x1x32xf32> to vector<1x32xf32>
    %467 = vector.broadcast %466 : vector<1x32xf32> to vector<16x32xf32>
    %468 = arith.addf %464, %467 : vector<16x32xf32>
    %c2_162 = arith.constant 2 : index
    %c0_163 = arith.constant 0 : index
    %c0_164 = arith.constant 0 : index
    %469 = vector.load %arg11[%c2_162, %c0_163, %c0_164] : memref<8x1x32xf32, #tpu.memory_space<vmem>>, vector<1x1x32xf32>
    %470 = vector.shape_cast %469 : vector<1x1x32xf32> to vector<1x32xf32>
    %c2_165 = arith.constant 2 : index
    %c0_166 = arith.constant 0 : index
    %c0_167 = arith.constant 0 : index
    %471 = vector.load %arg12[%c2_165, %c0_166, %c0_167] : memref<8x1x32xf32, #tpu.memory_space<vmem>>, vector<1x1x32xf32>
    %472 = vector.shape_cast %471 : vector<1x1x32xf32> to vector<1x32xf32>
    %cst_168 = arith.constant dense<0.000000e+00> : vector<16xf32>
    %473 = vector.multi_reduction <add>, %468, %cst_168 [1] : vector<16x32xf32> to vector<16xf32>
    %474 = vector.shape_cast %473 : vector<16xf32> to vector<16x1xf32>
    %cst_169 = arith.constant 3.200000e+01 : f32
    %475 = vector.broadcast %cst_169 : f32 to vector<16x1xf32>
    %476 = arith.divf %474, %475 : vector<16x1xf32>
    %477 = vector.broadcast %476 : vector<16x1xf32> to vector<16x32xf32>
    %478 = arith.subf %468, %477 : vector<16x32xf32>
    %479 = arith.mulf %478, %478 : vector<16x32xf32>
    %cst_170 = arith.constant dense<0.000000e+00> : vector<16xf32>
    %480 = vector.multi_reduction <add>, %479, %cst_170 [1] : vector<16x32xf32> to vector<16xf32>
    %481 = vector.shape_cast %480 : vector<16xf32> to vector<16x1xf32>
    %cst_171 = arith.constant 3.200000e+01 : f32
    %482 = vector.broadcast %cst_171 : f32 to vector<16x1xf32>
    %483 = arith.divf %481, %482 : vector<16x1xf32>
    %484 = vector.broadcast %476 : vector<16x1xf32> to vector<16x32xf32>
    %485 = arith.subf %468, %484 : vector<16x32xf32>
    %cst_172 = arith.constant 9.99999997E-7 : f32
    %486 = vector.broadcast %cst_172 : f32 to vector<16x1xf32>
    %487 = arith.addf %483, %486 : vector<16x1xf32>
    %488 = math.rsqrt %487 : vector<16x1xf32>
    %489 = vector.broadcast %488 : vector<16x1xf32> to vector<16x32xf32>
    %490 = arith.mulf %485, %489 : vector<16x32xf32>
    %491 = vector.broadcast %470 : vector<1x32xf32> to vector<16x32xf32>
    %492 = arith.mulf %490, %491 : vector<16x32xf32>
    %493 = vector.broadcast %472 : vector<1x32xf32> to vector<16x32xf32>
    %494 = arith.addf %492, %493 : vector<16x32xf32>
    %c2_173 = arith.constant 2 : index
    %c0_174 = arith.constant 0 : index
    %c0_175 = arith.constant 0 : index
    %495 = vector.load %arg13[%c2_173, %c0_174, %c0_175] : memref<8x32x64xbf16, #tpu.memory_space<vmem>>, vector<1x32x64xbf16>
    %496 = vector.shape_cast %495 : vector<1x32x64xbf16> to vector<32x64xbf16>
    %497 = arith.truncf %494 : vector<16x32xf32> to vector<16x32xbf16>
    %cst_176 = arith.constant dense<0.000000e+00> : vector<16x64xf32>
    %498 = tpu.matmul %497, %496, %cst_176 {dimension_numbers = #tpu.dot_dimension_numbers<[1], [0], [0], [1], [0, 0, 1, 1], [], []>} : vector<16x32xbf16>, vector<32x64xbf16>, vector<16x64xf32> -> vector<16x64xf32>
    %c2_177 = arith.constant 2 : index
    %c0_178 = arith.constant 0 : index
    %c0_179 = arith.constant 0 : index
    %499 = vector.load %arg14[%c2_177, %c0_178, %c0_179] : memref<8x1x64xf32, #tpu.memory_space<vmem>>, vector<1x1x64xf32>
    %500 = vector.shape_cast %499 : vector<1x1x64xf32> to vector<1x64xf32>
    %501 = vector.broadcast %500 : vector<1x64xf32> to vector<16x64xf32>
    %502 = arith.addf %498, %501 : vector<16x64xf32>
    %cst_180 = arith.constant 5.000000e-01 : f32
    %503 = vector.broadcast %cst_180 : f32 to vector<16x64xf32>
    %504 = arith.mulf %503, %502 : vector<16x64xf32>
    %cst_181 = arith.constant 4.471500e-02 : f32
    %505 = vector.broadcast %cst_181 : f32 to vector<16x64xf32>
    %506 = arith.mulf %505, %502 : vector<16x64xf32>
    %507 = arith.mulf %506, %502 : vector<16x64xf32>
    %508 = arith.mulf %507, %502 : vector<16x64xf32>
    %509 = arith.addf %502, %508 : vector<16x64xf32>
    %cst_182 = arith.constant 0.797884583 : f32
    %510 = vector.broadcast %cst_182 : f32 to vector<16x64xf32>
    %511 = arith.mulf %510, %509 : vector<16x64xf32>
    %512 = math.tanh %511 : vector<16x64xf32>
    %cst_183 = arith.constant 1.000000e+00 : f32
    %513 = vector.broadcast %cst_183 : f32 to vector<16x64xf32>
    %514 = arith.addf %513, %512 : vector<16x64xf32>
    %515 = arith.mulf %504, %514 : vector<16x64xf32>
    %c2_184 = arith.constant 2 : index
    %c0_185 = arith.constant 0 : index
    %c0_186 = arith.constant 0 : index
    %516 = vector.load %arg15[%c2_184, %c0_185, %c0_186] : memref<8x64x32xbf16, #tpu.memory_space<vmem>>, vector<1x64x32xbf16>
    %517 = vector.shape_cast %516 : vector<1x64x32xbf16> to vector<64x32xbf16>
    %518 = arith.truncf %515 : vector<16x64xf32> to vector<16x64xbf16>
    %cst_187 = arith.constant dense<0.000000e+00> : vector<16x32xf32>
    %519 = tpu.matmul %518, %517, %cst_187 {dimension_numbers = #tpu.dot_dimension_numbers<[1], [0], [0], [1], [0, 0, 1, 1], [], []>} : vector<16x64xbf16>, vector<64x32xbf16>, vector<16x32xf32> -> vector<16x32xf32>
    %520 = arith.addf %468, %519 : vector<16x32xf32>
    %c2_188 = arith.constant 2 : index
    %c0_189 = arith.constant 0 : index
    %c0_190 = arith.constant 0 : index
    %521 = vector.load %arg16[%c2_188, %c0_189, %c0_190] : memref<8x1x32xf32, #tpu.memory_space<vmem>>, vector<1x1x32xf32>
    %522 = vector.shape_cast %521 : vector<1x1x32xf32> to vector<1x32xf32>
    %523 = vector.broadcast %522 : vector<1x32xf32> to vector<16x32xf32>
    %524 = arith.addf %520, %523 : vector<16x32xf32>
    %c3 = arith.constant 3 : index
    %c0_191 = arith.constant 0 : index
    %c0_192 = arith.constant 0 : index
    %525 = vector.load %arg5[%c3, %c0_191, %c0_192] : memref<8x1x32xf32, #tpu.memory_space<vmem>>, vector<1x1x32xf32>
    %526 = vector.shape_cast %525 : vector<1x1x32xf32> to vector<1x32xf32>
    %c3_193 = arith.constant 3 : index
    %c0_194 = arith.constant 0 : index
    %c0_195 = arith.constant 0 : index
    %527 = vector.load %arg6[%c3_193, %c0_194, %c0_195] : memref<8x1x32xf32, #tpu.memory_space<vmem>>, vector<1x1x32xf32>
    %528 = vector.shape_cast %527 : vector<1x1x32xf32> to vector<1x32xf32>
    %cst_196 = arith.constant dense<0.000000e+00> : vector<8xf32>
    %529 = vector.multi_reduction <add>, %369, %cst_196 [1] : vector<8x32xf32> to vector<8xf32>
    %530 = vector.shape_cast %529 : vector<8xf32> to vector<8x1xf32>
    %cst_197 = arith.constant 3.200000e+01 : f32
    %531 = vector.broadcast %cst_197 : f32 to vector<8x1xf32>
    %532 = arith.divf %530, %531 : vector<8x1xf32>
    %533 = vector.broadcast %532 : vector<8x1xf32> to vector<8x32xf32>
    %534 = arith.subf %369, %533 : vector<8x32xf32>
    %535 = arith.mulf %534, %534 : vector<8x32xf32>
    %cst_198 = arith.constant dense<0.000000e+00> : vector<8xf32>
    %536 = vector.multi_reduction <add>, %535, %cst_198 [1] : vector<8x32xf32> to vector<8xf32>
    %537 = vector.shape_cast %536 : vector<8xf32> to vector<8x1xf32>
    %cst_199 = arith.constant 3.200000e+01 : f32
    %538 = vector.broadcast %cst_199 : f32 to vector<8x1xf32>
    %539 = arith.divf %537, %538 : vector<8x1xf32>
    %540 = vector.broadcast %532 : vector<8x1xf32> to vector<8x32xf32>
    %541 = arith.subf %369, %540 : vector<8x32xf32>
    %cst_200 = arith.constant 9.99999997E-7 : f32
    %542 = vector.broadcast %cst_200 : f32 to vector<8x1xf32>
    %543 = arith.addf %539, %542 : vector<8x1xf32>
    %544 = math.rsqrt %543 : vector<8x1xf32>
    %545 = vector.broadcast %544 : vector<8x1xf32> to vector<8x32xf32>
    %546 = arith.mulf %541, %545 : vector<8x32xf32>
    %547 = vector.broadcast %526 : vector<1x32xf32> to vector<8x32xf32>
    %548 = arith.mulf %546, %547 : vector<8x32xf32>
    %549 = vector.broadcast %528 : vector<1x32xf32> to vector<8x32xf32>
    %550 = arith.addf %548, %549 : vector<8x32xf32>
    %c3_201 = arith.constant 3 : index
    %c0_202 = arith.constant 0 : index
    %c0_203 = arith.constant 0 : index
    %551 = vector.load %arg7[%c3_201, %c0_202, %c0_203] : memref<8x32x96xbf16, #tpu.memory_space<vmem>>, vector<1x32x96xbf16>
    %552 = vector.shape_cast %551 : vector<1x32x96xbf16> to vector<32x96xbf16>
    %c3_204 = arith.constant 3 : index
    %c0_205 = arith.constant 0 : index
    %c0_206 = arith.constant 0 : index
    %553 = vector.load %arg8[%c3_204, %c0_205, %c0_206] : memref<8x1x96xf32, #tpu.memory_space<vmem>>, vector<1x1x96xf32>
    %554 = vector.shape_cast %553 : vector<1x1x96xf32> to vector<1x96xf32>
    %555 = arith.truncf %550 : vector<8x32xf32> to vector<8x32xbf16>
    %cst_207 = arith.constant dense<0.000000e+00> : vector<8x96xf32>
    %556 = tpu.matmul %555, %552, %cst_207 {dimension_numbers = #tpu.dot_dimension_numbers<[1], [0], [0], [1], [0, 0, 1, 1], [], []>} : vector<8x32xbf16>, vector<32x96xbf16>, vector<8x96xf32> -> vector<8x96xf32>
    %557 = vector.broadcast %554 : vector<1x96xf32> to vector<8x96xf32>
    %558 = arith.addf %556, %557 : vector<8x96xf32>
    %559 = vector.extract_strided_slice %558 {offsets = [0, 0], sizes = [8, 32], strides = [1, 1]} : vector<8x96xf32> to vector<8x32xf32>
    %560 = vector.extract_strided_slice %558 {offsets = [0, 32], sizes = [8, 64], strides = [1, 1]} : vector<8x96xf32> to vector<8x64xf32>
    %561 = vector.extract_strided_slice %559 {offsets = [0, 0], sizes = [8, 8], strides = [1, 1]} : vector<8x32xf32> to vector<8x8xf32>
    %562 = vector.extract_strided_slice %559 {offsets = [0, 8], sizes = [8, 8], strides = [1, 1]} : vector<8x32xf32> to vector<8x8xf32>
    %563 = vector.extract_strided_slice %559 {offsets = [0, 16], sizes = [8, 8], strides = [1, 1]} : vector<8x32xf32> to vector<8x8xf32>
    %564 = vector.extract_strided_slice %559 {offsets = [0, 24], sizes = [8, 8], strides = [1, 1]} : vector<8x32xf32> to vector<8x8xf32>
    %565 = vector.shape_cast %561 : vector<8x8xf32> to vector<1x8x8xf32>
    %566 = vector.shape_cast %562 : vector<8x8xf32> to vector<1x8x8xf32>
    %567 = vector.shape_cast %563 : vector<8x8xf32> to vector<1x8x8xf32>
    %568 = vector.shape_cast %564 : vector<8x8xf32> to vector<1x8x8xf32>
    %569 = tpu.concatenate %565, %566, %567, %568 in 0 : vector<1x8x8xf32>, vector<1x8x8xf32>, vector<1x8x8xf32>, vector<1x8x8xf32> -> vector<4x8x8xf32>
    %570 = vector.extract_strided_slice %560 {offsets = [0, 0], sizes = [8, 8], strides = [1, 1]} : vector<8x64xf32> to vector<8x8xf32>
    %571 = vector.extract_strided_slice %560 {offsets = [0, 8], sizes = [8, 8], strides = [1, 1]} : vector<8x64xf32> to vector<8x8xf32>
    %572 = vector.extract_strided_slice %560 {offsets = [0, 16], sizes = [8, 8], strides = [1, 1]} : vector<8x64xf32> to vector<8x8xf32>
    %573 = vector.extract_strided_slice %560 {offsets = [0, 24], sizes = [8, 8], strides = [1, 1]} : vector<8x64xf32> to vector<8x8xf32>
    %574 = vector.shape_cast %570 : vector<8x8xf32> to vector<1x8x8xf32>
    %575 = vector.shape_cast %571 : vector<8x8xf32> to vector<1x8x8xf32>
    %576 = vector.shape_cast %572 : vector<8x8xf32> to vector<1x8x8xf32>
    %577 = vector.shape_cast %573 : vector<8x8xf32> to vector<1x8x8xf32>
    %578 = tpu.concatenate %574, %575, %576, %577 in 0 : vector<1x8x8xf32>, vector<1x8x8xf32>, vector<1x8x8xf32>, vector<1x8x8xf32> -> vector<4x8x8xf32>
    %579 = vector.extract_strided_slice %560 {offsets = [0, 32], sizes = [8, 8], strides = [1, 1]} : vector<8x64xf32> to vector<8x8xf32>
    %580 = vector.extract_strided_slice %560 {offsets = [0, 40], sizes = [8, 8], strides = [1, 1]} : vector<8x64xf32> to vector<8x8xf32>
    %581 = vector.extract_strided_slice %560 {offsets = [0, 48], sizes = [8, 8], strides = [1, 1]} : vector<8x64xf32> to vector<8x8xf32>
    %582 = vector.extract_strided_slice %560 {offsets = [0, 56], sizes = [8, 8], strides = [1, 1]} : vector<8x64xf32> to vector<8x8xf32>
    %583 = vector.shape_cast %579 : vector<8x8xf32> to vector<1x8x8xf32>
    %584 = vector.shape_cast %580 : vector<8x8xf32> to vector<1x8x8xf32>
    %585 = vector.shape_cast %581 : vector<8x8xf32> to vector<1x8x8xf32>
    %586 = vector.shape_cast %582 : vector<8x8xf32> to vector<1x8x8xf32>
    %587 = tpu.concatenate %583, %584, %585, %586 in 0 : vector<1x8x8xf32>, vector<1x8x8xf32>, vector<1x8x8xf32>, vector<1x8x8xf32> -> vector<4x8x8xf32>
    %588 = arith.truncf %569 : vector<4x8x8xf32> to vector<4x8x8xbf16>
    %589 = arith.truncf %578 : vector<4x8x8xf32> to vector<4x8x8xbf16>
    "tpu.trace_start"() <{level = 10 : i32, message = "hnd,hmd->hnm"}> : () -> ()
    %cst_208 = arith.constant dense<0.000000e+00> : vector<4x8x8xf32>
    %590 = tpu.matmul %588, %589, %cst_208 {dimension_numbers = #tpu.dot_dimension_numbers<[2], [2], [1], [1], [0, 0, 0, 1, 1, 1], [0], [0]>} : vector<4x8x8xbf16>, vector<4x8x8xbf16>, vector<4x8x8xf32> -> vector<4x8x8xf32>
    "tpu.trace_stop"() : () -> ()
    %cst_209 = arith.constant 0.353553385 : f32
    %591 = vector.broadcast %cst_209 : f32 to vector<4x8x8xf32>
    %592 = arith.mulf %590, %591 : vector<4x8x8xf32>
    %cst_210 = arith.constant dense<0xFF800000> : vector<4x8xf32>
    %593 = vector.multi_reduction <maximumf>, %592, %cst_210 [2] : vector<4x8x8xf32> to vector<4x8xf32>
    %594 = vector.shape_cast %593 : vector<4x8xf32> to vector<4x8x1xf32>
    %595 = vector.broadcast %594 : vector<4x8x1xf32> to vector<4x8x8xf32>
    %596 = arith.subf %592, %595 : vector<4x8x8xf32>
    %597 = math.exp %596 : vector<4x8x8xf32>
    %cst_211 = arith.constant dense<0.000000e+00> : vector<4x8xf32>
    %598 = vector.multi_reduction <add>, %597, %cst_211 [2] : vector<4x8x8xf32> to vector<4x8xf32>
    %599 = vector.shape_cast %598 : vector<4x8xf32> to vector<4x8x1xf32>
    %600 = tpu.reciprocal %599 {approx = true} : vector<4x8x1xf32> -> vector<4x8x1xf32>
    %601 = vector.broadcast %600 : vector<4x8x1xf32> to vector<4x8x8xf32>
    %602 = arith.mulf %597, %601 : vector<4x8x8xf32>
    %603 = arith.truncf %602 : vector<4x8x8xf32> to vector<4x8x8xbf16>
    %604 = arith.truncf %587 : vector<4x8x8xf32> to vector<4x8x8xbf16>
    "tpu.trace_start"() <{level = 10 : i32, message = "hnm,hmd->hnd"}> : () -> ()
    %cst_212 = arith.constant dense<0.000000e+00> : vector<4x8x8xf32>
    %605 = tpu.matmul %603, %604, %cst_212 {dimension_numbers = #tpu.dot_dimension_numbers<[2], [1], [1], [2], [0, 0, 0, 1, 1, 2], [0], [0]>} : vector<4x8x8xbf16>, vector<4x8x8xbf16>, vector<4x8x8xf32> -> vector<4x8x8xf32>
    "tpu.trace_stop"() : () -> ()
    %606 = vector.extract_strided_slice %605 {offsets = [0, 0, 0], sizes = [1, 8, 8], strides = [1, 1, 1]} : vector<4x8x8xf32> to vector<1x8x8xf32>
    %607 = vector.shape_cast %606 : vector<1x8x8xf32> to vector<8x8xf32>
    %608 = vector.extract_strided_slice %605 {offsets = [1, 0, 0], sizes = [1, 8, 8], strides = [1, 1, 1]} : vector<4x8x8xf32> to vector<1x8x8xf32>
    %609 = vector.shape_cast %608 : vector<1x8x8xf32> to vector<8x8xf32>
    %610 = vector.extract_strided_slice %605 {offsets = [2, 0, 0], sizes = [1, 8, 8], strides = [1, 1, 1]} : vector<4x8x8xf32> to vector<1x8x8xf32>
    %611 = vector.shape_cast %610 : vector<1x8x8xf32> to vector<8x8xf32>
    %612 = vector.extract_strided_slice %605 {offsets = [3, 0, 0], sizes = [1, 8, 8], strides = [1, 1, 1]} : vector<4x8x8xf32> to vector<1x8x8xf32>
    %613 = vector.shape_cast %612 : vector<1x8x8xf32> to vector<8x8xf32>
    %614 = tpu.concatenate %607, %609, %611, %613 in 1 : vector<8x8xf32>, vector<8x8xf32>, vector<8x8xf32>, vector<8x8xf32> -> vector<8x32xf32>
    %c3_213 = arith.constant 3 : index
    %c0_214 = arith.constant 0 : index
    %c0_215 = arith.constant 0 : index
    %615 = vector.load %arg9[%c3_213, %c0_214, %c0_215] : memref<8x32x32xbf16, #tpu.memory_space<vmem>>, vector<1x32x32xbf16>
    %616 = vector.shape_cast %615 : vector<1x32x32xbf16> to vector<32x32xbf16>
    %617 = arith.truncf %614 : vector<8x32xf32> to vector<8x32xbf16>
    %cst_216 = arith.constant dense<0.000000e+00> : vector<8x32xf32>
    %618 = tpu.matmul %617, %616, %cst_216 {dimension_numbers = #tpu.dot_dimension_numbers<[1], [0], [0], [1], [0, 0, 1, 1], [], []>} : vector<8x32xbf16>, vector<32x32xbf16>, vector<8x32xf32> -> vector<8x32xf32>
    %619 = arith.addf %369, %618 : vector<8x32xf32>
    %c3_217 = arith.constant 3 : index
    %c0_218 = arith.constant 0 : index
    %c0_219 = arith.constant 0 : index
    %620 = vector.load %arg10[%c3_217, %c0_218, %c0_219] : memref<8x1x32xf32, #tpu.memory_space<vmem>>, vector<1x1x32xf32>
    %621 = vector.shape_cast %620 : vector<1x1x32xf32> to vector<1x32xf32>
    %622 = vector.broadcast %621 : vector<1x32xf32> to vector<8x32xf32>
    %623 = arith.addf %619, %622 : vector<8x32xf32>
    %c3_220 = arith.constant 3 : index
    %c0_221 = arith.constant 0 : index
    %c0_222 = arith.constant 0 : index
    %624 = vector.load %arg11[%c3_220, %c0_221, %c0_222] : memref<8x1x32xf32, #tpu.memory_space<vmem>>, vector<1x1x32xf32>
    %625 = vector.shape_cast %624 : vector<1x1x32xf32> to vector<1x32xf32>
    %c3_223 = arith.constant 3 : index
    %c0_224 = arith.constant 0 : index
    %c0_225 = arith.constant 0 : index
    %626 = vector.load %arg12[%c3_223, %c0_224, %c0_225] : memref<8x1x32xf32, #tpu.memory_space<vmem>>, vector<1x1x32xf32>
    %627 = vector.shape_cast %626 : vector<1x1x32xf32> to vector<1x32xf32>
    %cst_226 = arith.constant dense<0.000000e+00> : vector<8xf32>
    %628 = vector.multi_reduction <add>, %623, %cst_226 [1] : vector<8x32xf32> to vector<8xf32>
    %629 = vector.shape_cast %628 : vector<8xf32> to vector<8x1xf32>
    %cst_227 = arith.constant 3.200000e+01 : f32
    %630 = vector.broadcast %cst_227 : f32 to vector<8x1xf32>
    %631 = arith.divf %629, %630 : vector<8x1xf32>
    %632 = vector.broadcast %631 : vector<8x1xf32> to vector<8x32xf32>
    %633 = arith.subf %623, %632 : vector<8x32xf32>
    %634 = arith.mulf %633, %633 : vector<8x32xf32>
    %cst_228 = arith.constant dense<0.000000e+00> : vector<8xf32>
    %635 = vector.multi_reduction <add>, %634, %cst_228 [1] : vector<8x32xf32> to vector<8xf32>
    %636 = vector.shape_cast %635 : vector<8xf32> to vector<8x1xf32>
    %cst_229 = arith.constant 3.200000e+01 : f32
    %637 = vector.broadcast %cst_229 : f32 to vector<8x1xf32>
    %638 = arith.divf %636, %637 : vector<8x1xf32>
    %639 = vector.broadcast %631 : vector<8x1xf32> to vector<8x32xf32>
    %640 = arith.subf %623, %639 : vector<8x32xf32>
    %cst_230 = arith.constant 9.99999997E-7 : f32
    %641 = vector.broadcast %cst_230 : f32 to vector<8x1xf32>
    %642 = arith.addf %638, %641 : vector<8x1xf32>
    %643 = math.rsqrt %642 : vector<8x1xf32>
    %644 = vector.broadcast %643 : vector<8x1xf32> to vector<8x32xf32>
    %645 = arith.mulf %640, %644 : vector<8x32xf32>
    %646 = vector.broadcast %625 : vector<1x32xf32> to vector<8x32xf32>
    %647 = arith.mulf %645, %646 : vector<8x32xf32>
    %648 = vector.broadcast %627 : vector<1x32xf32> to vector<8x32xf32>
    %649 = arith.addf %647, %648 : vector<8x32xf32>
    %c3_231 = arith.constant 3 : index
    %c0_232 = arith.constant 0 : index
    %c0_233 = arith.constant 0 : index
    %650 = vector.load %arg13[%c3_231, %c0_232, %c0_233] : memref<8x32x64xbf16, #tpu.memory_space<vmem>>, vector<1x32x64xbf16>
    %651 = vector.shape_cast %650 : vector<1x32x64xbf16> to vector<32x64xbf16>
    %652 = arith.truncf %649 : vector<8x32xf32> to vector<8x32xbf16>
    %cst_234 = arith.constant dense<0.000000e+00> : vector<8x64xf32>
    %653 = tpu.matmul %652, %651, %cst_234 {dimension_numbers = #tpu.dot_dimension_numbers<[1], [0], [0], [1], [0, 0, 1, 1], [], []>} : vector<8x32xbf16>, vector<32x64xbf16>, vector<8x64xf32> -> vector<8x64xf32>
    %c3_235 = arith.constant 3 : index
    %c0_236 = arith.constant 0 : index
    %c0_237 = arith.constant 0 : index
    %654 = vector.load %arg14[%c3_235, %c0_236, %c0_237] : memref<8x1x64xf32, #tpu.memory_space<vmem>>, vector<1x1x64xf32>
    %655 = vector.shape_cast %654 : vector<1x1x64xf32> to vector<1x64xf32>
    %656 = vector.broadcast %655 : vector<1x64xf32> to vector<8x64xf32>
    %657 = arith.addf %653, %656 : vector<8x64xf32>
    %cst_238 = arith.constant 5.000000e-01 : f32
    %658 = vector.broadcast %cst_238 : f32 to vector<8x64xf32>
    %659 = arith.mulf %658, %657 : vector<8x64xf32>
    %cst_239 = arith.constant 4.471500e-02 : f32
    %660 = vector.broadcast %cst_239 : f32 to vector<8x64xf32>
    %661 = arith.mulf %660, %657 : vector<8x64xf32>
    %662 = arith.mulf %661, %657 : vector<8x64xf32>
    %663 = arith.mulf %662, %657 : vector<8x64xf32>
    %664 = arith.addf %657, %663 : vector<8x64xf32>
    %cst_240 = arith.constant 0.797884583 : f32
    %665 = vector.broadcast %cst_240 : f32 to vector<8x64xf32>
    %666 = arith.mulf %665, %664 : vector<8x64xf32>
    %667 = math.tanh %666 : vector<8x64xf32>
    %cst_241 = arith.constant 1.000000e+00 : f32
    %668 = vector.broadcast %cst_241 : f32 to vector<8x64xf32>
    %669 = arith.addf %668, %667 : vector<8x64xf32>
    %670 = arith.mulf %659, %669 : vector<8x64xf32>
    %c3_242 = arith.constant 3 : index
    %c0_243 = arith.constant 0 : index
    %c0_244 = arith.constant 0 : index
    %671 = vector.load %arg15[%c3_242, %c0_243, %c0_244] : memref<8x64x32xbf16, #tpu.memory_space<vmem>>, vector<1x64x32xbf16>
    %672 = vector.shape_cast %671 : vector<1x64x32xbf16> to vector<64x32xbf16>
    %673 = arith.truncf %670 : vector<8x64xf32> to vector<8x64xbf16>
    %cst_245 = arith.constant dense<0.000000e+00> : vector<8x32xf32>
    %674 = tpu.matmul %673, %672, %cst_245 {dimension_numbers = #tpu.dot_dimension_numbers<[1], [0], [0], [1], [0, 0, 1, 1], [], []>} : vector<8x64xbf16>, vector<64x32xbf16>, vector<8x32xf32> -> vector<8x32xf32>
    %675 = arith.addf %623, %674 : vector<8x32xf32>
    %c3_246 = arith.constant 3 : index
    %c0_247 = arith.constant 0 : index
    %c0_248 = arith.constant 0 : index
    %676 = vector.load %arg16[%c3_246, %c0_247, %c0_248] : memref<8x1x32xf32, #tpu.memory_space<vmem>>, vector<1x1x32xf32>
    %677 = vector.shape_cast %676 : vector<1x1x32xf32> to vector<1x32xf32>
    %678 = vector.broadcast %677 : vector<1x32xf32> to vector<8x32xf32>
    %679 = arith.addf %675, %678 : vector<8x32xf32>
    %c4 = arith.constant 4 : index
    %c0_249 = arith.constant 0 : index
    %c0_250 = arith.constant 0 : index
    %680 = vector.load %arg5[%c4, %c0_249, %c0_250] : memref<8x1x32xf32, #tpu.memory_space<vmem>>, vector<1x1x32xf32>
    %681 = vector.shape_cast %680 : vector<1x1x32xf32> to vector<1x32xf32>
    %c4_251 = arith.constant 4 : index
    %c0_252 = arith.constant 0 : index
    %c0_253 = arith.constant 0 : index
    %682 = vector.load %arg6[%c4_251, %c0_252, %c0_253] : memref<8x1x32xf32, #tpu.memory_space<vmem>>, vector<1x1x32xf32>
    %683 = vector.shape_cast %682 : vector<1x1x32xf32> to vector<1x32xf32>
    %cst_254 = arith.constant dense<0.000000e+00> : vector<16xf32>
    %684 = vector.multi_reduction <add>, %524, %cst_254 [1] : vector<16x32xf32> to vector<16xf32>
    %685 = vector.shape_cast %684 : vector<16xf32> to vector<16x1xf32>
    %cst_255 = arith.constant 3.200000e+01 : f32
    %686 = vector.broadcast %cst_255 : f32 to vector<16x1xf32>
    %687 = arith.divf %685, %686 : vector<16x1xf32>
    %688 = vector.broadcast %687 : vector<16x1xf32> to vector<16x32xf32>
    %689 = arith.subf %524, %688 : vector<16x32xf32>
    %690 = arith.mulf %689, %689 : vector<16x32xf32>
    %cst_256 = arith.constant dense<0.000000e+00> : vector<16xf32>
    %691 = vector.multi_reduction <add>, %690, %cst_256 [1] : vector<16x32xf32> to vector<16xf32>
    %692 = vector.shape_cast %691 : vector<16xf32> to vector<16x1xf32>
    %cst_257 = arith.constant 3.200000e+01 : f32
    %693 = vector.broadcast %cst_257 : f32 to vector<16x1xf32>
    %694 = arith.divf %692, %693 : vector<16x1xf32>
    %695 = vector.broadcast %687 : vector<16x1xf32> to vector<16x32xf32>
    %696 = arith.subf %524, %695 : vector<16x32xf32>
    %cst_258 = arith.constant 9.99999997E-7 : f32
    %697 = vector.broadcast %cst_258 : f32 to vector<16x1xf32>
    %698 = arith.addf %694, %697 : vector<16x1xf32>
    %699 = math.rsqrt %698 : vector<16x1xf32>
    %700 = vector.broadcast %699 : vector<16x1xf32> to vector<16x32xf32>
    %701 = arith.mulf %696, %700 : vector<16x32xf32>
    %702 = vector.broadcast %681 : vector<1x32xf32> to vector<16x32xf32>
    %703 = arith.mulf %701, %702 : vector<16x32xf32>
    %704 = vector.broadcast %683 : vector<1x32xf32> to vector<16x32xf32>
    %705 = arith.addf %703, %704 : vector<16x32xf32>
    %c4_259 = arith.constant 4 : index
    %c0_260 = arith.constant 0 : index
    %c0_261 = arith.constant 0 : index
    %706 = vector.load %arg7[%c4_259, %c0_260, %c0_261] : memref<8x32x96xbf16, #tpu.memory_space<vmem>>, vector<1x32x96xbf16>
    %707 = vector.shape_cast %706 : vector<1x32x96xbf16> to vector<32x96xbf16>
    %c4_262 = arith.constant 4 : index
    %c0_263 = arith.constant 0 : index
    %c0_264 = arith.constant 0 : index
    %708 = vector.load %arg8[%c4_262, %c0_263, %c0_264] : memref<8x1x96xf32, #tpu.memory_space<vmem>>, vector<1x1x96xf32>
    %709 = vector.shape_cast %708 : vector<1x1x96xf32> to vector<1x96xf32>
    %cst_265 = arith.constant dense<0.000000e+00> : vector<8xf32>
    %710 = vector.multi_reduction <add>, %679, %cst_265 [1] : vector<8x32xf32> to vector<8xf32>
    %711 = vector.shape_cast %710 : vector<8xf32> to vector<8x1xf32>
    %cst_266 = arith.constant 3.200000e+01 : f32
    %712 = vector.broadcast %cst_266 : f32 to vector<8x1xf32>
    %713 = arith.divf %711, %712 : vector<8x1xf32>
    %714 = vector.broadcast %713 : vector<8x1xf32> to vector<8x32xf32>
    %715 = arith.subf %679, %714 : vector<8x32xf32>
    %716 = arith.mulf %715, %715 : vector<8x32xf32>
    %cst_267 = arith.constant dense<0.000000e+00> : vector<8xf32>
    %717 = vector.multi_reduction <add>, %716, %cst_267 [1] : vector<8x32xf32> to vector<8xf32>
    %718 = vector.shape_cast %717 : vector<8xf32> to vector<8x1xf32>
    %cst_268 = arith.constant 3.200000e+01 : f32
    %719 = vector.broadcast %cst_268 : f32 to vector<8x1xf32>
    %720 = arith.divf %718, %719 : vector<8x1xf32>
    %721 = vector.broadcast %713 : vector<8x1xf32> to vector<8x32xf32>
    %722 = arith.subf %679, %721 : vector<8x32xf32>
    %cst_269 = arith.constant 9.99999997E-7 : f32
    %723 = vector.broadcast %cst_269 : f32 to vector<8x1xf32>
    %724 = arith.addf %720, %723 : vector<8x1xf32>
    %725 = math.rsqrt %724 : vector<8x1xf32>
    %726 = vector.broadcast %725 : vector<8x1xf32> to vector<8x32xf32>
    %727 = arith.mulf %722, %726 : vector<8x32xf32>
    %728 = vector.broadcast %681 : vector<1x32xf32> to vector<8x32xf32>
    %729 = arith.mulf %727, %728 : vector<8x32xf32>
    %730 = vector.broadcast %683 : vector<1x32xf32> to vector<8x32xf32>
    %731 = arith.addf %729, %730 : vector<8x32xf32>
    %732 = vector.extract_strided_slice %707 {offsets = [0, 0], sizes = [32, 32], strides = [1, 1]} : vector<32x96xbf16> to vector<32x32xbf16>
    %733 = arith.truncf %705 : vector<16x32xf32> to vector<16x32xbf16>
    %cst_270 = arith.constant dense<0.000000e+00> : vector<16x32xf32>
    %734 = tpu.matmul %733, %732, %cst_270 {dimension_numbers = #tpu.dot_dimension_numbers<[1], [0], [0], [1], [0, 0, 1, 1], [], []>} : vector<16x32xbf16>, vector<32x32xbf16>, vector<16x32xf32> -> vector<16x32xf32>
    %735 = vector.extract_strided_slice %709 {offsets = [0, 0], sizes = [1, 32], strides = [1, 1]} : vector<1x96xf32> to vector<1x32xf32>
    %736 = vector.broadcast %735 : vector<1x32xf32> to vector<16x32xf32>
    %737 = arith.addf %734, %736 : vector<16x32xf32>
    %738 = vector.extract_strided_slice %707 {offsets = [0, 32], sizes = [32, 64], strides = [1, 1]} : vector<32x96xbf16> to vector<32x64xbf16>
    %739 = arith.truncf %731 : vector<8x32xf32> to vector<8x32xbf16>
    %cst_271 = arith.constant dense<0.000000e+00> : vector<8x64xf32>
    %740 = tpu.matmul %739, %738, %cst_271 {dimension_numbers = #tpu.dot_dimension_numbers<[1], [0], [0], [1], [0, 0, 1, 1], [], []>} : vector<8x32xbf16>, vector<32x64xbf16>, vector<8x64xf32> -> vector<8x64xf32>
    %741 = vector.extract_strided_slice %709 {offsets = [0, 32], sizes = [1, 64], strides = [1, 1]} : vector<1x96xf32> to vector<1x64xf32>
    %742 = vector.broadcast %741 : vector<1x64xf32> to vector<8x64xf32>
    %743 = arith.addf %740, %742 : vector<8x64xf32>
    %744 = vector.extract_strided_slice %737 {offsets = [0, 0], sizes = [16, 8], strides = [1, 1]} : vector<16x32xf32> to vector<16x8xf32>
    %745 = vector.extract_strided_slice %737 {offsets = [0, 8], sizes = [16, 8], strides = [1, 1]} : vector<16x32xf32> to vector<16x8xf32>
    %746 = vector.extract_strided_slice %737 {offsets = [0, 16], sizes = [16, 8], strides = [1, 1]} : vector<16x32xf32> to vector<16x8xf32>
    %747 = vector.extract_strided_slice %737 {offsets = [0, 24], sizes = [16, 8], strides = [1, 1]} : vector<16x32xf32> to vector<16x8xf32>
    %748 = vector.shape_cast %744 : vector<16x8xf32> to vector<1x16x8xf32>
    %749 = vector.shape_cast %745 : vector<16x8xf32> to vector<1x16x8xf32>
    %750 = vector.shape_cast %746 : vector<16x8xf32> to vector<1x16x8xf32>
    %751 = vector.shape_cast %747 : vector<16x8xf32> to vector<1x16x8xf32>
    %752 = tpu.concatenate %748, %749, %750, %751 in 0 : vector<1x16x8xf32>, vector<1x16x8xf32>, vector<1x16x8xf32>, vector<1x16x8xf32> -> vector<4x16x8xf32>
    %753 = vector.extract_strided_slice %743 {offsets = [0, 0], sizes = [8, 8], strides = [1, 1]} : vector<8x64xf32> to vector<8x8xf32>
    %754 = vector.extract_strided_slice %743 {offsets = [0, 8], sizes = [8, 8], strides = [1, 1]} : vector<8x64xf32> to vector<8x8xf32>
    %755 = vector.extract_strided_slice %743 {offsets = [0, 16], sizes = [8, 8], strides = [1, 1]} : vector<8x64xf32> to vector<8x8xf32>
    %756 = vector.extract_strided_slice %743 {offsets = [0, 24], sizes = [8, 8], strides = [1, 1]} : vector<8x64xf32> to vector<8x8xf32>
    %757 = vector.shape_cast %753 : vector<8x8xf32> to vector<1x8x8xf32>
    %758 = vector.shape_cast %754 : vector<8x8xf32> to vector<1x8x8xf32>
    %759 = vector.shape_cast %755 : vector<8x8xf32> to vector<1x8x8xf32>
    %760 = vector.shape_cast %756 : vector<8x8xf32> to vector<1x8x8xf32>
    %761 = tpu.concatenate %757, %758, %759, %760 in 0 : vector<1x8x8xf32>, vector<1x8x8xf32>, vector<1x8x8xf32>, vector<1x8x8xf32> -> vector<4x8x8xf32>
    %762 = vector.extract_strided_slice %743 {offsets = [0, 32], sizes = [8, 8], strides = [1, 1]} : vector<8x64xf32> to vector<8x8xf32>
    %763 = vector.extract_strided_slice %743 {offsets = [0, 40], sizes = [8, 8], strides = [1, 1]} : vector<8x64xf32> to vector<8x8xf32>
    %764 = vector.extract_strided_slice %743 {offsets = [0, 48], sizes = [8, 8], strides = [1, 1]} : vector<8x64xf32> to vector<8x8xf32>
    %765 = vector.extract_strided_slice %743 {offsets = [0, 56], sizes = [8, 8], strides = [1, 1]} : vector<8x64xf32> to vector<8x8xf32>
    %766 = vector.shape_cast %762 : vector<8x8xf32> to vector<1x8x8xf32>
    %767 = vector.shape_cast %763 : vector<8x8xf32> to vector<1x8x8xf32>
    %768 = vector.shape_cast %764 : vector<8x8xf32> to vector<1x8x8xf32>
    %769 = vector.shape_cast %765 : vector<8x8xf32> to vector<1x8x8xf32>
    %770 = tpu.concatenate %766, %767, %768, %769 in 0 : vector<1x8x8xf32>, vector<1x8x8xf32>, vector<1x8x8xf32>, vector<1x8x8xf32> -> vector<4x8x8xf32>
    %771 = arith.truncf %752 : vector<4x16x8xf32> to vector<4x16x8xbf16>
    %772 = arith.truncf %761 : vector<4x8x8xf32> to vector<4x8x8xbf16>
    "tpu.trace_start"() <{level = 10 : i32, message = "hnd,hmd->hnm"}> : () -> ()
    %cst_272 = arith.constant dense<0.000000e+00> : vector<4x16x8xf32>
    %773 = tpu.matmul %771, %772, %cst_272 {dimension_numbers = #tpu.dot_dimension_numbers<[2], [2], [1], [1], [0, 0, 0, 1, 1, 1], [0], [0]>} : vector<4x16x8xbf16>, vector<4x8x8xbf16>, vector<4x16x8xf32> -> vector<4x16x8xf32>
    "tpu.trace_stop"() : () -> ()
    %cst_273 = arith.constant 0.353553385 : f32
    %774 = vector.broadcast %cst_273 : f32 to vector<4x16x8xf32>
    %775 = arith.mulf %773, %774 : vector<4x16x8xf32>
    %cst_274 = arith.constant dense<0xFF800000> : vector<4x16xf32>
    %776 = vector.multi_reduction <maximumf>, %775, %cst_274 [2] : vector<4x16x8xf32> to vector<4x16xf32>
    %777 = vector.shape_cast %776 : vector<4x16xf32> to vector<4x16x1xf32>
    %778 = vector.broadcast %777 : vector<4x16x1xf32> to vector<4x16x8xf32>
    %779 = arith.subf %775, %778 : vector<4x16x8xf32>
    %780 = math.exp %779 : vector<4x16x8xf32>
    %cst_275 = arith.constant dense<0.000000e+00> : vector<4x16xf32>
    %781 = vector.multi_reduction <add>, %780, %cst_275 [2] : vector<4x16x8xf32> to vector<4x16xf32>
    %782 = vector.shape_cast %781 : vector<4x16xf32> to vector<4x16x1xf32>
    %783 = tpu.reciprocal %782 {approx = true} : vector<4x16x1xf32> -> vector<4x16x1xf32>
    %784 = vector.broadcast %783 : vector<4x16x1xf32> to vector<4x16x8xf32>
    %785 = arith.mulf %780, %784 : vector<4x16x8xf32>
    %786 = arith.truncf %785 : vector<4x16x8xf32> to vector<4x16x8xbf16>
    %787 = arith.truncf %770 : vector<4x8x8xf32> to vector<4x8x8xbf16>
    "tpu.trace_start"() <{level = 10 : i32, message = "hnm,hmd->hnd"}> : () -> ()
    %cst_276 = arith.constant dense<0.000000e+00> : vector<4x16x8xf32>
    %788 = tpu.matmul %786, %787, %cst_276 {dimension_numbers = #tpu.dot_dimension_numbers<[2], [1], [1], [2], [0, 0, 0, 1, 1, 2], [0], [0]>} : vector<4x16x8xbf16>, vector<4x8x8xbf16>, vector<4x16x8xf32> -> vector<4x16x8xf32>
    "tpu.trace_stop"() : () -> ()
    %789 = vector.extract_strided_slice %788 {offsets = [0, 0, 0], sizes = [1, 16, 8], strides = [1, 1, 1]} : vector<4x16x8xf32> to vector<1x16x8xf32>
    %790 = vector.shape_cast %789 : vector<1x16x8xf32> to vector<16x8xf32>
    %791 = vector.extract_strided_slice %788 {offsets = [1, 0, 0], sizes = [1, 16, 8], strides = [1, 1, 1]} : vector<4x16x8xf32> to vector<1x16x8xf32>
    %792 = vector.shape_cast %791 : vector<1x16x8xf32> to vector<16x8xf32>
    %793 = vector.extract_strided_slice %788 {offsets = [2, 0, 0], sizes = [1, 16, 8], strides = [1, 1, 1]} : vector<4x16x8xf32> to vector<1x16x8xf32>
    %794 = vector.shape_cast %793 : vector<1x16x8xf32> to vector<16x8xf32>
    %795 = vector.extract_strided_slice %788 {offsets = [3, 0, 0], sizes = [1, 16, 8], strides = [1, 1, 1]} : vector<4x16x8xf32> to vector<1x16x8xf32>
    %796 = vector.shape_cast %795 : vector<1x16x8xf32> to vector<16x8xf32>
    %797 = tpu.concatenate %790, %792, %794, %796 in 1 : vector<16x8xf32>, vector<16x8xf32>, vector<16x8xf32>, vector<16x8xf32> -> vector<16x32xf32>
    %c4_277 = arith.constant 4 : index
    %c0_278 = arith.constant 0 : index
    %c0_279 = arith.constant 0 : index
    %798 = vector.load %arg9[%c4_277, %c0_278, %c0_279] : memref<8x32x32xbf16, #tpu.memory_space<vmem>>, vector<1x32x32xbf16>
    %799 = vector.shape_cast %798 : vector<1x32x32xbf16> to vector<32x32xbf16>
    %800 = arith.truncf %797 : vector<16x32xf32> to vector<16x32xbf16>
    %cst_280 = arith.constant dense<0.000000e+00> : vector<16x32xf32>
    %801 = tpu.matmul %800, %799, %cst_280 {dimension_numbers = #tpu.dot_dimension_numbers<[1], [0], [0], [1], [0, 0, 1, 1], [], []>} : vector<16x32xbf16>, vector<32x32xbf16>, vector<16x32xf32> -> vector<16x32xf32>
    %802 = arith.addf %524, %801 : vector<16x32xf32>
    %c4_281 = arith.constant 4 : index
    %c0_282 = arith.constant 0 : index
    %c0_283 = arith.constant 0 : index
    %803 = vector.load %arg10[%c4_281, %c0_282, %c0_283] : memref<8x1x32xf32, #tpu.memory_space<vmem>>, vector<1x1x32xf32>
    %804 = vector.shape_cast %803 : vector<1x1x32xf32> to vector<1x32xf32>
    %805 = vector.broadcast %804 : vector<1x32xf32> to vector<16x32xf32>
    %806 = arith.addf %802, %805 : vector<16x32xf32>
    %c4_284 = arith.constant 4 : index
    %c0_285 = arith.constant 0 : index
    %c0_286 = arith.constant 0 : index
    %807 = vector.load %arg11[%c4_284, %c0_285, %c0_286] : memref<8x1x32xf32, #tpu.memory_space<vmem>>, vector<1x1x32xf32>
    %808 = vector.shape_cast %807 : vector<1x1x32xf32> to vector<1x32xf32>
    %c4_287 = arith.constant 4 : index
    %c0_288 = arith.constant 0 : index
    %c0_289 = arith.constant 0 : index
    %809 = vector.load %arg12[%c4_287, %c0_288, %c0_289] : memref<8x1x32xf32, #tpu.memory_space<vmem>>, vector<1x1x32xf32>
    %810 = vector.shape_cast %809 : vector<1x1x32xf32> to vector<1x32xf32>
    %cst_290 = arith.constant dense<0.000000e+00> : vector<16xf32>
    %811 = vector.multi_reduction <add>, %806, %cst_290 [1] : vector<16x32xf32> to vector<16xf32>
    %812 = vector.shape_cast %811 : vector<16xf32> to vector<16x1xf32>
    %cst_291 = arith.constant 3.200000e+01 : f32
    %813 = vector.broadcast %cst_291 : f32 to vector<16x1xf32>
    %814 = arith.divf %812, %813 : vector<16x1xf32>
    %815 = vector.broadcast %814 : vector<16x1xf32> to vector<16x32xf32>
    %816 = arith.subf %806, %815 : vector<16x32xf32>
    %817 = arith.mulf %816, %816 : vector<16x32xf32>
    %cst_292 = arith.constant dense<0.000000e+00> : vector<16xf32>
    %818 = vector.multi_reduction <add>, %817, %cst_292 [1] : vector<16x32xf32> to vector<16xf32>
    %819 = vector.shape_cast %818 : vector<16xf32> to vector<16x1xf32>
    %cst_293 = arith.constant 3.200000e+01 : f32
    %820 = vector.broadcast %cst_293 : f32 to vector<16x1xf32>
    %821 = arith.divf %819, %820 : vector<16x1xf32>
    %822 = vector.broadcast %814 : vector<16x1xf32> to vector<16x32xf32>
    %823 = arith.subf %806, %822 : vector<16x32xf32>
    %cst_294 = arith.constant 9.99999997E-7 : f32
    %824 = vector.broadcast %cst_294 : f32 to vector<16x1xf32>
    %825 = arith.addf %821, %824 : vector<16x1xf32>
    %826 = math.rsqrt %825 : vector<16x1xf32>
    %827 = vector.broadcast %826 : vector<16x1xf32> to vector<16x32xf32>
    %828 = arith.mulf %823, %827 : vector<16x32xf32>
    %829 = vector.broadcast %808 : vector<1x32xf32> to vector<16x32xf32>
    %830 = arith.mulf %828, %829 : vector<16x32xf32>
    %831 = vector.broadcast %810 : vector<1x32xf32> to vector<16x32xf32>
    %832 = arith.addf %830, %831 : vector<16x32xf32>
    %c4_295 = arith.constant 4 : index
    %c0_296 = arith.constant 0 : index
    %c0_297 = arith.constant 0 : index
    %833 = vector.load %arg13[%c4_295, %c0_296, %c0_297] : memref<8x32x64xbf16, #tpu.memory_space<vmem>>, vector<1x32x64xbf16>
    %834 = vector.shape_cast %833 : vector<1x32x64xbf16> to vector<32x64xbf16>
    %835 = arith.truncf %832 : vector<16x32xf32> to vector<16x32xbf16>
    %cst_298 = arith.constant dense<0.000000e+00> : vector<16x64xf32>
    %836 = tpu.matmul %835, %834, %cst_298 {dimension_numbers = #tpu.dot_dimension_numbers<[1], [0], [0], [1], [0, 0, 1, 1], [], []>} : vector<16x32xbf16>, vector<32x64xbf16>, vector<16x64xf32> -> vector<16x64xf32>
    %c4_299 = arith.constant 4 : index
    %c0_300 = arith.constant 0 : index
    %c0_301 = arith.constant 0 : index
    %837 = vector.load %arg14[%c4_299, %c0_300, %c0_301] : memref<8x1x64xf32, #tpu.memory_space<vmem>>, vector<1x1x64xf32>
    %838 = vector.shape_cast %837 : vector<1x1x64xf32> to vector<1x64xf32>
    %839 = vector.broadcast %838 : vector<1x64xf32> to vector<16x64xf32>
    %840 = arith.addf %836, %839 : vector<16x64xf32>
    %cst_302 = arith.constant 5.000000e-01 : f32
    %841 = vector.broadcast %cst_302 : f32 to vector<16x64xf32>
    %842 = arith.mulf %841, %840 : vector<16x64xf32>
    %cst_303 = arith.constant 4.471500e-02 : f32
    %843 = vector.broadcast %cst_303 : f32 to vector<16x64xf32>
    %844 = arith.mulf %843, %840 : vector<16x64xf32>
    %845 = arith.mulf %844, %840 : vector<16x64xf32>
    %846 = arith.mulf %845, %840 : vector<16x64xf32>
    %847 = arith.addf %840, %846 : vector<16x64xf32>
    %cst_304 = arith.constant 0.797884583 : f32
    %848 = vector.broadcast %cst_304 : f32 to vector<16x64xf32>
    %849 = arith.mulf %848, %847 : vector<16x64xf32>
    %850 = math.tanh %849 : vector<16x64xf32>
    %cst_305 = arith.constant 1.000000e+00 : f32
    %851 = vector.broadcast %cst_305 : f32 to vector<16x64xf32>
    %852 = arith.addf %851, %850 : vector<16x64xf32>
    %853 = arith.mulf %842, %852 : vector<16x64xf32>
    %c4_306 = arith.constant 4 : index
    %c0_307 = arith.constant 0 : index
    %c0_308 = arith.constant 0 : index
    %854 = vector.load %arg15[%c4_306, %c0_307, %c0_308] : memref<8x64x32xbf16, #tpu.memory_space<vmem>>, vector<1x64x32xbf16>
    %855 = vector.shape_cast %854 : vector<1x64x32xbf16> to vector<64x32xbf16>
    %856 = arith.truncf %853 : vector<16x64xf32> to vector<16x64xbf16>
    %cst_309 = arith.constant dense<0.000000e+00> : vector<16x32xf32>
    %857 = tpu.matmul %856, %855, %cst_309 {dimension_numbers = #tpu.dot_dimension_numbers<[1], [0], [0], [1], [0, 0, 1, 1], [], []>} : vector<16x64xbf16>, vector<64x32xbf16>, vector<16x32xf32> -> vector<16x32xf32>
    %858 = arith.addf %806, %857 : vector<16x32xf32>
    %c4_310 = arith.constant 4 : index
    %c0_311 = arith.constant 0 : index
    %c0_312 = arith.constant 0 : index
    %859 = vector.load %arg16[%c4_310, %c0_311, %c0_312] : memref<8x1x32xf32, #tpu.memory_space<vmem>>, vector<1x1x32xf32>
    %860 = vector.shape_cast %859 : vector<1x1x32xf32> to vector<1x32xf32>
    %861 = vector.broadcast %860 : vector<1x32xf32> to vector<16x32xf32>
    %862 = arith.addf %858, %861 : vector<16x32xf32>
    %c5 = arith.constant 5 : index
    %c0_313 = arith.constant 0 : index
    %c0_314 = arith.constant 0 : index
    %863 = vector.load %arg5[%c5, %c0_313, %c0_314] : memref<8x1x32xf32, #tpu.memory_space<vmem>>, vector<1x1x32xf32>
    %864 = vector.shape_cast %863 : vector<1x1x32xf32> to vector<1x32xf32>
    %c5_315 = arith.constant 5 : index
    %c0_316 = arith.constant 0 : index
    %c0_317 = arith.constant 0 : index
    %865 = vector.load %arg6[%c5_315, %c0_316, %c0_317] : memref<8x1x32xf32, #tpu.memory_space<vmem>>, vector<1x1x32xf32>
    %866 = vector.shape_cast %865 : vector<1x1x32xf32> to vector<1x32xf32>
    %cst_318 = arith.constant dense<0.000000e+00> : vector<8xf32>
    %867 = vector.multi_reduction <add>, %679, %cst_318 [1] : vector<8x32xf32> to vector<8xf32>
    %868 = vector.shape_cast %867 : vector<8xf32> to vector<8x1xf32>
    %cst_319 = arith.constant 3.200000e+01 : f32
    %869 = vector.broadcast %cst_319 : f32 to vector<8x1xf32>
    %870 = arith.divf %868, %869 : vector<8x1xf32>
    %871 = vector.broadcast %870 : vector<8x1xf32> to vector<8x32xf32>
    %872 = arith.subf %679, %871 : vector<8x32xf32>
    %873 = arith.mulf %872, %872 : vector<8x32xf32>
    %cst_320 = arith.constant dense<0.000000e+00> : vector<8xf32>
    %874 = vector.multi_reduction <add>, %873, %cst_320 [1] : vector<8x32xf32> to vector<8xf32>
    %875 = vector.shape_cast %874 : vector<8xf32> to vector<8x1xf32>
    %cst_321 = arith.constant 3.200000e+01 : f32
    %876 = vector.broadcast %cst_321 : f32 to vector<8x1xf32>
    %877 = arith.divf %875, %876 : vector<8x1xf32>
    %878 = vector.broadcast %870 : vector<8x1xf32> to vector<8x32xf32>
    %879 = arith.subf %679, %878 : vector<8x32xf32>
    %cst_322 = arith.constant 9.99999997E-7 : f32
    %880 = vector.broadcast %cst_322 : f32 to vector<8x1xf32>
    %881 = arith.addf %877, %880 : vector<8x1xf32>
    %882 = math.rsqrt %881 : vector<8x1xf32>
    %883 = vector.broadcast %882 : vector<8x1xf32> to vector<8x32xf32>
    %884 = arith.mulf %879, %883 : vector<8x32xf32>
    %885 = vector.broadcast %864 : vector<1x32xf32> to vector<8x32xf32>
    %886 = arith.mulf %884, %885 : vector<8x32xf32>
    %887 = vector.broadcast %866 : vector<1x32xf32> to vector<8x32xf32>
    %888 = arith.addf %886, %887 : vector<8x32xf32>
    %c5_323 = arith.constant 5 : index
    %c0_324 = arith.constant 0 : index
    %c0_325 = arith.constant 0 : index
    %889 = vector.load %arg7[%c5_323, %c0_324, %c0_325] : memref<8x32x96xbf16, #tpu.memory_space<vmem>>, vector<1x32x96xbf16>
    %890 = vector.shape_cast %889 : vector<1x32x96xbf16> to vector<32x96xbf16>
    %c5_326 = arith.constant 5 : index
    %c0_327 = arith.constant 0 : index
    %c0_328 = arith.constant 0 : index
    %891 = vector.load %arg8[%c5_326, %c0_327, %c0_328] : memref<8x1x96xf32, #tpu.memory_space<vmem>>, vector<1x1x96xf32>
    %892 = vector.shape_cast %891 : vector<1x1x96xf32> to vector<1x96xf32>
    %cst_329 = arith.constant dense<0.000000e+00> : vector<16xf32>
    %893 = vector.multi_reduction <add>, %862, %cst_329 [1] : vector<16x32xf32> to vector<16xf32>
    %894 = vector.shape_cast %893 : vector<16xf32> to vector<16x1xf32>
    %cst_330 = arith.constant 3.200000e+01 : f32
    %895 = vector.broadcast %cst_330 : f32 to vector<16x1xf32>
    %896 = arith.divf %894, %895 : vector<16x1xf32>
    %897 = vector.broadcast %896 : vector<16x1xf32> to vector<16x32xf32>
    %898 = arith.subf %862, %897 : vector<16x32xf32>
    %899 = arith.mulf %898, %898 : vector<16x32xf32>
    %cst_331 = arith.constant dense<0.000000e+00> : vector<16xf32>
    %900 = vector.multi_reduction <add>, %899, %cst_331 [1] : vector<16x32xf32> to vector<16xf32>
    %901 = vector.shape_cast %900 : vector<16xf32> to vector<16x1xf32>
    %cst_332 = arith.constant 3.200000e+01 : f32
    %902 = vector.broadcast %cst_332 : f32 to vector<16x1xf32>
    %903 = arith.divf %901, %902 : vector<16x1xf32>
    %904 = vector.broadcast %896 : vector<16x1xf32> to vector<16x32xf32>
    %905 = arith.subf %862, %904 : vector<16x32xf32>
    %cst_333 = arith.constant 9.99999997E-7 : f32
    %906 = vector.broadcast %cst_333 : f32 to vector<16x1xf32>
    %907 = arith.addf %903, %906 : vector<16x1xf32>
    %908 = math.rsqrt %907 : vector<16x1xf32>
    %909 = vector.broadcast %908 : vector<16x1xf32> to vector<16x32xf32>
    %910 = arith.mulf %905, %909 : vector<16x32xf32>
    %911 = vector.broadcast %864 : vector<1x32xf32> to vector<16x32xf32>
    %912 = arith.mulf %910, %911 : vector<16x32xf32>
    %913 = vector.broadcast %866 : vector<1x32xf32> to vector<16x32xf32>
    %914 = arith.addf %912, %913 : vector<16x32xf32>
    %915 = vector.extract_strided_slice %890 {offsets = [0, 0], sizes = [32, 32], strides = [1, 1]} : vector<32x96xbf16> to vector<32x32xbf16>
    %916 = arith.truncf %888 : vector<8x32xf32> to vector<8x32xbf16>
    %cst_334 = arith.constant dense<0.000000e+00> : vector<8x32xf32>
    %917 = tpu.matmul %916, %915, %cst_334 {dimension_numbers = #tpu.dot_dimension_numbers<[1], [0], [0], [1], [0, 0, 1, 1], [], []>} : vector<8x32xbf16>, vector<32x32xbf16>, vector<8x32xf32> -> vector<8x32xf32>
    %918 = vector.extract_strided_slice %892 {offsets = [0, 0], sizes = [1, 32], strides = [1, 1]} : vector<1x96xf32> to vector<1x32xf32>
    %919 = vector.broadcast %918 : vector<1x32xf32> to vector<8x32xf32>
    %920 = arith.addf %917, %919 : vector<8x32xf32>
    %921 = vector.extract_strided_slice %890 {offsets = [0, 32], sizes = [32, 64], strides = [1, 1]} : vector<32x96xbf16> to vector<32x64xbf16>
    %922 = arith.truncf %914 : vector<16x32xf32> to vector<16x32xbf16>
    %cst_335 = arith.constant dense<0.000000e+00> : vector<16x64xf32>
    %923 = tpu.matmul %922, %921, %cst_335 {dimension_numbers = #tpu.dot_dimension_numbers<[1], [0], [0], [1], [0, 0, 1, 1], [], []>} : vector<16x32xbf16>, vector<32x64xbf16>, vector<16x64xf32> -> vector<16x64xf32>
    %924 = vector.extract_strided_slice %892 {offsets = [0, 32], sizes = [1, 64], strides = [1, 1]} : vector<1x96xf32> to vector<1x64xf32>
    %925 = vector.broadcast %924 : vector<1x64xf32> to vector<16x64xf32>
    %926 = arith.addf %923, %925 : vector<16x64xf32>
    %927 = vector.extract_strided_slice %920 {offsets = [0, 0], sizes = [8, 8], strides = [1, 1]} : vector<8x32xf32> to vector<8x8xf32>
    %928 = vector.extract_strided_slice %920 {offsets = [0, 8], sizes = [8, 8], strides = [1, 1]} : vector<8x32xf32> to vector<8x8xf32>
    %929 = vector.extract_strided_slice %920 {offsets = [0, 16], sizes = [8, 8], strides = [1, 1]} : vector<8x32xf32> to vector<8x8xf32>
    %930 = vector.extract_strided_slice %920 {offsets = [0, 24], sizes = [8, 8], strides = [1, 1]} : vector<8x32xf32> to vector<8x8xf32>
    %931 = vector.shape_cast %927 : vector<8x8xf32> to vector<1x8x8xf32>
    %932 = vector.shape_cast %928 : vector<8x8xf32> to vector<1x8x8xf32>
    %933 = vector.shape_cast %929 : vector<8x8xf32> to vector<1x8x8xf32>
    %934 = vector.shape_cast %930 : vector<8x8xf32> to vector<1x8x8xf32>
    %935 = tpu.concatenate %931, %932, %933, %934 in 0 : vector<1x8x8xf32>, vector<1x8x8xf32>, vector<1x8x8xf32>, vector<1x8x8xf32> -> vector<4x8x8xf32>
    %936 = vector.extract_strided_slice %926 {offsets = [0, 0], sizes = [16, 8], strides = [1, 1]} : vector<16x64xf32> to vector<16x8xf32>
    %937 = vector.extract_strided_slice %926 {offsets = [0, 8], sizes = [16, 8], strides = [1, 1]} : vector<16x64xf32> to vector<16x8xf32>
    %938 = vector.extract_strided_slice %926 {offsets = [0, 16], sizes = [16, 8], strides = [1, 1]} : vector<16x64xf32> to vector<16x8xf32>
    %939 = vector.extract_strided_slice %926 {offsets = [0, 24], sizes = [16, 8], strides = [1, 1]} : vector<16x64xf32> to vector<16x8xf32>
    %940 = vector.shape_cast %936 : vector<16x8xf32> to vector<1x16x8xf32>
    %941 = vector.shape_cast %937 : vector<16x8xf32> to vector<1x16x8xf32>
    %942 = vector.shape_cast %938 : vector<16x8xf32> to vector<1x16x8xf32>
    %943 = vector.shape_cast %939 : vector<16x8xf32> to vector<1x16x8xf32>
    %944 = tpu.concatenate %940, %941, %942, %943 in 0 : vector<1x16x8xf32>, vector<1x16x8xf32>, vector<1x16x8xf32>, vector<1x16x8xf32> -> vector<4x16x8xf32>
    %945 = vector.extract_strided_slice %926 {offsets = [0, 32], sizes = [16, 8], strides = [1, 1]} : vector<16x64xf32> to vector<16x8xf32>
    %946 = vector.extract_strided_slice %926 {offsets = [0, 40], sizes = [16, 8], strides = [1, 1]} : vector<16x64xf32> to vector<16x8xf32>
    %947 = vector.extract_strided_slice %926 {offsets = [0, 48], sizes = [16, 8], strides = [1, 1]} : vector<16x64xf32> to vector<16x8xf32>
    %948 = vector.extract_strided_slice %926 {offsets = [0, 56], sizes = [16, 8], strides = [1, 1]} : vector<16x64xf32> to vector<16x8xf32>
    %949 = vector.shape_cast %945 : vector<16x8xf32> to vector<1x16x8xf32>
    %950 = vector.shape_cast %946 : vector<16x8xf32> to vector<1x16x8xf32>
    %951 = vector.shape_cast %947 : vector<16x8xf32> to vector<1x16x8xf32>
    %952 = vector.shape_cast %948 : vector<16x8xf32> to vector<1x16x8xf32>
    %953 = tpu.concatenate %949, %950, %951, %952 in 0 : vector<1x16x8xf32>, vector<1x16x8xf32>, vector<1x16x8xf32>, vector<1x16x8xf32> -> vector<4x16x8xf32>
    %954 = arith.truncf %935 : vector<4x8x8xf32> to vector<4x8x8xbf16>
    %955 = arith.truncf %944 : vector<4x16x8xf32> to vector<4x16x8xbf16>
    "tpu.trace_start"() <{level = 10 : i32, message = "hnd,hmd->hnm"}> : () -> ()
    %cst_336 = arith.constant dense<0.000000e+00> : vector<4x8x16xf32>
    %956 = tpu.matmul %954, %955, %cst_336 {dimension_numbers = #tpu.dot_dimension_numbers<[2], [2], [1], [1], [0, 0, 0, 1, 1, 1], [0], [0]>} : vector<4x8x8xbf16>, vector<4x16x8xbf16>, vector<4x8x16xf32> -> vector<4x8x16xf32>
    "tpu.trace_stop"() : () -> ()
    %cst_337 = arith.constant 0.353553385 : f32
    %957 = vector.broadcast %cst_337 : f32 to vector<4x8x16xf32>
    %958 = arith.mulf %956, %957 : vector<4x8x16xf32>
    %cst_338 = arith.constant dense<0xFF800000> : vector<4x8xf32>
    %959 = vector.multi_reduction <maximumf>, %958, %cst_338 [2] : vector<4x8x16xf32> to vector<4x8xf32>
    %960 = vector.shape_cast %959 : vector<4x8xf32> to vector<4x8x1xf32>
    %961 = vector.broadcast %960 : vector<4x8x1xf32> to vector<4x8x16xf32>
    %962 = arith.subf %958, %961 : vector<4x8x16xf32>
    %963 = math.exp %962 : vector<4x8x16xf32>
    %cst_339 = arith.constant dense<0.000000e+00> : vector<4x8xf32>
    %964 = vector.multi_reduction <add>, %963, %cst_339 [2] : vector<4x8x16xf32> to vector<4x8xf32>
    %965 = vector.shape_cast %964 : vector<4x8xf32> to vector<4x8x1xf32>
    %966 = tpu.reciprocal %965 {approx = true} : vector<4x8x1xf32> -> vector<4x8x1xf32>
    %967 = vector.broadcast %966 : vector<4x8x1xf32> to vector<4x8x16xf32>
    %968 = arith.mulf %963, %967 : vector<4x8x16xf32>
    %969 = arith.truncf %968 : vector<4x8x16xf32> to vector<4x8x16xbf16>
    %970 = arith.truncf %953 : vector<4x16x8xf32> to vector<4x16x8xbf16>
    "tpu.trace_start"() <{level = 10 : i32, message = "hnm,hmd->hnd"}> : () -> ()
    %cst_340 = arith.constant dense<0.000000e+00> : vector<4x8x8xf32>
    %971 = tpu.matmul %969, %970, %cst_340 {dimension_numbers = #tpu.dot_dimension_numbers<[2], [1], [1], [2], [0, 0, 0, 1, 1, 2], [0], [0]>} : vector<4x8x16xbf16>, vector<4x16x8xbf16>, vector<4x8x8xf32> -> vector<4x8x8xf32>
    "tpu.trace_stop"() : () -> ()
    %972 = vector.extract_strided_slice %971 {offsets = [0, 0, 0], sizes = [1, 8, 8], strides = [1, 1, 1]} : vector<4x8x8xf32> to vector<1x8x8xf32>
    %973 = vector.shape_cast %972 : vector<1x8x8xf32> to vector<8x8xf32>
    %974 = vector.extract_strided_slice %971 {offsets = [1, 0, 0], sizes = [1, 8, 8], strides = [1, 1, 1]} : vector<4x8x8xf32> to vector<1x8x8xf32>
    %975 = vector.shape_cast %974 : vector<1x8x8xf32> to vector<8x8xf32>
    %976 = vector.extract_strided_slice %971 {offsets = [2, 0, 0], sizes = [1, 8, 8], strides = [1, 1, 1]} : vector<4x8x8xf32> to vector<1x8x8xf32>
    %977 = vector.shape_cast %976 : vector<1x8x8xf32> to vector<8x8xf32>
    %978 = vector.extract_strided_slice %971 {offsets = [3, 0, 0], sizes = [1, 8, 8], strides = [1, 1, 1]} : vector<4x8x8xf32> to vector<1x8x8xf32>
    %979 = vector.shape_cast %978 : vector<1x8x8xf32> to vector<8x8xf32>
    %980 = tpu.concatenate %973, %975, %977, %979 in 1 : vector<8x8xf32>, vector<8x8xf32>, vector<8x8xf32>, vector<8x8xf32> -> vector<8x32xf32>
    %c5_341 = arith.constant 5 : index
    %c0_342 = arith.constant 0 : index
    %c0_343 = arith.constant 0 : index
    %981 = vector.load %arg9[%c5_341, %c0_342, %c0_343] : memref<8x32x32xbf16, #tpu.memory_space<vmem>>, vector<1x32x32xbf16>
    %982 = vector.shape_cast %981 : vector<1x32x32xbf16> to vector<32x32xbf16>
    %983 = arith.truncf %980 : vector<8x32xf32> to vector<8x32xbf16>
    %cst_344 = arith.constant dense<0.000000e+00> : vector<8x32xf32>
    %984 = tpu.matmul %983, %982, %cst_344 {dimension_numbers = #tpu.dot_dimension_numbers<[1], [0], [0], [1], [0, 0, 1, 1], [], []>} : vector<8x32xbf16>, vector<32x32xbf16>, vector<8x32xf32> -> vector<8x32xf32>
    %985 = arith.addf %679, %984 : vector<8x32xf32>
    %c5_345 = arith.constant 5 : index
    %c0_346 = arith.constant 0 : index
    %c0_347 = arith.constant 0 : index
    %986 = vector.load %arg10[%c5_345, %c0_346, %c0_347] : memref<8x1x32xf32, #tpu.memory_space<vmem>>, vector<1x1x32xf32>
    %987 = vector.shape_cast %986 : vector<1x1x32xf32> to vector<1x32xf32>
    %988 = vector.broadcast %987 : vector<1x32xf32> to vector<8x32xf32>
    %989 = arith.addf %985, %988 : vector<8x32xf32>
    %c5_348 = arith.constant 5 : index
    %c0_349 = arith.constant 0 : index
    %c0_350 = arith.constant 0 : index
    %990 = vector.load %arg11[%c5_348, %c0_349, %c0_350] : memref<8x1x32xf32, #tpu.memory_space<vmem>>, vector<1x1x32xf32>
    %991 = vector.shape_cast %990 : vector<1x1x32xf32> to vector<1x32xf32>
    %c5_351 = arith.constant 5 : index
    %c0_352 = arith.constant 0 : index
    %c0_353 = arith.constant 0 : index
    %992 = vector.load %arg12[%c5_351, %c0_352, %c0_353] : memref<8x1x32xf32, #tpu.memory_space<vmem>>, vector<1x1x32xf32>
    %993 = vector.shape_cast %992 : vector<1x1x32xf32> to vector<1x32xf32>
    %cst_354 = arith.constant dense<0.000000e+00> : vector<8xf32>
    %994 = vector.multi_reduction <add>, %989, %cst_354 [1] : vector<8x32xf32> to vector<8xf32>
    %995 = vector.shape_cast %994 : vector<8xf32> to vector<8x1xf32>
    %cst_355 = arith.constant 3.200000e+01 : f32
    %996 = vector.broadcast %cst_355 : f32 to vector<8x1xf32>
    %997 = arith.divf %995, %996 : vector<8x1xf32>
    %998 = vector.broadcast %997 : vector<8x1xf32> to vector<8x32xf32>
    %999 = arith.subf %989, %998 : vector<8x32xf32>
    %1000 = arith.mulf %999, %999 : vector<8x32xf32>
    %cst_356 = arith.constant dense<0.000000e+00> : vector<8xf32>
    %1001 = vector.multi_reduction <add>, %1000, %cst_356 [1] : vector<8x32xf32> to vector<8xf32>
    %1002 = vector.shape_cast %1001 : vector<8xf32> to vector<8x1xf32>
    %cst_357 = arith.constant 3.200000e+01 : f32
    %1003 = vector.broadcast %cst_357 : f32 to vector<8x1xf32>
    %1004 = arith.divf %1002, %1003 : vector<8x1xf32>
    %1005 = vector.broadcast %997 : vector<8x1xf32> to vector<8x32xf32>
    %1006 = arith.subf %989, %1005 : vector<8x32xf32>
    %cst_358 = arith.constant 9.99999997E-7 : f32
    %1007 = vector.broadcast %cst_358 : f32 to vector<8x1xf32>
    %1008 = arith.addf %1004, %1007 : vector<8x1xf32>
    %1009 = math.rsqrt %1008 : vector<8x1xf32>
    %1010 = vector.broadcast %1009 : vector<8x1xf32> to vector<8x32xf32>
    %1011 = arith.mulf %1006, %1010 : vector<8x32xf32>
    %1012 = vector.broadcast %991 : vector<1x32xf32> to vector<8x32xf32>
    %1013 = arith.mulf %1011, %1012 : vector<8x32xf32>
    %1014 = vector.broadcast %993 : vector<1x32xf32> to vector<8x32xf32>
    %1015 = arith.addf %1013, %1014 : vector<8x32xf32>
    %c5_359 = arith.constant 5 : index
    %c0_360 = arith.constant 0 : index
    %c0_361 = arith.constant 0 : index
    %1016 = vector.load %arg13[%c5_359, %c0_360, %c0_361] : memref<8x32x64xbf16, #tpu.memory_space<vmem>>, vector<1x32x64xbf16>
    %1017 = vector.shape_cast %1016 : vector<1x32x64xbf16> to vector<32x64xbf16>
    %1018 = arith.truncf %1015 : vector<8x32xf32> to vector<8x32xbf16>
    %cst_362 = arith.constant dense<0.000000e+00> : vector<8x64xf32>
    %1019 = tpu.matmul %1018, %1017, %cst_362 {dimension_numbers = #tpu.dot_dimension_numbers<[1], [0], [0], [1], [0, 0, 1, 1], [], []>} : vector<8x32xbf16>, vector<32x64xbf16>, vector<8x64xf32> -> vector<8x64xf32>
    %c5_363 = arith.constant 5 : index
    %c0_364 = arith.constant 0 : index
    %c0_365 = arith.constant 0 : index
    %1020 = vector.load %arg14[%c5_363, %c0_364, %c0_365] : memref<8x1x64xf32, #tpu.memory_space<vmem>>, vector<1x1x64xf32>
    %1021 = vector.shape_cast %1020 : vector<1x1x64xf32> to vector<1x64xf32>
    %1022 = vector.broadcast %1021 : vector<1x64xf32> to vector<8x64xf32>
    %1023 = arith.addf %1019, %1022 : vector<8x64xf32>
    %cst_366 = arith.constant 5.000000e-01 : f32
    %1024 = vector.broadcast %cst_366 : f32 to vector<8x64xf32>
    %1025 = arith.mulf %1024, %1023 : vector<8x64xf32>
    %cst_367 = arith.constant 4.471500e-02 : f32
    %1026 = vector.broadcast %cst_367 : f32 to vector<8x64xf32>
    %1027 = arith.mulf %1026, %1023 : vector<8x64xf32>
    %1028 = arith.mulf %1027, %1023 : vector<8x64xf32>
    %1029 = arith.mulf %1028, %1023 : vector<8x64xf32>
    %1030 = arith.addf %1023, %1029 : vector<8x64xf32>
    %cst_368 = arith.constant 0.797884583 : f32
    %1031 = vector.broadcast %cst_368 : f32 to vector<8x64xf32>
    %1032 = arith.mulf %1031, %1030 : vector<8x64xf32>
    %1033 = math.tanh %1032 : vector<8x64xf32>
    %cst_369 = arith.constant 1.000000e+00 : f32
    %1034 = vector.broadcast %cst_369 : f32 to vector<8x64xf32>
    %1035 = arith.addf %1034, %1033 : vector<8x64xf32>
    %1036 = arith.mulf %1025, %1035 : vector<8x64xf32>
    %c5_370 = arith.constant 5 : index
    %c0_371 = arith.constant 0 : index
    %c0_372 = arith.constant 0 : index
    %1037 = vector.load %arg15[%c5_370, %c0_371, %c0_372] : memref<8x64x32xbf16, #tpu.memory_space<vmem>>, vector<1x64x32xbf16>
    %1038 = vector.shape_cast %1037 : vector<1x64x32xbf16> to vector<64x32xbf16>
    %1039 = arith.truncf %1036 : vector<8x64xf32> to vector<8x64xbf16>
    %cst_373 = arith.constant dense<0.000000e+00> : vector<8x32xf32>
    %1040 = tpu.matmul %1039, %1038, %cst_373 {dimension_numbers = #tpu.dot_dimension_numbers<[1], [0], [0], [1], [0, 0, 1, 1], [], []>} : vector<8x64xbf16>, vector<64x32xbf16>, vector<8x32xf32> -> vector<8x32xf32>
    %1041 = arith.addf %989, %1040 : vector<8x32xf32>
    %c5_374 = arith.constant 5 : index
    %c0_375 = arith.constant 0 : index
    %c0_376 = arith.constant 0 : index
    %1042 = vector.load %arg16[%c5_374, %c0_375, %c0_376] : memref<8x1x32xf32, #tpu.memory_space<vmem>>, vector<1x1x32xf32>
    %1043 = vector.shape_cast %1042 : vector<1x1x32xf32> to vector<1x32xf32>
    %1044 = vector.broadcast %1043 : vector<1x32xf32> to vector<8x32xf32>
    %1045 = arith.addf %1041, %1044 : vector<8x32xf32>
    %c6 = arith.constant 6 : index
    %c0_377 = arith.constant 0 : index
    %c0_378 = arith.constant 0 : index
    %1046 = vector.load %arg5[%c6, %c0_377, %c0_378] : memref<8x1x32xf32, #tpu.memory_space<vmem>>, vector<1x1x32xf32>
    %1047 = vector.shape_cast %1046 : vector<1x1x32xf32> to vector<1x32xf32>
    %c6_379 = arith.constant 6 : index
    %c0_380 = arith.constant 0 : index
    %c0_381 = arith.constant 0 : index
    %1048 = vector.load %arg6[%c6_379, %c0_380, %c0_381] : memref<8x1x32xf32, #tpu.memory_space<vmem>>, vector<1x1x32xf32>
    %1049 = vector.shape_cast %1048 : vector<1x1x32xf32> to vector<1x32xf32>
    %cst_382 = arith.constant dense<0.000000e+00> : vector<16xf32>
    %1050 = vector.multi_reduction <add>, %862, %cst_382 [1] : vector<16x32xf32> to vector<16xf32>
    %1051 = vector.shape_cast %1050 : vector<16xf32> to vector<16x1xf32>
    %cst_383 = arith.constant 3.200000e+01 : f32
    %1052 = vector.broadcast %cst_383 : f32 to vector<16x1xf32>
    %1053 = arith.divf %1051, %1052 : vector<16x1xf32>
    %1054 = vector.broadcast %1053 : vector<16x1xf32> to vector<16x32xf32>
    %1055 = arith.subf %862, %1054 : vector<16x32xf32>
    %1056 = arith.mulf %1055, %1055 : vector<16x32xf32>
    %cst_384 = arith.constant dense<0.000000e+00> : vector<16xf32>
    %1057 = vector.multi_reduction <add>, %1056, %cst_384 [1] : vector<16x32xf32> to vector<16xf32>
    %1058 = vector.shape_cast %1057 : vector<16xf32> to vector<16x1xf32>
    %cst_385 = arith.constant 3.200000e+01 : f32
    %1059 = vector.broadcast %cst_385 : f32 to vector<16x1xf32>
    %1060 = arith.divf %1058, %1059 : vector<16x1xf32>
    %1061 = vector.broadcast %1053 : vector<16x1xf32> to vector<16x32xf32>
    %1062 = arith.subf %862, %1061 : vector<16x32xf32>
    %cst_386 = arith.constant 9.99999997E-7 : f32
    %1063 = vector.broadcast %cst_386 : f32 to vector<16x1xf32>
    %1064 = arith.addf %1060, %1063 : vector<16x1xf32>
    %1065 = math.rsqrt %1064 : vector<16x1xf32>
    %1066 = vector.broadcast %1065 : vector<16x1xf32> to vector<16x32xf32>
    %1067 = arith.mulf %1062, %1066 : vector<16x32xf32>
    %1068 = vector.broadcast %1047 : vector<1x32xf32> to vector<16x32xf32>
    %1069 = arith.mulf %1067, %1068 : vector<16x32xf32>
    %1070 = vector.broadcast %1049 : vector<1x32xf32> to vector<16x32xf32>
    %1071 = arith.addf %1069, %1070 : vector<16x32xf32>
    %c6_387 = arith.constant 6 : index
    %c0_388 = arith.constant 0 : index
    %c0_389 = arith.constant 0 : index
    %1072 = vector.load %arg7[%c6_387, %c0_388, %c0_389] : memref<8x32x96xbf16, #tpu.memory_space<vmem>>, vector<1x32x96xbf16>
    %1073 = vector.shape_cast %1072 : vector<1x32x96xbf16> to vector<32x96xbf16>
    %c6_390 = arith.constant 6 : index
    %c0_391 = arith.constant 0 : index
    %c0_392 = arith.constant 0 : index
    %1074 = vector.load %arg8[%c6_390, %c0_391, %c0_392] : memref<8x1x96xf32, #tpu.memory_space<vmem>>, vector<1x1x96xf32>
    %1075 = vector.shape_cast %1074 : vector<1x1x96xf32> to vector<1x96xf32>
    %1076 = arith.truncf %1071 : vector<16x32xf32> to vector<16x32xbf16>
    %cst_393 = arith.constant dense<0.000000e+00> : vector<16x96xf32>
    %1077 = tpu.matmul %1076, %1073, %cst_393 {dimension_numbers = #tpu.dot_dimension_numbers<[1], [0], [0], [1], [0, 0, 1, 1], [], []>} : vector<16x32xbf16>, vector<32x96xbf16>, vector<16x96xf32> -> vector<16x96xf32>
    %1078 = vector.broadcast %1075 : vector<1x96xf32> to vector<16x96xf32>
    %1079 = arith.addf %1077, %1078 : vector<16x96xf32>
    %1080 = vector.extract_strided_slice %1079 {offsets = [0, 0], sizes = [16, 32], strides = [1, 1]} : vector<16x96xf32> to vector<16x32xf32>
    %1081 = vector.extract_strided_slice %1079 {offsets = [0, 32], sizes = [16, 64], strides = [1, 1]} : vector<16x96xf32> to vector<16x64xf32>
    %1082 = vector.extract_strided_slice %1080 {offsets = [0, 0], sizes = [16, 8], strides = [1, 1]} : vector<16x32xf32> to vector<16x8xf32>
    %1083 = vector.extract_strided_slice %1080 {offsets = [0, 8], sizes = [16, 8], strides = [1, 1]} : vector<16x32xf32> to vector<16x8xf32>
    %1084 = vector.extract_strided_slice %1080 {offsets = [0, 16], sizes = [16, 8], strides = [1, 1]} : vector<16x32xf32> to vector<16x8xf32>
    %1085 = vector.extract_strided_slice %1080 {offsets = [0, 24], sizes = [16, 8], strides = [1, 1]} : vector<16x32xf32> to vector<16x8xf32>
    %1086 = vector.shape_cast %1082 : vector<16x8xf32> to vector<1x16x8xf32>
    %1087 = vector.shape_cast %1083 : vector<16x8xf32> to vector<1x16x8xf32>
    %1088 = vector.shape_cast %1084 : vector<16x8xf32> to vector<1x16x8xf32>
    %1089 = vector.shape_cast %1085 : vector<16x8xf32> to vector<1x16x8xf32>
    %1090 = tpu.concatenate %1086, %1087, %1088, %1089 in 0 : vector<1x16x8xf32>, vector<1x16x8xf32>, vector<1x16x8xf32>, vector<1x16x8xf32> -> vector<4x16x8xf32>
    %1091 = vector.extract_strided_slice %1081 {offsets = [0, 0], sizes = [16, 8], strides = [1, 1]} : vector<16x64xf32> to vector<16x8xf32>
    %1092 = vector.extract_strided_slice %1081 {offsets = [0, 8], sizes = [16, 8], strides = [1, 1]} : vector<16x64xf32> to vector<16x8xf32>
    %1093 = vector.extract_strided_slice %1081 {offsets = [0, 16], sizes = [16, 8], strides = [1, 1]} : vector<16x64xf32> to vector<16x8xf32>
    %1094 = vector.extract_strided_slice %1081 {offsets = [0, 24], sizes = [16, 8], strides = [1, 1]} : vector<16x64xf32> to vector<16x8xf32>
    %1095 = vector.shape_cast %1091 : vector<16x8xf32> to vector<1x16x8xf32>
    %1096 = vector.shape_cast %1092 : vector<16x8xf32> to vector<1x16x8xf32>
    %1097 = vector.shape_cast %1093 : vector<16x8xf32> to vector<1x16x8xf32>
    %1098 = vector.shape_cast %1094 : vector<16x8xf32> to vector<1x16x8xf32>
    %1099 = tpu.concatenate %1095, %1096, %1097, %1098 in 0 : vector<1x16x8xf32>, vector<1x16x8xf32>, vector<1x16x8xf32>, vector<1x16x8xf32> -> vector<4x16x8xf32>
    %1100 = vector.extract_strided_slice %1081 {offsets = [0, 32], sizes = [16, 8], strides = [1, 1]} : vector<16x64xf32> to vector<16x8xf32>
    %1101 = vector.extract_strided_slice %1081 {offsets = [0, 40], sizes = [16, 8], strides = [1, 1]} : vector<16x64xf32> to vector<16x8xf32>
    %1102 = vector.extract_strided_slice %1081 {offsets = [0, 48], sizes = [16, 8], strides = [1, 1]} : vector<16x64xf32> to vector<16x8xf32>
    %1103 = vector.extract_strided_slice %1081 {offsets = [0, 56], sizes = [16, 8], strides = [1, 1]} : vector<16x64xf32> to vector<16x8xf32>
    %1104 = vector.shape_cast %1100 : vector<16x8xf32> to vector<1x16x8xf32>
    %1105 = vector.shape_cast %1101 : vector<16x8xf32> to vector<1x16x8xf32>
    %1106 = vector.shape_cast %1102 : vector<16x8xf32> to vector<1x16x8xf32>
    %1107 = vector.shape_cast %1103 : vector<16x8xf32> to vector<1x16x8xf32>
    %1108 = tpu.concatenate %1104, %1105, %1106, %1107 in 0 : vector<1x16x8xf32>, vector<1x16x8xf32>, vector<1x16x8xf32>, vector<1x16x8xf32> -> vector<4x16x8xf32>
    %1109 = arith.truncf %1090 : vector<4x16x8xf32> to vector<4x16x8xbf16>
    %1110 = arith.truncf %1099 : vector<4x16x8xf32> to vector<4x16x8xbf16>
    "tpu.trace_start"() <{level = 10 : i32, message = "hnd,hmd->hnm"}> : () -> ()
    %cst_394 = arith.constant dense<0.000000e+00> : vector<4x16x16xf32>
    %1111 = tpu.matmul %1109, %1110, %cst_394 {dimension_numbers = #tpu.dot_dimension_numbers<[2], [2], [1], [1], [0, 0, 0, 1, 1, 1], [0], [0]>} : vector<4x16x8xbf16>, vector<4x16x8xbf16>, vector<4x16x16xf32> -> vector<4x16x16xf32>
    "tpu.trace_stop"() : () -> ()
    %cst_395 = arith.constant 0.353553385 : f32
    %1112 = vector.broadcast %cst_395 : f32 to vector<4x16x16xf32>
    %1113 = arith.mulf %1111, %1112 : vector<4x16x16xf32>
    %cst_396 = arith.constant dense<0xFF800000> : vector<4x16xf32>
    %1114 = vector.multi_reduction <maximumf>, %1113, %cst_396 [2] : vector<4x16x16xf32> to vector<4x16xf32>
    %1115 = vector.shape_cast %1114 : vector<4x16xf32> to vector<4x16x1xf32>
    %1116 = vector.broadcast %1115 : vector<4x16x1xf32> to vector<4x16x16xf32>
    %1117 = arith.subf %1113, %1116 : vector<4x16x16xf32>
    %1118 = math.exp %1117 : vector<4x16x16xf32>
    %cst_397 = arith.constant dense<0.000000e+00> : vector<4x16xf32>
    %1119 = vector.multi_reduction <add>, %1118, %cst_397 [2] : vector<4x16x16xf32> to vector<4x16xf32>
    %1120 = vector.shape_cast %1119 : vector<4x16xf32> to vector<4x16x1xf32>
    %1121 = tpu.reciprocal %1120 {approx = true} : vector<4x16x1xf32> -> vector<4x16x1xf32>
    %1122 = vector.broadcast %1121 : vector<4x16x1xf32> to vector<4x16x16xf32>
    %1123 = arith.mulf %1118, %1122 : vector<4x16x16xf32>
    %1124 = arith.truncf %1123 : vector<4x16x16xf32> to vector<4x16x16xbf16>
    %1125 = arith.truncf %1108 : vector<4x16x8xf32> to vector<4x16x8xbf16>
    "tpu.trace_start"() <{level = 10 : i32, message = "hnm,hmd->hnd"}> : () -> ()
    %cst_398 = arith.constant dense<0.000000e+00> : vector<4x16x8xf32>
    %1126 = tpu.matmul %1124, %1125, %cst_398 {dimension_numbers = #tpu.dot_dimension_numbers<[2], [1], [1], [2], [0, 0, 0, 1, 1, 2], [0], [0]>} : vector<4x16x16xbf16>, vector<4x16x8xbf16>, vector<4x16x8xf32> -> vector<4x16x8xf32>
    "tpu.trace_stop"() : () -> ()
    %1127 = vector.extract_strided_slice %1126 {offsets = [0, 0, 0], sizes = [1, 16, 8], strides = [1, 1, 1]} : vector<4x16x8xf32> to vector<1x16x8xf32>
    %1128 = vector.shape_cast %1127 : vector<1x16x8xf32> to vector<16x8xf32>
    %1129 = vector.extract_strided_slice %1126 {offsets = [1, 0, 0], sizes = [1, 16, 8], strides = [1, 1, 1]} : vector<4x16x8xf32> to vector<1x16x8xf32>
    %1130 = vector.shape_cast %1129 : vector<1x16x8xf32> to vector<16x8xf32>
    %1131 = vector.extract_strided_slice %1126 {offsets = [2, 0, 0], sizes = [1, 16, 8], strides = [1, 1, 1]} : vector<4x16x8xf32> to vector<1x16x8xf32>
    %1132 = vector.shape_cast %1131 : vector<1x16x8xf32> to vector<16x8xf32>
    %1133 = vector.extract_strided_slice %1126 {offsets = [3, 0, 0], sizes = [1, 16, 8], strides = [1, 1, 1]} : vector<4x16x8xf32> to vector<1x16x8xf32>
    %1134 = vector.shape_cast %1133 : vector<1x16x8xf32> to vector<16x8xf32>
    %1135 = tpu.concatenate %1128, %1130, %1132, %1134 in 1 : vector<16x8xf32>, vector<16x8xf32>, vector<16x8xf32>, vector<16x8xf32> -> vector<16x32xf32>
    %c6_399 = arith.constant 6 : index
    %c0_400 = arith.constant 0 : index
    %c0_401 = arith.constant 0 : index
    %1136 = vector.load %arg9[%c6_399, %c0_400, %c0_401] : memref<8x32x32xbf16, #tpu.memory_space<vmem>>, vector<1x32x32xbf16>
    %1137 = vector.shape_cast %1136 : vector<1x32x32xbf16> to vector<32x32xbf16>
    %1138 = arith.truncf %1135 : vector<16x32xf32> to vector<16x32xbf16>
    %cst_402 = arith.constant dense<0.000000e+00> : vector<16x32xf32>
    %1139 = tpu.matmul %1138, %1137, %cst_402 {dimension_numbers = #tpu.dot_dimension_numbers<[1], [0], [0], [1], [0, 0, 1, 1], [], []>} : vector<16x32xbf16>, vector<32x32xbf16>, vector<16x32xf32> -> vector<16x32xf32>
    %1140 = arith.addf %862, %1139 : vector<16x32xf32>
    %c6_403 = arith.constant 6 : index
    %c0_404 = arith.constant 0 : index
    %c0_405 = arith.constant 0 : index
    %1141 = vector.load %arg10[%c6_403, %c0_404, %c0_405] : memref<8x1x32xf32, #tpu.memory_space<vmem>>, vector<1x1x32xf32>
    %1142 = vector.shape_cast %1141 : vector<1x1x32xf32> to vector<1x32xf32>
    %1143 = vector.broadcast %1142 : vector<1x32xf32> to vector<16x32xf32>
    %1144 = arith.addf %1140, %1143 : vector<16x32xf32>
    %c6_406 = arith.constant 6 : index
    %c0_407 = arith.constant 0 : index
    %c0_408 = arith.constant 0 : index
    %1145 = vector.load %arg11[%c6_406, %c0_407, %c0_408] : memref<8x1x32xf32, #tpu.memory_space<vmem>>, vector<1x1x32xf32>
    %1146 = vector.shape_cast %1145 : vector<1x1x32xf32> to vector<1x32xf32>
    %c6_409 = arith.constant 6 : index
    %c0_410 = arith.constant 0 : index
    %c0_411 = arith.constant 0 : index
    %1147 = vector.load %arg12[%c6_409, %c0_410, %c0_411] : memref<8x1x32xf32, #tpu.memory_space<vmem>>, vector<1x1x32xf32>
    %1148 = vector.shape_cast %1147 : vector<1x1x32xf32> to vector<1x32xf32>
    %cst_412 = arith.constant dense<0.000000e+00> : vector<16xf32>
    %1149 = vector.multi_reduction <add>, %1144, %cst_412 [1] : vector<16x32xf32> to vector<16xf32>
    %1150 = vector.shape_cast %1149 : vector<16xf32> to vector<16x1xf32>
    %cst_413 = arith.constant 3.200000e+01 : f32
    %1151 = vector.broadcast %cst_413 : f32 to vector<16x1xf32>
    %1152 = arith.divf %1150, %1151 : vector<16x1xf32>
    %1153 = vector.broadcast %1152 : vector<16x1xf32> to vector<16x32xf32>
    %1154 = arith.subf %1144, %1153 : vector<16x32xf32>
    %1155 = arith.mulf %1154, %1154 : vector<16x32xf32>
    %cst_414 = arith.constant dense<0.000000e+00> : vector<16xf32>
    %1156 = vector.multi_reduction <add>, %1155, %cst_414 [1] : vector<16x32xf32> to vector<16xf32>
    %1157 = vector.shape_cast %1156 : vector<16xf32> to vector<16x1xf32>
    %cst_415 = arith.constant 3.200000e+01 : f32
    %1158 = vector.broadcast %cst_415 : f32 to vector<16x1xf32>
    %1159 = arith.divf %1157, %1158 : vector<16x1xf32>
    %1160 = vector.broadcast %1152 : vector<16x1xf32> to vector<16x32xf32>
    %1161 = arith.subf %1144, %1160 : vector<16x32xf32>
    %cst_416 = arith.constant 9.99999997E-7 : f32
    %1162 = vector.broadcast %cst_416 : f32 to vector<16x1xf32>
    %1163 = arith.addf %1159, %1162 : vector<16x1xf32>
    %1164 = math.rsqrt %1163 : vector<16x1xf32>
    %1165 = vector.broadcast %1164 : vector<16x1xf32> to vector<16x32xf32>
    %1166 = arith.mulf %1161, %1165 : vector<16x32xf32>
    %1167 = vector.broadcast %1146 : vector<1x32xf32> to vector<16x32xf32>
    %1168 = arith.mulf %1166, %1167 : vector<16x32xf32>
    %1169 = vector.broadcast %1148 : vector<1x32xf32> to vector<16x32xf32>
    %1170 = arith.addf %1168, %1169 : vector<16x32xf32>
    %c6_417 = arith.constant 6 : index
    %c0_418 = arith.constant 0 : index
    %c0_419 = arith.constant 0 : index
    %1171 = vector.load %arg13[%c6_417, %c0_418, %c0_419] : memref<8x32x64xbf16, #tpu.memory_space<vmem>>, vector<1x32x64xbf16>
    %1172 = vector.shape_cast %1171 : vector<1x32x64xbf16> to vector<32x64xbf16>
    %1173 = arith.truncf %1170 : vector<16x32xf32> to vector<16x32xbf16>
    %cst_420 = arith.constant dense<0.000000e+00> : vector<16x64xf32>
    %1174 = tpu.matmul %1173, %1172, %cst_420 {dimension_numbers = #tpu.dot_dimension_numbers<[1], [0], [0], [1], [0, 0, 1, 1], [], []>} : vector<16x32xbf16>, vector<32x64xbf16>, vector<16x64xf32> -> vector<16x64xf32>
    %c6_421 = arith.constant 6 : index
    %c0_422 = arith.constant 0 : index
    %c0_423 = arith.constant 0 : index
    %1175 = vector.load %arg14[%c6_421, %c0_422, %c0_423] : memref<8x1x64xf32, #tpu.memory_space<vmem>>, vector<1x1x64xf32>
    %1176 = vector.shape_cast %1175 : vector<1x1x64xf32> to vector<1x64xf32>
    %1177 = vector.broadcast %1176 : vector<1x64xf32> to vector<16x64xf32>
    %1178 = arith.addf %1174, %1177 : vector<16x64xf32>
    %cst_424 = arith.constant 5.000000e-01 : f32
    %1179 = vector.broadcast %cst_424 : f32 to vector<16x64xf32>
    %1180 = arith.mulf %1179, %1178 : vector<16x64xf32>
    %cst_425 = arith.constant 4.471500e-02 : f32
    %1181 = vector.broadcast %cst_425 : f32 to vector<16x64xf32>
    %1182 = arith.mulf %1181, %1178 : vector<16x64xf32>
    %1183 = arith.mulf %1182, %1178 : vector<16x64xf32>
    %1184 = arith.mulf %1183, %1178 : vector<16x64xf32>
    %1185 = arith.addf %1178, %1184 : vector<16x64xf32>
    %cst_426 = arith.constant 0.797884583 : f32
    %1186 = vector.broadcast %cst_426 : f32 to vector<16x64xf32>
    %1187 = arith.mulf %1186, %1185 : vector<16x64xf32>
    %1188 = math.tanh %1187 : vector<16x64xf32>
    %cst_427 = arith.constant 1.000000e+00 : f32
    %1189 = vector.broadcast %cst_427 : f32 to vector<16x64xf32>
    %1190 = arith.addf %1189, %1188 : vector<16x64xf32>
    %1191 = arith.mulf %1180, %1190 : vector<16x64xf32>
    %c6_428 = arith.constant 6 : index
    %c0_429 = arith.constant 0 : index
    %c0_430 = arith.constant 0 : index
    %1192 = vector.load %arg15[%c6_428, %c0_429, %c0_430] : memref<8x64x32xbf16, #tpu.memory_space<vmem>>, vector<1x64x32xbf16>
    %1193 = vector.shape_cast %1192 : vector<1x64x32xbf16> to vector<64x32xbf16>
    %1194 = arith.truncf %1191 : vector<16x64xf32> to vector<16x64xbf16>
    %cst_431 = arith.constant dense<0.000000e+00> : vector<16x32xf32>
    %1195 = tpu.matmul %1194, %1193, %cst_431 {dimension_numbers = #tpu.dot_dimension_numbers<[1], [0], [0], [1], [0, 0, 1, 1], [], []>} : vector<16x64xbf16>, vector<64x32xbf16>, vector<16x32xf32> -> vector<16x32xf32>
    %1196 = arith.addf %1144, %1195 : vector<16x32xf32>
    %c6_432 = arith.constant 6 : index
    %c0_433 = arith.constant 0 : index
    %c0_434 = arith.constant 0 : index
    %1197 = vector.load %arg16[%c6_432, %c0_433, %c0_434] : memref<8x1x32xf32, #tpu.memory_space<vmem>>, vector<1x1x32xf32>
    %1198 = vector.shape_cast %1197 : vector<1x1x32xf32> to vector<1x32xf32>
    %1199 = vector.broadcast %1198 : vector<1x32xf32> to vector<16x32xf32>
    %1200 = arith.addf %1196, %1199 : vector<16x32xf32>
    %c7 = arith.constant 7 : index
    %c0_435 = arith.constant 0 : index
    %c0_436 = arith.constant 0 : index
    %1201 = vector.load %arg5[%c7, %c0_435, %c0_436] : memref<8x1x32xf32, #tpu.memory_space<vmem>>, vector<1x1x32xf32>
    %1202 = vector.shape_cast %1201 : vector<1x1x32xf32> to vector<1x32xf32>
    %c7_437 = arith.constant 7 : index
    %c0_438 = arith.constant 0 : index
    %c0_439 = arith.constant 0 : index
    %1203 = vector.load %arg6[%c7_437, %c0_438, %c0_439] : memref<8x1x32xf32, #tpu.memory_space<vmem>>, vector<1x1x32xf32>
    %1204 = vector.shape_cast %1203 : vector<1x1x32xf32> to vector<1x32xf32>
    %cst_440 = arith.constant dense<0.000000e+00> : vector<8xf32>
    %1205 = vector.multi_reduction <add>, %1045, %cst_440 [1] : vector<8x32xf32> to vector<8xf32>
    %1206 = vector.shape_cast %1205 : vector<8xf32> to vector<8x1xf32>
    %cst_441 = arith.constant 3.200000e+01 : f32
    %1207 = vector.broadcast %cst_441 : f32 to vector<8x1xf32>
    %1208 = arith.divf %1206, %1207 : vector<8x1xf32>
    %1209 = vector.broadcast %1208 : vector<8x1xf32> to vector<8x32xf32>
    %1210 = arith.subf %1045, %1209 : vector<8x32xf32>
    %1211 = arith.mulf %1210, %1210 : vector<8x32xf32>
    %cst_442 = arith.constant dense<0.000000e+00> : vector<8xf32>
    %1212 = vector.multi_reduction <add>, %1211, %cst_442 [1] : vector<8x32xf32> to vector<8xf32>
    %1213 = vector.shape_cast %1212 : vector<8xf32> to vector<8x1xf32>
    %cst_443 = arith.constant 3.200000e+01 : f32
    %1214 = vector.broadcast %cst_443 : f32 to vector<8x1xf32>
    %1215 = arith.divf %1213, %1214 : vector<8x1xf32>
    %1216 = vector.broadcast %1208 : vector<8x1xf32> to vector<8x32xf32>
    %1217 = arith.subf %1045, %1216 : vector<8x32xf32>
    %cst_444 = arith.constant 9.99999997E-7 : f32
    %1218 = vector.broadcast %cst_444 : f32 to vector<8x1xf32>
    %1219 = arith.addf %1215, %1218 : vector<8x1xf32>
    %1220 = math.rsqrt %1219 : vector<8x1xf32>
    %1221 = vector.broadcast %1220 : vector<8x1xf32> to vector<8x32xf32>
    %1222 = arith.mulf %1217, %1221 : vector<8x32xf32>
    %1223 = vector.broadcast %1202 : vector<1x32xf32> to vector<8x32xf32>
    %1224 = arith.mulf %1222, %1223 : vector<8x32xf32>
    %1225 = vector.broadcast %1204 : vector<1x32xf32> to vector<8x32xf32>
    %1226 = arith.addf %1224, %1225 : vector<8x32xf32>
    %c7_445 = arith.constant 7 : index
    %c0_446 = arith.constant 0 : index
    %c0_447 = arith.constant 0 : index
    %1227 = vector.load %arg7[%c7_445, %c0_446, %c0_447] : memref<8x32x96xbf16, #tpu.memory_space<vmem>>, vector<1x32x96xbf16>
    %1228 = vector.shape_cast %1227 : vector<1x32x96xbf16> to vector<32x96xbf16>
    %c7_448 = arith.constant 7 : index
    %c0_449 = arith.constant 0 : index
    %c0_450 = arith.constant 0 : index
    %1229 = vector.load %arg8[%c7_448, %c0_449, %c0_450] : memref<8x1x96xf32, #tpu.memory_space<vmem>>, vector<1x1x96xf32>
    %1230 = vector.shape_cast %1229 : vector<1x1x96xf32> to vector<1x96xf32>
    %1231 = arith.truncf %1226 : vector<8x32xf32> to vector<8x32xbf16>
    %cst_451 = arith.constant dense<0.000000e+00> : vector<8x96xf32>
    %1232 = tpu.matmul %1231, %1228, %cst_451 {dimension_numbers = #tpu.dot_dimension_numbers<[1], [0], [0], [1], [0, 0, 1, 1], [], []>} : vector<8x32xbf16>, vector<32x96xbf16>, vector<8x96xf32> -> vector<8x96xf32>
    %1233 = vector.broadcast %1230 : vector<1x96xf32> to vector<8x96xf32>
    %1234 = arith.addf %1232, %1233 : vector<8x96xf32>
    %1235 = vector.extract_strided_slice %1234 {offsets = [0, 0], sizes = [8, 32], strides = [1, 1]} : vector<8x96xf32> to vector<8x32xf32>
    %1236 = vector.extract_strided_slice %1234 {offsets = [0, 32], sizes = [8, 64], strides = [1, 1]} : vector<8x96xf32> to vector<8x64xf32>
    %1237 = vector.extract_strided_slice %1235 {offsets = [0, 0], sizes = [8, 8], strides = [1, 1]} : vector<8x32xf32> to vector<8x8xf32>
    %1238 = vector.extract_strided_slice %1235 {offsets = [0, 8], sizes = [8, 8], strides = [1, 1]} : vector<8x32xf32> to vector<8x8xf32>
    %1239 = vector.extract_strided_slice %1235 {offsets = [0, 16], sizes = [8, 8], strides = [1, 1]} : vector<8x32xf32> to vector<8x8xf32>
    %1240 = vector.extract_strided_slice %1235 {offsets = [0, 24], sizes = [8, 8], strides = [1, 1]} : vector<8x32xf32> to vector<8x8xf32>
    %1241 = vector.shape_cast %1237 : vector<8x8xf32> to vector<1x8x8xf32>
    %1242 = vector.shape_cast %1238 : vector<8x8xf32> to vector<1x8x8xf32>
    %1243 = vector.shape_cast %1239 : vector<8x8xf32> to vector<1x8x8xf32>
    %1244 = vector.shape_cast %1240 : vector<8x8xf32> to vector<1x8x8xf32>
    %1245 = tpu.concatenate %1241, %1242, %1243, %1244 in 0 : vector<1x8x8xf32>, vector<1x8x8xf32>, vector<1x8x8xf32>, vector<1x8x8xf32> -> vector<4x8x8xf32>
    %1246 = vector.extract_strided_slice %1236 {offsets = [0, 0], sizes = [8, 8], strides = [1, 1]} : vector<8x64xf32> to vector<8x8xf32>
    %1247 = vector.extract_strided_slice %1236 {offsets = [0, 8], sizes = [8, 8], strides = [1, 1]} : vector<8x64xf32> to vector<8x8xf32>
    %1248 = vector.extract_strided_slice %1236 {offsets = [0, 16], sizes = [8, 8], strides = [1, 1]} : vector<8x64xf32> to vector<8x8xf32>
    %1249 = vector.extract_strided_slice %1236 {offsets = [0, 24], sizes = [8, 8], strides = [1, 1]} : vector<8x64xf32> to vector<8x8xf32>
    %1250 = vector.shape_cast %1246 : vector<8x8xf32> to vector<1x8x8xf32>
    %1251 = vector.shape_cast %1247 : vector<8x8xf32> to vector<1x8x8xf32>
    %1252 = vector.shape_cast %1248 : vector<8x8xf32> to vector<1x8x8xf32>
    %1253 = vector.shape_cast %1249 : vector<8x8xf32> to vector<1x8x8xf32>
    %1254 = tpu.concatenate %1250, %1251, %1252, %1253 in 0 : vector<1x8x8xf32>, vector<1x8x8xf32>, vector<1x8x8xf32>, vector<1x8x8xf32> -> vector<4x8x8xf32>
    %1255 = vector.extract_strided_slice %1236 {offsets = [0, 32], sizes = [8, 8], strides = [1, 1]} : vector<8x64xf32> to vector<8x8xf32>
    %1256 = vector.extract_strided_slice %1236 {offsets = [0, 40], sizes = [8, 8], strides = [1, 1]} : vector<8x64xf32> to vector<8x8xf32>
    %1257 = vector.extract_strided_slice %1236 {offsets = [0, 48], sizes = [8, 8], strides = [1, 1]} : vector<8x64xf32> to vector<8x8xf32>
    %1258 = vector.extract_strided_slice %1236 {offsets = [0, 56], sizes = [8, 8], strides = [1, 1]} : vector<8x64xf32> to vector<8x8xf32>
    %1259 = vector.shape_cast %1255 : vector<8x8xf32> to vector<1x8x8xf32>
    %1260 = vector.shape_cast %1256 : vector<8x8xf32> to vector<1x8x8xf32>
    %1261 = vector.shape_cast %1257 : vector<8x8xf32> to vector<1x8x8xf32>
    %1262 = vector.shape_cast %1258 : vector<8x8xf32> to vector<1x8x8xf32>
    %1263 = tpu.concatenate %1259, %1260, %1261, %1262 in 0 : vector<1x8x8xf32>, vector<1x8x8xf32>, vector<1x8x8xf32>, vector<1x8x8xf32> -> vector<4x8x8xf32>
    %1264 = arith.truncf %1245 : vector<4x8x8xf32> to vector<4x8x8xbf16>
    %1265 = arith.truncf %1254 : vector<4x8x8xf32> to vector<4x8x8xbf16>
    "tpu.trace_start"() <{level = 10 : i32, message = "hnd,hmd->hnm"}> : () -> ()
    %cst_452 = arith.constant dense<0.000000e+00> : vector<4x8x8xf32>
    %1266 = tpu.matmul %1264, %1265, %cst_452 {dimension_numbers = #tpu.dot_dimension_numbers<[2], [2], [1], [1], [0, 0, 0, 1, 1, 1], [0], [0]>} : vector<4x8x8xbf16>, vector<4x8x8xbf16>, vector<4x8x8xf32> -> vector<4x8x8xf32>
    "tpu.trace_stop"() : () -> ()
    %cst_453 = arith.constant 0.353553385 : f32
    %1267 = vector.broadcast %cst_453 : f32 to vector<4x8x8xf32>
    %1268 = arith.mulf %1266, %1267 : vector<4x8x8xf32>
    %cst_454 = arith.constant dense<0xFF800000> : vector<4x8xf32>
    %1269 = vector.multi_reduction <maximumf>, %1268, %cst_454 [2] : vector<4x8x8xf32> to vector<4x8xf32>
    %1270 = vector.shape_cast %1269 : vector<4x8xf32> to vector<4x8x1xf32>
    %1271 = vector.broadcast %1270 : vector<4x8x1xf32> to vector<4x8x8xf32>
    %1272 = arith.subf %1268, %1271 : vector<4x8x8xf32>
    %1273 = math.exp %1272 : vector<4x8x8xf32>
    %cst_455 = arith.constant dense<0.000000e+00> : vector<4x8xf32>
    %1274 = vector.multi_reduction <add>, %1273, %cst_455 [2] : vector<4x8x8xf32> to vector<4x8xf32>
    %1275 = vector.shape_cast %1274 : vector<4x8xf32> to vector<4x8x1xf32>
    %1276 = tpu.reciprocal %1275 {approx = true} : vector<4x8x1xf32> -> vector<4x8x1xf32>
    %1277 = vector.broadcast %1276 : vector<4x8x1xf32> to vector<4x8x8xf32>
    %1278 = arith.mulf %1273, %1277 : vector<4x8x8xf32>
    %1279 = arith.truncf %1278 : vector<4x8x8xf32> to vector<4x8x8xbf16>
    %1280 = arith.truncf %1263 : vector<4x8x8xf32> to vector<4x8x8xbf16>
    "tpu.trace_start"() <{level = 10 : i32, message = "hnm,hmd->hnd"}> : () -> ()
    %cst_456 = arith.constant dense<0.000000e+00> : vector<4x8x8xf32>
    %1281 = tpu.matmul %1279, %1280, %cst_456 {dimension_numbers = #tpu.dot_dimension_numbers<[2], [1], [1], [2], [0, 0, 0, 1, 1, 2], [0], [0]>} : vector<4x8x8xbf16>, vector<4x8x8xbf16>, vector<4x8x8xf32> -> vector<4x8x8xf32>
    "tpu.trace_stop"() : () -> ()
    %1282 = vector.extract_strided_slice %1281 {offsets = [0, 0, 0], sizes = [1, 8, 8], strides = [1, 1, 1]} : vector<4x8x8xf32> to vector<1x8x8xf32>
    %1283 = vector.shape_cast %1282 : vector<1x8x8xf32> to vector<8x8xf32>
    %1284 = vector.extract_strided_slice %1281 {offsets = [1, 0, 0], sizes = [1, 8, 8], strides = [1, 1, 1]} : vector<4x8x8xf32> to vector<1x8x8xf32>
    %1285 = vector.shape_cast %1284 : vector<1x8x8xf32> to vector<8x8xf32>
    %1286 = vector.extract_strided_slice %1281 {offsets = [2, 0, 0], sizes = [1, 8, 8], strides = [1, 1, 1]} : vector<4x8x8xf32> to vector<1x8x8xf32>
    %1287 = vector.shape_cast %1286 : vector<1x8x8xf32> to vector<8x8xf32>
    %1288 = vector.extract_strided_slice %1281 {offsets = [3, 0, 0], sizes = [1, 8, 8], strides = [1, 1, 1]} : vector<4x8x8xf32> to vector<1x8x8xf32>
    %1289 = vector.shape_cast %1288 : vector<1x8x8xf32> to vector<8x8xf32>
    %1290 = tpu.concatenate %1283, %1285, %1287, %1289 in 1 : vector<8x8xf32>, vector<8x8xf32>, vector<8x8xf32>, vector<8x8xf32> -> vector<8x32xf32>
    %c7_457 = arith.constant 7 : index
    %c0_458 = arith.constant 0 : index
    %c0_459 = arith.constant 0 : index
    %1291 = vector.load %arg9[%c7_457, %c0_458, %c0_459] : memref<8x32x32xbf16, #tpu.memory_space<vmem>>, vector<1x32x32xbf16>
    %1292 = vector.shape_cast %1291 : vector<1x32x32xbf16> to vector<32x32xbf16>
    %1293 = arith.truncf %1290 : vector<8x32xf32> to vector<8x32xbf16>
    %cst_460 = arith.constant dense<0.000000e+00> : vector<8x32xf32>
    %1294 = tpu.matmul %1293, %1292, %cst_460 {dimension_numbers = #tpu.dot_dimension_numbers<[1], [0], [0], [1], [0, 0, 1, 1], [], []>} : vector<8x32xbf16>, vector<32x32xbf16>, vector<8x32xf32> -> vector<8x32xf32>
    %1295 = arith.addf %1045, %1294 : vector<8x32xf32>
    %c7_461 = arith.constant 7 : index
    %c0_462 = arith.constant 0 : index
    %c0_463 = arith.constant 0 : index
    %1296 = vector.load %arg10[%c7_461, %c0_462, %c0_463] : memref<8x1x32xf32, #tpu.memory_space<vmem>>, vector<1x1x32xf32>
    %1297 = vector.shape_cast %1296 : vector<1x1x32xf32> to vector<1x32xf32>
    %1298 = vector.broadcast %1297 : vector<1x32xf32> to vector<8x32xf32>
    %1299 = arith.addf %1295, %1298 : vector<8x32xf32>
    %c7_464 = arith.constant 7 : index
    %c0_465 = arith.constant 0 : index
    %c0_466 = arith.constant 0 : index
    %1300 = vector.load %arg11[%c7_464, %c0_465, %c0_466] : memref<8x1x32xf32, #tpu.memory_space<vmem>>, vector<1x1x32xf32>
    %1301 = vector.shape_cast %1300 : vector<1x1x32xf32> to vector<1x32xf32>
    %c7_467 = arith.constant 7 : index
    %c0_468 = arith.constant 0 : index
    %c0_469 = arith.constant 0 : index
    %1302 = vector.load %arg12[%c7_467, %c0_468, %c0_469] : memref<8x1x32xf32, #tpu.memory_space<vmem>>, vector<1x1x32xf32>
    %1303 = vector.shape_cast %1302 : vector<1x1x32xf32> to vector<1x32xf32>
    %cst_470 = arith.constant dense<0.000000e+00> : vector<8xf32>
    %1304 = vector.multi_reduction <add>, %1299, %cst_470 [1] : vector<8x32xf32> to vector<8xf32>
    %1305 = vector.shape_cast %1304 : vector<8xf32> to vector<8x1xf32>
    %cst_471 = arith.constant 3.200000e+01 : f32
    %1306 = vector.broadcast %cst_471 : f32 to vector<8x1xf32>
    %1307 = arith.divf %1305, %1306 : vector<8x1xf32>
    %1308 = vector.broadcast %1307 : vector<8x1xf32> to vector<8x32xf32>
    %1309 = arith.subf %1299, %1308 : vector<8x32xf32>
    %1310 = arith.mulf %1309, %1309 : vector<8x32xf32>
    %cst_472 = arith.constant dense<0.000000e+00> : vector<8xf32>
    %1311 = vector.multi_reduction <add>, %1310, %cst_472 [1] : vector<8x32xf32> to vector<8xf32>
    %1312 = vector.shape_cast %1311 : vector<8xf32> to vector<8x1xf32>
    %cst_473 = arith.constant 3.200000e+01 : f32
    %1313 = vector.broadcast %cst_473 : f32 to vector<8x1xf32>
    %1314 = arith.divf %1312, %1313 : vector<8x1xf32>
    %1315 = vector.broadcast %1307 : vector<8x1xf32> to vector<8x32xf32>
    %1316 = arith.subf %1299, %1315 : vector<8x32xf32>
    %cst_474 = arith.constant 9.99999997E-7 : f32
    %1317 = vector.broadcast %cst_474 : f32 to vector<8x1xf32>
    %1318 = arith.addf %1314, %1317 : vector<8x1xf32>
    %1319 = math.rsqrt %1318 : vector<8x1xf32>
    %1320 = vector.broadcast %1319 : vector<8x1xf32> to vector<8x32xf32>
    %1321 = arith.mulf %1316, %1320 : vector<8x32xf32>
    %1322 = vector.broadcast %1301 : vector<1x32xf32> to vector<8x32xf32>
    %1323 = arith.mulf %1321, %1322 : vector<8x32xf32>
    %1324 = vector.broadcast %1303 : vector<1x32xf32> to vector<8x32xf32>
    %1325 = arith.addf %1323, %1324 : vector<8x32xf32>
    %c7_475 = arith.constant 7 : index
    %c0_476 = arith.constant 0 : index
    %c0_477 = arith.constant 0 : index
    %1326 = vector.load %arg13[%c7_475, %c0_476, %c0_477] : memref<8x32x64xbf16, #tpu.memory_space<vmem>>, vector<1x32x64xbf16>
    %1327 = vector.shape_cast %1326 : vector<1x32x64xbf16> to vector<32x64xbf16>
    %1328 = arith.truncf %1325 : vector<8x32xf32> to vector<8x32xbf16>
    %cst_478 = arith.constant dense<0.000000e+00> : vector<8x64xf32>
    %1329 = tpu.matmul %1328, %1327, %cst_478 {dimension_numbers = #tpu.dot_dimension_numbers<[1], [0], [0], [1], [0, 0, 1, 1], [], []>} : vector<8x32xbf16>, vector<32x64xbf16>, vector<8x64xf32> -> vector<8x64xf32>
    %c7_479 = arith.constant 7 : index
    %c0_480 = arith.constant 0 : index
    %c0_481 = arith.constant 0 : index
    %1330 = vector.load %arg14[%c7_479, %c0_480, %c0_481] : memref<8x1x64xf32, #tpu.memory_space<vmem>>, vector<1x1x64xf32>
    %1331 = vector.shape_cast %1330 : vector<1x1x64xf32> to vector<1x64xf32>
    %1332 = vector.broadcast %1331 : vector<1x64xf32> to vector<8x64xf32>
    %1333 = arith.addf %1329, %1332 : vector<8x64xf32>
    %cst_482 = arith.constant 5.000000e-01 : f32
    %1334 = vector.broadcast %cst_482 : f32 to vector<8x64xf32>
    %1335 = arith.mulf %1334, %1333 : vector<8x64xf32>
    %cst_483 = arith.constant 4.471500e-02 : f32
    %1336 = vector.broadcast %cst_483 : f32 to vector<8x64xf32>
    %1337 = arith.mulf %1336, %1333 : vector<8x64xf32>
    %1338 = arith.mulf %1337, %1333 : vector<8x64xf32>
    %1339 = arith.mulf %1338, %1333 : vector<8x64xf32>
    %1340 = arith.addf %1333, %1339 : vector<8x64xf32>
    %cst_484 = arith.constant 0.797884583 : f32
    %1341 = vector.broadcast %cst_484 : f32 to vector<8x64xf32>
    %1342 = arith.mulf %1341, %1340 : vector<8x64xf32>
    %1343 = math.tanh %1342 : vector<8x64xf32>
    %cst_485 = arith.constant 1.000000e+00 : f32
    %1344 = vector.broadcast %cst_485 : f32 to vector<8x64xf32>
    %1345 = arith.addf %1344, %1343 : vector<8x64xf32>
    %1346 = arith.mulf %1335, %1345 : vector<8x64xf32>
    %c7_486 = arith.constant 7 : index
    %c0_487 = arith.constant 0 : index
    %c0_488 = arith.constant 0 : index
    %1347 = vector.load %arg15[%c7_486, %c0_487, %c0_488] : memref<8x64x32xbf16, #tpu.memory_space<vmem>>, vector<1x64x32xbf16>
    %1348 = vector.shape_cast %1347 : vector<1x64x32xbf16> to vector<64x32xbf16>
    %1349 = arith.truncf %1346 : vector<8x64xf32> to vector<8x64xbf16>
    %cst_489 = arith.constant dense<0.000000e+00> : vector<8x32xf32>
    %1350 = tpu.matmul %1349, %1348, %cst_489 {dimension_numbers = #tpu.dot_dimension_numbers<[1], [0], [0], [1], [0, 0, 1, 1], [], []>} : vector<8x64xbf16>, vector<64x32xbf16>, vector<8x32xf32> -> vector<8x32xf32>
    %1351 = arith.addf %1299, %1350 : vector<8x32xf32>
    %c7_490 = arith.constant 7 : index
    %c0_491 = arith.constant 0 : index
    %c0_492 = arith.constant 0 : index
    %1352 = vector.load %arg16[%c7_490, %c0_491, %c0_492] : memref<8x1x32xf32, #tpu.memory_space<vmem>>, vector<1x1x32xf32>
    %1353 = vector.shape_cast %1352 : vector<1x1x32xf32> to vector<1x32xf32>
    %1354 = vector.broadcast %1353 : vector<1x32xf32> to vector<8x32xf32>
    %1355 = arith.addf %1351, %1354 : vector<8x32xf32>
    %c0_493 = arith.constant 0 : index
    %c0_494 = arith.constant 0 : index
    %c0_495 = arith.constant 0 : index
    %1356 = vector.load %arg17[%c0_493, %c0_494, %c0_495] : memref<1x16x32xf32, #tpu.memory_space<vmem>>, vector<1x16x32xf32>
    %1357 = vector.shape_cast %1356 : vector<1x16x32xf32> to vector<16x32xf32>
    %1358 = vector.shape_cast %1200 : vector<16x32xf32> to vector<1x16x32xf32>
    tpu.vector_store %arg17[%c0_493, %c0_494, %c0_495], %1358 {strides = array<i32>} : memref<1x16x32xf32, #tpu.memory_space<vmem>>, vector<1x16x32xf32>,
    %c0_496 = arith.constant 0 : index
    %c0_497 = arith.constant 0 : index
    %c0_498 = arith.constant 0 : index
    %1359 = vector.load %arg18[%c0_496, %c0_497, %c0_498] : memref<1x8x32xf32, #tpu.memory_space<vmem>>, vector<1x8x32xf32>
    %1360 = vector.shape_cast %1359 : vector<1x8x32xf32> to vector<8x32xf32>
    %1361 = vector.shape_cast %1355 : vector<8x32xf32> to vector<1x8x32xf32>
    tpu.vector_store %arg18[%c0_496, %c0_497, %c0_498], %1361 {strides = array<i32>} : memref<1x8x32xf32, #tpu.memory_space<vmem>>, vector<1x8x32xf32>,
    %cst_499 = arith.constant 0.000000e+00 : f32
    %1362 = vector.broadcast %cst_499 : f32 to vector<8x32xf32>
    %1363 = tpu.concatenate %1200, %1362 in 0 : vector<16x32xf32>, vector<8x32xf32> -> vector<24x32xf32>
    %cst_500 = arith.constant 0.000000e+00 : f32
    %1364 = vector.broadcast %cst_500 : f32 to vector<120x32xf32>
    %1365 = tpu.concatenate %1355, %1364 in 0 : vector<8x32xf32>, vector<120x32xf32> -> vector<128x32xf32>
    %1366 = arith.truncf %1363 : vector<24x32xf32> to vector<24x32xbf16>
    %1367 = arith.truncf %1365 : vector<128x32xf32> to vector<128x32xbf16>
    %cst_501 = arith.constant dense<0.000000e+00> : vector<24x128xf32>
    %1368 = tpu.matmul %1366, %1367, %cst_501 {dimension_numbers = #tpu.dot_dimension_numbers<[1], [1], [0], [0], [0, 0, 1, 0], [], []>} : vector<24x32xbf16>, vector<128x32xbf16>, vector<24x128xf32> -> vector<24x128xf32>
    %cst_502 = arith.constant 0.176776692 : f32
    %1369 = vector.broadcast %cst_502 : f32 to vector<24x128xf32>
    %1370 = arith.mulf %1368, %1369 : vector<24x128xf32>
    %c0_503 = arith.constant 0 : index
    %1371 = memref.load %arg4[%c0_503] : memref<1xf32, #tpu.memory_space<smem>>
    %1372 = tpu.iota {dimensions = array<i32: 0>} : vector<24x128xi32>
    %1373 = tpu.iota {dimensions = array<i32: 1>} : vector<24x128xi32>
    %c16_i32 = arith.constant 16 : i32
    %1374 = vector.broadcast %c16_i32 : i32 to vector<24x128xi32>
    %1375 = arith.cmpi slt, %1372, %1374 : vector<24x128xi32>
    %c8_i32 = arith.constant 8 : i32
    %1376 = vector.broadcast %c8_i32 : i32 to vector<24x128xi32>
    %1377 = arith.cmpi slt, %1373, %1376 : vector<24x128xi32>
    %1378 = arith.andi %1375, %1377 : vector<24x128xi1>
    %1379 = vector.broadcast %1371 : f32 to vector<24x128xf32>
    %1380 = arith.select %1378, %1370, %1379 : vector<24x128xi1>, vector<24x128xf32>
    %1381 = tpu.iota {dimensions = array<i32: 0>} : vector<24x1xi32>
    %1382 = tpu.iota {dimensions = array<i32: 1>} : vector<1x128xi32>
    %c16_i32_504 = arith.constant 16 : i32
    %1383 = vector.broadcast %c16_i32_504 : i32 to vector<24x1xi32>
    %1384 = arith.cmpi sle, %1381, %1383 : vector<24x1xi32>
    %c8_i32_505 = arith.constant 8 : i32
    %1385 = vector.broadcast %c8_i32_505 : i32 to vector<1x128xi32>
    %1386 = arith.cmpi sle, %1382, %1385 : vector<1x128xi32>
    %c16_i32_506 = arith.constant 16 : i32
    %1387 = vector.broadcast %c16_i32_506 : i32 to vector<24x1xi32>
    %1388 = arith.cmpi eq, %1381, %1387 : vector<24x1xi32>
    %cst_507 = arith.constant -1.09861231 : f32
    %cst_508 = arith.constant -3.17805386 : f32
    %1389 = vector.broadcast %cst_507 : f32 to vector<24x1xf32>
    %1390 = vector.broadcast %cst_508 : f32 to vector<24x1xf32>
    %1391 = arith.select %1388, %1389, %1390 : vector<24x1xi1>, vector<24x1xf32>
    %c8_i32_509 = arith.constant 8 : i32
    %1392 = vector.broadcast %c8_i32_509 : i32 to vector<1x128xi32>
    %1393 = arith.cmpi eq, %1382, %1392 : vector<1x128xi32>
    %cst_510 = arith.constant -0.405465096 : f32
    %cst_511 = arith.constant -3.17805386 : f32
    %1394 = vector.broadcast %cst_510 : f32 to vector<1x128xf32>
    %1395 = vector.broadcast %cst_511 : f32 to vector<1x128xf32>
    %1396 = arith.select %1393, %1394, %1395 : vector<1x128xi1>, vector<1x128xf32>
    %cst_512 = arith.constant 0.000000e+00 : f32
    %1397 = vector.broadcast %cst_512 : f32 to vector<1x128xf32>
    %1398 = vector.broadcast %1397 : vector<1x128xf32> to vector<24x128xf32>
    %1399 = arith.addf %1380, %1398 : vector<24x128xf32>
    %cst_513 = arith.constant -1.000000e+30 : f32
    %1400 = vector.shape_cast %1386 : vector<1x128xi1> to vector<1x128xi1>
    %1401 = vector.broadcast %1400 : vector<1x128xi1> to vector<24x128xi1>
    %1402 = vector.broadcast %cst_513 : f32 to vector<24x128xf32>
    %1403 = arith.select %1401, %1399, %1402 : vector<24x128xi1>, vector<24x128xf32>
    %cst_514 = arith.constant dense<0xFF800000> : vector<24xf32>
    %1404 = vector.multi_reduction <maximumf>, %1403, %cst_514 [1] : vector<24x128xf32> to vector<24xf32>
    %1405 = vector.shape_cast %1404 : vector<24xf32> to vector<24x1xf32>
    %1406 = vector.broadcast %1405 : vector<24x1xf32> to vector<24x128xf32>
    %1407 = arith.subf %1403, %1406 : vector<24x128xf32>
    %1408 = math.exp %1407 : vector<24x128xf32>
    %cst_515 = arith.constant dense<0.000000e+00> : vector<24xf32>
    %1409 = vector.multi_reduction <add>, %1408, %cst_515 [1] : vector<24x128xf32> to vector<24xf32>
    %1410 = vector.shape_cast %1409 : vector<24xf32> to vector<24x1xf32>
    %1411 = math.log %1410 : vector<24x1xf32>
    %1412 = arith.addf %1405, %1411 : vector<24x1xf32>
    %1413 = arith.subf %1391, %1412 : vector<24x1xf32>
    %1414 = vector.broadcast %1413 : vector<24x1xf32> to vector<24x128xf32>
    %1415 = arith.addf %1380, %1414 : vector<24x128xf32>
    %cst_516 = arith.constant -1.000000e+30 : f32
    %1416 = vector.shape_cast %1384 : vector<24x1xi1> to vector<24x1xi1>
    %1417 = vector.broadcast %1416 : vector<24x1xi1> to vector<24x128xi1>
    %1418 = vector.broadcast %cst_516 : f32 to vector<24x128xf32>
    %1419 = arith.select %1417, %1415, %1418 : vector<24x128xi1>, vector<24x128xf32>
    %cst_517 = arith.constant dense<0xFF800000> : vector<128xf32>
    %1420 = vector.multi_reduction <maximumf>, %1419, %cst_517 [0] : vector<24x128xf32> to vector<128xf32>
    %1421 = vector.shape_cast %1420 : vector<128xf32> to vector<1x128xf32>
    %1422 = vector.broadcast %1421 : vector<1x128xf32> to vector<24x128xf32>
    %1423 = arith.subf %1419, %1422 : vector<24x128xf32>
    %1424 = math.exp %1423 : vector<24x128xf32>
    %cst_518 = arith.constant dense<0.000000e+00> : vector<128xf32>
    %1425 = vector.multi_reduction <add>, %1424, %cst_518 [0] : vector<24x128xf32> to vector<128xf32>
    %1426 = vector.shape_cast %1425 : vector<128xf32> to vector<1x128xf32>
    %1427 = math.log %1426 : vector<1x128xf32>
    %1428 = arith.addf %1421, %1427 : vector<1x128xf32>
    %1429 = arith.subf %1396, %1428 : vector<1x128xf32>
    %1430 = vector.broadcast %1429 : vector<1x128xf32> to vector<24x128xf32>
    %1431 = arith.addf %1380, %1430 : vector<24x128xf32>
    %cst_519 = arith.constant -1.000000e+30 : f32
    %1432 = vector.shape_cast %1386 : vector<1x128xi1> to vector<1x128xi1>
    %1433 = vector.broadcast %1432 : vector<1x128xi1> to vector<24x128xi1>
    %1434 = vector.broadcast %cst_519 : f32 to vector<24x128xf32>
    %1435 = arith.select %1433, %1431, %1434 : vector<24x128xi1>, vector<24x128xf32>
    %cst_520 = arith.constant dense<0xFF800000> : vector<24xf32>
    %1436 = vector.multi_reduction <maximumf>, %1435, %cst_520 [1] : vector<24x128xf32> to vector<24xf32>
    %1437 = vector.shape_cast %1436 : vector<24xf32> to vector<24x1xf32>
    %1438 = vector.broadcast %1437 : vector<24x1xf32> to vector<24x128xf32>
    %1439 = arith.subf %1435, %1438 : vector<24x128xf32>
    %1440 = math.exp %1439 : vector<24x128xf32>
    %cst_521 = arith.constant dense<0.000000e+00> : vector<24xf32>
    %1441 = vector.multi_reduction <add>, %1440, %cst_521 [1] : vector<24x128xf32> to vector<24xf32>
    %1442 = vector.shape_cast %1441 : vector<24xf32> to vector<24x1xf32>
    %1443 = math.log %1442 : vector<24x1xf32>
    %1444 = arith.addf %1437, %1443 : vector<24x1xf32>
    %1445 = arith.subf %1391, %1444 : vector<24x1xf32>
    %1446 = vector.broadcast %1445 : vector<24x1xf32> to vector<24x128xf32>
    %1447 = arith.addf %1380, %1446 : vector<24x128xf32>
    %cst_522 = arith.constant -1.000000e+30 : f32
    %1448 = vector.shape_cast %1384 : vector<24x1xi1> to vector<24x1xi1>
    %1449 = vector.broadcast %1448 : vector<24x1xi1> to vector<24x128xi1>
    %1450 = vector.broadcast %cst_522 : f32 to vector<24x128xf32>
    %1451 = arith.select %1449, %1447, %1450 : vector<24x128xi1>, vector<24x128xf32>
    %cst_523 = arith.constant dense<0xFF800000> : vector<128xf32>
    %1452 = vector.multi_reduction <maximumf>, %1451, %cst_523 [0] : vector<24x128xf32> to vector<128xf32>
    %1453 = vector.shape_cast %1452 : vector<128xf32> to vector<1x128xf32>
    %1454 = vector.broadcast %1453 : vector<1x128xf32> to vector<24x128xf32>
    %1455 = arith.subf %1451, %1454 : vector<24x128xf32>
    %1456 = math.exp %1455 : vector<24x128xf32>
    %cst_524 = arith.constant dense<0.000000e+00> : vector<128xf32>
    %1457 = vector.multi_reduction <add>, %1456, %cst_524 [0] : vector<24x128xf32> to vector<128xf32>
    %1458 = vector.shape_cast %1457 : vector<128xf32> to vector<1x128xf32>
    %1459 = math.log %1458 : vector<1x128xf32>
    %1460 = arith.addf %1453, %1459 : vector<1x128xf32>
    %1461 = arith.subf %1396, %1460 : vector<1x128xf32>
    %1462 = vector.broadcast %1461 : vector<1x128xf32> to vector<24x128xf32>
    %1463 = arith.addf %1380, %1462 : vector<24x128xf32>
    %cst_525 = arith.constant -1.000000e+30 : f32
    %1464 = vector.shape_cast %1386 : vector<1x128xi1> to vector<1x128xi1>
    %1465 = vector.broadcast %1464 : vector<1x128xi1> to vector<24x128xi1>
    %1466 = vector.broadcast %cst_525 : f32 to vector<24x128xf32>
    %1467 = arith.select %1465, %1463, %1466 : vector<24x128xi1>, vector<24x128xf32>
    %cst_526 = arith.constant dense<0xFF800000> : vector<24xf32>
    %1468 = vector.multi_reduction <maximumf>, %1467, %cst_526 [1] : vector<24x128xf32> to vector<24xf32>
    %1469 = vector.shape_cast %1468 : vector<24xf32> to vector<24x1xf32>
    %1470 = vector.broadcast %1469 : vector<24x1xf32> to vector<24x128xf32>
    %1471 = arith.subf %1467, %1470 : vector<24x128xf32>
    %1472 = math.exp %1471 : vector<24x128xf32>
    %cst_527 = arith.constant dense<0.000000e+00> : vector<24xf32>
    %1473 = vector.multi_reduction <add>, %1472, %cst_527 [1] : vector<24x128xf32> to vector<24xf32>
    %1474 = vector.shape_cast %1473 : vector<24xf32> to vector<24x1xf32>
    %1475 = math.log %1474 : vector<24x1xf32>
    %1476 = arith.addf %1469, %1475 : vector<24x1xf32>
    %1477 = arith.subf %1391, %1476 : vector<24x1xf32>
    %1478 = vector.broadcast %1477 : vector<24x1xf32> to vector<24x128xf32>
    %1479 = arith.addf %1380, %1478 : vector<24x128xf32>
    %cst_528 = arith.constant -1.000000e+30 : f32
    %1480 = vector.shape_cast %1384 : vector<24x1xi1> to vector<24x1xi1>
    %1481 = vector.broadcast %1480 : vector<24x1xi1> to vector<24x128xi1>
    %1482 = vector.broadcast %cst_528 : f32 to vector<24x128xf32>
    %1483 = arith.select %1481, %1479, %1482 : vector<24x128xi1>, vector<24x128xf32>
    %cst_529 = arith.constant dense<0xFF800000> : vector<128xf32>
    %1484 = vector.multi_reduction <maximumf>, %1483, %cst_529 [0] : vector<24x128xf32> to vector<128xf32>
    %1485 = vector.shape_cast %1484 : vector<128xf32> to vector<1x128xf32>
    %1486 = vector.broadcast %1485 : vector<1x128xf32> to vector<24x128xf32>
    %1487 = arith.subf %1483, %1486 : vector<24x128xf32>
    %1488 = math.exp %1487 : vector<24x128xf32>
    %cst_530 = arith.constant dense<0.000000e+00> : vector<128xf32>
    %1489 = vector.multi_reduction <add>, %1488, %cst_530 [0] : vector<24x128xf32> to vector<128xf32>
    %1490 = vector.shape_cast %1489 : vector<128xf32> to vector<1x128xf32>
    %1491 = math.log %1490 : vector<1x128xf32>
    %1492 = arith.addf %1485, %1491 : vector<1x128xf32>
    %1493 = arith.subf %1396, %1492 : vector<1x128xf32>
    %1494 = vector.broadcast %1477 : vector<24x1xf32> to vector<24x128xf32>
    %1495 = arith.addf %1380, %1494 : vector<24x128xf32>
    %1496 = vector.broadcast %1493 : vector<1x128xf32> to vector<24x128xf32>
    %1497 = arith.addf %1495, %1496 : vector<24x128xf32>
    %cst_531 = arith.constant -3.17805386 : f32
    %1498 = vector.broadcast %cst_531 : f32 to vector<24x128xf32>
    %1499 = arith.subf %1497, %1498 : vector<24x128xf32>
    %1500 = math.exp %1499 : vector<24x128xf32>
    %c0_532 = arith.constant 0 : index
    %c0_533 = arith.constant 0 : index
    %c0_534 = arith.constant 0 : index
    %1501 = vector.load %arg19[%c0_532, %c0_533, %c0_534] : memref<1x24x128xf32, #tpu.memory_space<vmem>>, vector<1x24x128xf32>
    %1502 = vector.shape_cast %1501 : vector<1x24x128xf32> to vector<24x128xf32>
    %1503 = vector.shape_cast %1500 : vector<24x128xf32> to vector<1x24x128xf32>
    tpu.vector_store %arg19[%c0_532, %c0_533, %c0_534], %1503 {strides = array<i32>} : memref<1x24x128xf32, #tpu.memory_space<vmem>>, vector<1x24x128xf32>,
    %c0_535 = arith.constant 0 : index
    %c0_536 = arith.constant 0 : index
    %c0_537 = arith.constant 0 : index
    %1504 = vector.load %arg3[%c0_535, %c0_536, %c0_537] : memref<1x24x128xf32, #tpu.memory_space<vmem>>, vector<1x24x128xf32>
    %1505 = vector.shape_cast %1504 : vector<1x24x128xf32> to vector<24x128xf32>
    %1506 = vector.broadcast %1384 : vector<24x1xi1> to vector<24x128xi1>
    %1507 = vector.broadcast %1386 : vector<1x128xi1> to vector<24x128xi1>
    %1508 = arith.andi %1506, %1507 : vector<24x128xi1>
    %cst_538 = arith.constant 0.000000e+00 : f32
    %1509 = vector.broadcast %cst_538 : f32 to vector<24x128xf32>
    %1510 = arith.subf %1509, %1505 : vector<24x128xf32>
    %1511 = arith.mulf %1510, %1499 : vector<24x128xf32>
    %cst_539 = arith.constant 0.000000e+00 : f32
    %1512 = vector.broadcast %cst_539 : f32 to vector<24x128xf32>
    %1513 = arith.select %1508, %1511, %1512 : vector<24x128xi1>, vector<24x128xf32>
    %cst_540 = arith.constant dense<0.000000e+00> : vector<24xf32>
    %1514 = vector.multi_reduction <add>, %1513, %cst_540 [1] : vector<24x128xf32> to vector<24xf32>
    %1515 = vector.shape_cast %1514 : vector<24xf32> to vector<24x1xf32>
    %cst_541 = arith.constant dense<0.000000e+00> : vector<1xf32>
    %1516 = vector.multi_reduction <add>, %1515, %cst_541 [0] : vector<24x1xf32> to vector<1xf32>
    %1517 = vector.shape_cast %1516 : vector<1xf32> to vector<1x1xf32>
    %c0_542 = arith.constant 0 : index
    %c0_543 = arith.constant 0 : index
    %c0_544 = arith.constant 0 : index
    %1518 = vector.load %arg20[%c0_542, %c0_543, %c0_544] : memref<1x1x1xf32, #tpu.memory_space<vmem>>, vector<1x1x1xf32>
    %1519 = vector.shape_cast %1518 : vector<1x1x1xf32> to vector<1x1xf32>
    %1520 = vector.shape_cast %1517 : vector<1x1xf32> to vector<1x1x1xf32>
    tpu.vector_store %arg20[%c0_542, %c0_543, %c0_544], %1520 {strides = array<i32>} : memref<1x1x1xf32, #tpu.memory_space<vmem>>, vector<1x1x1xf32>,
    %cst_545 = arith.constant dense<0.000000e+00> : vector<24xf32>
    %1521 = vector.multi_reduction <add>, %1505, %cst_545 [1] : vector<24x128xf32> to vector<24xf32>
    %1522 = vector.shape_cast %1521 : vector<24xf32> to vector<24x1xf32>
    %cst_546 = arith.constant dense<0.000000e+00> : vector<1xf32>
    %1523 = vector.multi_reduction <add>, %1522, %cst_546 [0] : vector<24x1xf32> to vector<1xf32>
    %1524 = vector.shape_cast %1523 : vector<1xf32> to vector<1x1xf32>
    %c0_547 = arith.constant 0 : index
    %c0_548 = arith.constant 0 : index
    %c0_549 = arith.constant 0 : index
    %1525 = vector.load %arg21[%c0_547, %c0_548, %c0_549] : memref<1x1x1xf32, #tpu.memory_space<vmem>>, vector<1x1x1xf32>
    %1526 = vector.shape_cast %1525 : vector<1x1x1xf32> to vector<1x1xf32>
    %1527 = vector.shape_cast %1524 : vector<1x1xf32> to vector<1x1x1xf32>
    tpu.vector_store %arg21[%c0_547, %c0_548, %c0_549], %1527 {strides = array<i32>} : memref<1x1x1xf32, #tpu.memory_space<vmem>>, vector<1x1x1xf32>,
    return
  }
  func.func @transform_0(%arg0: i32) -> (i32, i32, i32) {
    %c0_i32 = arith.constant 0 : i32
    %c0_i32_0 = arith.constant 0 : i32
    %c0_i32_1 = arith.constant 0 : i32
    return %arg0, %c0_i32, %c0_i32_0 : i32, i32, i32
  }
  func.func @transform_1(%arg0: i32) -> (i32, i32, i32) {
    %c0_i32 = arith.constant 0 : i32
    %c0_i32_0 = arith.constant 0 : i32
    %c0_i32_1 = arith.constant 0 : i32
    return %arg0, %c0_i32, %c0_i32_0 : i32, i32, i32
  }
  func.func @transform_2(%arg0: i32) -> (i32, i32, i32) {
    %c0_i32 = arith.constant 0 : i32
    %c0_i32_0 = arith.constant 0 : i32
    %c0_i32_1 = arith.constant 0 : i32
    return %arg0, %c0_i32, %c0_i32_0 : i32, i32, i32
  }
  func.func @transform_3(%arg0: i32) -> i32 {
    %c0_i32 = arith.constant 0 : i32
    %c0_i32_0 = arith.constant 0 : i32
    return %c0_i32 : i32
  }
  func.func @transform_4(%arg0: i32) -> (i32, i32, i32) {
    %c0_i32 = arith.constant 0 : i32
    %c0_i32_0 = arith.constant 0 : i32
    %c0_i32_1 = arith.constant 0 : i32
    %c0_i32_2 = arith.constant 0 : i32
    return %c0_i32, %c0_i32_0, %c0_i32_1 : i32, i32, i32
  }
  func.func @transform_5(%arg0: i32) -> (i32, i32, i32) {
    %c0_i32 = arith.constant 0 : i32
    %c0_i32_0 = arith.constant 0 : i32
    %c0_i32_1 = arith.constant 0 : i32
    %c0_i32_2 = arith.constant 0 : i32
    return %c0_i32, %c0_i32_0, %c0_i32_1 : i32, i32, i32
  }
  func.func @transform_6(%arg0: i32) -> (i32, i32, i32) {
    %c0_i32 = arith.constant 0 : i32
    %c0_i32_0 = arith.constant 0 : i32
    %c0_i32_1 = arith.constant 0 : i32
    %c0_i32_2 = arith.constant 0 : i32
    return %c0_i32, %c0_i32_0, %c0_i32_1 : i32, i32, i32
  }
  func.func @transform_7(%arg0: i32) -> (i32, i32, i32) {
    %c0_i32 = arith.constant 0 : i32
    %c0_i32_0 = arith.constant 0 : i32
    %c0_i32_1 = arith.constant 0 : i32
    %c0_i32_2 = arith.constant 0 : i32
    return %c0_i32, %c0_i32_0, %c0_i32_1 : i32, i32, i32
  }
  func.func @transform_8(%arg0: i32) -> (i32, i32, i32) {
    %c0_i32 = arith.constant 0 : i32
    %c0_i32_0 = arith.constant 0 : i32
    %c0_i32_1 = arith.constant 0 : i32
    %c0_i32_2 = arith.constant 0 : i32
    return %c0_i32, %c0_i32_0, %c0_i32_1 : i32, i32, i32
  }
  func.func @transform_9(%arg0: i32) -> (i32, i32, i32) {
    %c0_i32 = arith.constant 0 : i32
    %c0_i32_0 = arith.constant 0 : i32
    %c0_i32_1 = arith.constant 0 : i32
    %c0_i32_2 = arith.constant 0 : i32
    return %c0_i32, %c0_i32_0, %c0_i32_1 : i32, i32, i32
  }
  func.func @transform_10(%arg0: i32) -> (i32, i32, i32) {
    %c0_i32 = arith.constant 0 : i32
    %c0_i32_0 = arith.constant 0 : i32
    %c0_i32_1 = arith.constant 0 : i32
    %c0_i32_2 = arith.constant 0 : i32
    return %c0_i32, %c0_i32_0, %c0_i32_1 : i32, i32, i32
  }
  func.func @transform_11(%arg0: i32) -> (i32, i32, i32) {
    %c0_i32 = arith.constant 0 : i32
    %c0_i32_0 = arith.constant 0 : i32
    %c0_i32_1 = arith.constant 0 : i32
    %c0_i32_2 = arith.constant 0 : i32
    return %c0_i32, %c0_i32_0, %c0_i32_1 : i32, i32, i32
  }
  func.func @transform_12(%arg0: i32) -> (i32, i32, i32) {
    %c0_i32 = arith.constant 0 : i32
    %c0_i32_0 = arith.constant 0 : i32
    %c0_i32_1 = arith.constant 0 : i32
    %c0_i32_2 = arith.constant 0 : i32
    return %c0_i32, %c0_i32_0, %c0_i32_1 : i32, i32, i32
  }
  func.func @transform_13(%arg0: i32) -> (i32, i32, i32) {
    %c0_i32 = arith.constant 0 : i32
    %c0_i32_0 = arith.constant 0 : i32
    %c0_i32_1 = arith.constant 0 : i32
    %c0_i32_2 = arith.constant 0 : i32
    return %c0_i32, %c0_i32_0, %c0_i32_1 : i32, i32, i32
  }
  func.func @transform_14(%arg0: i32) -> (i32, i32, i32) {
    %c0_i32 = arith.constant 0 : i32
    %c0_i32_0 = arith.constant 0 : i32
    %c0_i32_1 = arith.constant 0 : i32
    %c0_i32_2 = arith.constant 0 : i32
    return %c0_i32, %c0_i32_0, %c0_i32_1 : i32, i32, i32
  }
  func.func @transform_15(%arg0: i32) -> (i32, i32, i32) {
    %c0_i32 = arith.constant 0 : i32
    %c0_i32_0 = arith.constant 0 : i32
    %c0_i32_1 = arith.constant 0 : i32
    %c0_i32_2 = arith.constant 0 : i32
    return %c0_i32, %c0_i32_0, %c0_i32_1 : i32, i32, i32
  }
  func.func @transform_16(%arg0: i32) -> (i32, i32, i32) {
    %c0_i32 = arith.constant 0 : i32
    %c0_i32_0 = arith.constant 0 : i32
    %c0_i32_1 = arith.constant 0 : i32
    return %arg0, %c0_i32, %c0_i32_0 : i32, i32, i32
  }
  func.func @transform_17(%arg0: i32) -> (i32, i32, i32) {
    %c0_i32 = arith.constant 0 : i32
    %c0_i32_0 = arith.constant 0 : i32
    %c0_i32_1 = arith.constant 0 : i32
    return %arg0, %c0_i32, %c0_i32_0 : i32, i32, i32
  }
  func.func @transform_18(%arg0: i32) -> (i32, i32, i32) {
    %c0_i32 = arith.constant 0 : i32
    %c0_i32_0 = arith.constant 0 : i32
    %c0_i32_1 = arith.constant 0 : i32
    return %arg0, %c0_i32, %c0_i32_0 : i32, i32, i32
  }
  func.func @transform_19(%arg0: i32) -> (i32, i32, i32) {
    %c0_i32 = arith.constant 0 : i32
    %c0_i32_0 = arith.constant 0 : i32
    %c0_i32_1 = arith.constant 0 : i32
    return %arg0, %c0_i32, %c0_i32_0 : i32, i32, i32
  }
  func.func @transform_20(%arg0: i32) -> (i32, i32, i32) {
    %c0_i32 = arith.constant 0 : i32
    %c0_i32_0 = arith.constant 0 : i32
    %c0_i32_1 = arith.constant 0 : i32
    return %arg0, %c0_i32, %c0_i32_0 : i32, i32, i32
  }
}

</mosaic_0001>

<bundles_post_ra>
// kernel: tpu_custom_call.1
= control target key start
LH: loop header
LB: loop body
LE: loop exit
PB: predicated region body
PF: predicated region fallthrough
CT: control target
= control target key end

     0   :  { %s10224_s0 = inlined_call_operand.hbm [shape: f32[2,16,32], index: 0, kind: input, shape index: {}]   ;;  %s10225_s1 = inlined_call_operand.hbm [shape: f32[2,8,32], index: 1, kind: input, shape index: {}]   ;;  %s10226_s2 = inlined_call_operand.hbm [shape: f32[2,24,128], index: 2, kind: input, shape index: {}]   ;;  %s10227_s3 = inlined_call_operand.<no memory space> [shape: f32[1], index: 3, kind: input, shape index: {}]   ;;  %s10228_s4 = inlined_call_operand.hbm [shape: f32[8,1,32], index: 4, kind: input, shape index: {}]   ;;  %s10229_s5 = inlined_call_operand.hbm [shape: f32[8,1,32], index: 5, kind: input, shape index: {}]   ;;  %s10230_s6 = inlined_call_operand.vmem [shape: bf16[8,32,96], index: 6, kind: input, shape index: {}]   ;;  %s10231_s7 = inlined_call_operand.hbm [shape: f32[8,1,96], index: 7, kind: input, shape index: {}]   ;;  %s10232_s8 = inlined_call_operand.vmem [shape: bf16[8,32,32], index: 8, kind: input, shape index: {}]   ;;  %s10233_s9 = inlined_call_operand.vmem [shape: f32[8,1,32], index: 9, kind: input, shape index: {}]   ;;  %s10234_s10 = inlined_call_operand.hbm [shape: f32[8,1,32], index: 10, kind: input, shape index: {}]   ;;  %s10235_s11 = inlined_call_operand.hbm [shape: f32[8,1,32], index: 11, kind: input, shape index: {}]   ;;  %s10236_s12 = inlined_call_operand.vmem [shape: bf16[8,32,64], index: 12, kind: input, shape index: {}]   ;;  %s10237_s13 = inlined_call_operand.hbm [shape: f32[8,1,64], index: 13, kind: input, shape index: {}]   ;;  %s10238_s14 = inlined_call_operand.vmem [shape: bf16[8,64,32], index: 14, kind: input, shape index: {}]   ;;  %s10239_s15 = inlined_call_operand.hbm [shape: f32[8,1,32], index: 15, kind: input, shape index: {}]   ;;  %s10240_s16 = inlined_call_operand.hbm [shape: f32[2,16,32], index: 16, kind: output, shape index: {0}]   ;;  %s10241_s17 = inlined_call_operand.hbm [shape: f32[2,8,32], index: 17, kind: output, shape index: {1}]   ;;  %s10242_s18 = inlined_call_operand.hbm [shape: f32[2,24,128], index: 18, kind: output, shape index: {2}]   ;;  %s10243_s19 = inlined_call_operand.vmem [shape: f32[2,1,1], index: 19, kind: output, shape index: {3}]   ;;  %s10244_s20 = inlined_call_operand.vmem [shape: f32[2,1,1], index: 20, kind: output, shape index: {4}]  }
   0x1   :  { %10269 = sst [smem:[#allocation38_spill]] %s10224_s0 }
   0x2   :  { %10270 = sst [smem:[#allocation39_spill]] %s10225_s1 }
   0x3   :  { %10271 = sst [smem:[#allocation40_spill]] %s10226_s2 }
   0x4   :  { %10272 = sst [smem:[#allocation41_spill]] %s10227_s3 }
   0x5   :  { %10273 = sst [smem:[#allocation42_spill]] %s10228_s4 }
   0x6   :  { %10274 = sst [smem:[#allocation43_spill]] %s10229_s5 }
   0x7   :  { %10275 = sst [smem:[#allocation44_spill]] %s10230_s6 }
   0x8   :  { %10276 = sst [smem:[#allocation45_spill]] %s10231_s7 }
   0x9   :  { %10277 = sst [smem:[#allocation46_spill]] %s10232_s8 }
   0xa   :  { %10278 = sst [smem:[#allocation47_spill]] %s10234_s10 }
   0xb   :  { %10279 = sst [smem:[#allocation48_spill]] %s10235_s11 }
   0xc   :  { %10280 = sst [smem:[#allocation49_spill]] %s10237_s13 }
   0xd   :  { %10281 = sst [smem:[#allocation50_spill]] %s10239_s15 }
   0xe   :  { %10282 = sst [smem:[#allocation51_spill]] %s10240_s16 }
   0xf   :  { %10283 = sst [smem:[#allocation52_spill]] %s10241_s17 }
  0x10   :  { %10284 = sst [smem:[#allocation53_spill]] %s10242_s18 }
  0x11   :  { %10285 = sst [smem:[#allocation54_spill]] %s10243_s19 }
  0x12   :  { %10286 = sst [smem:[#allocation55_spill]] %s10244_s20 }
  0x13   :  { %s10287_s23 = sld [smem:[#allocation41_spill]] }
  0x19   :  { %26 = sst [smem:[#allocation2]] %s10287_s23 }
  0x1a   :  { %27 = vsyncpa [#allocation4], 0 }
  0x1b   :  { %29 = vsyncpa [#allocation4 + $0x1], 0 }
  0x1c   :  { %30 = vsyncpa [#allocation7], 0 }
  0x1d   :  { %32 = vsyncpa [#allocation7 + $0x1], 0 }
  0x1e   :  { %33 = vsyncpa [#allocation10], 0 }
  0x1f   :  { %34 = vsyncpa [#allocation13], 0 }
  0x20   :  { %35 = vsyncpa [#allocation16], 0 }
  0x21   :  { %36 = vsyncpa [#allocation19], 0 }
  0x22   :  { %37 = vsyncpa [#allocation5], 0 }
  0x23   :  { %39 = vsyncpa [#allocation5 + $0x1], 0 }
  0x24   :  { %40 = vsyncpa [#allocation22], 0 }
  0x25   :  { %42 = vsyncpa [#allocation22 + $0x1], 0  ;;  %s8584_s24 = smov 0   ;;  %s8586_s2 = smov 0  }
  0x26   :  { %s8588_s25 = smov 0   ;;  %s8590_s3 = smov 0  }
  0x27 LB: > { %10288 = sst [smem:[#allocation32_spill]] %s8439_s24  ;;  %s8608_s29 = sadd.s32 4294967295, %s8451_s3   ;;  %s8451_s3 = sphi %s8590_s3, %s10336_s3   ;;  %s8447_s25 = sphi %s8588_s25, %s10338_s25   ;;  %s8443_s2 = sphi %s8586_s2, %s10340_s2   ;;  %s8439_s24 = sphi %s8584_s24, %s10339_s24  }
  0x28   : > { %10289 = sst [smem:[#allocation33_spill]] %s8447_s25  ;;  %p6613_p0 = scmp.ge.s32.totalorder %s8451_s3, 1 }
  0x29   : > { %s10290_s28 = sld [smem:[#allocation42_spill]]  ;;  %p10263_p1 = scmp.eq.s32.totalorder %s8608_s29, 0 }
  0x2a   : > { %p534_p2 = scmp.lt.s32.totalorder %s8451_s3, 3  ;;  %s8453_s0 = smov [#allocation9]  }
  0x2b   : > { %s550_s21 = sshll.u32 %s8453_s0, 4  ;;  %s10292_s7 = sld [smem:[#allocation45_spill]]  ;;  %s551_s21 = int_to_ptr.vmem [resolvable:$true] %s550_s21 }
  0x2c   : > { %p8613_p3 = pnand %p6613_p0, %p534_p2  ;;  %s10294_s11 = sld [smem:[#allocation48_spill]] }
  0x2d   : > { %s8454_s20 = smov [#allocation12]   ;;  %s10248_s22 = smov 16  }
  0x2e   : > { %p7345_p4 = pneg %p8613_p3  ;;  %s581_s1 = sshll.u32 %s8454_s20, 4  ;;  %s582_s1 = int_to_ptr.vmem [resolvable:$true] %s581_s1 }
  0x2f   : > { %s548_s4 = sshll.u32 %s10290_s28, 4  ;;  %s8457_s20 = smov [#allocation15]   ;;  %s549_s4 = int_to_ptr.hbm [resolvable:$true] %s548_s4 }
  0x30   : > { %p8625_p6 = pnand %p7345_p4, %p10263_p1  ;;  %s615_s27 = sshll.u32 %s8457_s20, 4  ;;  %s616_s27 = int_to_ptr.vmem [resolvable:$true] %s615_s27 }
  0x31   : > { %s579_s23 = sshll.u32 %s10292_s7, 4  ;;  %s10250_s7 = smov 1   ;;  %s580_s23 = int_to_ptr.hbm [resolvable:$true] %s579_s23 }
  0x32   : > { %s613_s0 = sshll.u32 %s10294_s11, 4  ;;  %s55_s28 = sadd.s32 1, %s8447_s25  ;;  %s614_s0 = int_to_ptr.hbm [resolvable:$true] %s613_s0 }
  0x33   : > { %7348 = dma.hbm_to_vmem [thread:$0]  (!%p8625_p6), %s549_s4, 128, %s551_s21, [#allocation10], %s10248_s22, %s10248_s22, %s10250_s7  }
  0x34   : > { %7354 = dma.hbm_to_vmem [thread:$0]  (!%p8625_p6), %s580_s23, 128, %s582_s1, [#allocation13], %s10248_s22, %s10248_s22, %s10250_s7  }
  0x35   : > { %7360 = dma.hbm_to_vmem [thread:$0]  (!%p8625_p6), %s614_s0, 128, %s616_s27, [#allocation16], %s10248_s22, %s10248_s22, %s10250_s7  }
  0x36   : > { %s10252_s4 = sadd.s32 4294967294, %s8451_s3   ;;  %s8649_s21 = sadd.s32 1, %s8451_s3  }
  0x37   : > { %10295 = sst [smem:[#allocation34_spill]] %s8649_s21  ;;  %s52_s11 = ssub.s32 %s8451_s3, %s8649_s21 }
  0x38   : > { %p62_p7 = scmp.ne.s32.totalorder %s8447_s25, %s8443_s2  ;;  %p53_p8 = scmp.eq.s32.totalorder %s52_s11, 0 }
  0x39   : > { %p63_p9 = scmp.eq.s32.totalorder %s8451_s3, 0  ;;  %p68_p10 = scmp.ne.s32.totalorder %s8443_s2, %s8439_s24 }
  0x3a   : > { %p417_p11 = scmp.eq.s32.totalorder %s8608_s29, 1  ;;  %p423_p2 = scmp.eq.s32.totalorder %s10252_s4, 1 }
  0x3b   : > { %s8661_s23 = scalar_select %p53_p8, %s8447_s25, %s55_s28  }
  0x3c   : > { %p64_p12 = por %p63_p9, %p62_p7  ;;  %p8665_p13 = por %p10263_p1, %p68_p10 }
  0x3d   : > { %10296 = sst [smem:[#allocation35_spill]] %s8661_s23  ;;  %p8669_p0 = por %p417_p11, %p62_p7 }
  0x3e   : > { %p7394_p4 = scmp.lt.s32.totalorder %s8451_s3, 2  ;;  %s8677_s20 = sand.u32 1, %s8447_s25  }
  0x3f   : > { %s10298_s1 = scalar_select %p8669_p0, 1, 0 }
  0x40   : > { %p8679_p5 = por %p423_p2, %p68_p10  ;;  %s685_s27 = sand.u32 1, %s8451_s3  }
  0x41   : > { %10299 = sst [smem:[#allocation36_spill]] %s10298_s1  ;;  %p8684_p8 = pnand %p7394_p4, %p64_p12 }
  0x42   : > { %s10300_s11 = scalar_select %p8679_p5, 1, 0 }
  0x43   : > { %s6625_s22 = sshll.u32 %s8677_s20, 3  ;;  %s6626_s7 = sshll.u32 %s8451_s3, 3 }
  0x44   : > { %10301 = sst [smem:[#allocation37_spill]] %s10300_s11  ;;  %s689_s24 = scalar_lea.vmem [#allocation6], %s6625_s22 }
  0x45   : > { %s10303_s21 = sld [smem:[#allocation39_spill]]  ;;  %s697_s19 = sshll.u32 %s689_s24, 4  ;;  %s698_s19 = int_to_ptr.vmem [resolvable:$true] %s697_s19 }
  0x46   : > { %s8694_s11 = scalar_lea.sflag [#allocation7], %s685_s27  ;;  %p8099_p9 = pneg %p8684_p8 }
  0x4b   : > { %s693_s25 = scalar_lea.hbm %s10303_s21, %s6626_s7  ;;  %s8102_s24 = scalar_lea.hbm %s10303_s21, 16 }
  0x4c   : > { %s695_s18 = sshll.u32 %s693_s25, 4  ;;  %s696_s18 = int_to_ptr.hbm [resolvable:$true] %s695_s18 }
  0x4d   : > { %s8095_s17 = sshra.s32 %s696_s18, 4  ;;  %s8096_s17 = int_to_ptr.hbm [resolvable:$true] %s8095_s17 }
  0x4e   : > { %s8097_s1 = scalar_lea.hbm %s8096_s17, 8  ;;  %p8103_p12 = scmp.lt.s32.totalorder %s8096_s17, %s10303_s21 }
  0x4f   : > { %p8098_p7 = scmp.ne.s32.totalorder %s8096_s17, %s8097_s1  ;;  %p8104_p2 = scmp.lt.s32.totalorder %s8102_s24, %s8097_s1 }
  0x51   : > { %p8100_p10 = pnand %p8099_p9, %p8098_p7  ;;  %p8105_p4 = por %p8104_p2, %p8103_p12 }
  0x53   : > { %p8101_p11 = pneg %p8100_p10 }
  0x55   : > { %p8106_p1 = pnand %p8105_p4, %p8101_p11 }
  0x57   : > { %8109 = shalt.err (!%p8106_p1)
}
  0x58   : > { %7373 = dma.hbm_to_vmem [thread:$0]  (!%p8684_p8), %s696_s18, 128, %s698_s19, %s8694_s11  }
  0x59   : > { %s10304_s5 = sld [smem:[#allocation43_spill]]  ;;  %s8458_s4 = smov [#allocation11]  }
  0x5a   : > { %s564_s7 = sshll.u32 %s8458_s4, 4  ;;  %s10305_s10 = sld [smem:[#allocation47_spill]]  ;;  %s565_s7 = int_to_ptr.vmem [resolvable:$true] %s564_s7 }
  0x5b   : > { %s10306_s25 = smov 1   ;;  %s10307_s22 = smov 16  }
  0x5c   : > { %s8459_s18 = smov [#allocation14]   ;;  %s10308_s13 = sld [smem:[#allocation49_spill]] }
  0x5d   : > { %s601_s19 = sshll.u32 %s8459_s18, 4  ;;  %s10309_s15 = sld [smem:[#allocation50_spill]]  ;;  %s602_s19 = int_to_ptr.vmem [resolvable:$true] %s601_s19 }
  0x5e   : > { %s8461_s18 = smov [#allocation18]   ;;  %s6622_s27 = sshll.u32 %s8677_s20, 4 }
  0x5f   : > { %s562_s16 = sshll.u32 %s10304_s5, 4  ;;  %s649_s23 = sshll.u32 %s8461_s18, 4  ;;  %s563_s16 = int_to_ptr.hbm [resolvable:$true] %s562_s16  ;;  %s650_s23 = int_to_ptr.vmem [resolvable:$true] %s649_s23 }
  0x60   : > { %s599_s24 = sshll.u32 %s10305_s10, 4  ;;  %s10310_s1 = sld [smem:[#allocation38_spill]]  ;;  %s600_s24 = int_to_ptr.hbm [resolvable:$true] %s599_s24 }
  0x61   : > { %7351 = dma.hbm_to_vmem [thread:$0]  (!%p8625_p6), %s563_s16, 128, %s565_s7, [#allocation10], %s10307_s22, %s10307_s22, %s10306_s25  }
  0x62   : > { %s630_s4 = sshll.u32 %s10308_s13, 4  ;;  %s8460_s7 = smov [#allocation17]   ;;  %s631_s4 = int_to_ptr.hbm [resolvable:$true] %s630_s4 }
  0x63   : > { %7357 = dma.hbm_to_vmem [thread:$0]  (!%p8625_p6), %s600_s24, 128, %s602_s19, [#allocation13], %s10307_s22, %s10307_s22, %s10306_s25  }
  0x64   : > { %s647_s16 = sshll.u32 %s10309_s15, 4  ;;  %s632_s5 = sshll.u32 %s8460_s7, 4  ;;  %s648_s16 = int_to_ptr.hbm [resolvable:$true] %s647_s16  ;;  %s633_s5 = int_to_ptr.vmem [resolvable:$true] %s632_s5 }
  0x65   : > { %7363 = dma.hbm_to_vmem [thread:$0]  (!%p8625_p6), %s631_s4, 128, %s633_s5, [#allocation16], %s10307_s22, %s10307_s22, %s10306_s25  }
  0x66   : > { %7366 = dma.hbm_to_vmem [thread:$0]  (!%p8625_p6), %s648_s16, 128, %s650_s23, [#allocation19], %s10307_s22, %s10307_s22, %s10306_s25  }
  0x67   : > { %s7219_s24 = sshll.u32 %s8451_s3, 4  ;;  %s667_s10 = scalar_lea.vmem [#allocation3], %s6622_s27 }
  0x68   : > { %s672_s7 = scalar_lea.hbm %s10310_s1, %s7219_s24  ;;  %s675_s13 = sshll.u32 %s667_s10, 4  ;;  %s676_s13 = int_to_ptr.vmem [resolvable:$true] %s675_s13 }
  0x69   : > { %s673_s15 = sshll.u32 %s672_s7, 4  ;;  %s664_s5 = scalar_lea.sflag [#allocation4], %s8677_s20  ;;  %s674_s15 = int_to_ptr.hbm [resolvable:$true] %s673_s15 }
  0x6a   : > { %s8245_s4 = sshra.s32 %s674_s15, 4  ;;  %s8252_s22 = scalar_lea.hbm %s10310_s1, 32  ;;  %s8246_s4 = int_to_ptr.hbm [resolvable:$true] %s8245_s4 }
  0x6b   : > { %s8247_s18 = scalar_lea.hbm %s8246_s4, 16  ;;  %p8253_p6 = scmp.lt.s32.totalorder %s8246_s4, %s10310_s1 }
  0x6c   : > { %p8248_p1 = scmp.ne.s32.totalorder %s8246_s4, %s8247_s18  ;;  %p8254_p11 = scmp.lt.s32.totalorder %s8252_s22, %s8247_s18 }
  0x6e   : > { %p8250_p7 = pnand %p8248_p1, %p8099_p9  ;;  %p8255_p12 = por %p8254_p11, %p8253_p6 }
  0x70   : > { %p8251_p10 = pneg %p8250_p7 }
  0x72   : > { %p8256_p2 = pnand %p8255_p12, %p8251_p10 }
  0x74   : > { %8259 = shalt.err (!%p8256_p2)
}
  0x75   : > { %s8462_s10 = smov 128   ;;  %s8463_s27 = smov 8  }
  0x76   : > { %7370 = dma.hbm_to_vmem [thread:$0]  (!%p8684_p8), %s674_s15, 256, %s676_s13, %s664_s5, %s8462_s10, %s8462_s10, %s8463_s27  }
  0x77   : > { %s7302_s24 = smul.u32 24, %s8451_s3  ;;  %s10312_s16 = sld [smem:[#allocation40_spill]] }
  0x78   : > { %s10311_s19 = smul.u32 24, %s8677_s20 }
  0x7a   : > { %s708_s17 = scalar_lea.vmem [#allocation8], %s10311_s19 }
  0x7b   : > { %s716_s7 = sshll.u32 %s708_s17, 4  ;;  %s717_s7 = int_to_ptr.vmem [resolvable:$true] %s716_s7 }
  0x7d   : > { %s713_s4 = scalar_lea.hbm %s10312_s16, %s7302_s24  ;;  %s8282_s20 = scalar_lea.hbm %s10312_s16, 48 }
  0x7e   : > { %s714_s18 = sshll.u32 %s713_s4, 4  ;;  %s715_s18 = int_to_ptr.hbm [resolvable:$true] %s714_s18 }
  0x7f   : > { %s8275_s22 = sshra.s32 %s715_s18, 4  ;;  %s8276_s22 = int_to_ptr.hbm [resolvable:$true] %s8275_s22 }
  0x80   : > { %s8277_s23 = scalar_lea.hbm %s8276_s22, 24  ;;  %p8283_p10 = scmp.lt.s32.totalorder %s8276_s22, %s10312_s16 }
  0x81   : > { %p8278_p4 = scmp.ne.s32.totalorder %s8276_s22, %s8277_s23  ;;  %p8284_p6 = scmp.lt.s32.totalorder %s8282_s20, %s8277_s23 }
  0x83   : > { %p8280_p1 = pnand %p8278_p4, %p8099_p9  ;;  %p8285_p11 = por %p8284_p6, %p8283_p10 }
  0x85   : > { %p8281_p7 = pneg %p8280_p1 }
  0x87   : > { %p8286_p12 = pnand %p8285_p11, %p8281_p7 }
  0x89   : > { %8289 = shalt.err (!%p8286_p12)
}
  0x8a   : > { %7376 = dma.hbm_to_vmem [thread:$0]  (!%p8684_p8), %s715_s18, 384, %s717_s7, %s8694_s11, %s8462_s10, %s8462_s10, %s8463_s27  }
  0x8b   : > { %728 = sbr.rel (%p8613_p3) target bundleno = 14003 (0x36b3), region = 84  ;;  %s8780_s24 = sand.u32 (!%p8613_p3), 1, %s8443_s2  }
  0x8c   : > { %s6629_s17 = sshll.u32 (!%p8613_p3), %s8780_s24, 4  ;;  %s731_s26 = scalar_lea.sflag (!%p8613_p3), [#allocation4], %s8780_s24 }
  0x8d   : > { %s734_s25 = scalar_lea.vmem (!%p8613_p3), [#allocation3], %s6629_s17 }
  0x90   : > { %8406 = dma.done.wait (%p8665_p13), %s731_s26, 256  }
  0x91   : > { %8408 = vsyncadd (%p8665_p13), %s731_s26, 4294967040  ;;  %s10264_s30 = sand.u32 1, %s8608_s29   ;;  %s6630_s11 = sshll.u32 %s8780_s24, 3 }
  0x92   : > { %s741_s28 = scalar_lea.sflag [#allocation7], %s10264_s30  ;;  %s8796_s10 = scalar_lea.vmem [#allocation6], %s6630_s11 }
  0x93   : > { %8410 = dma.done.wait (%p8665_p13), %s741_s28, 512  }
  0x94   : > { %8412 = vsyncadd (%p8665_p13), %s741_s28, 4294966784  ;;  %s10265_s27 = smul.u32 24, %s8780_s24  ;;  %p10313_p3 = scmp.eq.s32.totalorder %s8608_s29, 0 }
  0x96   : > { %s8805_s7 = scalar_lea.vmem [#allocation8], %s10265_s27 }
  0x97   : > { %8414 = dma.done.wait (%p10313_p3), [#allocation10], 256   ;;  %p10314_p8 = pmov %p10313_p3 }
  0x98   : > { %p10315_p9 = pmov %p10313_p3 }
  0x99   : > { %8416 = vsyncadd (%p10314_p8), [#allocation10], 4294967040 }
  0x9a   : > { %8418 = dma.done.wait (%p10315_p9), [#allocation13], 256   ;;  %p10316_p2 = pmov %p10313_p3 }
  0x9c   : > { %8420 = vsyncadd (%p10316_p2), [#allocation13], 4294967040  ;;  %p10317_p13 = pmov %p10316_p2 }
  0x9d   : > { %p10318_p4 = pmov %p10316_p2 }
  0x9e   : > { %8422 = dma.done.wait (%p10317_p13), [#allocation16], 256  }
  0x9f   : > { %8424 = vsyncadd (%p10318_p4), [#allocation16], 4294967040  ;;  %p10319_p1 = pmov %p10316_p2 }
  0xa1   : > { %8426 = dma.done.wait (%p10319_p1), [#allocation19], 128   ;;  %p10320_p7 = pmov %p10319_p1 }
  0xa2   : > { %vm885_vm0 = vcmask 261120   ;;  %v8823_v0 = vld [vmem:[%s734_s25] sm:$0xff]  ;;  %v8825_v1 = vld [vmem:[%s734_s25 + $0x8] sm:$0xff]  ;;  %v8464_v6 = vmov 32.0   ;;  %s10321_s6 = sld [smem:[#allocation44_spill]]  ;;  %s8465_s18 = smov 96  }
  0xa3   : > { %8428 = vsyncadd (%p10320_p7), [#allocation19], 4294967168  ;;  %v882_v2 = vld [vmem:[%s8796_s10] sm:$0xff]  ;;  %v886_v3 = vsel %vm885_vm0, %v8823_v0, 0.0  ;;  %v889_v5 = vsel %vm885_vm0, %v8825_v1, 0.0  ;;  %7672 = vrcp.f32 %v8464_v6  ;;  %s8466_s13 = smov 120  }
  0xa4   : > { %v952_v4 = vsel %vm885_vm0, %v882_v2, 0.0  ;;  %887 = vadd.xlane.f32.xlu0 %v886_v3  ;;  %v7611_v49 = vld [vmem:[#allocation12] ss:$0 sm:$0xff]  ;;  %v7609_v56 = vld [vmem:[#allocation9] ss:$0 sm:$0xff]  ;;  %vm1082_vm11 = vcmask 64512  }
  0xa5   : > { %953 = vadd.xlane.f32.xlu1 %v952_v4  ;;  %v7610_v63 = vld [vmem:[#allocation11] ss:$0 sm:$0xff]  ;;  %s8467_s15 = smov 112   ;;  %s8468_s20 = smov 104   ;;  %vm1295_vm12 = vcmask 1043456   ;;  %vm1429_vm13 = vcmask 130048  }
  0xa6   : > { %s8469_s28 = smov 16   ;;  %s10266_s0 = smov 8   ;;  %vm1432_vm14 = vcmask 195584  }
  0xa7   : > { %s8471_s4 = smov 24   ;;  %s10322_s8 = sld [smem:[#allocation46_spill]] }
  0xa8   : > { %v7221_v11 = vld [vmem:[%s10321_s6 + $0x8] sm:$0xff]  ;;  %v7220_v13 = vld [vmem:[%s10321_s6] sm:$0xff]  ;;  %s8472_s22 = smov 64   ;;  %s10046_s30 = scalar_lea.vmem [#allocation21], %s6630_s11 }
  0xa9   : > { %v7673_v7 = vpop.eup %7672  ;;  %1001 = vmatpush.bf16.msra.mxu1 %v7221_v11  ;;  %s10323_s11 = smul.u32 24, %s8780_s24  ;;  %s7215_s27 = sshll.u32 %s8608_s29, 3 }
  0xaa   : > { %v893_v8 = vmul.f32 32.0, %v7673_v7  ;;  %vm897_vm1 = vweird.f32 %v7673_v7  ;;  %s7304_s25 = smul.u32 24, %s8608_s29  ;;  %s6305_s23 = sshll.u32 %s10046_s30, 4  ;;  %s6306_s23 = int_to_ptr.vmem [resolvable:$true] %s6305_s23 }
  0xac   : > { %890 = vadd.xlane.f32.xlu0 %v889_v5  ;;  %v894_v9 = vsub.f32 1.0, %v893_v8 }
  0xad   : > { %1002 = vmatpush.bf16.msra.mxu1 %v7220_v13 }
  0xae   : > { %v895_v10 = vmul.f32 %v7673_v7, %v894_v9 }
  0xb0   : > { %v896_v12 = vadd.f32 %v7673_v7, %v895_v10 }
  0xb2   : > { %v8840_v14 = vsel %vm897_vm1, %v7673_v7, %v896_v12 }
  0xc0   : > { %1012 = vrot.lane.b32.xlu0 %v7221_v11, %s8465_s18 }
 0x117   : > { %v888_v15 = vpop.xlane.xlu0 %887 }
 0x118   : > { %v899_v16 = vmul.f32 %v8840_v14, %v888_v15  ;;  %v954_v19 = vpop.xlane.xlu1 %953 }
 0x119   : > { %v955_v23 = vmul.f32 %v954_v19, %v8840_v14 }
 0x11a   : > { %v901_v17 = vsub.f32 %v8823_v0, %v899_v16 }
 0x11b   : > { %v8848_v25 = vsub.f32 %v882_v2, %v955_v23 }
 0x11c   : > { %v903_v18 = vmul.f32 %v901_v17, %v901_v17 }
 0x11d   : > { %v957_v28 = vmul.f32 %v8848_v25, %v8848_v25 }
 0x11e   : > { %v905_v20 = vsel %vm885_vm0, %v903_v18, 0.0 }
 0x11f   : > { %906 = vadd.xlane.f32.xlu1 %v905_v20  ;;  %v891_v21 = vpop.xlane.xlu0 %890  ;;  %v958_v29 = vsel %vm885_vm0, %v957_v28, 0.0 }
 0x120   : > { %v900_v22 = vmul.f32 %v8840_v14, %v891_v21 }
 0x122   : > { %v902_v24 = vsub.f32 %v8825_v1, %v900_v22 }
 0x124   : > { %v904_v26 = vmul.f32 %v902_v24, %v902_v24 }
 0x126   : > { %v908_v27 = vsel %vm885_vm0, %v904_v26, 0.0 }
 0x127   : > { %909 = vadd.xlane.f32.xlu2 %v908_v27 }
 0x12f   : > { %959 = vadd.xlane.f32.xlu2 %v958_v29 }
 0x132   : > { %v1013_v35 = vpop.permute.xlu0 %1012 }
 0x133   : > { %1028 = vmatpush.bf16.msrb.mxu1 %v1013_v35 }
 0x138   : > { %1010 = vrot.lane.b32.xlu1 %v7220_v13, %s8465_s18 }
 0x147   : > { %1016 = vrot.lane.b32.xlu2 %v7611_v49, %s8465_s18 }
 0x192   : > { %v907_v30 = vpop.xlane.xlu1 %906 }
 0x193   : > { %v911_v31 = vmul.f32 %v907_v30, %v8840_v14 }
 0x195   : > { %v913_v32 = vadd.f32 1e-06, %v911_v31 }
 0x197   : > { %7674 = vrsqrt.f32 %v913_v32  ;;  %vm921_vm3 = vweird.f32 %v913_v32 }
 0x19a   : > { %v910_v33 = vpop.xlane.xlu2 %909 }
 0x19b   : > { %v912_v34 = vmul.f32 %v910_v33, %v8840_v14 }
 0x19d   : > { %v7675_v36 = vpop.eup %7674  ;;  %v914_v37 = vadd.f32 1e-06, %v912_v34 }
 0x19e   : > { %v916_v38 = vmul.f32 %v7675_v36, %v913_v32  ;;  %vm922_vm2 = vweird.f32 %v7675_v36 }
 0x19f   : > { %7676 = vrsqrt.f32 %v914_v37  ;;  %vm923_vm4 = vmor %vm921_vm3, %vm922_vm2  ;;  %vm931_vm6 = vweird.f32 %v914_v37 }
 0x1a0   : > { %v917_v39 = vmul.f32 %v7675_v36, %v916_v38 }
 0x1a2   : > { %v918_v40 = vmul.f32 0.5, %v917_v39  ;;  %v960_v41 = vpop.xlane.xlu2 %959 }
 0x1a3   : > { %v961_v42 = vmul.f32 %v960_v41, %v8840_v14 }
 0x1a4   : > { %v919_v43 = vsub.f32 1.5, %v918_v40 }
 0x1a5   : > { %v7677_v44 = vpop.eup %7676  ;;  %v962_v45 = vadd.f32 1e-06, %v961_v42 }
 0x1a6   : > { %v920_v46 = vmul.f32 %v7675_v36, %v919_v43  ;;  %v926_v47 = vmul.f32 %v7677_v44, %v914_v37  ;;  %vm932_vm5 = vweird.f32 %v7677_v44 }
 0x1a7   : > { %7678 = vrsqrt.f32 %v962_v45  ;;  %vm933_vm7 = vmor %vm931_vm6, %vm932_vm5  ;;  %vm969_vm8 = vweird.f32 %v962_v45  ;;  %vm1622_vm6 = vcmask 523264  }
 0x1a8   : > { %v927_v48 = vmul.f32 %v7677_v44, %v926_v47  ;;  %v924_v50 = vsel %vm923_vm4, %v7675_v36, %v920_v46 }
 0x1a9   : > { %v935_v55 = vmul.f32 %v924_v50, %v901_v17 }
 0x1aa   : > { %v928_v51 = vmul.f32 0.5, %v927_v48  ;;  %v1011_v52 = vpop.permute.xlu1 %1010  ;;  %v1017_v18 = vpop.permute.xlu2 %1016 }
 0x1ab   : > { %1029 = vmatpush.bf16.msrb.mxu1 %v1011_v52  ;;  %v940_v62 = vmul.f32 %v7609_v56, %v935_v55 }
 0x1ac   : > { %v929_v53 = vsub.f32 1.5, %v928_v51 }
 0x1ad   : > { %v7679_v54 = vpop.eup %7678  ;;  %v945_v5 = vadd.f32 %v7610_v63, %v940_v62 }
 0x1ae   : > { %v930_v57 = vmul.f32 %v7677_v44, %v929_v53  ;;  %v964_v58 = vmul.f32 %v7679_v54, %v962_v45  ;;  %vm970_vm9 = vweird.f32 %v7679_v54 }
 0x1af   : > { %vm971_vm10 = vmor %vm969_vm8, %vm970_vm9 }
 0x1b0   : > { %v934_v59 = vsel %vm933_vm7, %v7677_v44, %v930_v57  ;;  %v965_v60 = vmul.f32 %v7679_v54, %v964_v58 }
 0x1b1   : > { %v936_v61 = vmul.f32 %v934_v59, %v902_v24 }
 0x1b2   : > { %v966_v2 = vmul.f32 0.5, %v965_v60 }
 0x1b3   : > { %v941_v3 = vmul.f32 %v7609_v56, %v936_v61 }
 0x1b4   : > { %v967_v4 = vsub.f32 1.5, %v966_v2 }
 0x1b5   : > { %v946_v6 = vadd.f32 %v7610_v63, %v941_v3 }
 0x1b6   : > { %v968_v7 = vmul.f32 %v7679_v54, %v967_v4 }
 0x1b7   : > { %v976_v8 = vpack.c.bf16 %v946_v6, %v945_v5 }
 0x1b8   : > { %v972_v9 = vsel %vm971_vm10, %v7679_v54, %v968_v7 }
 0x1b9   : > { %6648 = vmatmul.msk.bf16.vlgmr.msra.gmra.mxu1 %vm885_vm0, %v976_v8  ;;  %v8861_v10 = vmul.f32 %v972_v9, %v8848_v25 }
 0x1bb   : > { %v974_v11 = vmul.f32 %v7609_v56, %v8861_v10 }
 0x1bd   : > { %v975_v12 = vadd.f32 %v7610_v63, %v974_v11 }
 0x1bf   : > { %v1009_v13 = vpack.c.bf16 %v975_v12, %v975_v12 }
 0x1c9   : > { %6649 = vmatmul.msk.bf16.vlgmr.msrb.gmra.mxu1 %vm885_vm0, %v1009_v13 }
 0x236   : > { %v1004_v15 = vpop.f32.mrf.mxu1 }
 0x237   : > { %v1005_v20 = vadd.f32 %v7611_v49, %v1004_v15 }
 0x239   : > { %v1065_v26 = vpack.c.bf16 %v1005_v20, %v1005_v20 }
 0x23b   : > { %v1079_v29 = vunpack.c.l.b16 %v1065_v26 }
 0x23e   : > { %v1006_v16 = vpop.f32.mrf.mxu1 }
 0x23f   : > { %v1007_v17 = vadd.f32 %v7611_v49, %v1006_v16 }
 0x241   : > { %1039 = vrot.lane.b32.xlu2 %v1007_v17, %s8466_s13  ;;  %v1066_v24 = vpack.c.bf16 %v1007_v17, %v1007_v17 }
 0x243   : > { %v1080_v28 = vunpack.c.l.b16 %v1066_v24 }
 0x245   : > { %v1081_v30 = vpack.c.b16 %v1080_v28, %v1079_v29 }
 0x246   : > { %v1031_v19 = vpop.f32.mrf.mxu1 }
 0x247   : > { %v1032_v21 = vadd.f32 %v1031_v19, %v1017_v18 }
 0x249   : > { %1045 = vrot.lane.b32.xlu2 %v1007_v17, %s8467_s15  ;;  %v7463_v22 = vpack.i.bf16 %v1005_v20, %v1032_v21  ;;  %v8867_v23 = vpack.c.bf16 %v1032_v21, %v1032_v21 }
 0x24b   : > { %7464 = vrot.lane.b32.xlu1 %v7463_v22, %s8467_s15  ;;  %7459 = vrot.lane.b32.xlu0 %v7463_v22, %s8466_s13  ;;  %v1087_v25 = vsel %vm1082_vm11, %v8867_v23, 0 }
 0x24c   : > { %1096 = vmatpush.bf16.xpose.msra.mxu2 %v1087_v25 }
 0x24e   : > { %v1033_v27 = vpop.f32.mrf.mxu1 }
 0x253   : > { %1051 = vrot.lane.b32.xlu1 %v1007_v17, %s8468_s20  ;;  %7469 = vrot.lane.b32.xlu0 %v7463_v22, %s8468_s20 }
 0x254   : > { %6650 = vmatmul.msk.bf16.vlgmr.msra.gmra.mxu2 %vm1082_vm11, %v1081_v30 }
 0x29b   : > { %v1040_v31 = vpop.permute.xlu2 %1039 }
 0x29c   : > { %v1068_v43 = vpack.c.bf16 %v1040_v31, %v1040_v31 }
 0x29e   : > { %v1106_v50 = vunpack.c.l.b16 %v1068_v43 }
 0x2a3   : > { %v1046_v38 = vpop.permute.xlu2 %1045 }
 0x2a4   : > { %v1070_v45 = vpack.c.bf16 %v1046_v38, %v1046_v38 }
 0x2a6   : > { %v1131_v53 = vunpack.c.l.b16 %v1070_v45 }
 0x2bd   : > { %v7465_v32 = vpop.permute.xlu1 %7464  ;;  %v7460_v33 = vpop.permute.xlu0 %7459 }
 0x2be   : > { %v7467_v34 = vunpack.i.h.bf16 %v7465_v32  ;;  %v7462_v35 = vunpack.i.h.bf16 %v7460_v33  ;;  %v7461_v36 = vunpack.i.l.bf16 %v7460_v33  ;;  %v7466_v37 = vunpack.i.l.bf16 %v7465_v32 }
 0x2c0   : > { %v1067_v39 = vpack.c.bf16 %v7462_v35, %v7462_v35  ;;  %v8876_v40 = vpack.c.bf16 %v7461_v36, %v7461_v36  ;;  %v8878_v41 = vpack.c.bf16 %v7466_v37, %v7466_v37  ;;  %v1069_v42 = vpack.c.bf16 %v7467_v34, %v7467_v34 }
 0x2c2   : > { %v1112_v44 = vsel %vm1082_vm11, %v8876_v40, 0  ;;  %v1137_v46 = vsel %vm1082_vm11, %v8878_v41, 0  ;;  %v1105_v47 = vunpack.c.l.b16 %v1067_v39  ;;  %v1130_v48 = vunpack.c.l.b16 %v1069_v42 }
 0x2c3   : > { %1121 = vmatpush.bf16.xpose.msra.mxu3 %v1112_v44  ;;  %1146 = vmatpush.bf16.xpose.msra.mxu0 %v1137_v46 }
 0x2c4   : > { %v1107_v57 = vpack.c.b16 %v1106_v50, %v1105_v47  ;;  %v1132_v58 = vpack.c.b16 %v1131_v53, %v1130_v48 }
 0x2c5   : > { %v7470_v49 = vpop.permute.xlu0 %7469  ;;  %v1052_v54 = vpop.permute.xlu1 %1051 }
 0x2c6   : > { %v7472_v51 = vunpack.i.h.bf16 %v7470_v49  ;;  %v7471_v52 = vunpack.i.l.bf16 %v7470_v49  ;;  %v1072_v59 = vpack.c.bf16 %v1052_v54, %v1052_v54 }
 0x2c8   : > { %v1071_v55 = vpack.c.bf16 %v7472_v51, %v7472_v51  ;;  %v8884_v56 = vpack.c.bf16 %v7471_v52, %v7471_v52  ;;  %v1156_v62 = vunpack.c.l.b16 %v1072_v59 }
 0x2ca   : > { %6651 = vmatmul.msk.bf16.vlgmr.msra.gmra.mxu3 %vm1082_vm11, %v1107_v57  ;;  %v1162_v60 = vsel %vm1082_vm11, %v8884_v56, 0  ;;  %6652 = vmatmul.msk.bf16.vlgmr.msra.gmra.mxu0 %vm1082_vm11, %v1132_v58  ;;  %v1155_v61 = vunpack.c.l.b16 %v1071_v55 }
 0x2cb   : > { %1171 = vmatpush.bf16.xpose.msra.mxu1 %v1162_v60 }
 0x2cc   : > { %v1157_v63 = vpack.c.b16 %v1156_v62, %v1155_v61  ;;  %v1319_v62 = vunpack.c.l.b16 %v8876_v40 }
 0x2d2   : > { %6653 = vmatmul.msk.bf16.vlgmr.msra.gmra.mxu1 %vm1082_vm11, %v1157_v63  ;;  %v1379_v63 = vunpack.c.l.b16 %v8884_v56 }
 0x2d7   : > { %v1098_v15 = vpop.f32.mrf.mxu2 }
 0x2d8   : > { %v8896_v21 = vmul.f32 0.35355338, %v1098_v15 }
 0x2da   : > { %v1186_v25 = vsel %vm1082_vm11, %v8896_v21, -inf }
 0x2df   : > { %v1100_v26 = vpop.f32.mrf.mxu2 }
 0x2e0   : > { %v1179_v27 = vmul.f32 0.35355338, %v1100_v26 }
 0x2e2   : > { %v1189_v28 = vsel %vm1082_vm11, %v1179_v27, -inf }
 0x347   : > { %v1148_v2 = vpop.f32.mrf.mxu0 }
 0x348   : > { %v1182_v3 = vmul.f32 0.35355338, %v1148_v2  ;;  %v1320_v2 = vpack.c.b16 %v1319_v62, %v1319_v62 }
 0x34a   : > { %v1198_v4 = vsel %vm1082_vm11, %v1182_v3, -inf }
 0x34b   : > { %1199 = vmax.xlane.f32.xlu1 %v1198_v4  ;;  %v1288_v4 = vunpack.c.l.b16 %v8867_v23 }
 0x34d   : > { %v1123_v5 = vpop.f32.mrf.mxu3 }
 0x34e   : > { %v1180_v6 = vmul.f32 0.35355338, %v1123_v5  ;;  %v1349_v5 = vunpack.c.l.b16 %v8878_v41 }
 0x34f   : > { %v1173_v7 = vpop.f32.mrf.mxu1  ;;  %v1150_v9 = vpop.f32.mrf.mxu0 }
 0x350   : > { %v1192_v8 = vsel %vm1082_vm11, %v1180_v6, -inf  ;;  %v1183_v11 = vmul.f32 0.35355338, %v1150_v9  ;;  %v1184_v22 = vmul.f32 0.35355338, %v1173_v7  ;;  %v1350_v7 = vpack.c.b16 %v1349_v5, %v1349_v5 }
 0x351   : > { %1193 = vmax.xlane.f32.xlu0 %v1192_v8 }
 0x352   : > { %v1201_v18 = vsel %vm1082_vm11, %v1183_v11, -inf  ;;  %v1204_v24 = vsel %vm1082_vm11, %v1184_v22, -inf }
 0x355   : > { %v1125_v12 = vpop.f32.mrf.mxu3 }
 0x356   : > { %v1181_v13 = vmul.f32 0.35355338, %v1125_v12 }
 0x357   : > { %v1175_v16 = vpop.f32.mrf.mxu1 }
 0x358   : > { %v1185_v17 = vmul.f32 0.35355338, %v1175_v16  ;;  %v1195_v19 = vsel %vm1082_vm11, %v1181_v13, -inf }
 0x359   : > { %1202 = vmax.xlane.f32.xlu0 %v1201_v18  ;;  %1196 = vmax.xlane.f32.xlu2 %v1195_v19 }
 0x35a   : > { %v1207_v20 = vsel %vm1082_vm11, %v1185_v17, -inf }
 0x35b   : > { %1208 = vmax.xlane.f32.xlu1 %v1207_v20 }
 0x361   : > { %1205 = vmax.xlane.f32.xlu2 %v1204_v24  ;;  %1187 = vmax.xlane.f32.xlu0 %v1186_v25 }
 0x369   : > { %1190 = vmax.xlane.f32.xlu2 %v1189_v28 }
 0x3be   : > { %v1200_v29 = vpop.xlane.xlu1 %1199 }
 0x3bf   : > { %v1214_v30 = vsub.f32 %v1182_v3, %v1200_v29  ;;  %v1380_v3 = vpack.c.b16 %v1379_v63, %v1379_v63 }
 0x3c1   : > { %v1226_v31 = vmul.f32 1.442695, %v1214_v30 }
 0x3c3   : > { %7680 = vpow2.f32 %v1226_v31 }
 0x3c4   : > { %v1194_v32 = vpop.xlane.xlu0 %1193 }
 0x3c5   : > { %v1212_v33 = vsub.f32 %v1180_v6, %v1194_v32  ;;  %v1289_v6 = vpack.c.b16 %v1288_v4, %v1288_v4 }
 0x3c7   : > { %v1222_v34 = vmul.f32 1.442695, %v1212_v33 }
 0x3c9   : > { %7682 = vpow2.f32 %v1222_v34  ;;  %v8902_v35 = vpop.eup %7680 }
 0x3ca   : > { %v1246_v36 = vsel %vm1082_vm11, %v8902_v35, 0.0 }
 0x3cb   : > { %1247 = vadd.xlane.f32.xlu2 %v1246_v36 }
 0x3cc   : > { %v1203_v37 = vpop.xlane.xlu0 %1202  ;;  %v1197_v38 = vpop.xlane.xlu2 %1196 }
 0x3cd   : > { %v1215_v39 = vsub.f32 %v1183_v11, %v1203_v37  ;;  %v1213_v51 = vsub.f32 %v1181_v13, %v1197_v38 }
 0x3ce   : > { %v1209_v42 = vpop.xlane.xlu1 %1208 }
 0x3cf   : > { %v8906_v43 = vpop.eup %7682  ;;  %v1228_v44 = vmul.f32 1.442695, %v1215_v39  ;;  %v1217_v45 = vsub.f32 %v1185_v17, %v1209_v42  ;;  %v1224_v57 = vmul.f32 1.442695, %v1213_v51 }
 0x3d0   : > { %v1240_v46 = vsel %vm1082_vm11, %v8906_v43, 0.0 }
 0x3d1   : > { %7684 = vpow2.f32 %v1228_v44  ;;  %v1232_v47 = vmul.f32 1.442695, %v1217_v45  ;;  %1241 = vadd.xlane.f32.xlu1 %v1240_v46 }
 0x3d3   : > { %7686 = vpow2.f32 %v1232_v47 }
 0x3d4   : > { %v1206_v48 = vpop.xlane.xlu2 %1205  ;;  %v1188_v56 = vpop.xlane.xlu0 %1187 }
 0x3d5   : > { %v1216_v49 = vsub.f32 %v1184_v22, %v1206_v48  ;;  %v1210_v11 = vsub.f32 %v8896_v21, %v1188_v56  ;;  %v8940_v21 = vld [vmem:[%s10321_s6 + $0x18] sm:$0xff] }
 0x3d7   : > { %v8910_v50 = vpop.eup %7684  ;;  %v1230_v52 = vmul.f32 1.442695, %v1216_v49  ;;  %v1218_v13 = vmul.f32 1.442695, %v1210_v11 }
 0x3d8   : > { %v1249_v53 = vsel %vm1082_vm11, %v8910_v50, 0.0 }
 0x3d9   : > { %v7687_v54 = vpop.eup %7686  ;;  %7688 = vpow2.f32 %v1230_v52  ;;  %1250 = vadd.xlane.f32.xlu1 %v1249_v53  ;;  %v8955_v52 = vld [vmem:[#allocation9 + $0x1] ss:$0 sm:$0xff] }
 0x3da   : > { %v1255_v55 = vsel %vm1082_vm11, %v7687_v54, 0.0  ;;  %7690 = vpow2.f32 %v1224_v57 }
 0x3db   : > { %1256 = vadd.xlane.f32.xlu2 %v1255_v55 }
 0x3dc   : > { %v1191_v8 = vpop.xlane.xlu2 %1190 }
 0x3dd   : > { %v1211_v40 = vsub.f32 %v1179_v27, %v1191_v8  ;;  %v8947_v27 = vld [vmem:[%s10321_s6 + $0x10] sm:$0xff] }
 0x3df   : > { %v7689_v58 = vpop.eup %7688  ;;  %v1220_v9 = vmul.f32 1.442695, %v1211_v40 }
 0x3e0   : > { %v1252_v59 = vsel %vm1082_vm11, %v7689_v58, 0.0  ;;  %v8916_v60 = vpop.eup %7690 }
 0x3e1   : > { %1253 = vadd.xlane.f32.xlu0 %v1252_v59  ;;  %v1243_v61 = vsel %vm1082_vm11, %v8916_v60, 0.0  ;;  %7692 = vpow2.f32 %v1220_v9 }
 0x3e2   : > { %7694 = vpow2.f32 %v1218_v13 }
 0x3e7   : > { %v8929_v12 = vpop.eup %7692 }
 0x3e8   : > { %v1237_v23 = vsel %vm1082_vm11, %v8929_v12, 0.0  ;;  %v8933_v41 = vpop.eup %7694 }
 0x3e9   : > { %1244 = vadd.xlane.f32.xlu0 %v1243_v61  ;;  %v1234_v15 = vsel %vm1082_vm11, %v8933_v41, 0.0  ;;  %v8961_v61 = vld [vmem:[#allocation11 + $0x1] ss:$0 sm:$0xff] }
 0x3f2   : > { %1321 = vrot.lane.b32.xlu1 %v1320_v2, %s8465_s18 }
 0x3f3   : > { %1381 = vrot.lane.b32.xlu2 %v1380_v3, %s8465_s18 }
 0x3fb   : > { %1290 = vrot.lane.b32.xlu2 %v1289_v6, %s8465_s18 }
 0x3fd   : > { %1351 = vrot.lane.b32.xlu0 %v1350_v7, %s8465_s18 }
 0x41c   : > { %1238 = vadd.xlane.f32.xlu1 %v1237_v23 }
 0x427   : > { %1235 = vadd.xlane.f32.xlu0 %v1234_v15 }
 0x43e   : > { %v1248_v16 = vpop.xlane.xlu2 %1247 }
 0x444   : > { %v1242_v18 = vpop.xlane.xlu1 %1241 }
 0x44c   : > { %v1251_v26 = vpop.xlane.xlu1 %1250 }
 0x44e   : > { %v1257_v17 = vpop.xlane.xlu2 %1256 }
 0x44f   : > { %7696 = vrcp.f32 %v1257_v17 }
 0x454   : > { %v1254_v19 = vpop.xlane.xlu0 %1253 }
 0x455   : > { %v7697_v20 = vpop.eup %7696  ;;  %7698 = vrcp.f32 %v1254_v19 }
 0x456   : > { %v1382_v22 = vpop.permute.xlu2 %1381  ;;  %7700 = vrcp.f32 %v1242_v18  ;;  %v1273_v25 = vmul.f32 %v7697_v20, %v7687_v54 }
 0x457   : > { %v1387_v24 = vsel %vm1295_vm12, %v1382_v22, 0  ;;  %7702 = vrcp.f32 %v1251_v26 }
 0x458   : > { %1396 = vmatpush.bf16.msrb.mxu1 %v1387_v24  ;;  %v1281_v29 = vpack.c.bf16 %v1273_v25, %v1273_v25 }
 0x45a   : > { %v1376_v38 = vunpack.c.l.b16 %v1281_v29  ;;  %v7222_v29 = vld [vmem:[%s10322_s8] sm:$0xff] }
 0x45b   : > { %v7699_v28 = vpop.eup %7698 }
 0x45c   : > { %1740 = vmatpush.bf16.msra.mxu1 %v8940_v21  ;;  %v1272_v30 = vmul.f32 %v7699_v28, %v7689_v58  ;;  %v1245_v31 = vpop.xlane.xlu0 %1244  ;;  %v7701_v32 = vpop.eup %7700  ;;  %v1655_v58 = vmul.f32 %v8955_v52, %v8861_v10  ;;  %v7223_v28 = vld [vmem:[%s10322_s8 + $0x8] sm:$0xff] }
 0x45d   : > { %7704 = vrcp.f32 %v1245_v31  ;;  %v1268_v37 = vmul.f32 %v7701_v32, %v8906_v43  ;;  %v7703_v42 = vpop.eup %7702 }
 0x45e   : > { %v1280_v33 = vpack.c.bf16 %v1272_v30, %v1272_v30  ;;  %v1291_v34 = vpop.permute.xlu2 %1290  ;;  %7706 = vrcp.f32 %v1248_v16  ;;  %v1271_v53 = vmul.f32 %v7703_v42, %v8910_v50  ;;  %v1659_v2 = vadd.f32 %v8961_v61, %v1655_v58 }
 0x45f   : > { %v1297_v36 = vsel %vm1295_vm12, %v1291_v34, 0  ;;  %v1276_v46 = vpack.c.bf16 %v1268_v37, %v1268_v37 }
 0x460   : > { %1741 = vmatpush.bf16.msra.mxu1 %v8947_v27  ;;  %v1375_v39 = vunpack.c.l.b16 %v1280_v33  ;;  %1306 = vmatpush.bf16.msrb.mxu2 %v1297_v36  ;;  %v1279_v59 = vpack.c.bf16 %v1271_v53, %v1271_v53  ;;  %v1715_v5 = vpack.c.bf16 %v1659_v2, %v1659_v2  ;;  %v7613_v2 = vld [vmem:[#allocation12 + $0x1] ss:$0 sm:$0xff] }
 0x461   : > { %v1315_v55 = vunpack.c.l.b16 %v1276_v46 }
 0x462   : > { %v1377_v44 = vpack.c.b16 %v1376_v38, %v1375_v39  ;;  %v1346_v63 = vunpack.c.l.b16 %v1279_v59 }
 0x463   : > { %v7705_v45 = vpop.eup %7704 }
 0x464   : > { %v1269_v47 = vmul.f32 %v7705_v45, %v8916_v60  ;;  %v1322_v48 = vpop.permute.xlu1 %1321  ;;  %6657 = vmatmul.msk.bf16.vlgmr.msrb.gmra.mxu1 %vm1082_vm11, %v1377_v44  ;;  %v7707_v49 = vpop.eup %7706  ;;  %1461 = vmatpush.bf16.msra.mxu2 %v7223_v28 }
 0x465   : > { %v1327_v51 = vsel %vm1295_vm12, %v1322_v48, 0  ;;  %v1270_v54 = vmul.f32 %v7707_v49, %v8902_v35 }
 0x466   : > { %v1277_v43 = vpack.c.bf16 %v1269_v47, %v1269_v47  ;;  %1336 = vmatpush.bf16.msrb.mxu3 %v1327_v51 }
 0x467   : > { %v1278_v62 = vpack.c.bf16 %v1270_v54, %v1270_v54 }
 0x468   : > { %v1316_v57 = vunpack.c.l.b16 %v1277_v43  ;;  %1462 = vmatpush.bf16.msra.mxu2 %v7222_v29  ;;  %v7614_v43 = vld [vmem:[%s10233_s9] ss:$0 sm:$0xff] }
 0x469   : > { %v1345_v4 = vunpack.c.l.b16 %v1278_v62 }
 0x46a   : > { %v1317_v60 = vpack.c.b16 %v1316_v57, %v1315_v55 }
 0x46b   : > { %v1347_v35 = vpack.c.b16 %v1346_v63, %v1345_v4 }
 0x46c   : > { %6655 = vmatmul.msk.bf16.vlgmr.msrb.gmra.mxu3 %vm1082_vm11, %v1317_v60 }
 0x46f   : > { %v1352_v50 = vpop.permute.xlu0 %1351 }
 0x470   : > { %v1357_v3 = vsel %vm1295_vm12, %v1352_v50, 0 }
 0x471   : > { %1366 = vmatpush.bf16.msrb.mxu0 %v1357_v3 }
 0x474   : > { %6656 = vmatmul.msk.bf16.vlgmr.msrb.gmra.mxu0 %vm1082_vm11, %v1347_v35  ;;  %6705 = vmatmul.msk.bf16.vlgmr.msra.gmra.mxu1 %vm885_vm0, %v1715_v5 }
 0x48f   : > { %v1239_v10 = vpop.xlane.xlu1 %1238 }
 0x490   : > { %7708 = vrcp.f32 %v1239_v10 }
 0x496   : > { %v7709_v7 = vpop.eup %7708 }
 0x497   : > { %v1267_v8 = vmul.f32 %v7709_v7, %v8929_v12 }
 0x499   : > { %v1275_v9 = vpack.c.bf16 %v1267_v8, %v1267_v8 }
 0x49a   : > { %v1236_v6 = vpop.xlane.xlu0 %1235 }
 0x49b   : > { %7710 = vrcp.f32 %v1236_v6  ;;  %v1285_v23 = vunpack.c.l.b16 %v1275_v9 }
 0x4a1   : > { %v7711_v40 = vpop.eup %7710 }
 0x4a2   : > { %v1266_v56 = vmul.f32 %v7711_v40, %v8933_v41  ;;  %v7225_v40 = vld [vmem:[%s10236_s12 + $0x8] sm:$0xff] }
 0x4a3   : > { %1563 = vmatpush.bf16.msra.mxu3 %v7225_v40 }
 0x4a4   : > { %v1274_v11 = vpack.c.bf16 %v1266_v56, %v1266_v56 }
 0x4a6   : > { %v1284_v13 = vunpack.c.l.b16 %v1274_v11  ;;  %v7224_v11 = vld [vmem:[%s10236_s12] sm:$0xff] }
 0x4a7   : > { %1564 = vmatpush.bf16.msra.mxu3 %v7224_v11  ;;  %v7618_v11 = vld [vmem:[#allocation18] ss:$0 sm:$0xff] }
 0x4a8   : > { %v1286_v15 = vpack.c.b16 %v1285_v23, %v1284_v13 }
 0x4aa   : > { %6654 = vmatmul.msk.bf16.vlgmr.msrb.gmra.mxu2 %vm1082_vm11, %v1286_v15 }
 0x4e1   : > { %v1398_v16 = vpop.f32.mrf.mxu1 }
 0x4e9   : > { %v1400_v17 = vpop.f32.mrf.mxu1 }
 0x4ea   : > { %v7483_v41 = vpack.i.bf16 %v1400_v17, %v1398_v16 }
 0x4ef   : > { %v1338_v20 = vpop.f32.mrf.mxu3 }
 0x4f1   : > { %v1368_v18 = vpop.f32.mrf.mxu0  ;;  %v1743_v19 = vpop.f32.mrf.mxu1 }
 0x4f2   : > { %v9001_v50 = vadd.f32 %v7613_v2, %v1743_v19 }
 0x4f7   : > { %v1340_v12 = vpop.f32.mrf.mxu3 }
 0x4f8   : > { %v7478_v26 = vpack.i.bf16 %v1340_v12, %v1338_v20 }
 0x4f9   : > { %v1370_v22 = vpop.f32.mrf.mxu0  ;;  %v1745_v24 = vpop.f32.mrf.mxu1 }
 0x4fa   : > { %v7473_v25 = vpack.i.bf16 %v1370_v22, %v1368_v18 }
 0x4fc   : > { %7474 = vrot.lane.b32.xlu2 %v7473_v25, %s8469_s28 }
 0x504   : > { %7479 = vrot.lane.b32.xlu2 %v7478_v26, %s10266_s0 }
 0x50c   : > { %7484 = vrot.lane.b32.xlu2 %v7483_v41, %s8471_s4 }
 0x52d   : > { %v1308_v31 = vpop.f32.mrf.mxu2 }
 0x535   : > { %v1310_v36 = vpop.f32.mrf.mxu2 }
 0x556   : > { %v7475_v30 = vpop.permute.xlu2 %7474 }
 0x557   : > { %v7477_v39 = vunpack.i.h.bf16 %v7475_v30  ;;  %v7476_v42 = vunpack.i.l.bf16 %v7475_v30  ;;  %v7615_v30 = vld [vmem:[#allocation14] ss:$0 sm:$0xff] }
 0x55e   : > { %v7480_v32 = vpop.permute.xlu2 %7479 }
 0x55f   : > { %v7482_v33 = vunpack.i.h.bf16 %v7480_v32  ;;  %v7481_v34 = vunpack.i.l.bf16 %v7480_v32 }
 0x561   : > { %v1428_v37 = vsel %vm1082_vm11, %v1310_v36, %v7482_v33  ;;  %v1427_v38 = vsel %vm1082_vm11, %v1308_v31, %v7481_v34 }
 0x562   : > { %v1430_v47 = vsel %vm1429_vm13, %v1427_v38, %v7476_v42  ;;  %v1431_v48 = vsel %vm1429_vm13, %v1428_v37, %v7477_v39  ;;  %v7616_v37 = vld [vmem:[#allocation15] ss:$0 sm:$0xff] }
 0x566   : > { %v7485_v44 = vpop.permute.xlu2 %7484 }
 0x567   : > { %v7487_v45 = vunpack.i.h.bf16 %v7485_v44  ;;  %v7486_v46 = vunpack.i.l.bf16 %v7485_v44 }
 0x569   : > { %v1433_v49 = vsel %vm1432_vm14, %v1430_v47, %v7486_v46  ;;  %v1434_v51 = vsel %vm1432_vm14, %v1431_v48, %v7487_v45  ;;  %v7229_v45 = vld [vmem:[%s10238_s14 + $0x18] sm:$0xff]  ;;  %v7228_v46 = vld [vmem:[%s10238_s14 + $0x10] sm:$0xff]  ;;  %v7227_v47 = vld [vmem:[%s10238_s14 + $0x8] sm:$0xff] }
 0x56a   : > { %v1439_v53 = vpack.c.bf16 %v1434_v51, %v1433_v49  ;;  %1630 = vmatpush.bf16.msra.mxu0 %v7229_v45  ;;  %v7226_v48 = vld [vmem:[%s10238_s14] sm:$0xff]  ;;  %v7617_v49 = vld [vmem:[#allocation17] ss:$0 sm:$0xff] }
 0x56c   : > { %6666 = vmatmul.msk.bf16.vlgmr.msra.gmra.mxu2 %vm885_vm0, %v1439_v53 }
 0x56e   : > { %1631 = vmatpush.bf16.msra.mxu0 %v7228_v46 }
 0x572   : > { %1632 = vmatpush.bf16.msra.mxu0 %v7227_v47 }
 0x576   : > { %1633 = vmatpush.bf16.msra.mxu0 %v7226_v48 }
 0x5ef   : > { %v1464_v54 = vpop.f32.mrf.mxu2 }
 0x5f0   : > { %v1469_v55 = vadd.f32 %v1464_v54, %v8823_v0 }
 0x5f2   : > { %v8991_v57 = vadd.f32 %v7614_v43, %v1469_v55 }
 0x5f4   : > { %v1479_v58 = vsel %vm885_vm0, %v8991_v57, 0.0 }
 0x5f5   : > { %1480 = vadd.xlane.f32.xlu2 %v1479_v58 }
 0x5f7   : > { %v1466_v59 = vpop.f32.mrf.mxu2 }
 0x5f8   : > { %v1470_v60 = vadd.f32 %v1466_v59, %v8825_v1 }
 0x5fa   : > { %v8996_v62 = vadd.f32 %v7614_v43, %v1470_v60 }
 0x5fc   : > { %v1482_v63 = vsel %vm885_vm0, %v8996_v62, 0.0 }
 0x5fd   : > { %1483 = vadd.xlane.f32.xlu0 %v1482_v63 }
 0x60d   : > { %1754 = vrot.lane.b32.xlu2 %v7613_v2, %s8465_s18 }
 0x615   : > { %1775 = vrot.lane.b32.xlu2 %v9001_v50, %s8466_s13 }
 0x668   : > { %v1481_v0 = vpop.xlane.xlu2 %1480 }
 0x669   : > { %v1485_v3 = vmul.f32 %v1481_v0, %v8840_v14 }
 0x66b   : > { %v1487_v4 = vsub.f32 %v8991_v57, %v1485_v3 }
 0x66d   : > { %v1489_v1 = vmul.f32 %v1487_v4, %v1487_v4 }
 0x66f   : > { %v1491_v35 = vsel %vm885_vm0, %v1489_v1, 0.0 }
 0x670   : > { %1492 = vadd.xlane.f32.xlu1 %v1491_v35  ;;  %v1484_v5 = vpop.xlane.xlu0 %1483 }
 0x671   : > { %v1486_v10 = vmul.f32 %v1484_v5, %v8840_v14 }
 0x673   : > { %v1488_v6 = vsub.f32 %v8996_v62, %v1486_v10 }
 0x675   : > { %v1490_v7 = vmul.f32 %v1488_v6, %v1488_v6 }
 0x677   : > { %v1494_v8 = vsel %vm885_vm0, %v1490_v7, 0.0 }
 0x678   : > { %1495 = vadd.xlane.f32.xlu0 %v1494_v8 }
 0x6e3   : > { %v1493_v9 = vpop.xlane.xlu1 %1492 }
 0x6e4   : > { %v1497_v56 = vmul.f32 %v1493_v9, %v8840_v14 }
 0x6e6   : > { %v1499_v13 = vadd.f32 1e-06, %v1497_v56 }
 0x6e8   : > { %7712 = vrsqrt.f32 %v1499_v13  ;;  %vm1507_vm1 = vweird.f32 %v1499_v13 }
 0x6eb   : > { %v1496_v23 = vpop.xlane.xlu0 %1495 }
 0x6ec   : > { %v1498_v15 = vmul.f32 %v1496_v23, %v8840_v14 }
 0x6ee   : > { %v7713_v16 = vpop.eup %7712  ;;  %v1500_v17 = vadd.f32 1e-06, %v1498_v15 }
 0x6ef   : > { %v1502_v18 = vmul.f32 %v7713_v16, %v1499_v13  ;;  %vm1508_vm15 = vweird.f32 %v7713_v16 }
 0x6f0   : > { %7714 = vrsqrt.f32 %v1500_v17  ;;  %vm1509_vm2 = vmor %vm1507_vm1, %vm1508_vm15  ;;  %vm1517_vm4 = vweird.f32 %v1500_v17 }
 0x6f1   : > { %v1503_v19 = vmul.f32 %v7713_v16, %v1502_v18 }
 0x6f3   : > { %v1504_v20 = vmul.f32 0.5, %v1503_v19 }
 0x6f5   : > { %v1505_v22 = vsub.f32 1.5, %v1504_v20 }
 0x6f6   : > { %v7715_v24 = vpop.eup %7714 }
 0x6f7   : > { %v1506_v25 = vmul.f32 %v7713_v16, %v1505_v22  ;;  %v1512_v12 = vmul.f32 %v7715_v24, %v1500_v17  ;;  %vm1518_vm3 = vweird.f32 %v7715_v24 }
 0x6f8   : > { %vm1519_vm5 = vmor %vm1517_vm4, %vm1518_vm3 }
 0x6f9   : > { %v1513_v26 = vmul.f32 %v7715_v24, %v1512_v12  ;;  %v1510_v41 = vsel %vm1509_vm2, %v7713_v16, %v1506_v25 }
 0x6fa   : > { %v1521_v31 = vmul.f32 %v1510_v41, %v1487_v4 }
 0x6fb   : > { %v1514_v28 = vmul.f32 0.5, %v1513_v26 }
 0x6fc   : > { %v1526_v34 = vmul.f32 %v7615_v30, %v1521_v31 }
 0x6fd   : > { %v1515_v29 = vsub.f32 1.5, %v1514_v28 }
 0x6fe   : > { %v1531_v39 = vadd.f32 %v7616_v37, %v1526_v34 }
 0x6ff   : > { %v1516_v32 = vmul.f32 %v7715_v24, %v1515_v29 }
 0x701   : > { %v1520_v33 = vsel %vm1519_vm5, %v7715_v24, %v1516_v32 }
 0x702   : > { %v1522_v36 = vmul.f32 %v1520_v33, %v1488_v6 }
 0x704   : > { %v1527_v38 = vmul.f32 %v7615_v30, %v1522_v36 }
 0x706   : > { %v1532_v42 = vadd.f32 %v7616_v37, %v1527_v38 }
 0x708   : > { %v1537_v44 = vpack.c.bf16 %v1532_v42, %v1531_v39 }
 0x70a   : > { %6675 = vmatmul.msk.bf16.vlgmr.msra.gmra.mxu3 %vm885_vm0, %v1537_v44 }
 0x78d   : > { %v1566_v51 = vpop.f32.mrf.mxu3 }
 0x78e   : > { %v1567_v53 = vadd.f32 %v7617_v49, %v1566_v51 }
 0x790   : > { %v1573_v43 = vmul.f32 0.044715, %v1567_v53  ;;  %v1571_v6 = vmul.f32 0.5, %v1567_v53 }
 0x792   : > { %v1575_v54 = vmul.f32 %v1573_v43, %v1567_v53 }
 0x794   : > { %v1577_v55 = vmul.f32 %v1575_v54, %v1567_v53 }
 0x795   : > { %v1568_v58 = vpop.f32.mrf.mxu3 }
 0x796   : > { %v1579_v59 = vadd.f32 %v1577_v55, %v1567_v53  ;;  %v1569_v60 = vadd.f32 %v7617_v49, %v1568_v58  ;;  %v7619_v53 = vld [vmem:[#allocation9 + $0x2] ss:$0 sm:$0xff] }
 0x798   : > { %v1574_v63 = vmul.f32 0.044715, %v1569_v60  ;;  %v1581_v2 = vmul.f32 0.7978846, %v1579_v59  ;;  %v1572_v7 = vmul.f32 0.5, %v1569_v60 }
 0x79a   : > { %v1576_v0 = vmul.f32 %v1574_v63, %v1569_v60  ;;  %7716 = vtanh.f32 %v1581_v2  ;;  %v7620_v2 = vld [vmem:[#allocation11 + $0x2] ss:$0 sm:$0xff] }
 0x79c   : > { %v1578_v3 = vmul.f32 %v1576_v0, %v1569_v60 }
 0x79e   : > { %v1580_v4 = vadd.f32 %v1578_v3, %v1569_v60 }
 0x7a0   : > { %v1582_v1 = vmul.f32 0.7978846, %v1580_v4  ;;  %v7717_v35 = vpop.eup %7716 }
 0x7a1   : > { %v1585_v5 = vadd.f32 1.0, %v7717_v35 }
 0x7a2   : > { %7718 = vtanh.f32 %v1582_v1 }
 0x7a3   : > { %v1587_v40 = vmul.f32 %v1585_v5, %v1571_v6 }
 0x7a8   : > { %v7719_v10 = vpop.eup %7718 }
 0x7a9   : > { %v1586_v8 = vadd.f32 1.0, %v7719_v10 }
 0x7ab   : > { %v1588_v9 = vmul.f32 %v1586_v8, %v1572_v7  ;;  %v1755_v8 = vpop.permute.xlu2 %1754 }
 0x7ad   : > { %v1597_v56 = vpack.c.bf16 %v1588_v9, %v1587_v40 }
 0x7af   : > { %6692 = vmatmul.msk.bf16.vlgmr.msra.gmra.mxu0 %vm1622_vm6, %v1597_v56 }
 0x82c   : > { %v1635_v13 = vpop.f32.mrf.mxu0 }
 0x82d   : > { %v1640_v23 = vadd.f32 %v1635_v13, %v8991_v57 }
 0x82f   : > { %v9034_v15 = vadd.f32 %v7618_v11, %v1640_v23 }
 0x831   : > { %v1667_v16 = vsel %vm885_vm0, %v9034_v15, 0.0 }
 0x832   : > { %1668 = vadd.xlane.f32.xlu1 %v1667_v16 }
 0x834   : > { %v1637_v17 = vpop.f32.mrf.mxu0 }
 0x835   : > { %v1641_v18 = vadd.f32 %v1637_v17, %v8996_v62 }
 0x837   : > { %v9039_v19 = vadd.f32 %v7618_v11, %v1641_v18  ;;  %v1804_v18 = vpack.c.bf16 %v9001_v50, %v9001_v50 }
 0x839   : > { %v1670_v20 = vsel %vm885_vm0, %v9039_v19, 0.0 }
 0x83a   : > { %1671 = vadd.xlane.f32.xlu0 %v1670_v20 }
 0x8a5   : > { %v1669_v22 = vpop.xlane.xlu1 %1668 }
 0x8a6   : > { %v1673_v24 = vmul.f32 %v1669_v22, %v8840_v14 }
 0x8a8   : > { %v1675_v57 = vsub.f32 %v9034_v15, %v1673_v24 }
 0x8aa   : > { %v1677_v25 = vmul.f32 %v1675_v57, %v1675_v57 }
 0x8ac   : > { %v1679_v12 = vsel %vm885_vm0, %v1677_v25, 0.0 }
 0x8ad   : > { %1680 = vadd.xlane.f32.xlu1 %v1679_v12  ;;  %v1672_v26 = vpop.xlane.xlu0 %1671 }
 0x8ae   : > { %v1674_v41 = vmul.f32 %v1672_v26, %v8840_v14 }
 0x8b0   : > { %v1676_v62 = vsub.f32 %v9039_v19, %v1674_v41 }
 0x8b2   : > { %v1678_v28 = vmul.f32 %v1676_v62, %v1676_v62 }
 0x8b4   : > { %v1682_v29 = vsel %vm885_vm0, %v1678_v28, 0.0 }
 0x8b5   : > { %1683 = vadd.xlane.f32.xlu0 %v1682_v29 }
 0x8c6   : > { %1750 = vrot.lane.b32.xlu1 %v8940_v21, %s8465_s18 }
 0x8c9   : > { %1748 = vrot.lane.b32.xlu0 %v8947_v27, %s8465_s18 }
 0x920   : > { %v1681_v30 = vpop.xlane.xlu1 %1680 }
 0x921   : > { %v1685_v31 = vmul.f32 %v1681_v30, %v8840_v14 }
 0x923   : > { %v1687_v32 = vadd.f32 1e-06, %v1685_v31 }
 0x925   : > { %7720 = vrsqrt.f32 %v1687_v32  ;;  %vm1695_vm8 = vweird.f32 %v1687_v32 }
 0x928   : > { %v1684_v33 = vpop.xlane.xlu0 %1683 }
 0x929   : > { %v1686_v34 = vmul.f32 %v1684_v33, %v8840_v14 }
 0x92b   : > { %v7721_v36 = vpop.eup %7720  ;;  %v1688_v37 = vadd.f32 1e-06, %v1686_v34 }
 0x92c   : > { %v1690_v38 = vmul.f32 %v7721_v36, %v1687_v32  ;;  %vm1696_vm7 = vweird.f32 %v7721_v36 }
 0x92d   : > { %7722 = vrsqrt.f32 %v1688_v37  ;;  %vm1697_vm9 = vmor %vm1695_vm8, %vm1696_vm7  ;;  %vm1705_vm15 = vweird.f32 %v1688_v37 }
 0x92e   : > { %v1691_v39 = vmul.f32 %v7721_v36, %v1690_v38 }
 0x930   : > { %v1692_v42 = vmul.f32 0.5, %v1691_v39 }
 0x932   : > { %v1693_v44 = vsub.f32 1.5, %v1692_v42 }
 0x933   : > { %v7723_v45 = vpop.eup %7722 }
 0x934   : > { %v1694_v21 = vmul.f32 %v7721_v36, %v1693_v44  ;;  %v1700_v46 = vmul.f32 %v7723_v45, %v1688_v37  ;;  %vm1706_vm10 = vweird.f32 %v7723_v45 }
 0x935   : > { %vm1707_vm1 = vmor %vm1705_vm15, %vm1706_vm10 }
 0x936   : > { %v1701_v27 = vmul.f32 %v7723_v45, %v1700_v46  ;;  %v1698_v47 = vsel %vm1697_vm9, %v7721_v36, %v1694_v21 }
 0x937   : > { %v1709_v43 = vmul.f32 %v1698_v47, %v1675_v57 }
 0x938   : > { %v1702_v48 = vmul.f32 0.5, %v1701_v27  ;;  %v1751_v49 = vpop.permute.xlu1 %1750 }
 0x939   : > { %1766 = vmatpush.bf16.msrb.mxu2 %v1751_v49  ;;  %v1711_v59 = vmul.f32 %v8955_v52, %v1709_v43  ;;  %v2242_v60 = vmul.f32 %v7619_v53, %v1709_v43 }
 0x93a   : > { %v1703_v51 = vsub.f32 1.5, %v1702_v48 }
 0x93b   : > { %v1749_v54 = vpop.permute.xlu0 %1748  ;;  %v1713_v4 = vadd.f32 %v8961_v61, %v1711_v59  ;;  %v9059_v35 = vadd.f32 %v7620_v2, %v2242_v60 }
 0x93c   : > { %v1704_v55 = vmul.f32 %v7723_v45, %v1703_v51 }
 0x93d   : > { %1767 = vmatpush.bf16.msrb.mxu2 %v1749_v54 }
 0x93e   : > { %v1708_v58 = vsel %vm1707_vm1, %v7723_v45, %v1704_v55  ;;  %v1776_v45 = vpop.permute.xlu2 %1775 }
 0x93f   : > { %v1710_v63 = vmul.f32 %v1708_v58, %v1676_v62  ;;  %v1805_v47 = vpack.c.bf16 %v1776_v45, %v1776_v45 }
 0x941   : > { %v1712_v0 = vmul.f32 %v8955_v52, %v1710_v63  ;;  %v2243_v3 = vmul.f32 %v7619_v53, %v1710_v63 }
 0x943   : > { %v1714_v1 = vadd.f32 %v8961_v61, %v1712_v0  ;;  %v9061_v5 = vadd.f32 %v7620_v2, %v2243_v3 }
 0x945   : > { %v1747_v10 = vpack.c.bf16 %v1714_v1, %v1713_v4  ;;  %v2256_v6 = vpack.c.bf16 %v9061_v5, %v9059_v35 }
 0x947   : > { %6706 = vmatmul.msk.bf16.vlgmr.msrb.gmra.mxu2 %vm885_vm0, %v1747_v10 }
 0x9ca   : > { %v1769_v7 = vpop.f32.mrf.mxu2 }
 0x9cb   : > { %v1770_v40 = vadd.f32 %v1769_v7, %v1755_v8 }
 0x9cd   : > { %v1808_v56 = vpack.c.bf16 %v1770_v40, %v1770_v40 }
 0x9cf   : > { %v1818_v61 = vunpack.c.l.b16 %v1808_v56 }
 0x9d2   : > { %v1771_v9 = vpop.f32.mrf.mxu2 }
 0x9d3   : > { %v1772_v52 = vadd.f32 %v1771_v9, %v1755_v8 }
 0x9d5   : > { %v7493_v11 = vpack.i.bf16 %v1772_v52, %v1770_v40  ;;  %v1809_v13 = vpack.c.bf16 %v1772_v52, %v1772_v52 }
 0x9d7   : > { %7494 = vrot.lane.b32.xlu0 %v7493_v11, %s8466_s13  ;;  %7489 = vrot.lane.b32.xlu1 %v7493_v11, %s8468_s20  ;;  %v1819_v23 = vunpack.c.l.b16 %v1809_v13 }
 0x9d9   : > { %v9068_v16 = vpack.c.b16 %v1819_v23, %v1818_v61 }
 0x9db   : > { %v1825_v17 = vsel %vm1082_vm11, %v9068_v16, 0 }
 0x9dc   : > { %1834 = vmatpush.bf16.xpose.msrb.mxu3 %v1825_v17 }
 0x9df   : > { %1781 = vrot.lane.b32.xlu0 %v9001_v50, %s8468_s20  ;;  %7499 = vrot.lane.b32.xlu1 %v7493_v11, %s8467_s15 }
 0x9e3   : > { %6707 = vmatmul.msk.bf16.vlgmr.msrb.gmra.mxu3 %vm1082_vm11, %v1804_v18 }
 0x9e7   : > { %1778 = vrot.lane.b32.xlu1 %v9001_v50, %s8467_s15 }
 0xa49   : > { %v7495_v20 = vpop.permute.xlu0 %7494  ;;  %v7490_v22 = vpop.permute.xlu1 %7489 }
 0xa4a   : > { %v7497_v24 = vunpack.i.h.bf16 %v7495_v20  ;;  %v7496_v57 = vunpack.i.l.bf16 %v7495_v20  ;;  %v7492_v25 = vunpack.i.h.bf16 %v7490_v22  ;;  %v7491_v12 = vunpack.i.l.bf16 %v7490_v22 }
 0xa4c   : > { %v1811_v26 = vpack.c.bf16 %v7497_v24, %v7497_v24  ;;  %v1810_v41 = vpack.c.bf16 %v7496_v57, %v7496_v57  ;;  %v1815_v62 = vpack.c.bf16 %v7492_v25, %v7492_v25  ;;  %v1814_v28 = vpack.c.bf16 %v7491_v12, %v7491_v12 }
 0xa4e   : > { %v1843_v29 = vunpack.c.l.b16 %v1811_v26  ;;  %v1842_v30 = vunpack.c.l.b16 %v1810_v41  ;;  %v1891_v31 = vunpack.c.l.b16 %v1815_v62  ;;  %v1890_v32 = vunpack.c.l.b16 %v1814_v28 }
 0xa50   : > { %v9080_v33 = vpack.c.b16 %v1843_v29, %v1842_v30  ;;  %v9082_v34 = vpack.c.b16 %v1891_v31, %v1890_v32 }
 0xa51   : > { %v7500_v36 = vpop.permute.xlu1 %7499  ;;  %v1782_v21 = vpop.permute.xlu0 %1781 }
 0xa52   : > { %v7502_v50 = vunpack.i.h.bf16 %v7500_v36  ;;  %v7501_v37 = vunpack.i.l.bf16 %v7500_v36  ;;  %v1849_v38 = vsel %vm1082_vm11, %v9080_v33, 0  ;;  %v1897_v39 = vsel %vm1082_vm11, %v9082_v34, 0 }
 0xa53   : > { %1858 = vmatpush.bf16.xpose.msrb.mxu0 %v1849_v38  ;;  %1906 = vmatpush.bf16.xpose.msra.mxu2 %v1897_v39  ;;  %v1807_v49 = vpack.c.bf16 %v1782_v21, %v1782_v21  ;;  %v7240_v38 = vld [vmem:[%s10321_s6 + $0x20] sm:$0xff] }
 0xa54   : > { %v1813_v42 = vpack.c.bf16 %v7502_v50, %v7502_v50  ;;  %v1812_v44 = vpack.c.bf16 %v7501_v37, %v7501_v37 }
 0xa56   : > { %v1867_v46 = vunpack.c.l.b16 %v1813_v42  ;;  %v1866_v27 = vunpack.c.l.b16 %v1812_v44 }
 0xa58   : > { %v1868_v48 = vpack.c.b16 %v1867_v46, %v1866_v27 }
 0xa59   : > { %v1779_v53 = vpop.permute.xlu1 %1778 }
 0xa5a   : > { %6708 = vmatmul.msk.bf16.vlgmr.msrb.gmra.mxu0 %vm1082_vm11, %v1805_v47  ;;  %v1873_v51 = vsel %vm1082_vm11, %v1868_v48, 0  ;;  %6710 = vmatmul.msk.bf16.vlgmr.msra.gmra.mxu2 %vm1082_vm11, %v1807_v49  ;;  %v1806_v43 = vpack.c.bf16 %v1779_v53, %v1779_v53 }
 0xa5b   : > { %1882 = vmatpush.bf16.xpose.msrb.mxu1 %v1873_v51 }
 0xa62   : > { %6709 = vmatmul.msk.bf16.vlgmr.msrb.gmra.mxu1 %vm1082_vm11, %v1806_v43 }
 0xa66   : > { %v1836_v54 = vpop.f32.mrf.mxu3 }
 0xa67   : > { %v1912_v7 = vmul.f32 0.35355338, %v1836_v54 }
 0xa69   : > { %v1916_v9 = vsel %vm1429_vm13, %v1912_v7, -inf }
 0xa6e   : > { %v1838_v55 = vpop.f32.mrf.mxu3 }
 0xad7   : > { %v1860_v58 = vpop.f32.mrf.mxu0 }
 0xad8   : > { %v1913_v59 = vmul.f32 0.35355338, %v1860_v58 }
 0xada   : > { %v1919_v60 = vsel %vm1429_vm13, %v1913_v59, -inf }
 0xadb   : > { %1920 = vmax.xlane.f32.xlu2 %v1919_v60  ;;  %v7621_v60 = vld [vmem:[#allocation12 + $0x2] ss:$0 sm:$0xff] }
 0xadd   : > { %v1908_v63 = vpop.f32.mrf.mxu2 }
 0xade   : > { %v1915_v2 = vmul.f32 0.35355338, %v1908_v63 }
 0xadf   : > { %v1862_v0 = vpop.f32.mrf.mxu0  ;;  %v1884_v3 = vpop.f32.mrf.mxu1 }
 0xae0   : > { %v1914_v4 = vmul.f32 0.35355338, %v1884_v3  ;;  %v1925_v1 = vsel %vm1429_vm13, %v1915_v2, -inf }
 0xae1   : > { %1926 = vmax.xlane.f32.xlu0 %v1925_v1 }
 0xae2   : > { %v1922_v10 = vsel %vm1429_vm13, %v1914_v4, -inf }
 0xae3   : > { %1923 = vmax.xlane.f32.xlu1 %v1922_v10 }
 0xae5   : > { %v1910_v8 = vpop.f32.mrf.mxu2 }
 0xae7   : > { %v1886_v40 = vpop.f32.mrf.mxu1 }
 0xae9   : > { %1917 = vmax.xlane.f32.xlu0 %v1916_v9 }
 0xb4e   : > { %v1921_v52 = vpop.xlane.xlu2 %1920 }
 0xb4f   : > { %v1929_v56 = vsub.f32 %v1913_v59, %v1921_v52  ;;  %v7233_v52 = vld [vmem:[%s10322_s8 + $0x18] sm:$0xff] }
 0xb51   : > { %v1934_v11 = vmul.f32 1.442695, %v1929_v56  ;;  %v7232_v56 = vld [vmem:[%s10322_s8 + $0x10] sm:$0xff] }
 0xb53   : > { %7724 = vpow2.f32 %v1934_v11 }
 0xb54   : > { %v1927_v13 = vpop.xlane.xlu0 %1926 }
 0xb55   : > { %v1931_v61 = vsub.f32 %v1915_v2, %v1927_v13 }
 0xb56   : > { %v1924_v23 = vpop.xlane.xlu1 %1923 }
 0xb57   : > { %v1930_v17 = vsub.f32 %v1914_v4, %v1924_v23  ;;  %v1938_v18 = vmul.f32 1.442695, %v1931_v61 }
 0xb59   : > { %v7725_v20 = vpop.eup %7724  ;;  %v1936_v22 = vmul.f32 1.442695, %v1930_v17  ;;  %7726 = vpow2.f32 %v1938_v18 }
 0xb5a   : > { %v1943_v24 = vsel %vm1429_vm13, %v7725_v20, 0.0 }
 0xb5b   : > { %7728 = vpow2.f32 %v1936_v22  ;;  %1944 = vadd.xlane.f32.xlu1 %v1943_v24 }
 0xb5c   : > { %v1918_v41 = vpop.xlane.xlu0 %1917 }
 0xb5d   : > { %v1928_v62 = vsub.f32 %v1912_v7, %v1918_v41 }
 0xb5f   : > { %v7727_v57 = vpop.eup %7726  ;;  %v1932_v28 = vmul.f32 1.442695, %v1928_v62 }
 0xb60   : > { %v1949_v12 = vsel %vm1429_vm13, %v7727_v57, 0.0 }
 0xb61   : > { %v7729_v25 = vpop.eup %7728  ;;  %1950 = vadd.xlane.f32.xlu2 %v1949_v12  ;;  %7730 = vpow2.f32 %v1932_v28 }
 0xb62   : > { %v1946_v26 = vsel %vm1429_vm13, %v7729_v25, 0.0 }
 0xb63   : > { %1947 = vadd.xlane.f32.xlu0 %v1946_v26 }
 0xb67   : > { %v7731_v29 = vpop.eup %7730 }
 0xb68   : > { %v1940_v30 = vsel %vm1429_vm13, %v7731_v29, 0.0 }
 0xb74   : > { %1983 = vrot.lane.b32.xlu1 %v9080_v33, %s8465_s18 }
 0xb77   : > { %2002 = vrot.lane.b32.xlu0 %v1868_v48, %s8465_s18 }
 0xb79   : > { %2021 = vrot.lane.b32.xlu2 %v9082_v34, %s8465_s18  ;;  %v7241_v34 = vld [vmem:[%s10321_s6 + $0x28] sm:$0xff] }
 0xb7f   : > { %1964 = vrot.lane.b32.xlu0 %v9068_v16, %s8465_s18 }
 0xba2   : > { %1941 = vadd.xlane.f32.xlu2 %v1940_v30  ;;  %v7622_v30 = vld [vmem:[%s10233_s9 + $0x1] ss:$0 sm:$0xff] }
 0xbce   : > { %v1945_v32 = vpop.xlane.xlu1 %1944 }
 0xbd4   : > { %v1951_v31 = vpop.xlane.xlu2 %1950 }
 0xbd5   : > { %7732 = vrcp.f32 %v1951_v31 }
 0xbd6   : > { %7734 = vrcp.f32 %v1945_v32  ;;  %v1948_v33 = vpop.xlane.xlu0 %1947  ;;  %v8004_v32 = vld [vmem:[%s8796_s10] sm:$0xff]  ;;  %s10325_s10 = sld [smem:[#allocation52_spill]] }
 0xbd7   : > { %7736 = vrcp.f32 %v1948_v33 }
 0xbdb   : > { %v7733_v36 = vpop.eup %7732 }
 0xbdc   : > { %v1959_v50 = vmul.f32 %v7733_v36, %v7727_v57  ;;  %v2022_v16 = vpop.permute.xlu2 %2021  ;;  %v7735_v39 = vpop.eup %7734  ;;  %s6303_s26 = scalar_lea.hbm %s10325_s10, %s7215_s27 }
 0xbdd   : > { %2034 = vmatpush.bf16.msrb.mxu2 %v2022_v16  ;;  %v7737_v42 = vpop.eup %7736  ;;  %v1957_v44 = vmul.f32 %v7735_v39, %v7725_v20  ;;  %s6307_s5 = sshll.u32 %s6303_s26, 4  ;;  %s6308_s5 = int_to_ptr.hbm [resolvable:$true] %s6307_s5 }
 0xbde   : > { %v1963_v37 = vpack.c.bf16 %v1959_v50, %v1959_v50  ;;  %v1958_v21 = vmul.f32 %v7737_v42, %v7729_v25 }
 0xbdf   : > { %v1961_v46 = vpack.c.bf16 %v1957_v44, %v1957_v44 }
 0xbe0   : > { %6714 = vmatmul.msk.bf16.vlgmr.msrb.gmra.mxu2 %vm1429_vm13, %v1963_v37  ;;  %v1962_v47 = vpack.c.bf16 %v1958_v21, %v1958_v21 }
 0xbe1   : > { %2281 = vmatpush.bf16.msra.mxu2 %v7241_v34 }
 0xbe5   : > { %2282 = vmatpush.bf16.msra.mxu2 %v7240_v38 }
 0xbe6   : > { %v1984_v45 = vpop.permute.xlu1 %1983 }
 0xbe7   : > { %1996 = vmatpush.bf16.msra.mxu0 %v1984_v45 }
 0xbe9   : > { %v2003_v27 = vpop.permute.xlu0 %2002 }
 0xbea   : > { %6712 = vmatmul.msk.bf16.vlgmr.msra.gmra.mxu0 %vm1429_vm13, %v1961_v46  ;;  %2015 = vmatpush.bf16.msra.mxu1 %v2003_v27 }
 0xbed   : > { %6713 = vmatmul.msk.bf16.vlgmr.msra.gmra.mxu1 %vm1429_vm13, %v1962_v47 }
 0xbf0   : > { %6779 = vmatmul.msk.bf16.vlgmr.msra.gmra.mxu2 %vm885_vm0, %v2256_v6 }
 0xbf1   : > { %v1965_v48 = vpop.permute.xlu0 %1964 }
 0xbf2   : > { %1977 = vmatpush.bf16.msra.mxu3 %v1965_v48 }
 0xbf6   : > { %2082 = vmatpush.bf16.msrb.mxu3 %v7233_v52 }
 0xbfa   : > { %2083 = vmatpush.bf16.msrb.mxu3 %v7232_v56  ;;  %v7624_v56 = vld [vmem:[#allocation15 + $0x1] ss:$0 sm:$0xff] }
 0xc15   : > { %v1942_v49 = vpop.xlane.xlu2 %1941 }
 0xc16   : > { %7738 = vrcp.f32 %v1942_v49 }
 0xc1c   : > { %v7739_v51 = vpop.eup %7738 }
 0xc1d   : > { %v1956_v53 = vmul.f32 %v7739_v51, %v7731_v29  ;;  %v7235_v51 = vld [vmem:[%s10236_s12 + $0x18] sm:$0xff] }
 0xc1e   : > { %2162 = vmatpush.bf16.msrb.mxu0 %v7235_v51 }
 0xc1f   : > { %v1960_v43 = vpack.c.bf16 %v1956_v53, %v1956_v53 }
 0xc21   : > { %6711 = vmatmul.msk.bf16.vlgmr.msra.gmra.mxu3 %vm1429_vm13, %v1960_v43 }
 0xc63   : > { %v2036_v54 = vpop.f32.mrf.mxu2 }
 0xc67   : > { %v1998_v55 = vpop.f32.mrf.mxu0 }
 0xc68   : > { %2041 = vrot.lane.b32.xlu1 %v1998_v55, %s10266_s0 }
 0xc6a   : > { %v2017_v58 = vpop.f32.mrf.mxu1 }
 0xc6b   : > { %2045 = vrot.lane.b32.xlu0 %v2017_v58, %s8469_s28  ;;  %v2038_v59 = vpop.f32.mrf.mxu2  ;;  %v7234_v58 = vld [vmem:[%s10236_s12 + $0x10] sm:$0xff] }
 0xc6c   : > { %2163 = vmatpush.bf16.msrb.mxu0 %v7234_v58 }
 0xc6f   : > { %v2000_v35 = vpop.f32.mrf.mxu0 }
 0xc70   : > { %2049 = vrot.lane.b32.xlu1 %v2036_v54, %s8471_s4 }
 0xc72   : > { %v2019_v5 = vpop.f32.mrf.mxu1 }
 0xc73   : > { %v2284_v6 = vpop.f32.mrf.mxu2 }
 0xc74   : > { %v2285_v63 = vadd.f32 %v7621_v60, %v2284_v6 }
 0xc76   : > { %v2309_v3 = vpack.c.bf16 %v2285_v63, %v2285_v63 }
 0xc78   : > { %v2319_v10 = vunpack.c.l.b16 %v2309_v3 }
 0xc7b   : > { %v2286_v2 = vpop.f32.mrf.mxu2 }
 0xc7c   : > { %v2287_v0 = vadd.f32 %v7621_v60, %v2286_v2 }
 0xc7e   : > { %v7503_v4 = vpack.i.bf16 %v2287_v0, %v2285_v63  ;;  %v2310_v1 = vpack.c.bf16 %v2287_v0, %v2287_v0 }
 0xc80   : > { %7504 = vrot.lane.b32.xlu2 %v7503_v4, %s8468_s20  ;;  %v2320_v7 = vunpack.c.l.b16 %v2310_v1 }
 0xc82   : > { %v9125_v8 = vpack.c.b16 %v2320_v7, %v2319_v10 }
 0xca4   : > { %v1979_v40 = vpop.f32.mrf.mxu3 }
 0xcac   : > { %v1981_v9 = vpop.f32.mrf.mxu3 }
 0xcda   : > { %v2042_v11 = vpop.permute.xlu1 %2041  ;;  %v7505_v13 = vpop.permute.xlu2 %7504 }
 0xcdb   : > { %v7507_v61 = vunpack.i.h.bf16 %v7505_v13  ;;  %v7506_v23 = vunpack.i.l.bf16 %v7505_v13  ;;  %v2052_v57 = vsel %vm1082_vm11, %v1979_v40, %v2042_v11  ;;  %v7623_v40 = vld [vmem:[#allocation14 + $0x1] ss:$0 sm:$0xff] }
 0xcdd   : > { %v2316_v17 = vpack.c.bf16 %v7507_v61, %v7507_v61  ;;  %v2315_v18 = vpack.c.bf16 %v7506_v23, %v7506_v23  ;;  %v2046_v20 = vpop.permute.xlu0 %2045 }
 0xcde   : > { %v2053_v25 = vsel %vm1429_vm13, %v2052_v57, %v2046_v20 }
 0xcdf   : > { %v2401_v22 = vunpack.c.l.b16 %v2316_v17  ;;  %v2400_v24 = vunpack.c.l.b16 %v2315_v18 }
 0xce1   : > { %v9135_v26 = vpack.c.b16 %v2401_v22, %v2400_v24 }
 0xce2   : > { %v2050_v12 = vpop.permute.xlu1 %2049 }
 0xce3   : > { %v2054_v41 = vsel %vm1432_vm14, %v2053_v25, %v2050_v12  ;;  %2403 = vrot.lane.b32.xlu2 %v9135_v26, %s8465_s18  ;;  %v7239_v12 = vld [vmem:[%s10238_s14 + $0x38] sm:$0xff] }
 0xce4   : > { %v2060_v62 = vpack.c.bf16 %v2054_v41, %v2054_v41  ;;  %2219 = vmatpush.bf16.msrb.mxu1 %v7239_v12  ;;  %v7238_v41 = vld [vmem:[%s10238_s14 + $0x30] sm:$0xff] }
 0xce6   : > { %6727 = vmatmul.msk.bf16.vlgmr.msrb.gmra.mxu3 %vm885_vm0, %v2060_v62 }
 0xce8   : > { %2220 = vmatpush.bf16.msrb.mxu1 %v7238_v41 }
 0xd3d   : > { %v2404_v28 = vpop.permute.xlu2 %2403 }
 0xd3e   : > { %v2409_v29 = vsel %vm1082_vm11, %v2404_v28, 0 }
 0xd3f   : > { %2418 = vmatpush.bf16.xpose.msrb.mxu2 %v2409_v29  ;;  %v7237_v29 = vld [vmem:[%s10238_s14 + $0x28] sm:$0xff] }
 0xd40   : > { %2221 = vmatpush.bf16.msrb.mxu1 %v7237_v29 }
 0xd46   : > { %6783 = vmatmul.msk.bf16.vlgmr.msrb.gmra.mxu2 %vm1082_vm11, %v9135_v26 }
 0xd69   : > { %v2085_v31 = vpop.f32.mrf.mxu3 }
 0xd6a   : > { %v2089_v33 = vadd.f32 %v8004_v32, %v2085_v31 }
 0xd6c   : > { %v9148_v34 = vadd.f32 %v7622_v30, %v2089_v33  ;;  %v7236_v30 = vld [vmem:[%s10238_s14 + $0x20] sm:$0xff]  ;;  %v7625_v33 = vld [vmem:[#allocation17 + $0x1] ss:$0 sm:$0xff] }
 0xd6d   : > { %2222 = vmatpush.bf16.msrb.mxu1 %v7236_v30 }
 0xd6e   : > { %v2100_v36 = vsel %vm885_vm0, %v9148_v34, 0.0 }
 0xd6f   : > { %2101 = vadd.xlane.f32.xlu0 %v2100_v36 }
 0xd71   : > { %v2087_v50 = vpop.f32.mrf.mxu3 }
 0xd83   : > { %7509 = vrot.lane.b32.xlu0 %v7503_v4, %s8466_s13 }
 0xdc9   : > { %v2420_v53 = vpop.f32.mrf.mxu2 }
 0xdca   : > { %v2431_v62 = vmul.f32 0.35355338, %v2420_v53 }
 0xdcc   : > { %v2451_v28 = vsel %vm1429_vm13, %v2431_v62, -inf }
 0xdd1   : > { %v2422_v43 = vpop.f32.mrf.mxu2 }
 0xdd2   : > { %v9166_v54 = vmul.f32 0.35355338, %v2422_v43 }
 0xdd4   : > { %v2454_v55 = vsel %vm1429_vm13, %v9166_v54, -inf }
 0xde2   : > { %v2102_v16 = vpop.xlane.xlu0 %2101 }
 0xde3   : > { %v2103_v37 = vmul.f32 %v2102_v16, %v8840_v14 }
 0xde5   : > { %v2104_v38 = vsub.f32 %v9148_v34, %v2103_v37 }
 0xde7   : > { %v2105_v39 = vmul.f32 %v2104_v38, %v2104_v38 }
 0xde9   : > { %v2106_v42 = vsel %vm885_vm0, %v2105_v39, 0.0 }
 0xdea   : > { %2107 = vadd.xlane.f32.xlu1 %v2106_v42 }
 0xdf5   : > { %v7510_v44 = vpop.permute.xlu0 %7509 }
 0xdf6   : > { %v7512_v45 = vunpack.i.h.bf16 %v7510_v44  ;;  %v7511_v21 = vunpack.i.l.bf16 %v7510_v44 }
 0xdf8   : > { %v2312_v46 = vpack.c.bf16 %v7512_v45, %v7512_v45  ;;  %v2311_v27 = vpack.c.bf16 %v7511_v21, %v7511_v21 }
 0xdfa   : > { %v2347_v47 = vunpack.c.l.b16 %v2312_v46  ;;  %v2346_v48 = vunpack.c.l.b16 %v2311_v27 }
 0xdfc   : > { %v9156_v49 = vpack.c.b16 %v2347_v47, %v2346_v48 }
 0xdfe   : > { %2349 = vrot.lane.b32.xlu2 %v9156_v49, %s8465_s18 }
 0xe03   : > { %7514 = vrot.lane.b32.xlu1 %v7503_v4, %s8467_s15 }
 0xe06   : > { %2322 = vrot.lane.b32.xlu2 %v9125_v8, %s8465_s18 }
 0xe2f   : > { %2455 = vmax.xlane.f32.xlu2 %v2454_v55 }
 0xe58   : > { %v2350_v59 = vpop.permute.xlu2 %2349 }
 0xe59   : > { %v2355_v35 = vsel %vm1082_vm11, %v2350_v59, 0 }
 0xe5a   : > { %2364 = vmatpush.bf16.xpose.msra.mxu0 %v2355_v35 }
 0xe5d   : > { %v2108_v5 = vpop.xlane.xlu1 %2107 }
 0xe5e   : > { %v2109_v6 = vmul.f32 %v2108_v5, %v8840_v14 }
 0xe60   : > { %v2110_v60 = vadd.f32 1e-06, %v2109_v6  ;;  %v2323_v63 = vpop.permute.xlu2 %2322 }
 0xe61   : > { %v2328_v2 = vsel %vm1082_vm11, %v2323_v63, 0 }
 0xe62   : > { %7740 = vrsqrt.f32 %v2110_v60  ;;  %2337 = vmatpush.bf16.xpose.msra.mxu3 %v2328_v2  ;;  %vm2117_vm3 = vweird.f32 %v2110_v60 }
 0xe68   : > { %v7741_v0 = vpop.eup %7740 }
 0xe69   : > { %v2112_v3 = vmul.f32 %v7741_v0, %v2110_v60  ;;  %6780 = vmatmul.msk.bf16.vlgmr.msra.gmra.mxu3 %vm1082_vm11, %v9125_v8  ;;  %vm2118_vm2 = vweird.f32 %v7741_v0 }
 0xe6a   : > { %vm2119_vm4 = vmor %vm2117_vm3, %vm2118_vm2 }
 0xe6b   : > { %v2113_v4 = vmul.f32 %v7741_v0, %v2112_v3 }
 0xe6d   : > { %v2114_v1 = vmul.f32 0.5, %v2113_v4 }
 0xe6f   : > { %v2115_v10 = vsub.f32 1.5, %v2114_v1 }
 0xe71   : > { %v2116_v7 = vmul.f32 %v7741_v0, %v2115_v10 }
 0xe73   : > { %v2120_v9 = vsel %vm2119_vm4, %v7741_v0, %v2116_v7 }
 0xe74   : > { %v2121_v52 = vmul.f32 %v2120_v9, %v2104_v38 }
 0xe75   : > { %v7515_v11 = vpop.permute.xlu1 %7514 }
 0xe76   : > { %v2125_v13 = vmul.f32 %v7623_v40, %v2121_v52  ;;  %v7517_v61 = vunpack.i.h.bf16 %v7515_v11  ;;  %v7516_v23 = vunpack.i.l.bf16 %v7515_v11 }
 0xe78   : > { %v2314_v17 = vpack.c.bf16 %v7517_v61, %v7517_v61  ;;  %v2313_v18 = vpack.c.bf16 %v7516_v23, %v7516_v23  ;;  %v2129_v20 = vadd.f32 %v7624_v56, %v2125_v13 }
 0xe7a   : > { %v2374_v22 = vunpack.c.l.b16 %v2314_v17  ;;  %v2373_v24 = vunpack.c.l.b16 %v2313_v18  ;;  %v2135_v57 = vpack.c.bf16 %v2129_v20, %v2129_v20 }
 0xe7c   : > { %6741 = vmatmul.msk.bf16.vlgmr.msrb.gmra.mxu0 %vm885_vm0, %v2135_v57  ;;  %v9179_v25 = vpack.c.b16 %v2374_v22, %v2373_v24 }
 0xe7e   : > { %2376 = vrot.lane.b32.xlu0 %v9179_v25, %s8465_s18 }
 0xe8c   : > { %6781 = vmatmul.msk.bf16.vlgmr.msra.gmra.mxu0 %vm1082_vm11, %v9156_v49 }
 0xea2   : > { %v2456_v53 = vpop.xlane.xlu2 %2455 }
 0xea3   : > { %v2464_v59 = vsub.f32 %v9166_v54, %v2456_v53 }
 0xea5   : > { %v2479_v6 = vmul.f32 1.442695, %v2464_v59 }
 0xea8   : > { %2452 = vmax.xlane.f32.xlu0 %v2451_v28 }
 0xeec   : > { %v2339_v5 = vpop.f32.mrf.mxu3 }
 0xeed   : > { %v2425_v60 = vmul.f32 0.35355338, %v2339_v5 }
 0xeef   : > { %v2433_v63 = vsel %vm1429_vm13, %v2425_v60, -inf }
 0xef0   : > { %v2377_v31 = vpop.permute.xlu0 %2376 }
 0xef1   : > { %v2382_v32 = vsel %vm1082_vm11, %v2377_v31, 0 }
 0xef2   : > { %2391 = vmatpush.bf16.xpose.msra.mxu1 %v2382_v32 }
 0xef4   : > { %v2341_v56 = vpop.f32.mrf.mxu3 }
 0xef5   : > { %v9213_v61 = vmul.f32 0.35355338, %v2341_v56 }
 0xef7   : > { %v2436_v24 = vsel %vm1429_vm13, %v9213_v61, -inf }
 0xef9   : > { %v2165_v36 = vpop.f32.mrf.mxu0 }
 0xefa   : > { %v2166_v50 = vadd.f32 %v7625_v33, %v2165_v36 }
 0xefc   : > { %v2170_v16 = vmul.f32 0.044715, %v2166_v50  ;;  %v2169_v47 = vmul.f32 0.5, %v2166_v50 }
 0xefe   : > { %v2171_v37 = vmul.f32 %v2170_v16, %v2166_v50 }
 0xf00   : > { %v2172_v38 = vmul.f32 %v2171_v37, %v2166_v50 }
 0xf01   : > { %v2167_v39 = vpop.f32.mrf.mxu0 }
 0xf02   : > { %v2173_v42 = vadd.f32 %v2172_v38, %v2166_v50 }
 0xf04   : > { %v2174_v44 = vmul.f32 0.7978846, %v2173_v42 }
 0xf06   : > { %7742 = vtanh.f32 %v2174_v44 }
 0xf07   : > { %7744 = vpow2.f32 %v2479_v6 }
 0xf09   : > { %v2366_v45 = vpop.f32.mrf.mxu0 }
 0xf0a   : > { %v2427_v21 = vmul.f32 0.35355338, %v2366_v45 }
 0xf0c   : > { %v7743_v46 = vpop.eup %7742  ;;  %v2439_v27 = vsel %vm1429_vm13, %v2427_v21, -inf }
 0xf0d   : > { %2440 = vmax.xlane.f32.xlu1 %v2439_v27  ;;  %v2176_v48 = vadd.f32 1.0, %v7743_v46  ;;  %v9204_v2 = vpop.eup %7744 }
 0xf0e   : > { %v2502_v54 = vsel %vm1429_vm13, %v9204_v2, 0.0 }
 0xf0f   : > { %v2177_v51 = vmul.f32 %v2176_v48, %v2169_v47 }
 0xf11   : > { %v2368_v43 = vpop.f32.mrf.mxu0  ;;  %v2187_v55 = vpack.c.bf16 %v2177_v51, %v2177_v51 }
 0xf12   : > { %v2428_v58 = vmul.f32 0.35355338, %v2368_v43 }
 0xf13   : > { %6766 = vmatmul.msk.bf16.vlgmr.msrb.gmra.mxu1 %vm1622_vm6, %v2187_v55 }
 0xf14   : > { %v2442_v35 = vsel %vm1429_vm13, %v2428_v58, -inf }
 0xf15   : > { %2443 = vmax.xlane.f32.xlu2 %v2442_v35 }
 0xf1b   : > { %v2453_v4 = vpop.xlane.xlu0 %2452 }
 0xf1c   : > { %v2463_v7 = vsub.f32 %v2431_v62, %v2453_v4 }
 0xf1d   : > { %2434 = vmax.xlane.f32.xlu2 %v2433_v63 }
 0xf1e   : > { %v2477_v11 = vmul.f32 1.442695, %v2463_v7 }
 0xf20   : > { %7746 = vpow2.f32 %v2477_v11 }
 0xf23   : > { %6782 = vmatmul.msk.bf16.vlgmr.msra.gmra.mxu1 %vm1082_vm11, %v9179_v25 }
 0xf25   : > { %2503 = vadd.xlane.f32.xlu2 %v2502_v54 }
 0xf26   : > { %v7747_v12 = vpop.eup %7746 }
 0xf27   : > { %v2499_v62 = vsel %vm1429_vm13, %v7747_v12, 0.0 }
 0xf80   : > { %v2441_v1 = vpop.xlane.xlu1 %2440 }
 0xf81   : > { %v2459_v9 = vsub.f32 %v2427_v21, %v2441_v1 }
 0xf83   : > { %v2469_v13 = vmul.f32 1.442695, %v2459_v9 }
 0xf85   : > { %7748 = vpow2.f32 %v2469_v13 }
 0xf88   : > { %v2444_v23 = vpop.xlane.xlu2 %2443 }
 0xf89   : > { %v2460_v20 = vsub.f32 %v2428_v58, %v2444_v23 }
 0xf8b   : > { %v2471_v57 = vmul.f32 1.442695, %v2460_v20  ;;  %v9218_v41 = vpop.eup %7748 }
 0xf8c   : > { %v2487_v28 = vsel %vm1429_vm13, %v9218_v41, 0.0 }
 0xf8d   : > { %7750 = vpow2.f32 %v2471_v57 }
 0xf90   : > { %v9210_v0 = vpop.f32.mrf.mxu1  ;;  %v2435_v31 = vpop.xlane.xlu2 %2434 }
 0xf91   : > { %v2457_v32 = vsub.f32 %v2425_v60, %v2435_v31 }
 0xf93   : > { %v7751_v29 = vpop.eup %7750  ;;  %v2465_v33 = vmul.f32 1.442695, %v2457_v32 }
 0xf94   : > { %v2490_v30 = vsel %vm1429_vm13, %v7751_v29, 0.0 }
 0xf95   : > { %7752 = vpow2.f32 %v2465_v33 }
 0xf98   : > { %v2226_v3 = vpop.f32.mrf.mxu1  ;;  %v2504_v47 = vpop.xlane.xlu2 %2503 }
 0xf9b   : > { %v9226_v36 = vpop.eup %7752 }
 0xf9c   : > { %v2481_v50 = vsel %vm1429_vm13, %v9226_v36, 0.0 }
 0xfa0   : > { %v2393_v10 = vpop.f32.mrf.mxu1 }
 0xfa1   : > { %v2429_v40 = vmul.f32 0.35355338, %v2393_v10 }
 0xfa3   : > { %v2445_v52 = vsel %vm1429_vm13, %v2429_v40, -inf }
 0xfa4   : > { %2446 = vmax.xlane.f32.xlu0 %v2445_v52 }
 0xfa8   : > { %v2395_v17 = vpop.f32.mrf.mxu1 }
 0xfa9   : > { %v2430_v18 = vmul.f32 0.35355338, %v2395_v17 }
 0xfab   : > { %v2448_v22 = vsel %vm1429_vm13, %v2430_v18, -inf }
 0xfac   : > { %2449 = vmax.xlane.f32.xlu1 %v2448_v22  ;;  %2437 = vmax.xlane.f32.xlu0 %v2436_v24 }
 0xfb4   : > { %2500 = vadd.xlane.f32.xlu1 %v2499_v62  ;;  %2488 = vadd.xlane.f32.xlu0 %v2487_v28 }
 0xfbc   : > { %2491 = vadd.xlane.f32.xlu1 %v2490_v30 }
 0xfd5   : > { %2609 = vrot.lane.b32.xlu1 %v9135_v26, %s8472_s22 }
 0xfff   : > { %2482 = vadd.xlane.f32.xlu1 %v2481_v50 }
0x1017   : > { %v2447_v16 = vpop.xlane.xlu0 %2446 }
0x1018   : > { %v2461_v37 = vsub.f32 %v2429_v40, %v2447_v16 }
0x101a   : > { %v2473_v38 = vmul.f32 1.442695, %v2461_v37 }
0x101c   : > { %7754 = vpow2.f32 %v2473_v38 }
0x101f   : > { %v2450_v39 = vpop.xlane.xlu1 %2449 }
0x1020   : > { %v2462_v42 = vsub.f32 %v2430_v18, %v2450_v39 }
0x1022   : > { %v7755_v44 = vpop.eup %7754  ;;  %v2475_v45 = vmul.f32 1.442695, %v2462_v42 }
0x1023   : > { %v2493_v26 = vsel %vm1429_vm13, %v7755_v44, 0.0 }
0x1024   : > { %7756 = vpow2.f32 %v2475_v45  ;;  %2494 = vadd.xlane.f32.xlu2 %v2493_v26 }
0x1027   : > { %v2501_v27 = vpop.xlane.xlu1 %2500 }
0x1028   : > { %7758 = vrcp.f32 %v2501_v27 }
0x1029   : > { %7760 = vrcp.f32 %v2504_v47 }
0x102a   : > { %v7757_v21 = vpop.eup %7756 }
0x102b   : > { %v2496_v46 = vsel %vm1429_vm13, %v7757_v21, 0.0 }
0x102c   : > { %2497 = vadd.xlane.f32.xlu0 %v2496_v46 }
0x102e   : > { %v7759_v48 = vpop.eup %7758 }
0x102f   : > { %v7761_v51 = vpop.eup %7760  ;;  %v2519_v53 = vmul.f32 %v7759_v48, %v7747_v12  ;;  %v2492_v55 = vpop.xlane.xlu1 %2491 }
0x1030   : > { %v2520_v43 = vmul.f32 %v7761_v51, %v9204_v2  ;;  %v2228_v51 = vadd.f32 %v9210_v0, %v9148_v34 }
0x1031   : > { %v2527_v58 = vpack.c.bf16 %v2519_v53, %v2519_v53  ;;  %v7626_v53 = vld [vmem:[#allocation18 + $0x1] ss:$0 sm:$0xff] }
0x1032   : > { %v2528_v59 = vpack.c.bf16 %v2520_v43, %v2520_v43  ;;  %v9252_v43 = vadd.f32 %v7626_v53, %v2228_v51 }
0x1033   : > { %v2606_v35 = vunpack.c.l.b16 %v2527_v58  ;;  %v7243_v58 = vld [vmem:[%s10322_s8 + $0x28] sm:$0xff] }
0x1034   : > { %v2607_v5 = vunpack.c.l.b16 %v2528_v59  ;;  %v7242_v59 = vld [vmem:[%s10322_s8 + $0x20] sm:$0xff] }
0x1036   : > { %v2608_v60 = vpack.c.b16 %v2607_v5, %v2606_v35 }
0x103c   : > { %2559 = vrot.lane.b32.xlu2 %v9156_v49, %s8472_s22  ;;  %v2438_v49 = vpop.xlane.xlu0 %2437 }
0x103d   : > { %v2458_v63 = vsub.f32 %v9213_v61, %v2438_v49 }
0x103f   : > { %v2467_v2 = vmul.f32 1.442695, %v2458_v63 }
0x1040   : > { %2584 = vrot.lane.b32.xlu0 %v9179_v25, %s8472_s22 }
0x1041   : > { %7762 = vpow2.f32 %v2467_v2 }
0x1042   : > { %7764 = vrcp.f32 %v2492_v55  ;;  %v2883_v55 = vsel %vm885_vm0, %v9252_v43, 0.0 }
0x1044   : > { %2534 = vrot.lane.b32.xlu2 %v9125_v8, %s8472_s22  ;;  %v2489_v3 = vpop.xlane.xlu0 %2488 }
0x1045   : > { %7766 = vrcp.f32 %v2489_v3 }
0x1047   : > { %v2610_v6 = vpop.permute.xlu1 %2609  ;;  %v7763_v54 = vpop.eup %7762 }
0x1048   : > { %2622 = vmatpush.bf16.msra.mxu2 %v2610_v6  ;;  %v2484_v25 = vsel %vm1429_vm13, %v7763_v54, 0.0  ;;  %v7765_v8 = vpop.eup %7764 }
0x1049   : > { %v2516_v1 = vmul.f32 %v7765_v8, %v7751_v29 }
0x104b   : > { %6787 = vmatmul.msk.bf16.vlgmr.msra.gmra.mxu2 %vm1429_vm13, %v2608_v60  ;;  %v7767_v4 = vpop.eup %7766  ;;  %v2524_v40 = vpack.c.bf16 %v2516_v1, %v2516_v1 }
0x104c   : > { %v2515_v10 = vmul.f32 %v7767_v4, %v9218_v41 }
0x104d   : > { %v2557_v52 = vunpack.c.l.b16 %v2524_v40 }
0x104e   : > { %v2523_v9 = vpack.c.bf16 %v2515_v10, %v2515_v10 }
0x1050   : > { %v2556_v56 = vunpack.c.l.b16 %v2523_v9 }
0x1052   : > { %v2558_v61 = vpack.c.b16 %v2557_v52, %v2556_v56 }
0x106a   : > { %2485 = vadd.xlane.f32.xlu0 %v2484_v25 }
0x1072   : > { %v2483_v29 = vpop.xlane.xlu1 %2482 }
0x1097   : > { %v2495_v7 = vpop.xlane.xlu2 %2494 }
0x109f   : > { %v2560_v11 = vpop.permute.xlu2 %2559  ;;  %v2498_v13 = vpop.xlane.xlu0 %2497 }
0x10a0   : > { %7768 = vrcp.f32 %v2498_v13  ;;  %2572 = vmatpush.bf16.msrb.mxu0 %v2560_v11 }
0x10a1   : > { %7770 = vrcp.f32 %v2495_v7 }
0x10a2   : > { %7772 = vrcp.f32 %v2483_v29 }
0x10a3   : > { %6785 = vmatmul.msk.bf16.vlgmr.msrb.gmra.mxu0 %vm1429_vm13, %v2558_v61  ;;  %v7627_v61 = vld [vmem:[%s10233_s9 + $0x2] ss:$0 sm:$0xff] }
0x10a6   : > { %v7769_v23 = vpop.eup %7768 }
0x10a7   : > { %v7771_v17 = vpop.eup %7770  ;;  %v2535_v18 = vpop.permute.xlu2 %2534  ;;  %v2518_v20 = vmul.f32 %v7769_v23, %v7757_v21 }
0x10a8   : > { %2547 = vmatpush.bf16.msrb.mxu3 %v2535_v18  ;;  %v2517_v22 = vmul.f32 %v7771_v17, %v7755_v44  ;;  %v7773_v31 = vpop.eup %7772 }
0x10a9   : > { %v2526_v24 = vpack.c.bf16 %v2518_v20, %v2518_v20  ;;  %v2513_v32 = vmul.f32 %v7773_v31, %v9226_v36 }
0x10aa   : > { %v2525_v57 = vpack.c.bf16 %v2517_v22, %v2517_v22 }
0x10ab   : > { %v2582_v12 = vunpack.c.l.b16 %v2526_v24  ;;  %v2521_v50 = vpack.c.bf16 %v2513_v32, %v2513_v32 }
0x10ac   : > { %v2581_v41 = vunpack.c.l.b16 %v2525_v57  ;;  %2686 = vmatpush.bf16.msra.mxu3 %v7243_v58  ;;  %v7630_v58 = vld [vmem:[#allocation12 + $0x3] ss:$0 sm:$0xff] }
0x10ad   : > { %v2531_v38 = vunpack.c.l.b16 %v2521_v50 }
0x10ae   : > { %v2583_v28 = vpack.c.b16 %v2582_v12, %v2581_v41  ;;  %v7251_v41 = vld [vmem:[%s10321_s6 + $0x38] sm:$0xff] }
0x10af   : > { %2945 = vmatpush.bf16.msrb.mxu2 %v7251_v41 }
0x10b0   : > { %2687 = vmatpush.bf16.msra.mxu3 %v7242_v59 }
0x10b2   : > { %v2585_v62 = vpop.permute.xlu0 %2584 }
0x10b3   : > { %2597 = vmatpush.bf16.msrb.mxu1 %v2585_v62 }
0x10b6   : > { %6786 = vmatmul.msk.bf16.vlgmr.msrb.gmra.mxu1 %vm1429_vm13, %v2583_v28 }
0x10ce   : > { %v2624_v46 = vpop.f32.mrf.mxu2 }
0x10d6   : > { %v2626_v36 = vpop.f32.mrf.mxu2 }
0x10d7   : > { %v7528_v48 = vpack.i.bf16 %v2626_v36, %v2624_v46 }
0x10dd   : > { %v2486_v30 = vpop.xlane.xlu0 %2485 }
0x10de   : > { %7774 = vrcp.f32 %v2486_v30 }
0x10e4   : > { %v7775_v33 = vpop.eup %7774 }
0x10e5   : > { %v2514_v16 = vmul.f32 %v7775_v33, %v7763_v54 }
0x10e7   : > { %v2522_v37 = vpack.c.bf16 %v2514_v16, %v2514_v16  ;;  %v7628_v16 = vld [vmem:[#allocation9 + $0x3] ss:$0 sm:$0xff] }
0x10e9   : > { %v2532_v39 = vunpack.c.l.b16 %v2522_v37 }
0x10eb   : > { %v2533_v42 = vpack.c.b16 %v2532_v39, %v2531_v38  ;;  %v7629_v39 = vld [vmem:[#allocation11 + $0x3] ss:$0 sm:$0xff] }
0x10ed   : > { %6784 = vmatmul.msk.bf16.vlgmr.msrb.gmra.mxu3 %vm1429_vm13, %v2533_v42 }
0x1120   : > { %v2574_v44 = vpop.f32.mrf.mxu0 }
0x1128   : > { %v2576_v45 = vpop.f32.mrf.mxu0 }
0x1129   : > { %v7518_v26 = vpack.i.bf16 %v2576_v45, %v2574_v44 }
0x112b   : > { %7519 = vrot.lane.b32.xlu2 %v7518_v26, %s10266_s0 }
0x1133   : > { %v2599_v21 = vpop.f32.mrf.mxu1 }
0x113b   : > { %v2601_v27 = vpop.f32.mrf.mxu1 }
0x113c   : > { %v7523_v47 = vpack.i.bf16 %v2601_v27, %v2599_v21 }
0x113e   : > { %7524 = vrot.lane.b32.xlu2 %v7523_v47, %s8469_s28 }
0x1146   : > { %7529 = vrot.lane.b32.xlu2 %v7528_v48, %s8471_s4 }
0x116f   : > { %2884 = vadd.xlane.f32.xlu2 %v2883_v55 }
0x1170   : > { %v2549_v5 = vpop.f32.mrf.mxu3 }
0x1178   : > { %v2551_v63 = vpop.f32.mrf.mxu3 }
0x1185   : > { %v7520_v35 = vpop.permute.xlu2 %7519 }
0x1186   : > { %v7522_v0 = vunpack.i.h.bf16 %v7520_v35  ;;  %v7521_v6 = vunpack.i.l.bf16 %v7520_v35 }
0x1188   : > { %v2653_v54 = vsel %vm1082_vm11, %v2549_v5, %v7521_v6  ;;  %v2654_v25 = vsel %vm1082_vm11, %v2551_v63, %v7522_v0 }
0x1198   : > { %v7525_v34 = vpop.permute.xlu2 %7524 }
0x1199   : > { %v7527_v60 = vunpack.i.h.bf16 %v7525_v34  ;;  %v7526_v49 = vunpack.i.l.bf16 %v7525_v34  ;;  %v7245_v34 = vld [vmem:[%s10236_s12 + $0x28] sm:$0xff] }
0x119a   : > { %2793 = vmatpush.bf16.msra.mxu0 %v7245_v34 }
0x119b   : > { %v2655_v4 = vsel %vm1429_vm13, %v2653_v54, %v7526_v49  ;;  %v2656_v1 = vsel %vm1429_vm13, %v2654_v25, %v7527_v60  ;;  %v7244_v60 = vld [vmem:[%s10236_s12 + $0x20] sm:$0xff] }
0x119e   : > { %2794 = vmatpush.bf16.msra.mxu0 %v7244_v60 }
0x11a0   : > { %v7530_v2 = vpop.permute.xlu2 %7529 }
0x11a1   : > { %v7532_v3 = vunpack.i.h.bf16 %v7530_v2  ;;  %v7531_v8 = vunpack.i.l.bf16 %v7530_v2 }
0x11a3   : > { %v2657_v10 = vsel %vm1432_vm14, %v2655_v4, %v7531_v8  ;;  %v2658_v7 = vsel %vm1432_vm14, %v2656_v1, %v7532_v3 }
0x11a4   : > { %v2664_v40 = vpack.c.bf16 %v2658_v7, %v2657_v10 }
0x11a6   : > { %6800 = vmatmul.msk.bf16.vlgmr.msra.gmra.mxu3 %vm885_vm0, %v2664_v40 }
0x11e2   : > { %v2885_v9 = vpop.xlane.xlu2 %2884 }
0x11e3   : > { %v2886_v52 = vmul.f32 %v2885_v9, %v8840_v14 }
0x11e5   : > { %v2887_v56 = vsub.f32 %v9252_v43, %v2886_v52 }
0x11e7   : > { %v2888_v11 = vmul.f32 %v2887_v56, %v2887_v56 }
0x11e9   : > { %v2889_v13 = vsel %vm885_vm0, %v2888_v11, 0.0 }
0x11ea   : > { %2890 = vadd.xlane.f32.xlu1 %v2889_v13  ;;  %v7631_v13 = vld [vmem:[#allocation14 + $0x2] ss:$0 sm:$0xff] }
0x1229   : > { %v2689_v23 = vpop.f32.mrf.mxu3 }
0x122a   : > { %v2694_v17 = vadd.f32 %v2689_v23, %v9034_v15  ;;  %v7250_v15 = vld [vmem:[%s10321_s6 + $0x30] sm:$0xff] }
0x122b   : > { %2946 = vmatpush.bf16.msrb.mxu2 %v7250_v15 }
0x122c   : > { %v9276_v18 = vadd.f32 %v7627_v61, %v2694_v17 }
0x122e   : > { %v2707_v20 = vsel %vm885_vm0, %v9276_v18, 0.0 }
0x122f   : > { %2708 = vadd.xlane.f32.xlu0 %v2707_v20 }
0x1231   : > { %v2691_v22 = vpop.f32.mrf.mxu3 }
0x1232   : > { %v2695_v24 = vadd.f32 %v2691_v22, %v9039_v19 }
0x1234   : > { %v9281_v57 = vadd.f32 %v7627_v61, %v2695_v24  ;;  %v7632_v24 = vld [vmem:[#allocation15 + $0x2] ss:$0 sm:$0xff] }
0x1236   : > { %v2710_v12 = vsel %vm885_vm0, %v9281_v57, 0.0 }
0x1237   : > { %2711 = vadd.xlane.f32.xlu1 %v2710_v12 }
0x125d   : > { %v2891_v62 = vpop.xlane.xlu1 %2890 }
0x125e   : > { %v2892_v28 = vmul.f32 %v2891_v62, %v8840_v14 }
0x1260   : > { %v2893_v19 = vadd.f32 1e-06, %v2892_v28 }
0x1262   : > { %7776 = vrsqrt.f32 %v2893_v19  ;;  %vm2900_vm7 = vweird.f32 %v2893_v19 }
0x1268   : > { %v7777_v29 = vpop.eup %7776 }
0x1269   : > { %v2895_v30 = vmul.f32 %v7777_v29, %v2893_v19  ;;  %vm2901_vm5 = vweird.f32 %v7777_v29 }
0x126a   : > { %vm2902_vm8 = vmor %vm2900_vm7, %vm2901_vm5 }
0x126b   : > { %v2896_v31 = vmul.f32 %v7777_v29, %v2895_v30 }
0x126d   : > { %v2897_v32 = vmul.f32 0.5, %v2896_v31 }
0x126f   : > { %v2898_v33 = vsub.f32 1.5, %v2897_v32 }
0x1271   : > { %v2899_v50 = vmul.f32 %v7777_v29, %v2898_v33 }
0x1273   : > { %v2903_v37 = vsel %vm2902_vm8, %v7777_v29, %v2899_v50 }
0x1274   : > { %v2904_v38 = vmul.f32 %v2903_v37, %v2887_v56 }
0x1276   : > { %v2908_v42 = vmul.f32 %v7628_v16, %v2904_v38 }
0x1278   : > { %v2912_v44 = vadd.f32 %v7629_v39, %v2908_v42 }
0x127a   : > { %v2920_v45 = vpack.c.bf16 %v2912_v44, %v2912_v44 }
0x127c   : > { %6852 = vmatmul.msk.bf16.vlgmr.msrb.gmra.mxu2 %vm885_vm0, %v2920_v45 }
0x12a2   : > { %v2709_v26 = vpop.xlane.xlu0 %2708 }
0x12a3   : > { %v2713_v21 = vmul.f32 %v2709_v26, %v8840_v14  ;;  %v7249_v26 = vld [vmem:[%s10238_s14 + $0x58] sm:$0xff] }
0x12a4   : > { %2860 = vmatpush.bf16.msra.mxu1 %v7249_v26 }
0x12a5   : > { %v2715_v46 = vsub.f32 %v9276_v18, %v2713_v21  ;;  %v7248_v21 = vld [vmem:[%s10238_s14 + $0x50] sm:$0xff] }
0x12a7   : > { %v2717_v27 = vmul.f32 %v2715_v46, %v2715_v46 }
0x12a8   : > { %2861 = vmatpush.bf16.msra.mxu1 %v7248_v21 }
0x12a9   : > { %v2719_v47 = vsel %vm885_vm0, %v2717_v27, 0.0  ;;  %v7246_v27 = vld [vmem:[%s10238_s14 + $0x40] sm:$0xff] }
0x12aa   : > { %2720 = vadd.xlane.f32.xlu0 %v2719_v47  ;;  %v2712_v36 = vpop.xlane.xlu1 %2711  ;;  %v7633_v47 = vld [vmem:[#allocation17 + $0x2] ss:$0 sm:$0xff] }
0x12ab   : > { %v2714_v48 = vmul.f32 %v2712_v36, %v8840_v14 }
0x12ad   : > { %v2716_v51 = vsub.f32 %v9281_v57, %v2714_v48 }
0x12af   : > { %v2718_v53 = vmul.f32 %v2716_v51, %v2716_v51 }
0x12b1   : > { %v2722_v55 = vsel %vm885_vm0, %v2718_v53, 0.0 }
0x12b2   : > { %2723 = vadd.xlane.f32.xlu1 %v2722_v55 }
0x12ff   : > { %v2948_v59 = vpop.f32.mrf.mxu2 }
0x1300   : > { %v2949_v35 = vadd.f32 %v7630_v58, %v2948_v59 }
0x1302   : > { %2956 = vrot.lane.b32.xlu2 %v2949_v35, %s8467_s15  ;;  %2959 = vrot.lane.b32.xlu0 %v2949_v35, %s8468_s20  ;;  %v2962_v42 = vpack.c.bf16 %v2949_v35, %v2949_v35 }
0x1303   : > { %2953 = vrot.lane.b32.xlu1 %v2949_v35, %s8466_s13 }
0x1304   : > { %v2967_v44 = vunpack.c.l.b16 %v2962_v42 }
0x1306   : > { %v9323_v45 = vpack.c.b16 %v2967_v44, %v2967_v44 }
0x1307   : > { %v2950_v5 = vpop.f32.mrf.mxu2 }
0x131d   : > { %v2721_v0 = vpop.xlane.xlu0 %2720 }
0x131e   : > { %v2725_v6 = vmul.f32 %v2721_v0, %v8840_v14 }
0x1320   : > { %v2727_v49 = vadd.f32 1e-06, %v2725_v6 }
0x1322   : > { %7778 = vrsqrt.f32 %v2727_v49  ;;  %vm2735_vm10 = vweird.f32 %v2727_v49 }
0x1325   : > { %v2724_v63 = vpop.xlane.xlu1 %2723 }
0x1326   : > { %v2726_v2 = vmul.f32 %v2724_v63, %v8840_v14 }
0x1328   : > { %v7779_v54 = vpop.eup %7778  ;;  %v2728_v25 = vadd.f32 1e-06, %v2726_v2 }
0x1329   : > { %v2730_v3 = vmul.f32 %v7779_v54, %v2727_v49  ;;  %vm2736_vm9 = vweird.f32 %v7779_v54 }
0x132a   : > { %7780 = vrsqrt.f32 %v2728_v25  ;;  %vm2737_vm15 = vmor %vm2735_vm10, %vm2736_vm9  ;;  %vm2745_vm2 = vweird.f32 %v2728_v25 }
0x132b   : > { %v2731_v8 = vmul.f32 %v7779_v54, %v2730_v3 }
0x132d   : > { %v2732_v4 = vmul.f32 0.5, %v2731_v8 }
0x132f   : > { %v2733_v1 = vsub.f32 1.5, %v2732_v4 }
0x1330   : > { %v7781_v10 = vpop.eup %7780 }
0x1331   : > { %v2734_v7 = vmul.f32 %v7779_v54, %v2733_v1  ;;  %v2740_v40 = vmul.f32 %v7781_v10, %v2728_v25  ;;  %vm2746_vm1 = vweird.f32 %v7781_v10 }
0x1332   : > { %vm2747_vm3 = vmor %vm2745_vm2, %vm2746_vm1 }
0x1333   : > { %v2741_v9 = vmul.f32 %v7781_v10, %v2740_v40  ;;  %v2738_v52 = vsel %vm2737_vm15, %v7779_v54, %v2734_v7 }
0x1334   : > { %v2749_v61 = vmul.f32 %v2738_v52, %v2715_v46  ;;  %v7247_v46 = vld [vmem:[%s10238_s14 + $0x48] sm:$0xff] }
0x1335   : > { %v2742_v56 = vmul.f32 0.5, %v2741_v9  ;;  %2862 = vmatpush.bf16.msra.mxu1 %v7247_v46 }
0x1336   : > { %v2754_v20 = vmul.f32 %v7631_v13, %v2749_v61 }
0x1337   : > { %v2743_v11 = vsub.f32 1.5, %v2742_v56 }
0x1338   : > { %v2759_v41 = vadd.f32 %v7632_v24, %v2754_v20 }
0x1339   : > { %v2744_v23 = vmul.f32 %v7781_v10, %v2743_v11  ;;  %2863 = vmatpush.bf16.msra.mxu1 %v7246_v27 }
0x133b   : > { %v2748_v17 = vsel %vm2747_vm3, %v7781_v10, %v2744_v23 }
0x133c   : > { %v2750_v22 = vmul.f32 %v2748_v17, %v2716_v51 }
0x133e   : > { %v2755_v12 = vmul.f32 %v7631_v13, %v2750_v22 }
0x1340   : > { %v2760_v15 = vadd.f32 %v7632_v24, %v2755_v12 }
0x1342   : > { %v2766_v62 = vpack.c.bf16 %v2760_v15, %v2759_v41 }
0x1344   : > { %6814 = vmatmul.msk.bf16.vlgmr.msra.gmra.mxu0 %vm885_vm0, %v2766_v62 }
0x135c   : > { %v2957_v28 = vpop.permute.xlu2 %2956 }
0x135d   : > { %v2964_v19 = vpack.c.bf16 %v2957_v28, %v2957_v28 }
0x135f   : > { %v3015_v29 = vunpack.c.l.b16 %v2964_v19 }
0x1361   : > { %v9311_v30 = vpack.c.b16 %v3015_v29, %v3015_v29 }
0x1363   : > { %3017 = vrot.lane.b32.xlu1 %v9311_v30, %s8465_s18 }
0x1374   : > { %v2960_v31 = vpop.permute.xlu0 %2959 }
0x1375   : > { %v2965_v32 = vpack.c.bf16 %v2960_v31, %v2960_v31  ;;  %v2954_v33 = vpop.permute.xlu1 %2953 }
0x1376   : > { %v2963_v16 = vpack.c.bf16 %v2954_v33, %v2954_v33 }
0x1377   : > { %v3039_v50 = vunpack.c.l.b16 %v2965_v32 }
0x1378   : > { %v2991_v38 = vunpack.c.l.b16 %v2963_v16 }
0x1379   : > { %v9315_v37 = vpack.c.b16 %v3039_v50, %v3039_v50 }
0x137a   : > { %v9319_v39 = vpack.c.b16 %v2991_v38, %v2991_v38 }
0x137b   : > { %3041 = vrot.lane.b32.xlu0 %v9315_v37, %s8465_s18 }
0x1383   : > { %2993 = vrot.lane.b32.xlu0 %v9319_v39, %s8465_s18 }
0x138b   : > { %2969 = vrot.lane.b32.xlu0 %v9323_v45, %s8465_s18 }
0x13c1   : > { %v2796_v36 = vpop.f32.mrf.mxu0 }
0x13c2   : > { %v2797_v48 = vadd.f32 %v7633_v47, %v2796_v36 }
0x13c4   : > { %v2803_v51 = vmul.f32 0.044715, %v2797_v48  ;;  %v2801_v8 = vmul.f32 0.5, %v2797_v48 }
0x13c6   : > { %v2805_v53 = vmul.f32 %v2803_v51, %v2797_v48 }
0x13c8   : > { %v2807_v55 = vmul.f32 %v2805_v53, %v2797_v48 }
0x13c9   : > { %v2798_v58 = vpop.f32.mrf.mxu0 }
0x13ca   : > { %v2809_v59 = vadd.f32 %v2807_v55, %v2797_v48  ;;  %v2799_v35 = vadd.f32 %v7633_v47, %v2798_v58 }
0x13cc   : > { %v2804_v5 = vmul.f32 0.044715, %v2799_v35  ;;  %v2811_v34 = vmul.f32 0.7978846, %v2809_v59  ;;  %v2802_v4 = vmul.f32 0.5, %v2799_v35 }
0x13ce   : > { %v2806_v0 = vmul.f32 %v2804_v5, %v2799_v35  ;;  %7782 = vtanh.f32 %v2811_v34 }
0x13d0   : > { %v2808_v6 = vmul.f32 %v2806_v0, %v2799_v35 }
0x13d2   : > { %v2810_v60 = vadd.f32 %v2808_v6, %v2799_v35 }
0x13d4   : > { %v2812_v49 = vmul.f32 0.7978846, %v2810_v60  ;;  %v7783_v54 = vpop.eup %7782 }
0x13d5   : > { %v3018_v63 = vpop.permute.xlu1 %3017  ;;  %v2815_v25 = vadd.f32 1.0, %v7783_v54 }
0x13d6   : > { %7784 = vtanh.f32 %v2812_v49  ;;  %v3023_v2 = vsel %vm1082_vm11, %v3018_v63, 0  ;;  %v7634_v49 = vld [vmem:[#allocation18 + $0x2] ss:$0 sm:$0xff] }
0x13d7   : > { %3032 = vmatpush.bf16.xpose.msrb.mxu1 %v3023_v2  ;;  %v2817_v10 = vmul.f32 %v2815_v25, %v2801_v8 }
0x13dc   : > { %v7785_v3 = vpop.eup %7784 }
0x13dd   : > { %v2816_v1 = vadd.f32 1.0, %v7785_v3 }
0x13df   : > { %v2818_v7 = vmul.f32 %v2816_v1, %v2802_v4 }
0x13e1   : > { %v2828_v40 = vpack.c.bf16 %v2818_v7, %v2817_v10 }
0x13e3   : > { %6839 = vmatmul.msk.bf16.vlgmr.msra.gmra.mxu1 %vm1622_vm6, %v2828_v40 }
0x13ed   : > { %v3042_v9 = vpop.permute.xlu0 %3041 }
0x13ee   : > { %v3047_v52 = vsel %vm1082_vm11, %v3042_v9, 0 }
0x13ef   : > { %3056 = vmatpush.bf16.xpose.msra.mxu2 %v3047_v52 }
0x13f3   : > { %6855 = vmatmul.msk.bf16.vlgmr.msrb.gmra.mxu1 %vm1082_vm11, %v2964_v19 }
0x13f5   : > { %v2994_v56 = vpop.permute.xlu0 %2993 }
0x13f6   : > { %v2999_v11 = vsel %vm1082_vm11, %v2994_v56, 0  ;;  %6856 = vmatmul.msk.bf16.vlgmr.msra.gmra.mxu2 %vm1082_vm11, %v2965_v32 }
0x13f7   : > { %3008 = vmatpush.bf16.xpose.msrb.mxu0 %v2999_v11 }
0x13fd   : > { %v2970_v13 = vpop.permute.xlu0 %2969 }
0x13fe   : > { %v2975_v61 = vsel %vm1082_vm11, %v2970_v13, 0  ;;  %6854 = vmatmul.msk.bf16.vlgmr.msrb.gmra.mxu0 %vm1082_vm11, %v2963_v16 }
0x13ff   : > { %2984 = vmatpush.bf16.xpose.msrb.mxu3 %v2975_v61 }
0x1406   : > { %6853 = vmatmul.msk.bf16.vlgmr.msrb.gmra.mxu3 %vm1082_vm11, %v2962_v42 }
0x1460   : > { %v2865_v23 = vpop.f32.mrf.mxu1 }
0x1461   : > { %v2870_v60 = vadd.f32 %v2865_v23, %v9276_v18 }
0x1468   : > { %v2867_v17 = vpop.f32.mrf.mxu1 }
0x1470   : > { %v3034_v20 = vpop.f32.mrf.mxu1 }
0x1471   : > { %v3064_v22 = vmul.f32 0.35355338, %v3034_v20 }
0x1473   : > { %v3072_v24 = vsel %vm1082_vm11, %v3064_v22, -inf }
0x1474   : > { %3073 = vmax.xlane.f32.xlu0 %v3072_v24 }
0x1478   : > { %v3036_v12 = vpop.f32.mrf.mxu1 }
0x1479   : > { %v3058_v41 = vpop.f32.mrf.mxu2 }
0x147a   : > { %v3065_v15 = vmul.f32 0.35355338, %v3058_v41 }
0x147b   : > { %v3010_v62 = vpop.f32.mrf.mxu0 }
0x147c   : > { %v3063_v28 = vmul.f32 0.35355338, %v3010_v62  ;;  %v3075_v19 = vsel %vm1082_vm11, %v3065_v15, -inf }
0x147d   : > { %3076 = vmax.xlane.f32.xlu1 %v3075_v19 }
0x147e   : > { %v3069_v29 = vsel %vm1082_vm11, %v3063_v28, -inf }
0x147f   : > { %3070 = vmax.xlane.f32.xlu2 %v3069_v29 }
0x1481   : > { %v3060_v31 = vpop.f32.mrf.mxu2 }
0x1483   : > { %v3012_v32 = vpop.f32.mrf.mxu0 }
0x1489   : > { %v2986_v33 = vpop.f32.mrf.mxu3 }
0x148a   : > { %v3062_v50 = vmul.f32 0.35355338, %v2986_v33 }
0x148c   : > { %v3066_v16 = vsel %vm1082_vm11, %v3062_v50, -inf }
0x148d   : > { %3067 = vmax.xlane.f32.xlu1 %v3066_v16  ;;  %v7252_v16 = vld [vmem:[%s10322_s8 + $0x30] sm:$0xff] }
0x1491   : > { %v2988_v38 = vpop.f32.mrf.mxu3 }
0x14e7   : > { %v3074_v42 = vpop.xlane.xlu0 %3073 }
0x14e8   : > { %v3080_v44 = vsub.f32 %v3064_v22, %v3074_v42 }
0x14ea   : > { %v3086_v26 = vmul.f32 1.442695, %v3080_v44 }
0x14ec   : > { %7786 = vpow2.f32 %v3086_v26 }
0x14f0   : > { %v3077_v21 = vpop.xlane.xlu1 %3076 }
0x14f1   : > { %v3081_v46 = vsub.f32 %v3065_v15, %v3077_v21 }
0x14f2   : > { %v7787_v27 = vpop.eup %7786  ;;  %v3071_v47 = vpop.xlane.xlu2 %3070 }
0x14f3   : > { %v3088_v36 = vmul.f32 1.442695, %v3081_v46  ;;  %v3079_v48 = vsub.f32 %v3063_v28, %v3071_v47  ;;  %v3096_v51 = vsel %vm1082_vm11, %v7787_v27, 0.0 }
0x14f4   : > { %3097 = vadd.xlane.f32.xlu1 %v3096_v51 }
0x14f5   : > { %7788 = vpow2.f32 %v3088_v36  ;;  %v3084_v53 = vmul.f32 1.442695, %v3079_v48  ;;  %v7635_v36 = vld [vmem:[%s10233_s9 + $0x3] ss:$0 sm:$0xff] }
0x14f7   : > { %7790 = vpow2.f32 %v3084_v53 }
0x14fb   : > { %v7789_v55 = vpop.eup %7788 }
0x14fc   : > { %v3099_v58 = vsel %vm1082_vm11, %v7789_v55, 0.0 }
0x14fd   : > { %v7791_v59 = vpop.eup %7790  ;;  %3100 = vadd.xlane.f32.xlu2 %v3099_v58 }
0x14fe   : > { %v3093_v35 = vsel %vm1082_vm11, %v7791_v59, 0.0 }
0x14ff   : > { %3094 = vadd.xlane.f32.xlu0 %v3093_v35 }
0x1500   : > { %v3068_v5 = vpop.xlane.xlu1 %3067 }
0x1501   : > { %v3078_v34 = vsub.f32 %v3062_v50, %v3068_v5  ;;  %v7253_v50 = vld [vmem:[%s10322_s8 + $0x38] sm:$0xff] }
0x1503   : > { %v3082_v0 = vmul.f32 1.442695, %v3078_v34 }
0x1505   : > { %7792 = vpow2.f32 %v3082_v0 }
0x150b   : > { %v7793_v6 = vpop.eup %7792 }
0x150c   : > { %v3090_v63 = vsel %vm1082_vm11, %v7793_v6, 0.0 }
0x150d   : > { %3156 = vrot.lane.b32.xlu1 %v9311_v30, %s8472_s22  ;;  %v9365_v30 = vadd.f32 %v7634_v49, %v2870_v60 }
0x1513   : > { %3135 = vrot.lane.b32.xlu0 %v9319_v39, %s8472_s22  ;;  %v2871_v39 = vadd.f32 %v2867_v17, %v9281_v57 }
0x1515   : > { %3177 = vrot.lane.b32.xlu2 %v9315_v37, %s8472_s22  ;;  %v3397_v37 = vsel %vm885_vm0, %v9365_v30, 0.0 }
0x151d   : > { %3114 = vrot.lane.b32.xlu2 %v9323_v45, %s8472_s22  ;;  %v9370_v45 = vadd.f32 %v7634_v49, %v2871_v39  ;;  %v7254_v39 = vld [vmem:[%s10236_s12 + $0x30] sm:$0xff] }
0x151f   : > { %v3400_v2 = vsel %vm885_vm0, %v9370_v45, 0.0 }
0x153d   : > { %3091 = vadd.xlane.f32.xlu0 %v3090_v63  ;;  %v7255_v63 = vld [vmem:[%s10236_s12 + $0x38] sm:$0xff] }
0x1545   : > { %3398 = vadd.xlane.f32.xlu0 %v3397_v37 }
0x154d   : > { %3401 = vadd.xlane.f32.xlu0 %v3400_v2 }
0x1567   : > { %v3098_v18 = vpop.xlane.xlu1 %3097 }
0x1570   : > { %v3101_v54 = vpop.xlane.xlu2 %3100 }
0x1571   : > { %7794 = vrcp.f32 %v3101_v54 }
0x1572   : > { %7796 = vrcp.f32 %v3098_v18  ;;  %v3095_v8 = vpop.xlane.xlu0 %3094 }
0x1573   : > { %7798 = vrcp.f32 %v3095_v8 }
0x1577   : > { %v7795_v25 = vpop.eup %7794 }
0x1578   : > { %v3109_v3 = vmul.f32 %v7795_v25, %v7789_v55  ;;  %v3178_v4 = vpop.permute.xlu2 %3177  ;;  %v7797_v10 = vpop.eup %7796 }
0x1579   : > { %v3183_v57 = vsel %vm1295_vm12, %v3178_v4, 0  ;;  %v3108_v7 = vmul.f32 %v7797_v10, %v7787_v27  ;;  %v7799_v56 = vpop.eup %7798 }
0x157a   : > { %v3113_v1 = vpack.c.bf16 %v3109_v3, %v3109_v3  ;;  %3192 = vmatpush.bf16.msrb.mxu2 %v3183_v57  ;;  %v3107_v61 = vmul.f32 %v7799_v56, %v7791_v59 }
0x157b   : > { %v3112_v13 = vpack.c.bf16 %v3108_v7, %v3108_v7 }
0x157c   : > { %v3111_v20 = vpack.c.bf16 %v3107_v61, %v3107_v61  ;;  %v7257_v61 = vld [vmem:[%s10238_s14 + $0x68] sm:$0xff] }
0x157d   : > { %6860 = vmatmul.msk.bf16.vlgmr.msrb.gmra.mxu2 %vm1082_vm11, %v3113_v1  ;;  %v7638_v1 = vld [vmem:[#allocation14 + $0x3] ss:$0 sm:$0xff] }
0x157f   : > { %v3157_v40 = vpop.permute.xlu1 %3156 }
0x1580   : > { %v3162_v9 = vsel %vm1295_vm12, %v3157_v40, 0  ;;  %v3115_v52 = vpop.permute.xlu2 %3114  ;;  %v7639_v40 = vld [vmem:[#allocation15 + $0x3] ss:$0 sm:$0xff] }
0x1581   : > { %v3120_v11 = vsel %vm1295_vm12, %v3115_v52, 0  ;;  %3171 = vmatpush.bf16.msra.mxu1 %v3162_v9 }
0x1582   : > { %3129 = vmatpush.bf16.msra.mxu3 %v3120_v11  ;;  %v7259_v11 = vld [vmem:[%s10238_s14 + $0x78] sm:$0xff] }
0x1584   : > { %6859 = vmatmul.msk.bf16.vlgmr.msra.gmra.mxu1 %vm1082_vm11, %v3112_v13  ;;  %v7258_v13 = vld [vmem:[%s10238_s14 + $0x70] sm:$0xff] }
0x1585   : > { %v3136_v23 = vpop.permute.xlu0 %3135  ;;  %3377 = vmatpush.bf16.msrb.mxu1 %v7259_v11 }
0x1586   : > { %v3141_v17 = vsel %vm1295_vm12, %v3136_v23, 0  ;;  %3240 = vmatpush.bf16.msrb.mxu3 %v7253_v50  ;;  %v7256_v23 = vld [vmem:[%s10238_s14 + $0x60] sm:$0xff] }
0x1587   : > { %3150 = vmatpush.bf16.msra.mxu0 %v3141_v17  ;;  %v7640_v17 = vld [vmem:[#allocation17 + $0x3] ss:$0 sm:$0xff] }
0x1589   : > { %3378 = vmatpush.bf16.msrb.mxu1 %v7258_v13 }
0x158a   : > { %6858 = vmatmul.msk.bf16.vlgmr.msra.gmra.mxu0 %vm1082_vm11, %v3111_v20  ;;  %3241 = vmatpush.bf16.msrb.mxu3 %v7252_v16  ;;  %v7641_v16 = vld [vmem:[#allocation18 + $0x3] ss:$0 sm:$0xff] }
0x158b   : > { %3320 = vmatpush.bf16.msrb.mxu0 %v7255_v63 }
0x158d   : > { %3379 = vmatpush.bf16.msrb.mxu1 %v7257_v61 }
0x158f   : > { %3321 = vmatpush.bf16.msrb.mxu0 %v7254_v39 }
0x1591   : > { %3380 = vmatpush.bf16.msrb.mxu1 %v7256_v23 }
0x15b0   : > { %v3092_v22 = vpop.xlane.xlu0 %3091 }
0x15b1   : > { %7800 = vrcp.f32 %v3092_v22 }
0x15b7   : > { %v7801_v24 = vpop.eup %7800 }
0x15b8   : > { %v3106_v12 = vmul.f32 %v7801_v24, %v7793_v6  ;;  %v3399_v47 = vpop.xlane.xlu0 %3398 }
0x15b9   : > { %v3403_v51 = vmul.f32 %v3399_v47, %v8840_v14 }
0x15ba   : > { %v3110_v41 = vpack.c.bf16 %v3106_v12, %v3106_v12 }
0x15bb   : > { %v9403_v58 = vsub.f32 %v9365_v30, %v3403_v51 }
0x15bc   : > { %6857 = vmatmul.msk.bf16.vlgmr.msra.gmra.mxu3 %vm1082_vm11, %v3110_v41 }
0x15bd   : > { %v3407_v5 = vmul.f32 %v9403_v58, %v9403_v58 }
0x15bf   : > { %v3409_v34 = vsel %vm885_vm0, %v3407_v5, 0.0 }
0x15c0   : > { %v3402_v50 = vpop.xlane.xlu0 %3401 }
0x1600   : > { %v3194_v15 = vpop.f32.mrf.mxu2 }
0x1601   : > { %v3173_v62 = vpop.f32.mrf.mxu1 }
0x1602   : > { %3203 = vrot.lane.b32.xlu2 %v3173_v62, %s8469_s28 }
0x1607   : > { %v3152_v28 = vpop.f32.mrf.mxu0 }
0x1608   : > { %3199 = vrot.lane.b32.xlu1 %v3152_v28, %s10266_s0  ;;  %v3196_v19 = vpop.f32.mrf.mxu2 }
0x1609   : > { %v3175_v29 = vpop.f32.mrf.mxu1 }
0x160f   : > { %v3154_v31 = vpop.f32.mrf.mxu0 }
0x1610   : > { %3207 = vrot.lane.b32.xlu1 %v3194_v15, %s8471_s4 }
0x163f   : > { %v3131_v32 = vpop.f32.mrf.mxu3 }
0x1647   : > { %v3133_v33 = vpop.f32.mrf.mxu3 }
0x165c   : > { %v3204_v44 = vpop.permute.xlu2 %3203 }
0x167a   : > { %v3200_v38 = vpop.permute.xlu1 %3199 }
0x167b   : > { %v3210_v42 = vsel %vm1082_vm11, %v3131_v32, %v3200_v38 }
0x167c   : > { %v3211_v26 = vsel %vm1429_vm13, %v3210_v42, %v3204_v44  ;;  %v3404_v42 = vmul.f32 %v3402_v50, %v8840_v14 }
0x1682   : > { %v3208_v21 = vpop.permute.xlu1 %3207 }
0x1683   : > { %v3212_v46 = vsel %vm1432_vm14, %v3211_v26, %v3208_v21  ;;  %v3406_v21 = vsub.f32 %v9370_v45, %v3404_v42 }
0x1684   : > { %v3218_v27 = vpack.c.bf16 %v3212_v46, %v3212_v46 }
0x1685   : > { %v3408_v47 = vmul.f32 %v3406_v21, %v3406_v21 }
0x1686   : > { %6873 = vmatmul.msk.bf16.vlgmr.msrb.gmra.mxu3 %vm885_vm0, %v3218_v27 }
0x1709   : > { %v3243_v48 = vpop.f32.mrf.mxu3 }
0x170a   : > { %v3247_v53 = vadd.f32 %v3243_v48, %v9252_v43 }
0x170c   : > { %v9400_v55 = vadd.f32 %v7635_v36, %v3247_v53  ;;  %v3412_v36 = vsel %vm885_vm0, %v3408_v47, 0.0 }
0x170e   : > { %v3258_v59 = vsel %vm885_vm0, %v9400_v55, 0.0 }
0x170f   : > { %3259 = vadd.xlane.f32.xlu2 %v3258_v59 }
0x1711   : > { %v3245_v35 = vpop.f32.mrf.mxu3 }
0x1717   : > { %3410 = vadd.xlane.f32.xlu2 %v3409_v34 }
0x1782   : > { %v3260_v0 = vpop.xlane.xlu2 %3259 }
0x1783   : > { %v3261_v6 = vmul.f32 %v3260_v0, %v8840_v14  ;;  %v7260_v0 = vld [vmem:[%s10321_s6 + $0x40] sm:$0xff] }
0x1785   : > { %v3262_v43 = vsub.f32 %v9400_v55, %v3261_v6 }
0x1787   : > { %v3263_v60 = vmul.f32 %v3262_v43, %v3262_v43 }
0x1789   : > { %v3264_v49 = vsel %vm885_vm0, %v3263_v60, 0.0 }
0x178a   : > { %3265 = vadd.xlane.f32.xlu1 %v3264_v49  ;;  %v3411_v48 = vpop.xlane.xlu2 %3410 }
0x178b   : > { %v3415_v51 = vmul.f32 %v3411_v48, %v8840_v14 }
0x178d   : > { %v3417_v53 = vadd.f32 1e-06, %v3415_v51 }
0x178f   : > { %vm3425_vm9 = vweird.f32 %v3417_v53 }
0x17fd   : > { %v3266_v37 = vpop.xlane.xlu1 %3265 }
0x17fe   : > { %v3267_v2 = vmul.f32 %v3266_v37, %v8840_v14 }
0x1800   : > { %v3268_v54 = vadd.f32 1e-06, %v3267_v2 }
0x1802   : > { %7802 = vrsqrt.f32 %v3268_v54  ;;  %vm3275_vm5 = vweird.f32 %v3268_v54 }
0x1808   : > { %v7803_v18 = vpop.eup %7802 }
0x1809   : > { %v3270_v25 = vmul.f32 %v7803_v18, %v3268_v54  ;;  %vm3276_vm4 = vweird.f32 %v7803_v18 }
0x180a   : > { %vm3277_vm7 = vmor %vm3275_vm5, %vm3276_vm4 }
0x180b   : > { %v3271_v3 = vmul.f32 %v7803_v18, %v3270_v25 }
0x180d   : > { %v3272_v8 = vmul.f32 0.5, %v3271_v3 }
0x180f   : > { %v3273_v4 = vsub.f32 1.5, %v3272_v8 }
0x1811   : > { %v3274_v57 = vmul.f32 %v7803_v18, %v3273_v4 }
0x1813   : > { %v3278_v10 = vsel %vm3277_vm7, %v7803_v18, %v3274_v57 }
0x1814   : > { %v3279_v7 = vmul.f32 %v3278_v10, %v3262_v43  ;;  %v7636_v10 = vld [vmem:[#allocation9 + $0x4] ss:$0 sm:$0xff] }
0x1816   : > { %v3283_v9 = vmul.f32 %v7638_v1, %v3279_v7 }
0x1818   : > { %v3287_v52 = vadd.f32 %v7639_v40, %v3283_v9 }
0x181a   : > { %v3293_v56 = vpack.c.bf16 %v3287_v52, %v3287_v52  ;;  %v7637_v52 = vld [vmem:[#allocation11 + $0x4] ss:$0 sm:$0xff] }
0x181c   : > { %6887 = vmatmul.msk.bf16.vlgmr.msrb.gmra.mxu0 %vm885_vm0, %v3293_v56 }
0x1899   : > { %v3323_v20 = vpop.f32.mrf.mxu0 }
0x189a   : > { %v3324_v22 = vadd.f32 %v7640_v17, %v3323_v20 }
0x189c   : > { %v3328_v24 = vmul.f32 0.044715, %v3324_v22  ;;  %v3327_v29 = vmul.f32 0.5, %v3324_v22 }
0x189e   : > { %v3329_v12 = vmul.f32 %v3328_v24, %v3324_v22  ;;  %v7644_v24 = vld [vmem:[#allocation12 + $0x4] ss:$0 sm:$0xff] }
0x18a0   : > { %v3330_v41 = vmul.f32 %v3329_v12, %v3324_v22 }
0x18a1   : > { %v3325_v15 = vpop.f32.mrf.mxu0 }
0x18a2   : > { %v3331_v62 = vadd.f32 %v3330_v41, %v3324_v22 }
0x18a4   : > { %v3332_v28 = vmul.f32 0.7978846, %v3331_v62 }
0x18a6   : > { %7804 = vtanh.f32 %v3332_v28 }
0x18a7   : > { %7806 = vrsqrt.f32 %v3417_v53 }
0x18ac   : > { %v7805_v19 = vpop.eup %7804 }
0x18ad   : > { %v3334_v31 = vadd.f32 1.0, %v7805_v19  ;;  %v7807_v35 = vpop.eup %7806 }
0x18ae   : > { %v3420_v6 = vmul.f32 %v7807_v35, %v3417_v53  ;;  %vm3426_vm8 = vweird.f32 %v7807_v35 }
0x18af   : > { %v3335_v32 = vmul.f32 %v3334_v31, %v3327_v29  ;;  %vm3427_vm10 = vmor %vm3425_vm9, %vm3426_vm8 }
0x18b0   : > { %v3421_v49 = vmul.f32 %v7807_v35, %v3420_v6 }
0x18b1   : > { %v3345_v33 = vpack.c.bf16 %v3335_v32, %v3335_v32 }
0x18b2   : > { %v3422_v2 = vmul.f32 0.5, %v3421_v49 }
0x18b3   : > { %6912 = vmatmul.msk.bf16.vlgmr.msrb.gmra.mxu1 %vm1622_vm6, %v3345_v33 }
0x18b4   : > { %v3423_v54 = vsub.f32 1.5, %v3422_v2 }
0x18b6   : > { %v3424_v25 = vmul.f32 %v7807_v35, %v3423_v54 }
0x18b8   : > { %v3428_v4 = vsel %vm3427_vm10, %v7807_v35, %v3424_v25 }
0x18b9   : > { %v3439_v7 = vmul.f32 %v3428_v4, %v9403_v58 }
0x18bb   : > { %v3444_v56 = vmul.f32 %v7636_v10, %v3439_v7 }
0x18bd   : > { %v3449_v61 = vadd.f32 %v7637_v52, %v3444_v56 }
0x1930   : > { %v3382_v38 = vpop.f32.mrf.mxu1 }
0x1931   : > { %v3386_v44 = vadd.f32 %v3382_v38, %v9400_v55  ;;  %v7261_v55 = vld [vmem:[%s10321_s6 + $0x48] sm:$0xff] }
0x1932   : > { %3507 = vmatpush.bf16.msra.mxu2 %v7261_v55  ;;  %3518 = vrot.lane.b32.xlu2 %v7261_v55, %s8465_s18 }
0x1933   : > { %v9436_v26 = vadd.f32 %v7641_v16, %v3386_v44 }
0x1935   : > { %v3458_v46 = vsel %vm885_vm0, %v9436_v26, 0.0 }
0x1936   : > { %3459 = vadd.xlane.f32.xlu0 %v3458_v46  ;;  %3508 = vmatpush.bf16.msra.mxu2 %v7260_v0 }
0x1938   : > { %v3384_v27 = vpop.f32.mrf.mxu1 }
0x193e   : > { %3413 = vadd.xlane.f32.xlu0 %v3412_v36 }
0x1952   : > { %3516 = vrot.lane.b32.xlu0 %v7260_v0, %s8465_s18 }
0x198c   : > { %v3519_v20 = vpop.permute.xlu2 %3518 }
0x198d   : > { %3534 = vmatpush.bf16.msra.mxu3 %v3519_v20 }
0x19a9   : > { %v3460_v59 = vpop.xlane.xlu0 %3459 }
0x19aa   : > { %v3461_v5 = vmul.f32 %v3460_v59, %v8840_v14 }
0x19ac   : > { %v3462_v34 = vsub.f32 %v9436_v26, %v3461_v5 }
0x19ae   : > { %v3463_v43 = vmul.f32 %v3462_v34, %v3462_v34 }
0x19b0   : > { %v3464_v60 = vsel %vm885_vm0, %v3463_v43, 0.0 }
0x19b1   : > { %3465 = vadd.xlane.f32.xlu1 %v3464_v60  ;;  %v3414_v63 = vpop.xlane.xlu0 %3413 }
0x19b2   : > { %v3416_v39 = vmul.f32 %v3414_v63, %v8840_v14 }
0x19b4   : > { %v3418_v37 = vadd.f32 1e-06, %v3416_v39 }
0x19b6   : > { %7808 = vrsqrt.f32 %v3418_v37  ;;  %vm3435_vm1 = vweird.f32 %v3418_v37 }
0x19bc   : > { %v7809_v18 = vpop.eup %7808 }
0x19bd   : > { %v3430_v3 = vmul.f32 %v7809_v18, %v3418_v37  ;;  %vm3436_vm15 = vweird.f32 %v7809_v18 }
0x19be   : > { %vm3437_vm2 = vmor %vm3435_vm1, %vm3436_vm15 }
0x19bf   : > { %v3431_v8 = vmul.f32 %v7809_v18, %v3430_v3 }
0x19c1   : > { %v3432_v57 = vmul.f32 0.5, %v3431_v8 }
0x19c3   : > { %v3433_v1 = vsub.f32 1.5, %v3432_v57 }
0x19c4   : > { %v3517_v22 = vpop.permute.xlu0 %3516 }
0x19c5   : > { %v3434_v40 = vmul.f32 %v7809_v18, %v3433_v1  ;;  %3535 = vmatpush.bf16.msra.mxu3 %v3517_v22 }
0x19c7   : > { %v3438_v9 = vsel %vm3437_vm2, %v7809_v18, %v3434_v40 }
0x19c8   : > { %v3440_v11 = vmul.f32 %v3438_v9, %v3406_v21 }
0x19ca   : > { %v3445_v13 = vmul.f32 %v7636_v10, %v3440_v11  ;;  %3522 = vrot.lane.b32.xlu1 %v7644_v24, %s8465_s18 }
0x19cc   : > { %v3450_v23 = vadd.f32 %v7637_v52, %v3445_v13 }
0x19ce   : > { %v3482_v17 = vpack.c.bf16 %v3450_v23, %v3449_v61 }
0x19d0   : > { %6925 = vmatmul.msk.bf16.vlgmr.msra.gmra.mxu2 %vm885_vm0, %v3482_v17 }
0x1a24   : > { %v3466_v12 = vpop.xlane.xlu1 %3465 }
0x1a25   : > { %v3467_v58 = vmul.f32 %v3466_v12, %v8840_v14 }
0x1a27   : > { %v3468_v41 = vadd.f32 1e-06, %v3467_v58 }
0x1a29   : > { %7810 = vrsqrt.f32 %v3468_v41  ;;  %vm3475_vm4 = vweird.f32 %v3468_v41 }
0x1a2f   : > { %v7811_v15 = vpop.eup %7810 }
0x1a30   : > { %v3470_v62 = vmul.f32 %v7811_v15, %v3468_v41  ;;  %vm3476_vm3 = vweird.f32 %v7811_v15 }
0x1a31   : > { %vm3477_vm5 = vmor %vm3475_vm4, %vm3476_vm3 }
0x1a32   : > { %v3471_v28 = vmul.f32 %v7811_v15, %v3470_v62 }
0x1a34   : > { %v3472_v19 = vmul.f32 0.5, %v3471_v28 }
0x1a36   : > { %v3473_v29 = vsub.f32 1.5, %v3472_v19 }
0x1a38   : > { %v3474_v31 = vmul.f32 %v7811_v15, %v3473_v29 }
0x1a3a   : > { %v3478_v32 = vsel %vm3477_vm5, %v7811_v15, %v3474_v31 }
0x1a3b   : > { %v9459_v33 = vmul.f32 %v3478_v32, %v3462_v34 }
0x1a3c   : > { %v3523_v27 = vpop.permute.xlu1 %3522 }
0x1a3d   : > { %v3480_v50 = vmul.f32 %v7636_v10, %v9459_v33 }
0x1a3f   : > { %v3481_v16 = vadd.f32 %v7637_v52, %v3480_v50 }
0x1a41   : > { %v3515_v38 = vpack.c.bf16 %v3481_v16, %v3481_v16 }
0x1a43   : > { %6926 = vmatmul.msk.bf16.vlgmr.msra.gmra.mxu3 %vm885_vm0, %v3515_v38 }
0x1a53   : > { %v3510_v42 = vpop.f32.mrf.mxu2 }
0x1a54   : > { %v3511_v44 = vadd.f32 %v7644_v24, %v3510_v42 }
0x1a56   : > { %v3571_v59 = vpack.c.bf16 %v3511_v44, %v3511_v44 }
0x1a58   : > { %v3585_v34 = vunpack.c.l.b16 %v3571_v59 }
0x1a5b   : > { %v3512_v21 = vpop.f32.mrf.mxu2 }
0x1a5c   : > { %v3513_v46 = vadd.f32 %v7644_v24, %v3512_v21 }
0x1a5e   : > { %3557 = vrot.lane.b32.xlu1 %v3513_v46, %s8468_s20  ;;  %v3572_v53 = vpack.c.bf16 %v3513_v46, %v3513_v46 }
0x1a60   : > { %v3586_v35 = vunpack.c.l.b16 %v3572_v53 }
0x1a62   : > { %v3587_v0 = vpack.c.b16 %v3586_v35, %v3585_v34 }
0x1ac6   : > { %v3537_v47 = vpop.f32.mrf.mxu3 }
0x1ac7   : > { %v3538_v36 = vadd.f32 %v3537_v47, %v3523_v27 }
0x1ac9   : > { %v7538_v48 = vpack.i.bf16 %v3511_v44, %v3538_v36  ;;  %v9464_v51 = vpack.c.bf16 %v3538_v36, %v3538_v36 }
0x1acb   : > { %7539 = vrot.lane.b32.xlu0 %v7538_v48, %s8468_s20  ;;  %7534 = vrot.lane.b32.xlu2 %v7538_v48, %s8467_s15  ;;  %v3592_v55 = vsel %vm1082_vm11, %v9464_v51, 0 }
0x1acc   : > { %3601 = vmatpush.bf16.xpose.msra.mxu0 %v3592_v55 }
0x1ace   : > { %v3539_v5 = vpop.f32.mrf.mxu3 }
0x1ad0   : > { %v3558_v57 = vpop.permute.xlu1 %3557 }
0x1ad1   : > { %v3578_v7 = vpack.c.bf16 %v3558_v57, %v3558_v57 }
0x1ad3   : > { %7544 = vrot.lane.b32.xlu0 %v7538_v48, %s8466_s13  ;;  %3551 = vrot.lane.b32.xlu2 %v3513_v46, %s8467_s15  ;;  %v3661_v56 = vunpack.c.l.b16 %v3578_v7 }
0x1ad4   : > { %6927 = vmatmul.msk.bf16.vlgmr.msra.gmra.mxu0 %vm1082_vm11, %v3587_v0 }
0x1adb   : > { %3545 = vrot.lane.b32.xlu2 %v3513_v46, %s8466_s13 }
0x1b25   : > { %v7535_v6 = vpop.permute.xlu2 %7534 }
0x1b26   : > { %v7536_v43 = vunpack.i.l.bf16 %v7535_v6  ;;  %v7537_v60 = vunpack.i.h.bf16 %v7535_v6 }
0x1b28   : > { %v9474_v49 = vpack.c.bf16 %v7536_v43, %v7536_v43  ;;  %v3575_v39 = vpack.c.bf16 %v7537_v60, %v7537_v60 }
0x1b2a   : > { %v3642_v63 = vsel %vm1082_vm11, %v9474_v49, 0  ;;  %v3635_v54 = vunpack.c.l.b16 %v3575_v39 }
0x1b2b   : > { %3651 = vmatpush.bf16.xpose.msrb.mxu2 %v3642_v63 }
0x1b2d   : > { %v3552_v37 = vpop.permute.xlu2 %3551 }
0x1b2e   : > { %v3576_v2 = vpack.c.bf16 %v3552_v37, %v3552_v37 }
0x1b30   : > { %v3636_v18 = vunpack.c.l.b16 %v3576_v2 }
0x1b32   : > { %v3637_v25 = vpack.c.b16 %v3636_v18, %v3635_v54 }
0x1b34   : > { %6929 = vmatmul.msk.bf16.vlgmr.msrb.gmra.mxu2 %vm1082_vm11, %v3637_v25 }
0x1b35   : > { %v3546_v61 = vpop.permute.xlu2 %3545 }
0x1b36   : > { %v3574_v22 = vpack.c.bf16 %v3546_v61, %v3546_v61 }
0x1b38   : > { %v3611_v58 = vunpack.c.l.b16 %v3574_v22 }
0x1b3d   : > { %v7540_v3 = vpop.permute.xlu0 %7539 }
0x1b3e   : > { %v7542_v8 = vunpack.i.h.bf16 %v7540_v3  ;;  %v7541_v4 = vunpack.i.l.bf16 %v7540_v3 }
0x1b40   : > { %v3577_v1 = vpack.c.bf16 %v7542_v8, %v7542_v8  ;;  %v9479_v10 = vpack.c.bf16 %v7541_v4, %v7541_v4 }
0x1b42   : > { %v3667_v40 = vsel %vm1082_vm11, %v9479_v10, 0  ;;  %v3660_v9 = vunpack.c.l.b16 %v3577_v1 }
0x1b43   : > { %3676 = vmatpush.bf16.xpose.msrb.mxu3 %v3667_v40 }
0x1b44   : > { %v3662_v23 = vpack.c.b16 %v3661_v56, %v3660_v9 }
0x1b45   : > { %v7545_v52 = vpop.permute.xlu0 %7544 }
0x1b46   : > { %v7547_v11 = vunpack.i.h.bf16 %v7545_v52  ;;  %v7546_v13 = vunpack.i.l.bf16 %v7545_v52 }
0x1b48   : > { %v3573_v17 = vpack.c.bf16 %v7547_v11, %v7547_v11  ;;  %v9483_v20 = vpack.c.bf16 %v7546_v13, %v7546_v13 }
0x1b4a   : > { %6930 = vmatmul.msk.bf16.vlgmr.msrb.gmra.mxu3 %vm1082_vm11, %v3662_v23  ;;  %v3617_v24 = vsel %vm1082_vm11, %v9483_v20, 0  ;;  %v3610_v12 = vunpack.c.l.b16 %v3573_v17 }
0x1b4b   : > { %3626 = vmatpush.bf16.xpose.msra.mxu1 %v3617_v24 }
0x1b4c   : > { %v3612_v41 = vpack.c.b16 %v3611_v58, %v3610_v12 }
0x1b51   : > { %v3603_v32 = vpop.f32.mrf.mxu0 }
0x1b52   : > { %6928 = vmatmul.msk.bf16.vlgmr.msra.gmra.mxu1 %vm1082_vm11, %v3612_v41  ;;  %v3683_v5 = vmul.f32 0.35355338, %v3603_v32  ;;  %v3823_v41 = vunpack.c.l.b16 %v9483_v20 }
0x1b54   : > { %v3691_v34 = vsel %vm1082_vm11, %v3683_v5, -inf }
0x1b59   : > { %v3605_v46 = vpop.f32.mrf.mxu0 }
0x1b5a   : > { %v9493_v47 = vmul.f32 0.35355338, %v3605_v46 }
0x1b5c   : > { %v3694_v35 = vsel %vm1082_vm11, %v9493_v47, -inf }
0x1bb7   : > { %v3653_v15 = vpop.f32.mrf.mxu2 }
0x1bb8   : > { %v3687_v62 = vmul.f32 0.35355338, %v3653_v15  ;;  %v3853_v15 = vunpack.c.l.b16 %v9474_v49 }
0x1bba   : > { %v3703_v28 = vsel %vm1082_vm11, %v3687_v62, -inf }
0x1bbb   : > { %3704 = vmax.xlane.f32.xlu1 %v3703_v28  ;;  %v3883_v28 = vunpack.c.l.b16 %v9479_v10 }
0x1bbf   : > { %v3655_v19 = vpop.f32.mrf.mxu2 }
0x1bc0   : > { %v3688_v29 = vmul.f32 0.35355338, %v3655_v19  ;;  %v3854_v19 = vpack.c.b16 %v3853_v15, %v3853_v15 }
0x1bc2   : > { %v3706_v31 = vsel %vm1082_vm11, %v3688_v29, -inf }
0x1bc3   : > { %3707 = vmax.xlane.f32.xlu0 %v3706_v31  ;;  %v3793_v31 = vunpack.c.l.b16 %v9464_v51 }
0x1bc5   : > { %v3794_v32 = vpack.c.b16 %v3793_v31, %v3793_v31 }
0x1bcd   : > { %v3678_v50 = vpop.f32.mrf.mxu3 }
0x1bce   : > { %v3689_v16 = vmul.f32 0.35355338, %v3678_v50 }
0x1bcf   : > { %v3628_v38 = vpop.f32.mrf.mxu1 }
0x1bd0   : > { %v3685_v42 = vmul.f32 0.35355338, %v3628_v38  ;;  %v3709_v44 = vsel %vm1082_vm11, %v3689_v16, -inf }
0x1bd1   : > { %3710 = vmax.xlane.f32.xlu2 %v3709_v44 }
0x1bd2   : > { %v3697_v21 = vsel %vm1082_vm11, %v3685_v42, -inf }
0x1bd3   : > { %3698 = vmax.xlane.f32.xlu0 %v3697_v21 }
0x1bd5   : > { %v3680_v27 = vpop.f32.mrf.mxu3 }
0x1bd6   : > { %v3690_v36 = vmul.f32 0.35355338, %v3680_v27 }
0x1bd7   : > { %v3630_v48 = vpop.f32.mrf.mxu1 }
0x1bd8   : > { %v3686_v53 = vmul.f32 0.35355338, %v3630_v48  ;;  %v3712_v55 = vsel %vm1082_vm11, %v3690_v36, -inf }
0x1bd9   : > { %3713 = vmax.xlane.f32.xlu1 %v3712_v55 }
0x1bda   : > { %v3700_v59 = vsel %vm1082_vm11, %v3686_v53, -inf }
0x1bdb   : > { %3701 = vmax.xlane.f32.xlu2 %v3700_v59  ;;  %3695 = vmax.xlane.f32.xlu0 %v3694_v35 }
0x1be1   : > { %3692 = vmax.xlane.f32.xlu1 %v3691_v34 }
0x1c2e   : > { %v3705_v0 = vpop.xlane.xlu1 %3704 }
0x1c2f   : > { %v3719_v6 = vsub.f32 %v3687_v62, %v3705_v0  ;;  %v3824_v62 = vpack.c.b16 %v3823_v41, %v3823_v41  ;;  %v9556_v41 = vld [vmem:[#allocation9 + $0x5] ss:$0 sm:$0xff] }
0x1c31   : > { %v3731_v43 = vmul.f32 1.442695, %v3719_v6 }
0x1c33   : > { %7812 = vpow2.f32 %v3731_v43 }
0x1c36   : > { %v3708_v39 = vpop.xlane.xlu0 %3707 }
0x1c37   : > { %v3720_v3 = vsub.f32 %v3688_v29, %v3708_v39  ;;  %v3884_v29 = vpack.c.b16 %v3883_v28, %v3883_v28  ;;  %v9560_v28 = vld [vmem:[#allocation11 + $0x5] ss:$0 sm:$0xff] }
0x1c39   : > { %v9500_v60 = vpop.eup %7812  ;;  %v3733_v4 = vmul.f32 1.442695, %v3720_v3 }
0x1c3a   : > { %v3751_v63 = vsel %vm1082_vm11, %v9500_v60, 0.0 }
0x1c3b   : > { %3752 = vadd.xlane.f32.xlu2 %v3751_v63 }
0x1c44   : > { %v3711_v37 = vpop.xlane.xlu2 %3710 }
0x1c45   : > { %v3721_v2 = vsub.f32 %v3689_v16, %v3711_v37 }
0x1c46   : > { %v3699_v54 = vpop.xlane.xlu0 %3698 }
0x1c47   : > { %v3735_v18 = vmul.f32 1.442695, %v3721_v2  ;;  %v3717_v25 = vsub.f32 %v3685_v42, %v3699_v54 }
0x1c49   : > { %7814 = vpow2.f32 %v3735_v18  ;;  %v3727_v8 = vmul.f32 1.442695, %v3717_v25 }
0x1c4b   : > { %7816 = vpow2.f32 %v3727_v8 }
0x1c4c   : > { %v3714_v57 = vpop.xlane.xlu1 %3713  ;;  %7818 = vpow2.f32 %v3733_v4 }
0x1c4d   : > { %v3722_v1 = vsub.f32 %v3690_v36, %v3714_v57 }
0x1c4e   : > { %v3702_v7 = vpop.xlane.xlu2 %3701  ;;  %v3696_v50 = vpop.xlane.xlu0 %3695 }
0x1c4f   : > { %v9504_v40 = vpop.eup %7814  ;;  %v3737_v9 = vmul.f32 1.442695, %v3722_v1  ;;  %v3718_v52 = vsub.f32 %v3686_v53, %v3702_v7  ;;  %v3716_v49 = vsub.f32 %v9493_v47, %v3696_v50 }
0x1c50   : > { %v3757_v56 = vsel %vm1082_vm11, %v9504_v40, 0.0 }
0x1c51   : > { %v9508_v11 = vpop.eup %7816  ;;  %7820 = vpow2.f32 %v3737_v9  ;;  %v3729_v13 = vmul.f32 1.442695, %v3718_v52  ;;  %3758 = vadd.xlane.f32.xlu0 %v3757_v56  ;;  %v3725_v38 = vmul.f32 1.442695, %v3716_v49 }
0x1c52   : > { %v3745_v61 = vsel %vm1082_vm11, %v9508_v11, 0.0  ;;  %v7819_v23 = vpop.eup %7818 }
0x1c53   : > { %7822 = vpow2.f32 %v3729_v13  ;;  %3746 = vadd.xlane.f32.xlu1 %v3745_v61  ;;  %v3754_v12 = vsel %vm1082_vm11, %v7819_v23, 0.0 }
0x1c54   : > { %v3693_v20 = vpop.xlane.xlu1 %3692  ;;  %7824 = vpow2.f32 %v3725_v38 }
0x1c55   : > { %v3715_v16 = vsub.f32 %v3683_v5, %v3693_v20 }
0x1c57   : > { %v9512_v17 = vpop.eup %7820  ;;  %v3723_v10 = vmul.f32 1.442695, %v3715_v16 }
0x1c58   : > { %v3760_v22 = vsel %vm1082_vm11, %v9512_v17, 0.0 }
0x1c59   : > { %v7823_v24 = vpop.eup %7822  ;;  %3761 = vadd.xlane.f32.xlu2 %v3760_v22  ;;  %7826 = vpow2.f32 %v3723_v10  ;;  %v9545_v22 = vld [vmem:[%s10321_s6 + $0x58] sm:$0xff] }
0x1c5a   : > { %v3748_v58 = vsel %vm1082_vm11, %v7823_v24, 0.0  ;;  %v9527_v42 = vpop.eup %7824 }
0x1c5b   : > { %3755 = vadd.xlane.f32.xlu1 %v3754_v12  ;;  %3749 = vadd.xlane.f32.xlu0 %v3748_v58  ;;  %v3742_v21 = vsel %vm1082_vm11, %v9527_v42, 0.0  ;;  %v9553_v58 = vld [vmem:[%s10321_s6 + $0x50] sm:$0xff] }
0x1c5f   : > { %v9529_v44 = vpop.eup %7826 }
0x1c60   : > { %v3739_v51 = vsel %vm1082_vm11, %v9529_v44, 0.0 }
0x1c6f   : > { %3825 = vrot.lane.b32.xlu0 %v3824_v62, %s8465_s18 }
0x1c71   : > { %3855 = vrot.lane.b32.xlu2 %v3854_v19, %s8465_s18  ;;  %v4164_v19 = vmul.f32 %v9556_v41, %v9459_v33 }
0x1c74   : > { %3885 = vrot.lane.b32.xlu1 %v3884_v29, %s8465_s18  ;;  %v4168_v29 = vadd.f32 %v9560_v28, %v4164_v19 }
0x1c76   : > { %v4224_v31 = vpack.c.bf16 %v4168_v29, %v4168_v29 }
0x1c7c   : > { %3795 = vrot.lane.b32.xlu1 %v3794_v32, %s8465_s18 }
0x1c99   : > { %3743 = vadd.xlane.f32.xlu0 %v3742_v21 }
0x1c9a   : > { %3740 = vadd.xlane.f32.xlu2 %v3739_v51 }
0x1cae   : > { %v3753_v46 = vpop.xlane.xlu2 %3752 }
0x1caf   : > { %7828 = vrcp.f32 %v3753_v46 }
0x1cb5   : > { %v7829_v55 = vpop.eup %7828 }
0x1cb6   : > { %v3775_v59 = vmul.f32 %v7829_v55, %v9500_v60 }
0x1cb8   : > { %v3783_v6 = vpack.c.bf16 %v3775_v59, %v3775_v59 }
0x1cba   : > { %v3849_v54 = vunpack.c.l.b16 %v3783_v6 }
0x1cc4   : > { %v3759_v27 = vpop.xlane.xlu0 %3758 }
0x1cc6   : > { %v3747_v47 = vpop.xlane.xlu1 %3746 }
0x1ccc   : > { %v3762_v36 = vpop.xlane.xlu2 %3761 }
0x1cce   : > { %v3756_v48 = vpop.xlane.xlu1 %3755  ;;  %v3750_v53 = vpop.xlane.xlu0 %3749 }
0x1ccf   : > { %7830 = vrcp.f32 %v3756_v48 }
0x1cd0   : > { %7832 = vrcp.f32 %v3750_v53 }
0x1cd1   : > { %7834 = vrcp.f32 %v3747_v47 }
0x1cd2   : > { %7836 = vrcp.f32 %v3762_v36 }
0x1cd3   : > { %7838 = vrcp.f32 %v3759_v27 }
0x1cd4   : > { %v3856_v35 = vpop.permute.xlu2 %3855 }
0x1cd5   : > { %v7831_v5 = vpop.eup %7830  ;;  %v3861_v34 = vsel %vm1295_vm12, %v3856_v35, 0 }
0x1cd6   : > { %v7833_v0 = vpop.eup %7832  ;;  %v3776_v43 = vmul.f32 %v7831_v5, %v7819_v23  ;;  %3870 = vmatpush.bf16.msra.mxu2 %v3861_v34  ;;  %v7263_v34 = vld [vmem:[%s10322_s8 + $0x48] sm:$0xff] }
0x1cd7   : > { %v7835_v63 = vpop.eup %7834  ;;  %v3774_v37 = vmul.f32 %v7833_v0, %v7823_v24  ;;  %v7262_v0 = vld [vmem:[%s10322_s8 + $0x40] sm:$0xff] }
0x1cd8   : > { %v3784_v39 = vpack.c.bf16 %v3776_v43, %v3776_v43  ;;  %v7837_v2 = vpop.eup %7836  ;;  %v3773_v18 = vmul.f32 %v7835_v63, %v9508_v11 }
0x1cd9   : > { %v7839_v3 = vpop.eup %7838  ;;  %v3782_v8 = vpack.c.bf16 %v3774_v37, %v3774_v37  ;;  %v3778_v4 = vmul.f32 %v7837_v2, %v9512_v17 }
0x1cda   : > { %v3850_v25 = vunpack.c.l.b16 %v3784_v39  ;;  %v3781_v57 = vpack.c.bf16 %v3773_v18, %v3773_v18  ;;  %v3777_v1 = vmul.f32 %v7839_v3, %v9504_v40 }
0x1cdb   : > { %v3820_v7 = vunpack.c.l.b16 %v3782_v8  ;;  %v3786_v9 = vpack.c.bf16 %v3778_v4, %v3778_v4 }
0x1cdc   : > { %v3851_v60 = vpack.c.b16 %v3850_v25, %v3849_v54  ;;  %v3819_v56 = vunpack.c.l.b16 %v3781_v57  ;;  %v3785_v61 = vpack.c.bf16 %v3777_v1, %v3777_v1 }
0x1cdd   : > { %v3880_v23 = vunpack.c.l.b16 %v3786_v9 }
0x1cde   : > { %6933 = vmatmul.msk.bf16.vlgmr.msra.gmra.mxu2 %vm1082_vm11, %v3851_v60  ;;  %v3821_v11 = vpack.c.b16 %v3820_v7, %v3819_v56  ;;  %v3879_v24 = vunpack.c.l.b16 %v3785_v61  ;;  %v7646_v56 = vld [vmem:[%s10233_s9 + $0x4] ss:$0 sm:$0xff] }
0x1ce0   : > { %v3881_v12 = vpack.c.b16 %v3880_v23, %v3879_v24 }
0x1ce1   : > { %v3826_v52 = vpop.permute.xlu0 %3825 }
0x1ce2   : > { %v3831_v13 = vsel %vm1295_vm12, %v3826_v52, 0 }
0x1ce3   : > { %3840 = vmatpush.bf16.msrb.mxu1 %v3831_v13 }
0x1ce6   : > { %v3886_v17 = vpop.permute.xlu1 %3885  ;;  %6932 = vmatmul.msk.bf16.vlgmr.msrb.gmra.mxu1 %vm1082_vm11, %v3821_v11 }
0x1ce7   : > { %v3891_v40 = vsel %vm1295_vm12, %v3886_v17, 0 }
0x1ce8   : > { %3900 = vmatpush.bf16.msra.mxu3 %v3891_v40 }
0x1ceb   : > { %6934 = vmatmul.msk.bf16.vlgmr.msra.gmra.mxu3 %vm1082_vm11, %v3881_v12 }
0x1cec   : > { %4249 = vmatpush.bf16.msrb.mxu3 %v9545_v22 }
0x1cee   : > { %v3796_v15 = vpop.permute.xlu1 %3795 }
0x1cef   : > { %v3801_v62 = vsel %vm1295_vm12, %v3796_v15, 0  ;;  %v7645_v15 = vld [vmem:[#allocation12 + $0x5] ss:$0 sm:$0xff] }
0x1cf0   : > { %4250 = vmatpush.bf16.msrb.mxu3 %v9553_v58  ;;  %3810 = vmatpush.bf16.msrb.mxu0 %v3801_v62 }
0x1cf4   : > { %3964 = vmatpush.bf16.msra.mxu0 %v7263_v34 }
0x1cf8   : > { %3965 = vmatpush.bf16.msra.mxu0 %v7262_v0 }
0x1cfb   : > { %6999 = vmatmul.msk.bf16.vlgmr.msrb.gmra.mxu3 %vm885_vm0, %v4224_v31 }
0x1d0c   : > { %v3744_v32 = vpop.xlane.xlu0 %3743 }
0x1d0d   : > { %7840 = vrcp.f32 %v3744_v32  ;;  %v3741_v50 = vpop.xlane.xlu2 %3740 }
0x1d0e   : > { %7842 = vrcp.f32 %v3741_v50 }
0x1d13   : > { %v7841_v20 = vpop.eup %7840 }
0x1d14   : > { %v7843_v49 = vpop.eup %7842  ;;  %v3772_v16 = vmul.f32 %v7841_v20, %v9527_v42 }
0x1d15   : > { %v3771_v38 = vmul.f32 %v7843_v49, %v9529_v44 }
0x1d16   : > { %v3780_v10 = vpack.c.bf16 %v3772_v16, %v3772_v16 }
0x1d17   : > { %v3779_v21 = vpack.c.bf16 %v3771_v38, %v3771_v38  ;;  %v7265_v38 = vld [vmem:[%s10236_s12 + $0x48] sm:$0xff] }
0x1d18   : > { %v3790_v51 = vunpack.c.l.b16 %v3780_v10  ;;  %4071 = vmatpush.bf16.msra.mxu1 %v7265_v38 }
0x1d19   : > { %v3789_v46 = vunpack.c.l.b16 %v3779_v21 }
0x1d1b   : > { %v3791_v33 = vpack.c.b16 %v3790_v51, %v3789_v46  ;;  %v7264_v46 = vld [vmem:[%s10236_s12 + $0x40] sm:$0xff] }
0x1d1c   : > { %4072 = vmatpush.bf16.msra.mxu1 %v7264_v46  ;;  %v7650_v46 = vld [vmem:[#allocation18 + $0x4] ss:$0 sm:$0xff] }
0x1d1d   : > { %6931 = vmatmul.msk.bf16.vlgmr.msrb.gmra.mxu0 %vm1082_vm11, %v3791_v33 }
0x1d61   : > { %v3872_v47 = vpop.f32.mrf.mxu2 }
0x1d63   : > { %v3842_v27 = vpop.f32.mrf.mxu1 }
0x1d69   : > { %v3874_v55 = vpop.f32.mrf.mxu2 }
0x1d6a   : > { %v7553_v59 = vpack.i.bf16 %v3874_v55, %v3872_v47 }
0x1d6b   : > { %v3844_v36 = vpop.f32.mrf.mxu1 }
0x1d6c   : > { %v7548_v48 = vpack.i.bf16 %v3844_v36, %v3842_v27 }
0x1d6e   : > { %v3902_v53 = vpop.f32.mrf.mxu3  ;;  %7549 = vrot.lane.b32.xlu1 %v7548_v48, %s10266_s0 }
0x1d76   : > { %v3904_v35 = vpop.f32.mrf.mxu3  ;;  %7554 = vrot.lane.b32.xlu1 %v7553_v59, %s8469_s28 }
0x1d77   : > { %v7558_v42 = vpack.i.bf16 %v3904_v35, %v3902_v53 }
0x1d7e   : > { %v4252_v44 = vpop.f32.mrf.mxu3  ;;  %7559 = vrot.lane.b32.xlu1 %v7558_v42, %s8471_s4 }
0x1d7f   : > { %v9599_v62 = vadd.f32 %v7645_v15, %v4252_v44 }
0x1d86   : > { %v4254_v5 = vpop.f32.mrf.mxu3 }
0x1d9a   : > { %v3812_v43 = vpop.f32.mrf.mxu0 }
0x1da2   : > { %v3814_v18 = vpop.f32.mrf.mxu0 }
0x1de0   : > { %v7550_v6 = vpop.permute.xlu1 %7549 }
0x1de1   : > { %v7552_v39 = vunpack.i.h.bf16 %v7550_v6  ;;  %v7551_v37 = vunpack.i.l.bf16 %v7550_v6 }
0x1de3   : > { %v3931_v3 = vsel %vm1082_vm11, %v3812_v43, %v7551_v37  ;;  %v3932_v60 = vsel %vm1082_vm11, %v3814_v18, %v7552_v39  ;;  %v7647_v43 = vld [vmem:[#allocation14 + $0x4] ss:$0 sm:$0xff] }
0x1de8   : > { %v7555_v63 = vpop.permute.xlu1 %7554 }
0x1de9   : > { %v7557_v2 = vunpack.i.h.bf16 %v7555_v63  ;;  %v7556_v54 = vunpack.i.l.bf16 %v7555_v63 }
0x1deb   : > { %v3933_v57 = vsel %vm1429_vm13, %v3931_v3, %v7556_v54  ;;  %v3934_v1 = vsel %vm1429_vm13, %v3932_v60, %v7557_v2  ;;  %v7648_v2 = vld [vmem:[#allocation15 + $0x4] ss:$0 sm:$0xff] }
0x1df0   : > { %v7560_v25 = vpop.permute.xlu1 %7559 }
0x1df1   : > { %v7562_v8 = vunpack.i.h.bf16 %v7560_v25  ;;  %v7561_v4 = vunpack.i.l.bf16 %v7560_v25 }
0x1df3   : > { %v3935_v7 = vsel %vm1432_vm14, %v3933_v57, %v7561_v4  ;;  %v3936_v9 = vsel %vm1432_vm14, %v3934_v1, %v7562_v8  ;;  %v7269_v4 = vld [vmem:[%s10238_s14 + $0x98] sm:$0xff]  ;;  %v7268_v57 = vld [vmem:[%s10238_s14 + $0x90] sm:$0xff]  ;;  %v7267_v1 = vld [vmem:[%s10238_s14 + $0x88] sm:$0xff] }
0x1df4   : > { %v3942_v52 = vpack.c.bf16 %v3936_v9, %v3935_v7  ;;  %4138 = vmatpush.bf16.msrb.mxu2 %v7269_v4  ;;  %v7649_v7 = vld [vmem:[#allocation17 + $0x4] ss:$0 sm:$0xff]  ;;  %v7266_v9 = vld [vmem:[%s10238_s14 + $0x80] sm:$0xff] }
0x1df6   : > { %6947 = vmatmul.msk.bf16.vlgmr.msra.gmra.mxu0 %vm885_vm0, %v3942_v52 }
0x1df8   : > { %4139 = vmatpush.bf16.msrb.mxu2 %v7268_v57 }
0x1dfc   : > { %4140 = vmatpush.bf16.msrb.mxu2 %v7267_v1 }
0x1e00   : > { %4141 = vmatpush.bf16.msrb.mxu2 %v7266_v9 }
0x1e73   : > { %v3967_v13 = vpop.f32.mrf.mxu0 }
0x1e74   : > { %v3972_v61 = vadd.f32 %v3967_v13, %v9365_v30 }
0x1e76   : > { %v9589_v11 = vadd.f32 %v7646_v56, %v3972_v61 }
0x1e78   : > { %v3985_v23 = vsel %vm885_vm0, %v9589_v11, 0.0 }
0x1e79   : > { %3986 = vadd.xlane.f32.xlu1 %v3985_v23 }
0x1e7b   : > { %v3969_v17 = vpop.f32.mrf.mxu0 }
0x1e7c   : > { %v3973_v24 = vadd.f32 %v3969_v17, %v9370_v45 }
0x1e7e   : > { %v9594_v40 = vadd.f32 %v7646_v56, %v3973_v24 }
0x1e80   : > { %v3988_v12 = vsel %vm885_vm0, %v9594_v40, 0.0 }
0x1e81   : > { %3989 = vadd.xlane.f32.xlu2 %v3988_v12 }
0x1e92   : > { %4263 = vrot.lane.b32.xlu1 %v7645_v15, %s8465_s18 }
0x1e9a   : > { %4287 = vrot.lane.b32.xlu1 %v9599_v62, %s8467_s15 }
0x1eec   : > { %v3987_v30 = vpop.xlane.xlu1 %3986 }
0x1eed   : > { %v3991_v19 = vmul.f32 %v3987_v30, %v8840_v14 }
0x1eef   : > { %v3993_v29 = vsub.f32 %v9589_v11, %v3991_v19 }
0x1ef1   : > { %v3995_v45 = vmul.f32 %v3993_v29, %v3993_v29 }
0x1ef3   : > { %v3997_v31 = vsel %vm885_vm0, %v3995_v45, 0.0 }
0x1ef4   : > { %3998 = vadd.xlane.f32.xlu0 %v3997_v31  ;;  %v3990_v32 = vpop.xlane.xlu2 %3989 }
0x1ef5   : > { %v3992_v50 = vmul.f32 %v3990_v32, %v8840_v14 }
0x1ef7   : > { %v3994_v20 = vsub.f32 %v9594_v40, %v3992_v50 }
0x1ef9   : > { %v3996_v49 = vmul.f32 %v3994_v20, %v3994_v20 }
0x1efb   : > { %v4000_v16 = vsel %vm885_vm0, %v3996_v49, 0.0 }
0x1efc   : > { %4001 = vadd.xlane.f32.xlu2 %v4000_v16 }
0x1f67   : > { %v3999_v10 = vpop.xlane.xlu0 %3998 }
0x1f68   : > { %v4003_v21 = vmul.f32 %v3999_v10, %v8840_v14 }
0x1f6a   : > { %v4005_v51 = vadd.f32 1e-06, %v4003_v21 }
0x1f6c   : > { %7844 = vrsqrt.f32 %v4005_v51  ;;  %vm4013_vm8 = vweird.f32 %v4005_v51 }
0x1f6f   : > { %v4002_v33 = vpop.xlane.xlu2 %4001 }
0x1f70   : > { %v4004_v27 = vmul.f32 %v4002_v33, %v8840_v14 }
0x1f72   : > { %v7845_v47 = vpop.eup %7844  ;;  %v4006_v36 = vadd.f32 1e-06, %v4004_v27 }
0x1f73   : > { %v4008_v48 = vmul.f32 %v7845_v47, %v4005_v51  ;;  %vm4014_vm7 = vweird.f32 %v7845_v47 }
0x1f74   : > { %7846 = vrsqrt.f32 %v4006_v36  ;;  %vm4015_vm9 = vmor %vm4013_vm8, %vm4014_vm7  ;;  %vm4023_vm15 = vweird.f32 %v4006_v36 }
0x1f75   : > { %v4009_v53 = vmul.f32 %v7845_v47, %v4008_v48 }
0x1f77   : > { %v4010_v55 = vmul.f32 0.5, %v4009_v53 }
0x1f79   : > { %v4011_v59 = vsub.f32 1.5, %v4010_v55 }
0x1f7a   : > { %v7847_v35 = vpop.eup %7846 }
0x1f7b   : > { %v4012_v42 = vmul.f32 %v7845_v47, %v4011_v59  ;;  %v4018_v44 = vmul.f32 %v7847_v35, %v4006_v36  ;;  %vm4024_vm10 = vweird.f32 %v7847_v35 }
0x1f7c   : > { %vm4025_vm1 = vmor %vm4023_vm15, %vm4024_vm10 }
0x1f7d   : > { %v4019_v5 = vmul.f32 %v7847_v35, %v4018_v44  ;;  %v4016_v34 = vsel %vm4015_vm9, %v7845_v47, %v4012_v42 }
0x1f7e   : > { %v4027_v63 = vmul.f32 %v4016_v34, %v3993_v29 }
0x1f7f   : > { %v4020_v0 = vmul.f32 0.5, %v4019_v5 }
0x1f80   : > { %v4032_v54 = vmul.f32 %v7647_v43, %v4027_v63 }
0x1f81   : > { %v4021_v6 = vsub.f32 1.5, %v4020_v0 }
0x1f82   : > { %v4037_v3 = vadd.f32 %v7648_v2, %v4032_v54 }
0x1f83   : > { %v4022_v39 = vmul.f32 %v7847_v35, %v4021_v6 }
0x1f85   : > { %v4026_v37 = vsel %vm4025_vm1, %v7847_v35, %v4022_v39 }
0x1f86   : > { %v4028_v18 = vmul.f32 %v4026_v37, %v3994_v20 }
0x1f88   : > { %v4033_v25 = vmul.f32 %v7647_v43, %v4028_v18 }
0x1f8a   : > { %v4038_v60 = vadd.f32 %v7648_v2, %v4033_v25 }
0x1f8c   : > { %v4044_v8 = vpack.c.bf16 %v4038_v60, %v4037_v3 }
0x1f8e   : > { %6961 = vmatmul.msk.bf16.vlgmr.msra.gmra.mxu1 %vm885_vm0, %v4044_v8 }
0x200b   : > { %v4074_v52 = vpop.f32.mrf.mxu1 }
0x200c   : > { %v4075_v56 = vadd.f32 %v7649_v7, %v4074_v52 }
0x200e   : > { %v4081_v13 = vmul.f32 0.044715, %v4075_v56  ;;  %v4079_v49 = vmul.f32 0.5, %v4075_v56 }
0x2010   : > { %v4083_v61 = vmul.f32 %v4081_v13, %v4075_v56 }
0x2012   : > { %v4085_v23 = vmul.f32 %v4083_v61, %v4075_v56  ;;  %v7651_v61 = vld [vmem:[#allocation9 + $0x6] ss:$0 sm:$0xff] }
0x2013   : > { %v4076_v17 = vpop.f32.mrf.mxu1 }
0x2014   : > { %v4087_v24 = vadd.f32 %v4085_v23, %v4075_v56  ;;  %v4077_v12 = vadd.f32 %v7649_v7, %v4076_v17 }
0x2016   : > { %v4082_v15 = vmul.f32 0.044715, %v4077_v12  ;;  %v4089_v30 = vmul.f32 0.7978846, %v4087_v24  ;;  %v4080_v16 = vmul.f32 0.5, %v4077_v12 }
0x2018   : > { %v4084_v19 = vmul.f32 %v4082_v15, %v4077_v12  ;;  %7848 = vtanh.f32 %v4089_v30 }
0x201a   : > { %v4086_v29 = vmul.f32 %v4084_v19, %v4077_v12 }
0x201c   : > { %v4088_v45 = vadd.f32 %v4086_v29, %v4077_v12  ;;  %v7652_v12 = vld [vmem:[#allocation11 + $0x6] ss:$0 sm:$0xff] }
0x201e   : > { %v4090_v31 = vmul.f32 0.7978846, %v4088_v45  ;;  %v7849_v32 = vpop.eup %7848 }
0x201f   : > { %v4093_v50 = vadd.f32 1.0, %v7849_v32 }
0x2020   : > { %7850 = vtanh.f32 %v4090_v31 }
0x2021   : > { %v4095_v10 = vmul.f32 %v4093_v50, %v4079_v49 }
0x2026   : > { %v7851_v20 = vpop.eup %7850 }
0x2027   : > { %v4094_v38 = vadd.f32 1.0, %v7851_v20 }
0x2029   : > { %v4096_v21 = vmul.f32 %v4094_v38, %v4080_v16 }
0x202b   : > { %v4106_v51 = vpack.c.bf16 %v4096_v21, %v4095_v10  ;;  %v4264_v10 = vpop.permute.xlu1 %4263 }
0x202d   : > { %6986 = vmatmul.msk.bf16.vlgmr.msrb.gmra.mxu2 %vm1622_vm6, %v4106_v51 }
0x20b0   : > { %v4143_v33 = vpop.f32.mrf.mxu2 }
0x20b1   : > { %v4148_v27 = vadd.f32 %v4143_v33, %v9589_v11 }
0x20b3   : > { %v9632_v47 = vadd.f32 %v7650_v46, %v4148_v27 }
0x20b5   : > { %v4176_v36 = vsel %vm885_vm0, %v9632_v47, 0.0 }
0x20b6   : > { %4177 = vadd.xlane.f32.xlu0 %v4176_v36 }
0x20b8   : > { %v4145_v48 = vpop.f32.mrf.mxu2 }
0x20b9   : > { %v4149_v53 = vadd.f32 %v4145_v48, %v9594_v40 }
0x20bb   : > { %v9637_v55 = vadd.f32 %v7650_v46, %v4149_v53 }
0x20bd   : > { %v4179_v59 = vsel %vm885_vm0, %v9637_v55, 0.0 }
0x20be   : > { %4180 = vadd.xlane.f32.xlu2 %v4179_v59  ;;  %v4313_v59 = vpack.c.bf16 %v9599_v62, %v9599_v62 }
0x2129   : > { %v4178_v35 = vpop.xlane.xlu0 %4177 }
0x212a   : > { %v4182_v42 = vmul.f32 %v4178_v35, %v8840_v14 }
0x212c   : > { %v4184_v11 = vsub.f32 %v9632_v47, %v4182_v42 }
0x212e   : > { %v4186_v44 = vmul.f32 %v4184_v11, %v4184_v11 }
0x2130   : > { %v4188_v5 = vsel %vm885_vm0, %v4186_v44, 0.0 }
0x2131   : > { %4189 = vadd.xlane.f32.xlu0 %v4188_v5  ;;  %v4181_v34 = vpop.xlane.xlu2 %4180 }
0x2132   : > { %v4183_v0 = vmul.f32 %v4181_v34, %v8840_v14 }
0x2134   : > { %v4185_v40 = vsub.f32 %v9637_v55, %v4183_v0 }
0x2136   : > { %v4187_v6 = vmul.f32 %v4185_v40, %v4185_v40 }
0x2138   : > { %v4191_v43 = vsel %vm885_vm0, %v4187_v6, 0.0 }
0x2139   : > { %4192 = vadd.xlane.f32.xlu2 %v4191_v43 }
0x2145   : > { %4259 = vrot.lane.b32.xlu0 %v9545_v22, %s8465_s18 }
0x2151   : > { %4257 = vrot.lane.b32.xlu2 %v9553_v58, %s8465_s18 }
0x2159   : > { %4284 = vrot.lane.b32.xlu2 %v9599_v62, %s8466_s13 }
0x2161   : > { %4290 = vrot.lane.b32.xlu2 %v9599_v62, %s8468_s20 }
0x21a4   : > { %v4190_v63 = vpop.xlane.xlu0 %4189 }
0x21a5   : > { %v4194_v39 = vmul.f32 %v4190_v63, %v8840_v14 }
0x21a7   : > { %v4196_v37 = vadd.f32 1e-06, %v4194_v39 }
0x21a9   : > { %7852 = vrsqrt.f32 %v4196_v37  ;;  %vm4204_vm3 = vweird.f32 %v4196_v37 }
0x21ac   : > { %v4193_v2 = vpop.xlane.xlu2 %4192 }
0x21ad   : > { %v4195_v54 = vmul.f32 %v4193_v2, %v8840_v14 }
0x21af   : > { %v7853_v18 = vpop.eup %7852  ;;  %v4197_v25 = vadd.f32 1e-06, %v4195_v54 }
0x21b0   : > { %v4199_v22 = vmul.f32 %v7853_v18, %v4196_v37  ;;  %vm4205_vm2 = vweird.f32 %v7853_v18 }
0x21b1   : > { %7854 = vrsqrt.f32 %v4197_v25  ;;  %vm4206_vm4 = vmor %vm4204_vm3, %vm4205_vm2  ;;  %vm4214_vm7 = vweird.f32 %v4197_v25 }
0x21b2   : > { %v4200_v3 = vmul.f32 %v7853_v18, %v4199_v22 }
0x21b4   : > { %v4201_v58 = vmul.f32 0.5, %v4200_v3  ;;  %v4258_v9 = vpop.permute.xlu2 %4257 }
0x21b6   : > { %v4202_v60 = vsub.f32 1.5, %v4201_v58 }
0x21b7   : > { %v7855_v8 = vpop.eup %7854  ;;  %v4260_v4 = vpop.permute.xlu0 %4259 }
0x21b8   : > { %v4203_v57 = vmul.f32 %v7853_v18, %v4202_v60  ;;  %v4209_v1 = vmul.f32 %v7855_v8, %v4197_v25  ;;  %4275 = vmatpush.bf16.msrb.mxu0 %v4260_v4  ;;  %vm4215_vm5 = vweird.f32 %v7855_v8 }
0x21b9   : > { %vm4216_vm8 = vmor %vm4214_vm7, %vm4215_vm5 }
0x21ba   : > { %v4210_v7 = vmul.f32 %v7855_v8, %v4209_v1  ;;  %v4207_v52 = vsel %vm4206_vm4, %v7853_v18, %v4203_v57  ;;  %v4288_v1 = vpop.permute.xlu1 %4287 }
0x21bb   : > { %v4218_v23 = vmul.f32 %v4207_v52, %v4184_v11  ;;  %v4315_v52 = vpack.c.bf16 %v4288_v1, %v4288_v1 }
0x21bc   : > { %v4211_v56 = vmul.f32 0.5, %v4210_v7  ;;  %4276 = vmatpush.bf16.msrb.mxu0 %v4258_v9  ;;  %v4285_v2 = vpop.permute.xlu2 %4284 }
0x21bd   : > { %v4220_v15 = vmul.f32 %v9556_v41, %v4218_v23  ;;  %v4751_v30 = vmul.f32 %v7651_v61, %v4218_v23  ;;  %v4314_v25 = vpack.c.bf16 %v4285_v2, %v4285_v2 }
0x21be   : > { %v4212_v13 = vsub.f32 1.5, %v4211_v56 }
0x21bf   : > { %v4222_v31 = vadd.f32 %v9560_v28, %v4220_v15  ;;  %v9660_v32 = vadd.f32 %v7652_v12, %v4751_v30 }
0x21c0   : > { %v4213_v17 = vmul.f32 %v7855_v8, %v4212_v13 }
0x21c2   : > { %v4217_v24 = vsel %vm4216_vm8, %v7855_v8, %v4213_v17 }
0x21c3   : > { %v4219_v19 = vmul.f32 %v4217_v24, %v4185_v40 }
0x21c4   : > { %v4291_v23 = vpop.permute.xlu2 %4290 }
0x21c5   : > { %v4221_v29 = vmul.f32 %v9556_v41, %v4219_v19  ;;  %v4752_v45 = vmul.f32 %v7651_v61, %v4219_v19  ;;  %v4316_v17 = vpack.c.bf16 %v4291_v23, %v4291_v23 }
0x21c7   : > { %v4223_v50 = vadd.f32 %v9560_v28, %v4221_v29  ;;  %v9663_v20 = vadd.f32 %v7652_v12, %v4752_v45 }
0x21c9   : > { %v4256_v49 = vpack.c.bf16 %v4223_v50, %v4222_v31  ;;  %v4765_v16 = vpack.c.bf16 %v9663_v20, %v9660_v32 }
0x21cb   : > { %7000 = vmatmul.msk.bf16.vlgmr.msrb.gmra.mxu0 %vm885_vm0, %v4256_v49 }
0x2248   : > { %v4278_v38 = vpop.f32.mrf.mxu0 }
0x2249   : > { %v4279_v21 = vadd.f32 %v4278_v38, %v4264_v10 }
0x224b   : > { %v4317_v46 = vpack.c.bf16 %v4279_v21, %v4279_v21 }
0x224d   : > { %v4327_v36 = vunpack.c.l.b16 %v4317_v46 }
0x2250   : > { %v4280_v51 = vpop.f32.mrf.mxu0 }
0x2251   : > { %v4281_v41 = vadd.f32 %v4280_v51, %v4264_v10 }
0x2253   : > { %v7563_v33 = vpack.i.bf16 %v4281_v41, %v4279_v21  ;;  %v4318_v27 = vpack.c.bf16 %v4281_v41, %v4281_v41 }
0x2255   : > { %7564 = vrot.lane.b32.xlu0 %v7563_v33, %s8466_s13  ;;  %v4328_v28 = vunpack.c.l.b16 %v4318_v27 }
0x2257   : > { %v9669_v48 = vpack.c.b16 %v4328_v28, %v4327_v36 }
0x2259   : > { %v4334_v53 = vsel %vm1082_vm11, %v9669_v48, 0 }
0x225a   : > { %4343 = vmatpush.bf16.xpose.msrb.mxu1 %v4334_v53 }
0x225d   : > { %7569 = vrot.lane.b32.xlu0 %v7563_v33, %s8467_s15 }
0x2261   : > { %7001 = vmatmul.msk.bf16.vlgmr.msrb.gmra.mxu1 %vm1082_vm11, %v4313_v59 }
0x2265   : > { %7574 = vrot.lane.b32.xlu0 %v7563_v33, %s8468_s20 }
0x22c7   : > { %v7565_v35 = vpop.permute.xlu0 %7564 }
0x22c8   : > { %v7567_v42 = vunpack.i.h.bf16 %v7565_v35  ;;  %v7566_v11 = vunpack.i.l.bf16 %v7565_v35 }
0x22ca   : > { %v4320_v44 = vpack.c.bf16 %v7567_v42, %v7567_v42  ;;  %v4319_v5 = vpack.c.bf16 %v7566_v11, %v7566_v11 }
0x22cc   : > { %v4352_v34 = vunpack.c.l.b16 %v4320_v44  ;;  %v4351_v0 = vunpack.c.l.b16 %v4319_v5 }
0x22ce   : > { %v9678_v40 = vpack.c.b16 %v4352_v34, %v4351_v0 }
0x22cf   : > { %v7570_v6 = vpop.permute.xlu0 %7569 }
0x22d0   : > { %v7572_v43 = vunpack.i.h.bf16 %v7570_v6  ;;  %v7571_v63 = vunpack.i.l.bf16 %v7570_v6  ;;  %v4358_v39 = vsel %vm1082_vm11, %v9678_v40, 0 }
0x22d1   : > { %4367 = vmatpush.bf16.xpose.msra.mxu2 %v4358_v39 }
0x22d2   : > { %v4322_v62 = vpack.c.bf16 %v7572_v43, %v7572_v43  ;;  %v4321_v37 = vpack.c.bf16 %v7571_v63, %v7571_v63 }
0x22d4   : > { %v4376_v54 = vunpack.c.l.b16 %v4322_v62  ;;  %v4375_v18 = vunpack.c.l.b16 %v4321_v37 }
0x22d6   : > { %v4377_v22 = vpack.c.b16 %v4376_v54, %v4375_v18 }
0x22d7   : > { %v7575_v3 = vpop.permute.xlu0 %7574 }
0x22d8   : > { %v7577_v58 = vunpack.i.h.bf16 %v7575_v3  ;;  %v7576_v60 = vunpack.i.l.bf16 %v7575_v3  ;;  %7002 = vmatmul.msk.bf16.vlgmr.msra.gmra.mxu2 %vm1082_vm11, %v4314_v25  ;;  %v4382_v8 = vsel %vm1082_vm11, %v4377_v22, 0 }
0x22d9   : > { %4391 = vmatpush.bf16.xpose.msra.mxu3 %v4382_v8 }
0x22da   : > { %v4324_v4 = vpack.c.bf16 %v7577_v58, %v7577_v58  ;;  %v4323_v57 = vpack.c.bf16 %v7576_v60, %v7576_v60 }
0x22dc   : > { %v4400_v7 = vunpack.c.l.b16 %v4324_v4  ;;  %v4399_v9 = vunpack.c.l.b16 %v4323_v57 }
0x22de   : > { %v4401_v56 = vpack.c.b16 %v4400_v7, %v4399_v9  ;;  %v4345_v13 = vpop.f32.mrf.mxu1  ;;  %v7281_v7 = vld [vmem:[%s10321_s6 + $0x68] sm:$0xff] }
0x22df   : > { %v4421_v19 = vmul.f32 0.35355338, %v4345_v13 }
0x22e0   : > { %7003 = vmatmul.msk.bf16.vlgmr.msra.gmra.mxu3 %vm1082_vm11, %v4315_v52  ;;  %v4406_v61 = vsel %vm1082_vm11, %v4401_v56, 0 }
0x22e1   : > { %4415 = vmatpush.bf16.xpose.msra.mxu0 %v4406_v61  ;;  %v4425_v10 = vsel %vm1429_vm13, %v4421_v19, -inf }
0x22e6   : > { %v4347_v24 = vpop.f32.mrf.mxu1 }
0x22e8   : > { %7004 = vmatmul.msk.bf16.vlgmr.msra.gmra.mxu0 %vm1082_vm11, %v4316_v17 }
0x235b   : > { %v4369_v12 = vpop.f32.mrf.mxu2 }
0x235c   : > { %v4422_v15 = vmul.f32 0.35355338, %v4369_v12 }
0x235e   : > { %v4428_v30 = vsel %vm1429_vm13, %v4422_v15, -inf }
0x235f   : > { %4429 = vmax.xlane.f32.xlu1 %v4428_v30 }
0x2363   : > { %v4371_v29 = vpop.f32.mrf.mxu2  ;;  %v4393_v45 = vpop.f32.mrf.mxu3 }
0x2364   : > { %v4423_v31 = vmul.f32 0.35355338, %v4393_v45 }
0x2365   : > { %v4417_v50 = vpop.f32.mrf.mxu0 }
0x2366   : > { %v4424_v49 = vmul.f32 0.35355338, %v4417_v50  ;;  %v4431_v38 = vsel %vm1429_vm13, %v4423_v31, -inf }
0x2367   : > { %4432 = vmax.xlane.f32.xlu0 %v4431_v38  ;;  %4426 = vmax.xlane.f32.xlu1 %v4425_v10 }
0x2368   : > { %v4434_v21 = vsel %vm1429_vm13, %v4424_v49, -inf }
0x2369   : > { %4435 = vmax.xlane.f32.xlu2 %v4434_v21 }
0x236b   : > { %v4395_v51 = vpop.f32.mrf.mxu3 }
0x236d   : > { %v4419_v41 = vpop.f32.mrf.mxu0 }
0x23d2   : > { %v4430_v46 = vpop.xlane.xlu1 %4429 }
0x23d3   : > { %v4438_v33 = vsub.f32 %v4422_v15, %v4430_v46 }
0x23d5   : > { %v4443_v27 = vmul.f32 1.442695, %v4438_v33  ;;  %v7273_v33 = vld [vmem:[%s10322_s8 + $0x58] sm:$0xff] }
0x23d7   : > { %7856 = vpow2.f32 %v4443_v27  ;;  %v7272_v27 = vld [vmem:[%s10322_s8 + $0x50] sm:$0xff] }
0x23da   : > { %v4433_v36 = vpop.xlane.xlu0 %4432  ;;  %v4427_v43 = vpop.xlane.xlu1 %4426 }
0x23db   : > { %v4439_v28 = vsub.f32 %v4423_v31, %v4433_v36  ;;  %v4437_v63 = vsub.f32 %v4421_v19, %v4427_v43 }
0x23dc   : > { %v4436_v53 = vpop.xlane.xlu2 %4435 }
0x23dd   : > { %v7857_v59 = vpop.eup %7856  ;;  %v4445_v35 = vmul.f32 1.442695, %v4439_v28  ;;  %v4440_v42 = vsub.f32 %v4424_v49, %v4436_v53  ;;  %v4441_v39 = vmul.f32 1.442695, %v4437_v63 }
0x23de   : > { %v4452_v11 = vsel %vm1429_vm13, %v7857_v59, 0.0 }
0x23df   : > { %7858 = vpow2.f32 %v4445_v35  ;;  %v4447_v44 = vmul.f32 1.442695, %v4440_v42  ;;  %4453 = vadd.xlane.f32.xlu0 %v4452_v11 }
0x23e1   : > { %7860 = vpow2.f32 %v4447_v44 }
0x23e2   : > { %7862 = vpow2.f32 %v4441_v39 }
0x23e5   : > { %v7859_v5 = vpop.eup %7858 }
0x23e6   : > { %v4455_v34 = vsel %vm1429_vm13, %v7859_v5, 0.0 }
0x23e7   : > { %v7861_v0 = vpop.eup %7860  ;;  %4456 = vadd.xlane.f32.xlu2 %v4455_v34 }
0x23e8   : > { %v4458_v6 = vsel %vm1429_vm13, %v7861_v0, 0.0  ;;  %v7863_v62 = vpop.eup %7862 }
0x23e9   : > { %4459 = vadd.xlane.f32.xlu1 %v4458_v6  ;;  %v4449_v37 = vsel %vm1429_vm13, %v7863_v62, 0.0 }
0x23f3   : > { %4492 = vrot.lane.b32.xlu0 %v9678_v40, %s8465_s18 }
0x23ff   : > { %4511 = vrot.lane.b32.xlu2 %v4377_v22, %s8465_s18 }
0x2402   : > { %4530 = vrot.lane.b32.xlu1 %v4401_v56, %s8465_s18  ;;  %v7280_v56 = vld [vmem:[%s10321_s6 + $0x60] sm:$0xff] }
0x2407   : > { %4473 = vrot.lane.b32.xlu2 %v9669_v48, %s8465_s18 }
0x241d   : > { %4450 = vadd.xlane.f32.xlu0 %v4449_v37  ;;  %v7274_v37 = vld [vmem:[%s10236_s12 + $0x50] sm:$0xff] }
0x2452   : > { %v4454_v2 = vpop.xlane.xlu0 %4453 }
0x2453   : > { %7864 = vrcp.f32 %v4454_v2  ;;  %v7654_v2 = vld [vmem:[%s10233_s9 + $0x5] ss:$0 sm:$0xff] }
0x2459   : > { %v7865_v40 = vpop.eup %7864 }
0x245a   : > { %v4457_v54 = vpop.xlane.xlu2 %4456  ;;  %v4466_v3 = vmul.f32 %v7865_v40, %v7857_v59 }
0x245b   : > { %7866 = vrcp.f32 %v4457_v54 }
0x245c   : > { %v4460_v60 = vpop.xlane.xlu1 %4459  ;;  %v4470_v8 = vpack.c.bf16 %v4466_v3, %v4466_v3 }
0x245d   : > { %7868 = vrcp.f32 %v4460_v60 }
0x2461   : > { %v7867_v18 = vpop.eup %7866 }
0x2462   : > { %v4467_v25 = vmul.f32 %v7867_v18, %v7859_v5  ;;  %v4512_v22 = vpop.permute.xlu2 %4511 }
0x2463   : > { %4524 = vmatpush.bf16.msrb.mxu3 %v4512_v22  ;;  %v7869_v57 = vpop.eup %7868 }
0x2464   : > { %v4471_v58 = vpack.c.bf16 %v4467_v25, %v4467_v25  ;;  %v4468_v1 = vmul.f32 %v7869_v57, %v7861_v0 }
0x2465   : > { %v4493_v48 = vpop.permute.xlu0 %4492 }
0x2466   : > { %4505 = vmatpush.bf16.msrb.mxu2 %v4493_v48  ;;  %7007 = vmatmul.msk.bf16.vlgmr.msrb.gmra.mxu3 %vm1429_vm13, %v4471_v58  ;;  %v4472_v52 = vpack.c.bf16 %v4468_v1, %v4468_v1 }
0x2469   : > { %7006 = vmatmul.msk.bf16.vlgmr.msrb.gmra.mxu2 %vm1429_vm13, %v4470_v8 }
0x246a   : > { %v4474_v4 = vpop.permute.xlu2 %4473 }
0x246b   : > { %4486 = vmatpush.bf16.msra.mxu1 %v4474_v4 }
0x246f   : > { %4591 = vmatpush.bf16.msrb.mxu1 %v7273_v33 }
0x2473   : > { %4592 = vmatpush.bf16.msrb.mxu1 %v7272_v27 }
0x2474   : > { %v4531_v9 = vpop.permute.xlu1 %4530 }
0x2475   : > { %4543 = vmatpush.bf16.msrb.mxu0 %v4531_v9 }
0x2478   : > { %7008 = vmatmul.msk.bf16.vlgmr.msrb.gmra.mxu0 %vm1429_vm13, %v4472_v52 }
0x2479   : > { %4790 = vmatpush.bf16.msra.mxu0 %v7281_v7 }
0x247d   : > { %4791 = vmatpush.bf16.msra.mxu0 %v7280_v56 }
0x2488   : > { %7073 = vmatmul.msk.bf16.vlgmr.msra.gmra.mxu0 %vm885_vm0, %v4765_v16  ;;  %v7653_v16 = vld [vmem:[#allocation12 + $0x6] ss:$0 sm:$0xff] }
0x2490   : > { %v4451_v13 = vpop.xlane.xlu0 %4450 }
0x2491   : > { %7870 = vrcp.f32 %v4451_v13 }
0x2497   : > { %v7871_v61 = vpop.eup %7870 }
0x2498   : > { %v4465_v23 = vmul.f32 %v7871_v61, %v7863_v62  ;;  %v7275_v62 = vld [vmem:[%s10236_s12 + $0x58] sm:$0xff] }
0x2499   : > { %4671 = vmatpush.bf16.msra.mxu2 %v7275_v62 }
0x249a   : > { %v4469_v17 = vpack.c.bf16 %v4465_v23, %v4465_v23 }
0x249c   : > { %7005 = vmatmul.msk.bf16.vlgmr.msra.gmra.mxu1 %vm1429_vm13, %v4469_v17 }
0x249d   : > { %4672 = vmatpush.bf16.msra.mxu2 %v7274_v37 }
0x24e9   : > { %v4526_v24 = vpop.f32.mrf.mxu3 }
0x24ea   : > { %4554 = vrot.lane.b32.xlu2 %v4526_v24, %s8469_s28 }
0x24ec   : > { %v4507_v12 = vpop.f32.mrf.mxu2 }
0x24ed   : > { %4550 = vrot.lane.b32.xlu1 %v4507_v12, %s10266_s0 }
0x24f1   : > { %v4528_v15 = vpop.f32.mrf.mxu3 }
0x24f4   : > { %v4509_v30 = vpop.f32.mrf.mxu2 }
0x24f5   : > { %v4545_v19 = vpop.f32.mrf.mxu0 }
0x24f6   : > { %4558 = vrot.lane.b32.xlu1 %v4545_v19, %s8471_s4 }
0x24fd   : > { %v4547_v32 = vpop.f32.mrf.mxu0 }
0x2505   : > { %v4793_v20 = vpop.f32.mrf.mxu0 }
0x2506   : > { %v4794_v29 = vadd.f32 %v7653_v16, %v4793_v20  ;;  %v7279_v20 = vld [vmem:[%s10238_s14 + $0xb8] sm:$0xff] }
0x2507   : > { %4728 = vmatpush.bf16.msra.mxu3 %v7279_v20 }
0x2508   : > { %v4818_v31 = vpack.c.bf16 %v4794_v29, %v4794_v29 }
0x250a   : > { %v4828_v10 = vunpack.c.l.b16 %v4818_v31 }
0x250d   : > { %v4795_v45 = vpop.f32.mrf.mxu0 }
0x250e   : > { %v4796_v50 = vadd.f32 %v7653_v16, %v4795_v45  ;;  %v7278_v16 = vld [vmem:[%s10238_s14 + $0xb0] sm:$0xff]  ;;  %v7276_v45 = vld [vmem:[%s10238_s14 + $0xa0] sm:$0xff] }
0x250f   : > { %4729 = vmatpush.bf16.msra.mxu3 %v7278_v16 }
0x2510   : > { %v4819_v49 = vpack.c.bf16 %v4796_v50, %v4796_v50  ;;  %v7578_v38 = vpack.i.bf16 %v4796_v50, %v4794_v29  ;;  %v7277_v29 = vld [vmem:[%s10238_s14 + $0xa8] sm:$0xff] }
0x2512   : > { %v4829_v21 = vunpack.c.l.b16 %v4819_v49  ;;  %7579 = vrot.lane.b32.xlu0 %v7578_v38, %s8466_s13 }
0x2513   : > { %4730 = vmatpush.bf16.msra.mxu3 %v7277_v29 }
0x2514   : > { %v9719_v51 = vpack.c.b16 %v4829_v21, %v4828_v10 }
0x2517   : > { %4731 = vmatpush.bf16.msra.mxu3 %v7276_v45 }
0x2519   : > { %v4488_v41 = vpop.f32.mrf.mxu1 }
0x251a   : > { %7584 = vrot.lane.b32.xlu0 %v7578_v38, %s8467_s15 }
0x2521   : > { %v4490_v46 = vpop.f32.mrf.mxu1 }
0x2544   : > { %v4555_v53 = vpop.permute.xlu2 %4554 }
0x255f   : > { %v4551_v36 = vpop.permute.xlu1 %4550 }
0x2560   : > { %v4561_v28 = vsel %vm1082_vm11, %v4488_v41, %v4551_v36 }
0x2561   : > { %v4562_v59 = vsel %vm1429_vm13, %v4561_v28, %v4555_v53 }
0x2568   : > { %v4559_v35 = vpop.permute.xlu1 %4558 }
0x2569   : > { %v4563_v42 = vsel %vm1432_vm14, %v4562_v59, %v4559_v35  ;;  %v7655_v59 = vld [vmem:[#allocation14 + $0x5] ss:$0 sm:$0xff] }
0x256a   : > { %v4569_v11 = vpack.c.bf16 %v4563_v42, %v4563_v42  ;;  %v7656_v42 = vld [vmem:[#allocation15 + $0x5] ss:$0 sm:$0xff] }
0x256c   : > { %7021 = vmatmul.msk.bf16.vlgmr.msrb.gmra.mxu1 %vm885_vm0, %v4569_v11 }
0x2584   : > { %v7580_v44 = vpop.permute.xlu0 %7579 }
0x2585   : > { %v7582_v5 = vunpack.i.h.bf16 %v7580_v44  ;;  %v7581_v34 = vunpack.i.l.bf16 %v7580_v44 }
0x2587   : > { %v4821_v0 = vpack.c.bf16 %v7582_v5, %v7582_v5  ;;  %v4820_v6 = vpack.c.bf16 %v7581_v34, %v7581_v34 }
0x2589   : > { %v4856_v43 = vunpack.c.l.b16 %v4821_v0  ;;  %v4855_v63 = vunpack.c.l.b16 %v4820_v6 }
0x258b   : > { %v9732_v39 = vpack.c.b16 %v4856_v43, %v4855_v63  ;;  %v7657_v43 = vld [vmem:[#allocation17 + $0x5] ss:$0 sm:$0xff] }
0x258c   : > { %v7585_v3 = vpop.permute.xlu0 %7584 }
0x258d   : > { %4858 = vrot.lane.b32.xlu0 %v9732_v39, %s8465_s18  ;;  %v7587_v17 = vunpack.i.h.bf16 %v7585_v3  ;;  %v7586_v24 = vunpack.i.l.bf16 %v7585_v3 }
0x258f   : > { %v4823_v12 = vpack.c.bf16 %v7587_v17, %v7587_v17  ;;  %v4822_v15 = vpack.c.bf16 %v7586_v24, %v7586_v24 }
0x2591   : > { %v4883_v30 = vunpack.c.l.b16 %v4823_v12  ;;  %v4882_v19 = vunpack.c.l.b16 %v4822_v15 }
0x2593   : > { %v9761_v32 = vpack.c.b16 %v4883_v30, %v4882_v19 }
0x25e9   : > { %v4594_v54 = vpop.f32.mrf.mxu1 }
0x25ea   : > { %v4598_v40 = vadd.f32 %v4594_v54, %v9436_v26 }
0x25ec   : > { %v9746_v18 = vadd.f32 %v7654_v2, %v4598_v40 }
0x25ee   : > { %v4609_v25 = vsel %vm885_vm0, %v9746_v18, 0.0 }
0x25ef   : > { %4610 = vadd.xlane.f32.xlu2 %v4609_v25 }
0x25f1   : > { %v4596_v22 = vpop.f32.mrf.mxu1 }
0x25ff   : > { %v4859_v58 = vpop.permute.xlu0 %4858 }
0x2600   : > { %v4864_v48 = vsel %vm1082_vm11, %v4859_v58, 0 }
0x2601   : > { %4873 = vmatpush.bf16.xpose.msrb.mxu2 %v4864_v48 }
0x2607   : > { %7589 = vrot.lane.b32.xlu2 %v7578_v38, %s8468_s20 }
0x2662   : > { %v4611_v60 = vpop.xlane.xlu2 %4610 }
0x2663   : > { %v4612_v8 = vmul.f32 %v4611_v60, %v8840_v14 }
0x2665   : > { %v4613_v4 = vsub.f32 %v9746_v18, %v4612_v8 }
0x2667   : > { %v4614_v26 = vmul.f32 %v4613_v4, %v4613_v4 }
0x2669   : > { %v4615_v57 = vsel %vm885_vm0, %v4614_v26, 0.0 }
0x266a   : > { %4616 = vadd.xlane.f32.xlu1 %v4615_v57  ;;  %v7590_v1 = vpop.permute.xlu2 %7589 }
0x266b   : > { %v7592_v7 = vunpack.i.h.bf16 %v7590_v1  ;;  %v7591_v9 = vunpack.i.l.bf16 %v7590_v1 }
0x266d   : > { %v4825_v52 = vpack.c.bf16 %v7592_v7, %v7592_v7  ;;  %v4824_v56 = vpack.c.bf16 %v7591_v9, %v7591_v9 }
0x266f   : > { %v4910_v13 = vunpack.c.l.b16 %v4825_v52  ;;  %v4909_v61 = vunpack.c.l.b16 %v4824_v56 }
0x2671   : > { %v9755_v23 = vpack.c.b16 %v4910_v13, %v4909_v61 }
0x2673   : > { %4912 = vrot.lane.b32.xlu0 %v9755_v23, %s8465_s18 }
0x267b   : > { %4831 = vrot.lane.b32.xlu0 %v9719_v51, %s8465_s18 }
0x2683   : > { %4885 = vrot.lane.b32.xlu1 %v9761_v32, %s8465_s18 }
0x26dd   : > { %v4617_v31 = vpop.xlane.xlu1 %4616 }
0x26de   : > { %v4618_v50 = vmul.f32 %v4617_v31, %v8840_v14 }
0x26e0   : > { %v4619_v49 = vadd.f32 1e-06, %v4618_v50 }
0x26e2   : > { %7872 = vrsqrt.f32 %v4619_v49  ;;  %vm4626_vm10 = vweird.f32 %v4619_v49 }
0x26e5   : > { %v4913_v38 = vpop.permute.xlu0 %4912 }
0x26e6   : > { %v4918_v10 = vsel %vm1082_vm11, %v4913_v38, 0 }
0x26e7   : > { %4927 = vmatpush.bf16.xpose.msrb.mxu0 %v4918_v10 }
0x26e8   : > { %v7873_v21 = vpop.eup %7872 }
0x26e9   : > { %v4621_v41 = vmul.f32 %v7873_v21, %v4619_v49  ;;  %vm4627_vm9 = vweird.f32 %v7873_v21 }
0x26ea   : > { %vm4628_vm15 = vmor %vm4626_vm10, %vm4627_vm9 }
0x26eb   : > { %v4622_v46 = vmul.f32 %v7873_v21, %v4621_v41 }
0x26ed   : > { %v4623_v33 = vmul.f32 0.5, %v4622_v46  ;;  %v4832_v27 = vpop.permute.xlu0 %4831 }
0x26ee   : > { %v4837_v36 = vsel %vm1082_vm11, %v4832_v27, 0  ;;  %7077 = vmatmul.msk.bf16.vlgmr.msrb.gmra.mxu0 %vm1082_vm11, %v9755_v23 }
0x26ef   : > { %v4624_v28 = vsub.f32 1.5, %v4623_v33  ;;  %4846 = vmatpush.bf16.xpose.msra.mxu1 %v4837_v36 }
0x26f1   : > { %v4625_v53 = vmul.f32 %v7873_v21, %v4624_v28 }
0x26f3   : > { %v4629_v35 = vsel %vm4628_vm15, %v7873_v21, %v4625_v53 }
0x26f4   : > { %v4630_v11 = vmul.f32 %v4629_v35, %v4613_v4 }
0x26f5   : > { %v4886_v44 = vpop.permute.xlu1 %4885 }
0x26f6   : > { %v4634_v5 = vmul.f32 %v7655_v59, %v4630_v11  ;;  %v4891_v34 = vsel %vm1082_vm11, %v4886_v44, 0  ;;  %7074 = vmatmul.msk.bf16.vlgmr.msra.gmra.mxu1 %vm1082_vm11, %v9719_v51 }
0x26f7   : > { %4900 = vmatpush.bf16.xpose.msrb.mxu3 %v4891_v34 }
0x26f8   : > { %v4638_v0 = vadd.f32 %v7656_v42, %v4634_v5 }
0x26fa   : > { %v4644_v6 = vpack.c.bf16 %v4638_v0, %v4638_v0 }
0x26fc   : > { %7035 = vmatmul.msk.bf16.vlgmr.msra.gmra.mxu2 %vm885_vm0, %v4644_v6 }
0x270c   : > { %7075 = vmatmul.msk.bf16.vlgmr.msrb.gmra.mxu2 %vm1082_vm11, %v9732_v39 }
0x276b   : > { %v4929_v48 = vpop.f32.mrf.mxu0 }
0x276c   : > { %v4940_v27 = vmul.f32 0.35355338, %v4929_v48 }
0x276e   : > { %v4960_v59 = vsel %vm1429_vm13, %v4940_v27, -inf }
0x2773   : > { %v4931_v56 = vpop.f32.mrf.mxu0  ;;  %v4848_v49 = vpop.f32.mrf.mxu1 }
0x2774   : > { %v4941_v13 = vmul.f32 0.35355338, %v4931_v56  ;;  %v4934_v10 = vmul.f32 0.35355338, %v4848_v49 }
0x2776   : > { %v4963_v61 = vsel %vm1429_vm13, %v4941_v13, -inf  ;;  %v4942_v33 = vsel %vm1429_vm13, %v4934_v10, -inf }
0x277b   : > { %v4850_v42 = vpop.f32.mrf.mxu1 }
0x277c   : > { %v4935_v44 = vmul.f32 0.35355338, %v4850_v42 }
0x277e   : > { %v4945_v5 = vsel %vm1429_vm13, %v4935_v44, -inf }
0x277f   : > { %v4674_v63 = vpop.f32.mrf.mxu2 }
0x2780   : > { %v4675_v62 = vadd.f32 %v7657_v43, %v4674_v63 }
0x2782   : > { %v4679_v37 = vmul.f32 0.044715, %v4675_v62  ;;  %v4678_v4 = vmul.f32 0.5, %v4675_v62 }
0x2784   : > { %v4680_v2 = vmul.f32 %v4679_v37, %v4675_v62 }
0x2786   : > { %v4681_v54 = vmul.f32 %v4680_v2, %v4675_v62 }
0x2787   : > { %v4676_v40 = vpop.f32.mrf.mxu2 }
0x2788   : > { %v4682_v25 = vadd.f32 %v4681_v54, %v4675_v62 }
0x278a   : > { %v4683_v22 = vmul.f32 0.7978846, %v4682_v25 }
0x278c   : > { %7874 = vtanh.f32 %v4683_v22 }
0x278f   : > { %v4875_v3 = vpop.f32.mrf.mxu2 }
0x2790   : > { %v4936_v58 = vmul.f32 0.35355338, %v4875_v3 }
0x2792   : > { %v7875_v60 = vpop.eup %7874  ;;  %v4948_v8 = vsel %vm1429_vm13, %v4936_v58, -inf }
0x2793   : > { %v4685_v26 = vadd.f32 1.0, %v7875_v60  ;;  %4949 = vmax.xlane.f32.xlu2 %v4948_v8 }
0x2795   : > { %v4686_v57 = vmul.f32 %v4685_v26, %v4678_v4 }
0x2797   : > { %v4696_v1 = vpack.c.bf16 %v4686_v57, %v4686_v57  ;;  %v4877_v7 = vpop.f32.mrf.mxu2 }
0x2798   : > { %v4937_v9 = vmul.f32 0.35355338, %v4877_v7 }
0x2799   : > { %7060 = vmatmul.msk.bf16.vlgmr.msra.gmra.mxu3 %vm1622_vm6, %v4696_v1 }
0x279a   : > { %v4951_v52 = vsel %vm1429_vm13, %v4937_v9, -inf }
0x279b   : > { %4952 = vmax.xlane.f32.xlu0 %v4951_v52  ;;  %v7658_v52 = vld [vmem:[#allocation18 + $0x5] ss:$0 sm:$0xff] }
0x27a3   : > { %4964 = vmax.xlane.f32.xlu0 %v4963_v61 }
0x27a9   : > { %7076 = vmatmul.msk.bf16.vlgmr.msrb.gmra.mxu3 %vm1082_vm11, %v9761_v32 }
0x2806   : > { %v4950_v17 = vpop.xlane.xlu2 %4949 }
0x2807   : > { %v4968_v24 = vsub.f32 %v4936_v58, %v4950_v17 }
0x2809   : > { %v4978_v12 = vmul.f32 1.442695, %v4968_v24 }
0x280b   : > { %7876 = vpow2.f32 %v4978_v12 }
0x280e   : > { %v4953_v16 = vpop.xlane.xlu0 %4952 }
0x280f   : > { %v4969_v31 = vsub.f32 %v4937_v9, %v4953_v16 }
0x2811   : > { %v9794_v15 = vpop.eup %7876  ;;  %v4980_v38 = vmul.f32 1.442695, %v4969_v31 }
0x2812   : > { %v4996_v30 = vsel %vm1429_vm13, %v9794_v15, 0.0 }
0x2813   : > { %4997 = vadd.xlane.f32.xlu0 %v4996_v30  ;;  %7878 = vpow2.f32 %v4980_v38 }
0x2816   : > { %v4965_v36 = vpop.xlane.xlu0 %4964 }
0x2817   : > { %v4973_v53 = vsub.f32 %v4941_v13, %v4965_v36 }
0x2819   : > { %v9803_v28 = vpop.eup %7878  ;;  %v4988_v11 = vmul.f32 1.442695, %v4973_v53 }
0x281a   : > { %v4999_v35 = vsel %vm1429_vm13, %v9803_v28, 0.0 }
0x281b   : > { %7880 = vpow2.f32 %v4988_v11 }
0x281c   : > { %v9798_v19 = vpop.f32.mrf.mxu3 }
0x2821   : > { %v9809_v34 = vpop.eup %7880 }
0x2822   : > { %v5011_v0 = vsel %vm1429_vm13, %v9809_v34, 0.0 }
0x2824   : > { %v4735_v20 = vpop.f32.mrf.mxu3 }
0x282c   : > { %v4902_v29 = vpop.f32.mrf.mxu3 }
0x282d   : > { %v4938_v45 = vmul.f32 0.35355338, %v4902_v29 }
0x282f   : > { %v4954_v50 = vsel %vm1429_vm13, %v4938_v45, -inf }
0x2830   : > { %4955 = vmax.xlane.f32.xlu1 %v4954_v50 }
0x2834   : > { %v4904_v21 = vpop.f32.mrf.mxu3 }
0x2835   : > { %v4939_v41 = vmul.f32 0.35355338, %v4904_v21 }
0x2837   : > { %v4957_v46 = vsel %vm1429_vm13, %v4939_v41, -inf }
0x2838   : > { %4958 = vmax.xlane.f32.xlu2 %v4957_v46  ;;  %4943 = vmax.xlane.f32.xlu1 %v4942_v33 }
0x2840   : > { %4961 = vmax.xlane.f32.xlu2 %v4960_v59  ;;  %5000 = vadd.xlane.f32.xlu1 %v4999_v35 }
0x2848   : > { %4946 = vmax.xlane.f32.xlu2 %v4945_v5 }
0x2850   : > { %5012 = vadd.xlane.f32.xlu2 %v5011_v0 }
0x2886   : > { %v4998_v12 = vpop.xlane.xlu0 %4997 }
0x28a3   : > { %v4956_v6 = vpop.xlane.xlu1 %4955 }
0x28a4   : > { %v4970_v43 = vsub.f32 %v4938_v45, %v4956_v6 }
0x28a6   : > { %v4982_v63 = vmul.f32 1.442695, %v4970_v43 }
0x28a8   : > { %7882 = vpow2.f32 %v4982_v63 }
0x28ab   : > { %v4959_v62 = vpop.xlane.xlu2 %4958  ;;  %v4944_v4 = vpop.xlane.xlu1 %4943 }
0x28ac   : > { %v4971_v37 = vsub.f32 %v4939_v41, %v4959_v62  ;;  %v4966_v26 = vsub.f32 %v4934_v10, %v4944_v4 }
0x28ae   : > { %v9813_v2 = vpop.eup %7882  ;;  %v4984_v54 = vmul.f32 1.442695, %v4971_v37  ;;  %v4974_v57 = vmul.f32 1.442695, %v4966_v26 }
0x28af   : > { %v5002_v40 = vsel %vm1429_vm13, %v9813_v2, 0.0 }
0x28b0   : > { %7884 = vpow2.f32 %v4984_v54  ;;  %5003 = vadd.xlane.f32.xlu2 %v5002_v40 }
0x28b3   : > { %v4962_v25 = vpop.xlane.xlu2 %4961  ;;  %v5001_v24 = vpop.xlane.xlu1 %5000 }
0x28b4   : > { %v4972_v22 = vsub.f32 %v4940_v27, %v4962_v25 }
0x28b6   : > { %v9817_v3 = vpop.eup %7884  ;;  %v4986_v58 = vmul.f32 1.442695, %v4972_v22 }
0x28b7   : > { %v5005_v48 = vsel %vm1429_vm13, %v9817_v3, 0.0 }
0x28b8   : > { %7886 = vpow2.f32 %v4986_v58  ;;  %5006 = vadd.xlane.f32.xlu0 %v5005_v48 }
0x28b9   : > { %7888 = vpow2.f32 %v4974_v57 }
0x28bb   : > { %v4947_v1 = vpop.xlane.xlu2 %4946 }
0x28bc   : > { %v4967_v7 = vsub.f32 %v4935_v44, %v4947_v1 }
0x28be   : > { %v7887_v60 = vpop.eup %7886  ;;  %v4976_v56 = vmul.f32 1.442695, %v4967_v7 }
0x28bf   : > { %v5008_v8 = vsel %vm1429_vm13, %v7887_v60, 0.0  ;;  %v9830_v9 = vpop.eup %7888 }
0x28c0   : > { %5009 = vadd.xlane.f32.xlu1 %v5008_v8  ;;  %7890 = vpow2.f32 %v4976_v56 }
0x28c1   : > { %7892 = vrcp.f32 %v5001_v24 }
0x28c2   : > { %7894 = vrcp.f32 %v4998_v12  ;;  %v7290_v12 = vld [vmem:[%s10321_s6 + $0x70] sm:$0xff] }
0x28c6   : > { %v9840_v13 = vpop.eup %7890 }
0x28c7   : > { %v4993_v61 = vsel %vm1429_vm13, %v9840_v13, 0.0 }
0x28c8   : > { %5118 = vrot.lane.b32.xlu2 %v9755_v23, %s8472_s22  ;;  %v4737_v23 = vadd.f32 %v9798_v19, %v9746_v18  ;;  %v5013_v18 = vpop.xlane.xlu2 %5012  ;;  %v7893_v19 = vpop.eup %7892 }
0x28c9   : > { %7896 = vrcp.f32 %v5013_v18  ;;  %v7895_v20 = vpop.eup %7894  ;;  %v5025_v31 = vmul.f32 %v7893_v19, %v9803_v28 }
0x28ca   : > { %v5024_v49 = vmul.f32 %v7895_v20, %v9794_v15 }
0x28cb   : > { %v5033_v10 = vpack.c.bf16 %v5025_v31, %v5025_v31 }
0x28cc   : > { %5068 = vrot.lane.b32.xlu0 %v9732_v39, %s8472_s22  ;;  %v4990_v39 = vsel %vm1429_vm13, %v9830_v9, 0.0  ;;  %v5032_v41 = vpack.c.bf16 %v5024_v49, %v5024_v49 }
0x28cd   : > { %v5066_v27 = vunpack.c.l.b16 %v5033_v10 }
0x28ce   : > { %v5065_v59 = vunpack.c.l.b16 %v5032_v41 }
0x28cf   : > { %v7897_v45 = vpop.eup %7896 }
0x28d0   : > { %5043 = vrot.lane.b32.xlu2 %v9719_v51, %s8472_s22  ;;  %v9836_v51 = vadd.f32 %v7658_v52, %v4737_v23  ;;  %v5029_v38 = vmul.f32 %v7897_v45, %v9809_v34  ;;  %v5067_v44 = vpack.c.b16 %v5066_v27, %v5065_v59 }
0x28d2   : > { %v5037_v46 = vpack.c.bf16 %v5029_v38, %v5029_v38  ;;  %v7659_v38 = vld [vmem:[#allocation9 + $0x7] ss:$0 sm:$0xff] }
0x28d4   : > { %v5116_v28 = vunpack.c.l.b16 %v5037_v46 }
0x28d9   : > { %5093 = vrot.lane.b32.xlu1 %v9761_v32, %s8472_s22  ;;  %v5392_v32 = vsel %vm885_vm0, %v9836_v51, 0.0 }
0x28f6   : > { %4991 = vadd.xlane.f32.xlu0 %v4990_v39 }
0x28fe   : > { %5393 = vadd.xlane.f32.xlu0 %v5392_v32 }
0x2903   : > { %4994 = vadd.xlane.f32.xlu1 %v4993_v61 }
0x2923   : > { %v5004_v17 = vpop.xlane.xlu2 %5003 }
0x292b   : > { %v5119_v30 = vpop.permute.xlu2 %5118  ;;  %v5007_v50 = vpop.xlane.xlu0 %5006 }
0x292c   : > { %5131 = vmatpush.bf16.msra.mxu0 %v5119_v30 }
0x2933   : > { %v5010_v16 = vpop.xlane.xlu1 %5009  ;;  %v5044_v29 = vpop.permute.xlu2 %5043 }
0x2934   : > { %7898 = vrcp.f32 %v5010_v16  ;;  %5056 = vmatpush.bf16.msrb.mxu1 %v5044_v29 }
0x2935   : > { %7900 = vrcp.f32 %v5007_v50 }
0x2936   : > { %7902 = vrcp.f32 %v5004_v17 }
0x293a   : > { %v7899_v21 = vpop.eup %7898 }
0x293b   : > { %v5028_v33 = vmul.f32 %v7899_v21, %v7887_v60  ;;  %v7901_v53 = vpop.eup %7900  ;;  %v7660_v21 = vld [vmem:[#allocation11 + $0x7] ss:$0 sm:$0xff] }
0x293c   : > { %v7903_v11 = vpop.eup %7902  ;;  %v5027_v15 = vmul.f32 %v7901_v53, %v9817_v3  ;;  %v7282_v53 = vld [vmem:[%s10322_s8 + $0x60] sm:$0xff] }
0x293d   : > { %v5036_v36 = vpack.c.bf16 %v5028_v33, %v5028_v33  ;;  %v5026_v34 = vmul.f32 %v7903_v11, %v9813_v2 }
0x293e   : > { %v5069_v35 = vpop.permute.xlu0 %5068  ;;  %v5035_v0 = vpack.c.bf16 %v5027_v15, %v5027_v15 }
0x293f   : > { %v5115_v42 = vunpack.c.l.b16 %v5036_v36  ;;  %5081 = vmatpush.bf16.msra.mxu2 %v5069_v35  ;;  %v5034_v6 = vpack.c.bf16 %v5026_v34, %v5026_v34  ;;  %v7283_v36 = vld [vmem:[%s10322_s8 + $0x68] sm:$0xff] }
0x2940   : > { %v5091_v43 = vunpack.c.l.b16 %v5035_v0  ;;  %5195 = vmatpush.bf16.msra.mxu1 %v7283_v36 }
0x2941   : > { %v5117_v5 = vpack.c.b16 %v5116_v28, %v5115_v42  ;;  %v5090_v63 = vunpack.c.l.b16 %v5034_v6 }
0x2942   : > { %7079 = vmatmul.msk.bf16.vlgmr.msra.gmra.mxu2 %vm1429_vm13, %v5067_v44 }
0x2943   : > { %7081 = vmatmul.msk.bf16.vlgmr.msra.gmra.mxu0 %vm1429_vm13, %v5117_v5  ;;  %v5092_v37 = vpack.c.b16 %v5091_v43, %v5090_v63 }
0x2944   : > { %5196 = vmatpush.bf16.msra.mxu1 %v7282_v53 }
0x294b   : > { %v5094_v62 = vpop.permute.xlu1 %5093 }
0x294c   : > { %5106 = vmatpush.bf16.msra.mxu3 %v5094_v62 }
0x294f   : > { %7080 = vmatmul.msk.bf16.vlgmr.msra.gmra.mxu3 %vm1429_vm13, %v5092_v37 }
0x2969   : > { %v4992_v54 = vpop.xlane.xlu0 %4991 }
0x296a   : > { %7904 = vrcp.f32 %v4992_v54 }
0x2970   : > { %v7905_v58 = vpop.eup %7904 }
0x2971   : > { %v5394_v40 = vpop.xlane.xlu0 %5393  ;;  %v5022_v60 = vmul.f32 %v7905_v58, %v9830_v9 }
0x2972   : > { %v5395_v25 = vmul.f32 %v5394_v40, %v8840_v14 }
0x2973   : > { %v5030_v4 = vpack.c.bf16 %v5022_v60, %v5022_v60 }
0x2974   : > { %v5396_v22 = vsub.f32 %v9836_v51, %v5395_v25 }
0x2975   : > { %v5040_v1 = vunpack.c.l.b16 %v5030_v4 }
0x2976   : > { %v4995_v3 = vpop.xlane.xlu1 %4994  ;;  %v5397_v2 = vmul.f32 %v5396_v22, %v5396_v22 }
0x2977   : > { %7906 = vrcp.f32 %v4995_v3 }
0x2978   : > { %v5398_v48 = vsel %vm885_vm0, %v5397_v2, 0.0  ;;  %v7662_v2 = vld [vmem:[%s10233_s9 + $0x6] ss:$0 sm:$0xff] }
0x2979   : > { %5399 = vadd.xlane.f32.xlu0 %v5398_v48 }
0x297d   : > { %v7907_v8 = vpop.eup %7906 }
0x297e   : > { %v5023_v26 = vmul.f32 %v7907_v8, %v9840_v13  ;;  %v7291_v13 = vld [vmem:[%s10321_s6 + $0x78] sm:$0xff] }
0x297f   : > { %5454 = vmatpush.bf16.msrb.mxu0 %v7291_v13 }
0x2980   : > { %v5031_v57 = vpack.c.bf16 %v5023_v26, %v5023_v26 }
0x2982   : > { %v5041_v7 = vunpack.c.l.b16 %v5031_v57 }
0x2983   : > { %5455 = vmatpush.bf16.msrb.mxu0 %v7290_v12 }
0x2984   : > { %v5042_v23 = vpack.c.b16 %v5041_v7, %v5040_v1  ;;  %v7661_v7 = vld [vmem:[#allocation12 + $0x7] ss:$0 sm:$0xff] }
0x2986   : > { %7078 = vmatmul.msk.bf16.vlgmr.msrb.gmra.mxu1 %vm1429_vm13, %v5042_v23 }
0x29c0   : > { %v5133_v61 = vpop.f32.mrf.mxu0 }
0x29c5   : > { %v5083_v52 = vpop.f32.mrf.mxu2 }
0x29c8   : > { %v5135_v9 = vpop.f32.mrf.mxu0 }
0x29c9   : > { %v7603_v24 = vpack.i.bf16 %v5135_v9, %v5133_v61 }
0x29cd   : > { %v5085_v56 = vpop.f32.mrf.mxu2 }
0x29ce   : > { %v7593_v39 = vpack.i.bf16 %v5085_v56, %v5083_v52 }
0x29d0   : > { %7594 = vrot.lane.b32.xlu2 %v7593_v39, %s10266_s0 }
0x29d2   : > { %v5108_v32 = vpop.f32.mrf.mxu3 }
0x29da   : > { %v5110_v18 = vpop.f32.mrf.mxu3 }
0x29db   : > { %v7598_v17 = vpack.i.bf16 %v5110_v18, %v5108_v32 }
0x29dd   : > { %7599 = vrot.lane.b32.xlu2 %v7598_v17, %s8469_s28 }
0x29e5   : > { %7604 = vrot.lane.b32.xlu2 %v7603_v24, %s8471_s4  ;;  %v7285_v24 = vld [vmem:[%s10236_s12 + $0x68] sm:$0xff] }
0x29e6   : > { %5302 = vmatpush.bf16.msrb.mxu2 %v7285_v24 }
0x29ec   : > { %v5400_v30 = vpop.xlane.xlu0 %5399 }
0x29ed   : > { %v5401_v19 = vmul.f32 %v5400_v30, %v8840_v14 }
0x29ef   : > { %v5402_v20 = vadd.f32 1e-06, %v5401_v19  ;;  %v7284_v19 = vld [vmem:[%s10236_s12 + $0x60] sm:$0xff] }
0x29f0   : > { %5303 = vmatpush.bf16.msrb.mxu2 %v7284_v19 }
0x29f1   : > { %7908 = vrsqrt.f32 %v5402_v20  ;;  %vm5409_vm2 = vweird.f32 %v5402_v20 }
0x29f7   : > { %v7909_v16 = vpop.eup %7908 }
0x29f8   : > { %v5404_v29 = vmul.f32 %v7909_v16, %v5402_v20  ;;  %vm5410_vm1 = vweird.f32 %v7909_v16 }
0x29f9   : > { %vm5411_vm3 = vmor %vm5409_vm2, %vm5410_vm1 }
0x29fa   : > { %v5405_v45 = vmul.f32 %v7909_v16, %v5404_v29  ;;  %v7289_v29 = vld [vmem:[%s10238_s14 + $0xd8] sm:$0xff] }
0x29fb   : > { %5369 = vmatpush.bf16.msrb.mxu3 %v7289_v29 }
0x29fc   : > { %v5406_v31 = vmul.f32 0.5, %v5405_v45 }
0x29fe   : > { %v5407_v50 = vsub.f32 1.5, %v5406_v31 }
0x2a00   : > { %v5408_v49 = vmul.f32 %v7909_v16, %v5407_v50 }
0x2a02   : > { %v5412_v10 = vsel %vm5411_vm3, %v7909_v16, %v5408_v49  ;;  %v7288_v49 = vld [vmem:[%s10238_s14 + $0xd0] sm:$0xff] }
0x2a03   : > { %v5413_v41 = vmul.f32 %v5412_v10, %v5396_v22  ;;  %v5058_v35 = vpop.f32.mrf.mxu1  ;;  %5370 = vmatpush.bf16.msrb.mxu3 %v7288_v49 }
0x2a05   : > { %v5417_v46 = vmul.f32 %v7659_v38, %v5413_v41 }
0x2a07   : > { %v5421_v33 = vadd.f32 %v7660_v21, %v5417_v46  ;;  %v7287_v21 = vld [vmem:[%s10238_s14 + $0xc8] sm:$0xff] }
0x2a08   : > { %5371 = vmatpush.bf16.msrb.mxu3 %v7287_v21 }
0x2a09   : > { %v5429_v27 = vpack.c.bf16 %v5421_v33, %v5421_v33 }
0x2a0b   : > { %7146 = vmatmul.msk.bf16.vlgmr.msrb.gmra.mxu0 %vm885_vm0, %v5429_v27  ;;  %v5060_v5 = vpop.f32.mrf.mxu1 }
0x2a2a   : > { %v7595_v59 = vpop.permute.xlu2 %7594 }
0x2a2b   : > { %v7597_v42 = vunpack.i.h.bf16 %v7595_v59  ;;  %v7596_v11 = vunpack.i.l.bf16 %v7595_v59 }
0x2a2d   : > { %v5162_v0 = vsel %vm1082_vm11, %v5058_v35, %v7596_v11  ;;  %v5163_v6 = vsel %vm1082_vm11, %v5060_v5, %v7597_v42 }
0x2a37   : > { %v7600_v28 = vpop.permute.xlu2 %7599 }
0x2a38   : > { %v7602_v44 = vunpack.i.h.bf16 %v7600_v28  ;;  %v7601_v15 = vunpack.i.l.bf16 %v7600_v28 }
0x2a3a   : > { %v5164_v62 = vsel %vm1429_vm13, %v5162_v0, %v7601_v15  ;;  %v5165_v37 = vsel %vm1429_vm13, %v5163_v6, %v7602_v44  ;;  %v7663_v44 = vld [vmem:[#allocation14 + $0x6] ss:$0 sm:$0xff] }
0x2a3f   : > { %v7605_v34 = vpop.permute.xlu2 %7604 }
0x2a40   : > { %v7607_v43 = vunpack.i.h.bf16 %v7605_v34  ;;  %v7606_v63 = vunpack.i.l.bf16 %v7605_v34 }
0x2a42   : > { %v5166_v54 = vsel %vm1432_vm14, %v5164_v62, %v7606_v63  ;;  %v5167_v40 = vsel %vm1432_vm14, %v5165_v37, %v7607_v43 }
0x2a43   : > { %v5173_v25 = vpack.c.bf16 %v5167_v40, %v5166_v54  ;;  %v7664_v54 = vld [vmem:[#allocation15 + $0x6] ss:$0 sm:$0xff] }
0x2a45   : > { %7094 = vmatmul.msk.bf16.vlgmr.msra.gmra.mxu1 %vm885_vm0, %v5173_v25 }
0x2a88   : > { %v5457_v22 = vpop.f32.mrf.mxu0 }
0x2a89   : > { %v9895_v23 = vadd.f32 %v7661_v7, %v5457_v22 }
0x2a8b   : > { %v5471_v22 = vpack.c.bf16 %v9895_v23, %v9895_v23 }
0x2a90   : > { %v5459_v3 = vpop.f32.mrf.mxu0 }
0x2ac2   : > { %v5198_v58 = vpop.f32.mrf.mxu1 }
0x2ac3   : > { %v5203_v48 = vadd.f32 %v5198_v58, %v9632_v47 }
0x2ac5   : > { %v9886_v60 = vadd.f32 %v7662_v2, %v5203_v48 }
0x2ac7   : > { %v5216_v8 = vsel %vm885_vm0, %v9886_v60, 0.0 }
0x2ac8   : > { %5217 = vadd.xlane.f32.xlu2 %v5216_v8 }
0x2aca   : > { %v5200_v4 = vpop.f32.mrf.mxu1 }
0x2acb   : > { %v5204_v26 = vadd.f32 %v5200_v4, %v9637_v55  ;;  %v5476_v4 = vunpack.c.l.b16 %v5471_v22 }
0x2acd   : > { %v9891_v57 = vadd.f32 %v7662_v2, %v5204_v26  ;;  %v9944_v7 = vpack.c.b16 %v5476_v4, %v5476_v4 }
0x2acf   : > { %v5219_v1 = vsel %vm885_vm0, %v9891_v57, 0.0 }
0x2ad0   : > { %5220 = vadd.xlane.f32.xlu1 %v5219_v1 }
0x2ae0   : > { %5468 = vrot.lane.b32.xlu2 %v9895_v23, %s8468_s20  ;;  %s10326_s20 = sand.u32 1, %s8608_s29  }
0x2b3b   : > { %v5218_v47 = vpop.xlane.xlu2 %5217 }
0x2b3c   : > { %v5222_v52 = vmul.f32 %v5218_v47, %v8840_v14 }
0x2b3e   : > { %v5224_v56 = vsub.f32 %v9886_v60, %v5222_v52 }
0x2b40   : > { %v5226_v39 = vmul.f32 %v5224_v56, %v5224_v56 }
0x2b42   : > { %v5228_v55 = vsel %vm885_vm0, %v5226_v39, 0.0 }
0x2b43   : > { %5229 = vadd.xlane.f32.xlu1 %v5228_v55  ;;  %v5221_v32 = vpop.xlane.xlu1 %5220  ;;  %v5469_v42 = vpop.permute.xlu2 %5468 }
0x2b44   : > { %v5223_v61 = vmul.f32 %v5221_v32, %v8840_v14  ;;  %v5474_v43 = vpack.c.bf16 %v5469_v42, %v5469_v42 }
0x2b46   : > { %v5225_v18 = vsub.f32 %v9891_v57, %v5223_v61  ;;  %v5548_v2 = vunpack.c.l.b16 %v5474_v43 }
0x2b48   : > { %v5227_v17 = vmul.f32 %v5225_v18, %v5225_v18  ;;  %v9939_v26 = vpack.c.b16 %v5548_v2, %v5548_v2 }
0x2b4a   : > { %v5231_v9 = vsel %vm885_vm0, %v5227_v17, 0.0  ;;  %v7665_v17 = vld [vmem:[#allocation17 + $0x6] ss:$0 sm:$0xff] }
0x2b4b   : > { %5232 = vadd.xlane.f32.xlu0 %v5231_v9 }
0x2b5c   : > { %5462 = vrot.lane.b32.xlu1 %v9895_v23, %s8466_s13  ;;  %s8325_s13 = scalar_lea.hbm %s10325_s10, 16 }
0x2b5f   : > { %5465 = vrot.lane.b32.xlu0 %v9895_v23, %s8467_s15  ;;  %v7286_v23 = vld [vmem:[%s10238_s14 + $0xc0] sm:$0xff] }
0x2b60   : > { %5372 = vmatpush.bf16.msrb.mxu3 %v7286_v23 }
0x2bb6   : > { %v5230_v13 = vpop.xlane.xlu1 %5229 }
0x2bb7   : > { %v5234_v12 = vmul.f32 %v5230_v13, %v8840_v14 }
0x2bb9   : > { %v5236_v30 = vadd.f32 1e-06, %v5234_v12 }
0x2bbb   : > { %7910 = vrsqrt.f32 %v5236_v30  ;;  %vm5244_vm5 = vweird.f32 %v5236_v30 }
0x2bbe   : > { %v5233_v20 = vpop.xlane.xlu0 %5232 }
0x2bbf   : > { %v5235_v16 = vmul.f32 %v5233_v20, %v8840_v14 }
0x2bc1   : > { %v7911_v45 = vpop.eup %7910  ;;  %v5237_v31 = vadd.f32 1e-06, %v5235_v16 }
0x2bc2   : > { %v5239_v50 = vmul.f32 %v7911_v45, %v5236_v30  ;;  %vm5245_vm4 = vweird.f32 %v7911_v45 }
0x2bc3   : > { %7912 = vrsqrt.f32 %v5237_v31  ;;  %vm5246_vm7 = vmor %vm5244_vm5, %vm5245_vm4  ;;  %vm5254_vm9 = vweird.f32 %v5237_v31 }
0x2bc4   : > { %v5240_v38 = vmul.f32 %v7911_v45, %v5239_v50 }
0x2bc6   : > { %v5241_v10 = vmul.f32 0.5, %v5240_v38 }
0x2bc8   : > { %v5242_v41 = vsub.f32 1.5, %v5241_v10 }
0x2bc9   : > { %v7913_v46 = vpop.eup %7912 }
0x2bca   : > { %v5243_v33 = vmul.f32 %v7911_v45, %v5242_v41  ;;  %v5249_v27 = vmul.f32 %v7913_v46, %v5237_v31  ;;  %vm5255_vm8 = vweird.f32 %v7913_v46 }
0x2bcb   : > { %vm5256_vm10 = vmor %vm5254_vm9, %vm5255_vm8 }
0x2bcc   : > { %v5250_v36 = vmul.f32 %v7913_v46, %v5249_v27  ;;  %v5247_v53 = vsel %vm5246_vm7, %v7911_v45, %v5243_v33 }
0x2bcd   : > { %v5258_v15 = vmul.f32 %v5247_v53, %v5224_v56 }
0x2bce   : > { %v5251_v59 = vmul.f32 0.5, %v5250_v36  ;;  %v5463_v35 = vpop.permute.xlu1 %5462 }
0x2bcf   : > { %v5472_v28 = vpack.c.bf16 %v5463_v35, %v5463_v35  ;;  %v5263_v40 = vmul.f32 %v7663_v44, %v5258_v15 }
0x2bd0   : > { %v5252_v11 = vsub.f32 1.5, %v5251_v59 }
0x2bd1   : > { %v5500_v5 = vunpack.c.l.b16 %v5472_v28  ;;  %v5466_v34 = vpop.permute.xlu0 %5465  ;;  %v5268_v48 = vadd.f32 %v7664_v54, %v5263_v40 }
0x2bd2   : > { %v5253_v0 = vmul.f32 %v7913_v46, %v5252_v11  ;;  %v9926_v6 = vpack.c.bf16 %v5466_v34, %v5466_v34 }
0x2bd3   : > { %v9928_v63 = vpack.c.b16 %v5500_v5, %v5500_v5 }
0x2bd4   : > { %v5257_v62 = vsel %vm5256_vm10, %v7913_v46, %v5253_v0  ;;  %v5524_v37 = vunpack.c.l.b16 %v9926_v6 }
0x2bd5   : > { %v5259_v25 = vmul.f32 %v5257_v62, %v5225_v18  ;;  %5502 = vrot.lane.b32.xlu0 %v9928_v63, %s8465_s18 }
0x2bd6   : > { %v9935_v3 = vpack.c.b16 %v5524_v37, %v5524_v37 }
0x2bd7   : > { %v5264_v58 = vmul.f32 %v7663_v44, %v5259_v25 }
0x2bd8   : > { %5526 = vrot.lane.b32.xlu1 %v9935_v3, %s8465_s18 }
0x2bd9   : > { %v5269_v8 = vadd.f32 %v7664_v54, %v5264_v58 }
0x2bdb   : > { %v5275_v1 = vpack.c.bf16 %v5269_v8, %v5268_v48 }
0x2bdd   : > { %5550 = vrot.lane.b32.xlu0 %v9939_v26, %s8465_s18  ;;  %7108 = vmatmul.msk.bf16.vlgmr.msrb.gmra.mxu2 %vm885_vm0, %v5275_v1 }
0x2be0   : > { %5478 = vrot.lane.b32.xlu1 %v9944_v7, %s8465_s18  ;;  %s9969_s18 = scalar_lea.vmem [#allocation20], %s6629_s17  ;;  %s10150_s17 = scalar_lea.sflag [#allocation22], %s10326_s20 }
0x2c47   : > { %v5503_v47 = vpop.permute.xlu0 %5502 }
0x2c48   : > { %v5508_v52 = vsel %vm1082_vm11, %v5503_v47, 0 }
0x2c49   : > { %5517 = vmatpush.bf16.xpose.msra.mxu2 %v5508_v52 }
0x2c4a   : > { %v5527_v56 = vpop.permute.xlu1 %5526 }
0x2c4b   : > { %v5532_v39 = vsel %vm1082_vm11, %v5527_v56, 0 }
0x2c4c   : > { %5541 = vmatpush.bf16.xpose.msra.mxu3 %v5532_v39 }
0x2c4f   : > { %v5551_v55 = vpop.permute.xlu0 %5550 }
0x2c50   : > { %v5556_v32 = vsel %vm1082_vm11, %v5551_v55, 0  ;;  %7148 = vmatmul.msk.bf16.vlgmr.msra.gmra.mxu2 %vm1082_vm11, %v5472_v28 }
0x2c51   : > { %5565 = vmatpush.bf16.xpose.msra.mxu0 %v5556_v32 }
0x2c52   : > { %v5479_v61 = vpop.permute.xlu1 %5478 }
0x2c53   : > { %v5484_v18 = vsel %vm1082_vm11, %v5479_v61, 0 }
0x2c54   : > { %5493 = vmatpush.bf16.xpose.msrb.mxu1 %v5484_v18 }
0x2c58   : > { %7150 = vmatmul.msk.bf16.vlgmr.msra.gmra.mxu0 %vm1082_vm11, %v5474_v43 }
0x2c5b   : > { %7147 = vmatmul.msk.bf16.vlgmr.msrb.gmra.mxu1 %vm1082_vm11, %v5471_v22 }
0x2c60   : > { %v5305_v9 = vpop.f32.mrf.mxu2 }
0x2c61   : > { %v5306_v24 = vadd.f32 %v7665_v17, %v5305_v9 }
0x2c63   : > { %v5312_v13 = vmul.f32 0.044715, %v5306_v24  ;;  %v5310_v46 = vmul.f32 0.5, %v5306_v24 }
0x2c65   : > { %v5314_v12 = vmul.f32 %v5312_v13, %v5306_v24 }
0x2c67   : > { %v5316_v30 = vmul.f32 %v5314_v12, %v5306_v24 }
0x2c68   : > { %v5307_v19 = vpop.f32.mrf.mxu2 }
0x2c69   : > { %v5318_v20 = vadd.f32 %v5316_v30, %v5306_v24  ;;  %v5308_v16 = vadd.f32 %v7665_v17, %v5307_v19 }
0x2c6b   : > { %v5313_v29 = vmul.f32 0.044715, %v5308_v16  ;;  %v5320_v45 = vmul.f32 0.7978846, %v5318_v20  ;;  %v5311_v33 = vmul.f32 0.5, %v5308_v16 }
0x2c6d   : > { %v5315_v31 = vmul.f32 %v5313_v29, %v5308_v16  ;;  %7914 = vtanh.f32 %v5320_v45 }
0x2c6f   : > { %v5317_v50 = vmul.f32 %v5315_v31, %v5308_v16 }
0x2c71   : > { %v5319_v49 = vadd.f32 %v5317_v50, %v5308_v16 }
0x2c73   : > { %v5321_v38 = vmul.f32 0.7978846, %v5319_v49  ;;  %v7915_v10 = vpop.eup %7914 }
0x2c74   : > { %v5324_v21 = vadd.f32 1.0, %v7915_v10 }
0x2c75   : > { %7916 = vtanh.f32 %v5321_v38 }
0x2c76   : > { %v5326_v36 = vmul.f32 %v5324_v21, %v5310_v46 }
0x2c7b   : > { %v7917_v41 = vpop.eup %7916 }
0x2c7c   : > { %v5325_v27 = vadd.f32 1.0, %v7917_v41 }
0x2c7e   : > { %v5327_v53 = vmul.f32 %v5325_v27, %v5311_v33 }
0x2c80   : > { %v5337_v59 = vpack.c.bf16 %v5327_v53, %v5326_v36 }
0x2c82   : > { %7133 = vmatmul.msk.bf16.vlgmr.msrb.gmra.mxu3 %vm1622_vm6, %v5337_v59 }
0x2c92   : > { %7149 = vmatmul.msk.bf16.vlgmr.msra.gmra.mxu3 %vm1082_vm11, %v9926_v6  ;;  %v7666_v6 = vld [vmem:[#allocation18 + $0x6] ss:$0 sm:$0xff] }
0x2cd3   : > { %v5519_v35 = vpop.f32.mrf.mxu2 }
0x2cd4   : > { %v5572_v28 = vmul.f32 0.35355338, %v5519_v35 }
0x2cd5   : > { %v5567_v42 = vpop.f32.mrf.mxu0 }
0x2cd6   : > { %v5574_v11 = vmul.f32 0.35355338, %v5567_v42  ;;  %v5578_v44 = vsel %vm1082_vm11, %v5572_v28, -inf }
0x2cd7   : > { %5579 = vmax.xlane.f32.xlu0 %v5578_v44 }
0x2cd8   : > { %v5495_v15 = vpop.f32.mrf.mxu1  ;;  %v5584_v5 = vsel %vm1082_vm11, %v5574_v11, -inf }
0x2cd9   : > { %5585 = vmax.xlane.f32.xlu2 %v5584_v5  ;;  %v5571_v34 = vmul.f32 0.35355338, %v5495_v15 }
0x2cdb   : > { %v5521_v0 = vpop.f32.mrf.mxu2  ;;  %v5575_v62 = vsel %vm1082_vm11, %v5571_v34, -inf }
0x2cdd   : > { %v5569_v43 = vpop.f32.mrf.mxu0 }
0x2cdf   : > { %5576 = vmax.xlane.f32.xlu0 %v5575_v62 }
0x2ce0   : > { %v5497_v37 = vpop.f32.mrf.mxu1 }
0x2d05   : > { %v5374_v54 = vpop.f32.mrf.mxu3 }
0x2d06   : > { %v5379_v40 = vadd.f32 %v5374_v54, %v9886_v60 }
0x2d08   : > { %v9965_v25 = vadd.f32 %v7666_v6, %v5379_v40  ;;  %v7293_v40 = vld [vmem:[%s10322_s8 + $0x78] sm:$0xff] }
0x2d0a   : > { %5902 = vst.msk [vmem:[%s9969_s18] sm:$0xff] %vm885_vm0, %v9965_v25 }
0x2d0d   : > { %v5376_v22 = vpop.f32.mrf.mxu3 }
0x2d0e   : > { %v5380_v2 = vadd.f32 %v5376_v22, %v9891_v57  ;;  %v7292_v22 = vld [vmem:[%s10322_s8 + $0x70] sm:$0xff] }
0x2d10   : > { %v9975_v58 = vadd.f32 %v7666_v6, %v5380_v2 }
0x2d12   : > { %5903 = vst.msk [vmem:[%s9969_s18 + $0x8] sm:$0xff] %vm885_vm0, %v9975_v58  ;;  %v5905_v60 = vpack.c.bf16 %v9975_v58, %v9965_v25 }
0x2d15   : > { %v5543_v48 = vpop.f32.mrf.mxu3 }
0x2d16   : > { %v5573_v8 = vmul.f32 0.35355338, %v5543_v48 }
0x2d18   : > { %v5581_v4 = vsel %vm1082_vm11, %v5573_v8, -inf }
0x2d19   : > { %5582 = vmax.xlane.f32.xlu1 %v5581_v4 }
0x2d1d   : > { %v5545_v1 = vpop.f32.mrf.mxu3 }
0x2d4a   : > { %v5580_v23 = vpop.xlane.xlu0 %5579 }
0x2d4b   : > { %v5588_v47 = vsub.f32 %v5572_v28, %v5580_v23 }
0x2d4c   : > { %v5586_v52 = vpop.xlane.xlu2 %5585 }
0x2d4d   : > { %v5593_v56 = vmul.f32 1.442695, %v5588_v47  ;;  %v5590_v39 = vsub.f32 %v5574_v11, %v5586_v52  ;;  %v7667_v52 = vld [vmem:[%s10233_s9 + $0x7] ss:$0 sm:$0xff] }
0x2d4f   : > { %7918 = vpow2.f32 %v5593_v56  ;;  %v5597_v57 = vmul.f32 1.442695, %v5590_v39 }
0x2d51   : > { %7920 = vpow2.f32 %v5597_v57 }
0x2d52   : > { %v5577_v17 = vpop.xlane.xlu0 %5576 }
0x2d53   : > { %v5587_v9 = vsub.f32 %v5571_v34, %v5577_v17 }
0x2d55   : > { %v7919_v55 = vpop.eup %7918  ;;  %v5591_v24 = vmul.f32 1.442695, %v5587_v9 }
0x2d56   : > { %v5602_v32 = vsel %vm1082_vm11, %v7919_v55, 0.0 }
0x2d57   : > { %v7921_v61 = vpop.eup %7920  ;;  %5603 = vadd.xlane.f32.xlu1 %v5602_v32  ;;  %7922 = vpow2.f32 %v5591_v24 }
0x2d58   : > { %v5608_v18 = vsel %vm1082_vm11, %v7921_v61, 0.0 }
0x2d59   : > { %5609 = vadd.xlane.f32.xlu0 %v5608_v18 }
0x2d5d   : > { %v7923_v19 = vpop.eup %7922 }
0x2d5e   : > { %v5599_v20 = vsel %vm1082_vm11, %v7923_v19, 0.0 }
0x2d6d   : > { %5686 = vrot.lane.b32.xlu0 %v9939_v26, %s8472_s22 }
0x2d70   : > { %5644 = vrot.lane.b32.xlu1 %v9928_v63, %s8472_s22 }
0x2d78   : > { %5623 = vrot.lane.b32.xlu1 %v9944_v7, %s8472_s22 }
0x2d8c   : > { %v5583_v13 = vpop.xlane.xlu1 %5582 }
0x2d8d   : > { %v5589_v12 = vsub.f32 %v5573_v8, %v5583_v13  ;;  %v7295_v13 = vld [vmem:[%s10236_s12 + $0x78] sm:$0xff] }
0x2d8f   : > { %v5595_v30 = vmul.f32 1.442695, %v5589_v12 }
0x2d91   : > { %7924 = vpow2.f32 %v5595_v30 }
0x2d97   : > { %v7925_v16 = vpop.eup %7924  ;;  %5600 = vadd.xlane.f32.xlu0 %v5599_v20 }
0x2d98   : > { %v5605_v26 = vsel %vm1082_vm11, %v7925_v16, 0.0 }
0x2d99   : > { %5606 = vadd.xlane.f32.xlu2 %v5605_v26 }
0x2db1   : > { %5665 = vrot.lane.b32.xlu2 %v9935_v3, %s8472_s22  ;;  %s8319_s22 = sshra.s32 %s6308_s5, 4  ;;  %s8320_s22 = int_to_ptr.hbm [resolvable:$true] %s8319_s22 }
0x2db2   : > { %s8321_s19 = scalar_lea.hbm %s8320_s22, 8  ;;  %p8326_p12 = scmp.lt.s32.totalorder %s8320_s22, %s10325_s10 }
0x2db3   : > { %p8322_p10 = scmp.ne.s32.totalorder %s8320_s22, %s8321_s19  ;;  %p8327_p3 = scmp.lt.s32.totalorder %s8325_s13, %s8321_s19 }
0x2db5   : > { %p8323_p6 = pnand %p8322_p10, %p8669_p0  ;;  %p8328_p8 = por %p8327_p3, %p8326_p12 }
0x2db7   : > { %p8324_p11 = pneg %p8323_p6 }
0x2db9   : > { %p8329_p9 = pnand %p8328_p8, %p8324_p11 }
0x2dca   : > { %v5604_v7 = vpop.xlane.xlu1 %5603 }
0x2dcc   : > { %v5610_v63 = vpop.xlane.xlu0 %5609 }
0x2dcd   : > { %7926 = vrcp.f32 %v5610_v63 }
0x2dce   : > { %7928 = vrcp.f32 %v5604_v7 }
0x2dd3   : > { %v7927_v29 = vpop.eup %7926 }
0x2dd4   : > { %v7929_v45 = vpop.eup %7928  ;;  %v5618_v31 = vmul.f32 %v7927_v29, %v7921_v61 }
0x2dd5   : > { %v5616_v38 = vmul.f32 %v7929_v45, %v7919_v55  ;;  %v7668_v45 = vld [vmem:[#allocation14 + $0x7] ss:$0 sm:$0xff] }
0x2dd6   : > { %v5622_v10 = vpack.c.bf16 %v5618_v31, %v5618_v31 }
0x2dd7   : > { %v5620_v3 = vpack.c.bf16 %v5616_v38, %v5616_v38 }
0x2ddf   : > { %v5687_v50 = vpop.permute.xlu0 %5686 }
0x2de0   : > { %v5692_v49 = vsel %vm1295_vm12, %v5687_v50, 0  ;;  %v7669_v50 = vld [vmem:[#allocation15 + $0x7] ss:$0 sm:$0xff] }
0x2de1   : > { %5701 = vmatpush.bf16.msrb.mxu0 %v5692_v49 }
0x2de2   : > { %v5645_v21 = vpop.permute.xlu1 %5644 }
0x2de3   : > { %v5650_v41 = vsel %vm1295_vm12, %v5645_v21, 0 }
0x2de4   : > { %5659 = vmatpush.bf16.msrb.mxu2 %v5650_v41  ;;  %7154 = vmatmul.msk.bf16.vlgmr.msrb.gmra.mxu0 %vm1082_vm11, %v5622_v10  ;;  %v7298_v41 = vld [vmem:[%s10238_s14 + $0xf0] sm:$0xff] }
0x2de7   : > { %7152 = vmatmul.msk.bf16.vlgmr.msrb.gmra.mxu2 %vm1082_vm11, %v5620_v3  ;;  %v7297_v3 = vld [vmem:[%s10238_s14 + $0xe8] sm:$0xff] }
0x2de8   : > { %5829 = vmatpush.bf16.msra.mxu2 %v7295_v13 }
0x2dea   : > { %v5624_v46 = vpop.permute.xlu1 %5623 }
0x2deb   : > { %v5629_v33 = vsel %vm1295_vm12, %v5624_v46, 0  ;;  %v7296_v46 = vld [vmem:[%s10238_s14 + $0xe0] sm:$0xff] }
0x2dec   : > { %5638 = vmatpush.bf16.msra.mxu1 %v5629_v33  ;;  %v7670_v33 = vld [vmem:[#allocation17 + $0x7] ss:$0 sm:$0xff] }
0x2df0   : > { %5749 = vmatpush.bf16.msrb.mxu1 %v7293_v40 }
0x2df4   : > { %5750 = vmatpush.bf16.msrb.mxu1 %v7292_v22 }
0x2e0a   : > { %v5601_v27 = vpop.xlane.xlu0 %5600 }
0x2e0b   : > { %7930 = vrcp.f32 %v5601_v27 }
0x2e0c   : > { %v5607_v36 = vpop.xlane.xlu2 %5606 }
0x2e0d   : > { %7932 = vrcp.f32 %v5607_v36 }
0x2e11   : > { %v7931_v53 = vpop.eup %7930 }
0x2e12   : > { %v5615_v59 = vmul.f32 %v7931_v53, %v7923_v19 }
0x2e13   : > { %v7933_v35 = vpop.eup %7932 }
0x2e14   : > { %v5619_v28 = vpack.c.bf16 %v5615_v59, %v5615_v59  ;;  %v5617_v42 = vmul.f32 %v7933_v35, %v7925_v16  ;;  %v5666_v11 = vpop.permute.xlu2 %5665 }
0x2e15   : > { %v5671_v44 = vsel %vm1295_vm12, %v5666_v11, 0 }
0x2e16   : > { %v5621_v15 = vpack.c.bf16 %v5617_v42, %v5617_v42  ;;  %7151 = vmatmul.msk.bf16.vlgmr.msra.gmra.mxu1 %vm1082_vm11, %v5619_v28  ;;  %5680 = vmatpush.bf16.msrb.mxu3 %v5671_v44 }
0x2e19   : > { %7153 = vmatmul.msk.bf16.vlgmr.msrb.gmra.mxu3 %vm1082_vm11, %v5621_v15 }
0x2e61   : > { %v5703_v5 = vpop.f32.mrf.mxu0 }
0x2e69   : > { %v5705_v34 = vpop.f32.mrf.mxu0 }
0x2e6a   : > { %v5661_v0 = vpop.f32.mrf.mxu2 }
0x2e6b   : > { %5708 = vrot.lane.b32.xlu2 %v5661_v0, %s10266_s0 }
0x2e72   : > { %v5663_v43 = vpop.f32.mrf.mxu2 }
0x2e73   : > { %5716 = vrot.lane.b32.xlu2 %v5703_v5, %s8471_s4  ;;  %v7671_v43 = vld [vmem:[#allocation18 + $0x7] ss:$0 sm:$0xff] }
0x2e93   : > { %v5640_v62 = vpop.f32.mrf.mxu1 }
0x2e9b   : > { %v5642_v37 = vpop.f32.mrf.mxu1 }
0x2e9c   : > { %v5682_v6 = vpop.f32.mrf.mxu3 }
0x2e9d   : > { %5712 = vrot.lane.b32.xlu1 %v5682_v6, %s8469_s28  ;;  %s5938_s28 = sld [smem:[#allocation2]] }
0x2ea4   : > { %v5684_v54 = vpop.f32.mrf.mxu3 }
0x2ec5   : > { %v5709_v2 = vpop.permute.xlu2 %5708 }
0x2ec6   : > { %v5719_v48 = vsel %vm1082_vm11, %v5640_v62, %v5709_v2  ;;  %v5939_v2 = vlaneseq }
0x2ecd   : > { %v5717_v4 = vpop.permute.xlu2 %5716 }
0x2f0f   : > { %v5713_v8 = vpop.permute.xlu1 %5712 }
0x2f10   : > { %v5720_v1 = vsel %vm1429_vm13, %v5719_v48, %v5713_v8  ;;  %v10055_v48 = vand.u32 127, %v5939_v2 }
0x2f11   : > { %v5721_v23 = vsel %vm1432_vm14, %v5720_v1, %v5717_v4  ;;  %v10058_v4 = vstv %s5938_s28 }
0x2f12   : > { %v5727_v47 = vpack.c.bf16 %v5721_v23, %v5721_v23  ;;  %vm5948_vm14 = vcmp.lt.s32.totalorder %v10055_v48, 8  ;;  %vm5966_vm1 = vcmp.eq.s32.totalorder %v10055_v48, 8 }
0x2f14   : > { %7167 = vmatmul.msk.bf16.vlgmr.msrb.gmra.mxu1 %vm885_vm0, %v5727_v47 }
0x2f91   : > { %v5752_v56 = vpop.f32.mrf.mxu1 }
0x2f92   : > { %v5756_v39 = vadd.f32 %v5752_v56, %v9836_v51  ;;  %v7294_v51 = vld [vmem:[%s10236_s12 + $0x70] sm:$0xff] }
0x2f93   : > { %5830 = vmatpush.bf16.msra.mxu2 %v7294_v51 }
0x2f94   : > { %v5762_v57 = vadd.f32 %v7667_v52, %v5756_v39 }
0x2f96   : > { %v5767_v55 = vsel %vm885_vm0, %v5762_v57, 0.0 }
0x2f97   : > { %5768 = vadd.xlane.f32.xlu1 %v5767_v55 }
0x2f99   : > { %v5754_v32 = vpop.f32.mrf.mxu1 }
0x300a   : > { %v5769_v61 = vpop.xlane.xlu1 %5768 }
0x300b   : > { %v5770_v18 = vmul.f32 %v5769_v61, %v8840_v14 }
0x300d   : > { %v5771_v17 = vsub.f32 %v5762_v57, %v5770_v18 }
0x300f   : > { %v5772_v9 = vmul.f32 %v5771_v17, %v5771_v17 }
0x3011   : > { %v5773_v24 = vsel %vm885_vm0, %v5772_v9, 0.0 }
0x3012   : > { %5774 = vadd.xlane.f32.xlu2 %v5773_v24 }
0x3085   : > { %v5775_v12 = vpop.xlane.xlu2 %5774 }
0x3086   : > { %v5776_v30 = vmul.f32 %v5775_v12, %v8840_v14  ;;  %v7299_v14 = vld [vmem:[%s10238_s14 + $0xf8] sm:$0xff] }
0x3087   : > { %5886 = vmatpush.bf16.msra.mxu3 %v7299_v14  ;;  %v8473_v14 = vmov -3.1780539  }
0x3088   : > { %v5777_v19 = vadd.f32 1e-06, %v5776_v30 }
0x308a   : > { %7934 = vrsqrt.f32 %v5777_v19  ;;  %vm5784_vm12 = vweird.f32 %v5777_v19 }
0x308b   : > { %5887 = vmatpush.bf16.msra.mxu3 %v7298_v41 }
0x308f   : > { %5888 = vmatpush.bf16.msra.mxu3 %v7297_v3 }
0x3090   : > { %v7935_v20 = vpop.eup %7934 }
0x3091   : > { %v5779_v16 = vmul.f32 %v7935_v20, %v5777_v19  ;;  %vm5785_vm11 = vweird.f32 %v7935_v20 }
0x3092   : > { %vm5786_vm13 = vmor %vm5784_vm12, %vm5785_vm11 }
0x3093   : > { %v5780_v26 = vmul.f32 %v7935_v20, %v5779_v16  ;;  %5889 = vmatpush.bf16.msra.mxu3 %v7296_v46  ;;  %v5940_v16 = vshrl.u32 %v5939_v2, 7 }
0x3095   : > { %v5781_v63 = vmul.f32 0.5, %v5780_v26 }
0x3097   : > { %v5782_v7 = vsub.f32 1.5, %v5781_v63 }
0x3099   : > { %v5783_v29 = vmul.f32 %v7935_v20, %v5782_v7 }
0x309b   : > { %v5787_v31 = vsel %vm5786_vm13, %v7935_v20, %v5783_v29 }
0x309c   : > { %v5788_v49 = vmul.f32 %v5787_v31, %v5771_v17 }
0x309e   : > { %v5792_v38 = vmul.f32 %v7668_v45, %v5788_v49  ;;  %v10076_v45 = vadd.s32 16, %v5940_v16 }
0x30a0   : > { %v5796_v10 = vadd.f32 %v7669_v50, %v5792_v38  ;;  %vm5958_vm15 = vcmp.le.s32.totalorder %v10076_v45, 16 }
0x30a2   : > { %v5802_v21 = vpack.c.bf16 %v5796_v10, %v5796_v10 }
0x30a4   : > { %7181 = vmatmul.msk.bf16.vlgmr.msra.gmra.mxu2 %vm885_vm0, %v5802_v21 }
0x3127   : > { %v5832_v27 = vpop.f32.mrf.mxu2 }
0x3128   : > { %v5833_v36 = vadd.f32 %v7670_v33, %v5832_v27 }
0x312a   : > { %v5837_v53 = vmul.f32 0.044715, %v5833_v36  ;;  %v5836_v15 = vmul.f32 0.5, %v5833_v36 }
0x312c   : > { %v5838_v59 = vmul.f32 %v5837_v53, %v5833_v36 }
0x312e   : > { %v5839_v35 = vmul.f32 %v5838_v59, %v5833_v36 }
0x312f   : > { %v5834_v28 = vpop.f32.mrf.mxu2 }
0x3130   : > { %v5840_v42 = vadd.f32 %v5839_v35, %v5833_v36 }
0x3132   : > { %v5841_v11 = vmul.f32 0.7978846, %v5840_v42 }
0x3134   : > { %7936 = vtanh.f32 %v5841_v11 }
0x313a   : > { %v7937_v44 = vpop.eup %7936 }
0x313b   : > { %v5843_v5 = vadd.f32 1.0, %v7937_v44 }
0x313d   : > { %v5844_v34 = vmul.f32 %v5843_v5, %v5836_v15 }
0x313f   : > { %v5854_v0 = vpack.c.bf16 %v5844_v34, %v5844_v34 }
0x3141   : > { %7206 = vmatmul.msk.bf16.vlgmr.msra.gmra.mxu3 %vm1622_vm6, %v5854_v0  ;;  %vm5959_vm6 = vcmp.le.s32.totalorder %v10055_v48, 8 }
0x3142   : > { %v5975_v56 = vsel %vm5959_vm6, %v10058_v4, -1e+30  ;;  %vm6218_vm2 = vmand %vm5958_vm15, %vm5959_vm6 }
0x31c4   : > { %v5891_v62 = vpop.f32.mrf.mxu3 }
0x31c5   : > { %v5895_v37 = vadd.f32 %v5891_v62, %v5762_v57 }
0x31c7   : > { %v5901_v6 = vadd.f32 %v7671_v43, %v5895_v37 }
0x31c9   : > { %v5907_v54 = vpack.c.bf16 0.0, %v5901_v6  ;;  %5904 = vst.msk [vmem:[%s10046_s30] sm:$0xff] %vm885_vm0, %v5901_v6 }
0x31cb   : > { %v5915_v40 = vsel %vm885_vm0, %v5907_v54, 0 }
0x31cc   : > { %v5893_v22 = vpop.f32.mrf.mxu3  ;;  %5924 = vmatpush.bf16.xpose.msra.mxu0 %v5915_v40 }
0x31d3   : > { %7207 = vmatmul.msk.bf16.vlgmr.msra.gmra.mxu0 %vm885_vm0, %v5905_v60  ;;  %vm5962_vm0 = vcmp.eq.s32.totalorder %v10076_v45, 16 }
0x31d4   : > { %v10079_v41 = vsel %vm5962_vm0, -1.0986123, %v8473_v14 }
0x3250   : > { %v5926_v8 = vpop.f32.mrf.mxu0 }
0x3251   : > { %v5935_v1 = vmul.f32 0.17677669, %v5926_v8 }
0x3253   : > { %v10062_v23 = vsel %vm5948_vm14, %v5935_v1, %v10058_v4 }
0x3254   : > { %v5973_v25 = vsel %vm5959_vm6, %v10062_v23, -1e+30 }
0x3255   : > { %5976 = vmax.xlane.f32.xlu0 %v5973_v25 }
0x3258   : > { %v5928_v58 = vpop.f32.mrf.mxu0 }
0x3259   : > { %v5936_v60 = vmul.f32 0.17677669, %v5928_v58 }
0x325b   : > { %v10068_v47 = vsel %vm5948_vm14, %v5936_v60, %v10058_v4 }
0x325c   : > { %v5974_v52 = vsel %vm5959_vm6, %v10068_v47, -1e+30 }
0x325d   : > { %5978 = vmax.xlane.f32.xlu0 %v5974_v52 }
0x3265   : > { %5980 = vmax.xlane.f32.xlu0 %v5975_v56 }
0x32c8   : > { %v5977_v39 = vpop.xlane.xlu0 %5976 }
0x32c9   : > { %v5982_v57 = vsub.f32 %v5973_v25, %v5977_v39 }
0x32cb   : > { %v5985_v55 = vmul.f32 1.442695, %v5982_v57 }
0x32cd   : > { %7938 = vpow2.f32 %v5985_v55  ;;  %v10089_v55 = vsel %vm5966_vm1, -0.4054651, %v8473_v14 }
0x32d0   : > { %v5979_v32 = vpop.xlane.xlu0 %5978 }
0x32d1   : > { %v5983_v61 = vsub.f32 %v5974_v52, %v5979_v32 }
0x32d3   : > { %v7939_v18 = vpop.eup %7938  ;;  %v5987_v17 = vmul.f32 1.442695, %v5983_v61 }
0x32d4   : > { %5991 = vadd.xlane.f32.xlu1 %v7939_v18 }
0x32d5   : > { %7940 = vpow2.f32 %v5987_v17 }
0x32d8   : > { %v5981_v9 = vpop.xlane.xlu0 %5980 }
0x32d9   : > { %v5984_v24 = vsub.f32 %v5975_v56, %v5981_v9 }
0x32db   : > { %v7941_v13 = vpop.eup %7940  ;;  %v5989_v51 = vmul.f32 1.442695, %v5984_v24 }
0x32dc   : > { %5993 = vadd.xlane.f32.xlu2 %v7941_v13 }
0x32dd   : > { %7942 = vpow2.f32 %v5989_v51 }
0x32e3   : > { %v7943_v12 = vpop.eup %7942 }
0x32e4   : > { %5995 = vadd.xlane.f32.xlu0 %v7943_v12 }
0x3347   : > { %v5992_v30 = vpop.xlane.xlu1 %5991 }
0x3348   : > { %7944 = vlog2.f32 %v5992_v30 }
0x334e   : > { %v7945_v20 = vpop.eup %7944 }
0x334f   : > { %v5994_v19 = vpop.xlane.xlu2 %5993  ;;  %v5998_v29 = vmul.f32 0.6931472, %v7945_v20 }
0x3350   : > { %7946 = vlog2.f32 %v5994_v19 }
0x3351   : > { %v6003_v50 = vadd.f32 %v5998_v29, %v5977_v39 }
0x3353   : > { %v6006_v21 = vsub.f32 -3.1780539, %v6003_v50 }
0x3355   : > { %v6009_v27 = vadd.f32 %v6006_v21, %v10062_v23 }
0x3356   : > { %v7947_v26 = vpop.eup %7946 }
0x3357   : > { %v6000_v63 = vmul.f32 0.6931472, %v7947_v26  ;;  %v5996_v7 = vpop.xlane.xlu0 %5995 }
0x3358   : > { %7948 = vlog2.f32 %v5996_v7 }
0x3359   : > { %v6004_v31 = vadd.f32 %v6000_v63, %v5979_v32 }
0x335b   : > { %v6007_v38 = vsub.f32 -3.1780539, %v6004_v31 }
0x335d   : > { %v6010_v46 = vadd.f32 %v6007_v38, %v10068_v47 }
0x335e   : > { %v7949_v49 = vpop.eup %7948 }
0x335f   : > { %v6002_v10 = vmul.f32 0.6931472, %v7949_v49  ;;  %v6021_v53 = vmax.f32 %v6009_v27, %v6010_v46 }
0x3361   : > { %v6005_v3 = vadd.f32 %v6002_v10, %v5981_v9 }
0x3363   : > { %v6008_v33 = vsub.f32 %v10079_v41, %v6005_v3 }
0x3365   : > { %v6011_v36 = vadd.f32 %v6008_v33, %v10058_v4 }
0x3367   : > { %v6020_v59 = vsel %vm5958_vm15, %v6011_v36, -1e+30 }
0x3368   : > { %v6022_v35 = vmax.f32 %v6021_v53, %v6020_v59 }
0x336a   : > { %v6023_v28 = vrot.slane %v6022_v35, 4 }
0x336c   : > { %v6024_v42 = vmax.f32 %v6022_v35, %v6023_v28 }
0x336e   : > { %v6025_v11 = vrot.slane %v6024_v42, 2 }
0x3370   : > { %v6026_v44 = vmax.f32 %v6024_v42, %v6025_v11 }
0x3372   : > { %v6027_v15 = vrot.slane %v6026_v44, 1 }
0x3374   : > { %v6028_v5 = vmax.f32 %v6026_v44, %v6027_v15 }
0x3376   : > { %v6029_v34 = vsub.f32 %v6009_v27, %v6028_v5  ;;  %v6030_v0 = vsub.f32 %v6010_v46, %v6028_v5  ;;  %v6031_v43 = vsub.f32 %v6020_v59, %v6028_v5 }
0x3378   : > { %v6032_v62 = vmul.f32 1.442695, %v6029_v34  ;;  %v6034_v37 = vmul.f32 1.442695, %v6030_v0  ;;  %v6036_v6 = vmul.f32 1.442695, %v6031_v43 }
0x337a   : > { %7950 = vpow2.f32 %v6032_v62 }
0x337b   : > { %7952 = vpow2.f32 %v6034_v37 }
0x337c   : > { %7954 = vpow2.f32 %v6036_v6 }
0x3380   : > { %v7951_v54 = vpop.eup %7950 }
0x3381   : > { %v7953_v40 = vpop.eup %7952 }
0x3382   : > { %v6038_v22 = vadd.f32 %v7953_v40, %v7951_v54  ;;  %v7955_v2 = vpop.eup %7954 }
0x3384   : > { %v6039_v8 = vadd.f32 %v7955_v2, %v6038_v22 }
0x3386   : > { %v6040_v1 = vrot.slane %v6039_v8, 4 }
0x3388   : > { %v6041_v25 = vadd.f32 %v6040_v1, %v6039_v8 }
0x338a   : > { %v6042_v58 = vrot.slane %v6041_v25, 2 }
0x338c   : > { %v6043_v60 = vadd.f32 %v6042_v58, %v6041_v25 }
0x338e   : > { %v6044_v52 = vrot.slane %v6043_v60, 1 }
0x3390   : > { %v6045_v56 = vadd.f32 %v6044_v52, %v6043_v60 }
0x3392   : > { %7956 = vlog2.f32 %v6045_v56 }
0x3398   : > { %v7957_v39 = vpop.eup %7956 }
0x3399   : > { %v6047_v57 = vmul.f32 0.6931472, %v7957_v39 }
0x339b   : > { %v6048_v32 = vadd.f32 %v6047_v57, %v6028_v5 }
0x339d   : > { %v6049_v61 = vsub.f32 %v10089_v55, %v6048_v32 }
0x339f   : > { %v6052_v18 = vadd.f32 %v6049_v61, %v10058_v4  ;;  %v6051_v17 = vadd.f32 %v6049_v61, %v10068_v47  ;;  %v6050_v9 = vadd.f32 %v6049_v61, %v10062_v23 }
0x33a1   : > { %v6055_v24 = vsel %vm5959_vm6, %v6052_v18, -1e+30  ;;  %v6054_v13 = vsel %vm5959_vm6, %v6051_v17, -1e+30  ;;  %v6053_v51 = vsel %vm5959_vm6, %v6050_v9, -1e+30 }
0x33a2   : > { %6060 = vmax.xlane.f32.xlu0 %v6055_v24  ;;  %6058 = vmax.xlane.f32.xlu2 %v6054_v13 }
0x33a3   : > { %6056 = vmax.xlane.f32.xlu1 %v6053_v51 }
0x3415   : > { %v6061_v12 = vpop.xlane.xlu0 %6060  ;;  %v6059_v30 = vpop.xlane.xlu2 %6058 }
0x3416   : > { %v6064_v19 = vsub.f32 %v6055_v24, %v6061_v12  ;;  %v6063_v20 = vsub.f32 %v6054_v13, %v6059_v30  ;;  %v6057_v16 = vpop.xlane.xlu1 %6056 }
0x3417   : > { %v6062_v26 = vsub.f32 %v6053_v51, %v6057_v16 }
0x3418   : > { %v6069_v63 = vmul.f32 1.442695, %v6064_v19  ;;  %v6067_v7 = vmul.f32 1.442695, %v6063_v20 }
0x3419   : > { %v6065_v29 = vmul.f32 1.442695, %v6062_v26 }
0x341a   : > { %7958 = vpow2.f32 %v6069_v63 }
0x341b   : > { %7960 = vpow2.f32 %v6067_v7 }
0x341c   : > { %7962 = vpow2.f32 %v6065_v29 }
0x3420   : > { %v7959_v31 = vpop.eup %7958 }
0x3421   : > { %v7961_v50 = vpop.eup %7960  ;;  %6075 = vadd.xlane.f32.xlu0 %v7959_v31 }
0x3422   : > { %v7963_v49 = vpop.eup %7962  ;;  %6073 = vadd.xlane.f32.xlu2 %v7961_v50 }
0x3423   : > { %6071 = vadd.xlane.f32.xlu1 %v7963_v49 }
0x3494   : > { %v6076_v38 = vpop.xlane.xlu0 %6075 }
0x3495   : > { %7964 = vlog2.f32 %v6076_v38  ;;  %v6074_v10 = vpop.xlane.xlu2 %6073 }
0x3496   : > { %7966 = vlog2.f32 %v6074_v10  ;;  %v6072_v21 = vpop.xlane.xlu1 %6071 }
0x3497   : > { %7968 = vlog2.f32 %v6072_v21 }
0x349b   : > { %v7965_v14 = vpop.eup %7964 }
0x349c   : > { %v7967_v3 = vpop.eup %7966  ;;  %v6082_v46 = vmul.f32 0.6931472, %v7965_v14 }
0x349d   : > { %v7969_v33 = vpop.eup %7968  ;;  %v6080_v27 = vmul.f32 0.6931472, %v7967_v3 }
0x349e   : > { %v6085_v36 = vadd.f32 %v6082_v46, %v6061_v12  ;;  %v6078_v53 = vmul.f32 0.6931472, %v7969_v33 }
0x349f   : > { %v6084_v59 = vadd.f32 %v6080_v27, %v6059_v30 }
0x34a0   : > { %v6088_v35 = vsub.f32 %v10079_v41, %v6085_v36  ;;  %v6083_v28 = vadd.f32 %v6078_v53, %v6057_v16 }
0x34a1   : > { %v6087_v42 = vsub.f32 -3.1780539, %v6084_v59 }
0x34a2   : > { %v6091_v11 = vadd.f32 %v6088_v35, %v10058_v4  ;;  %v6086_v44 = vsub.f32 -3.1780539, %v6083_v28 }
0x34a3   : > { %v6090_v15 = vadd.f32 %v6087_v42, %v10068_v47 }
0x34a4   : > { %v6089_v5 = vadd.f32 %v6086_v44, %v10062_v23  ;;  %v6094_v34 = vsel %vm5958_vm15, %v6091_v11, -1e+30 }
0x34a6   : > { %v6095_v0 = vmax.f32 %v6089_v5, %v6090_v15 }
0x34a8   : > { %v6096_v43 = vmax.f32 %v6095_v0, %v6094_v34 }
0x34aa   : > { %v6097_v62 = vrot.slane %v6096_v43, 4 }
0x34ac   : > { %v6098_v37 = vmax.f32 %v6096_v43, %v6097_v62 }
0x34ae   : > { %v6099_v6 = vrot.slane %v6098_v37, 2 }
0x34b0   : > { %v6100_v54 = vmax.f32 %v6098_v37, %v6099_v6 }
0x34b2   : > { %v6101_v40 = vrot.slane %v6100_v54, 1 }
0x34b4   : > { %v6102_v22 = vmax.f32 %v6100_v54, %v6101_v40 }
0x34b6   : > { %v6103_v2 = vsub.f32 %v6089_v5, %v6102_v22  ;;  %v6104_v8 = vsub.f32 %v6090_v15, %v6102_v22  ;;  %v6105_v1 = vsub.f32 %v6094_v34, %v6102_v22 }
0x34b8   : > { %v6106_v25 = vmul.f32 1.442695, %v6103_v2  ;;  %v6108_v58 = vmul.f32 1.442695, %v6104_v8  ;;  %v6110_v60 = vmul.f32 1.442695, %v6105_v1 }
0x34ba   : > { %7970 = vpow2.f32 %v6106_v25 }
0x34bb   : > { %7972 = vpow2.f32 %v6108_v58 }
0x34bc   : > { %7974 = vpow2.f32 %v6110_v60 }
0x34c0   : > { %v7971_v52 = vpop.eup %7970 }
0x34c1   : > { %v7973_v56 = vpop.eup %7972 }
0x34c2   : > { %v6112_v39 = vadd.f32 %v7973_v56, %v7971_v52  ;;  %v7975_v57 = vpop.eup %7974 }
0x34c4   : > { %v6113_v32 = vadd.f32 %v7975_v57, %v6112_v39 }
0x34c6   : > { %v6114_v61 = vrot.slane %v6113_v32, 4 }
0x34c8   : > { %v6115_v18 = vadd.f32 %v6114_v61, %v6113_v32 }
0x34ca   : > { %v6116_v17 = vrot.slane %v6115_v18, 2 }
0x34cc   : > { %v6117_v9 = vadd.f32 %v6116_v17, %v6115_v18  ;;  %v6213_v17 = vld [vmem:[%s8805_s7] sm:$0xff] }
0x34ce   : > { %v6118_v24 = vrot.slane %v6117_v9, 1 }
0x34d0   : > { %v6119_v13 = vadd.f32 %v6118_v24, %v6117_v9 }
0x34d2   : > { %7976 = vlog2.f32 %v6119_v13 }
0x34d8   : > { %v7977_v51 = vpop.eup %7976 }
0x34d9   : > { %v6121_v12 = vmul.f32 0.6931472, %v7977_v51 }
0x34db   : > { %v6122_v30 = vadd.f32 %v6121_v12, %v6102_v22  ;;  %v8474_v12 = vmov 0.0|0.0  }
0x34dc   : > { %5930 = vmatmul.bf16.gmra.mxu0 %v8474_v12 }
0x34dd   : > { %v6123_v19 = vsub.f32 %v10089_v55, %v6122_v30 }
0x34df   : > { %v6126_v20 = vadd.f32 %v6123_v19, %v10058_v4  ;;  %v6125_v16 = vadd.f32 %v6123_v19, %v10068_v47  ;;  %v6124_v26 = vadd.f32 %v6123_v19, %v10062_v23  ;;  %v6215_v19 = vld [vmem:[%s8805_s7 + $0x10] sm:$0xff] }
0x34e1   : > { %v6129_v63 = vsel %vm5959_vm6, %v6126_v20, -1e+30  ;;  %v6128_v7 = vsel %vm5959_vm6, %v6125_v16, -1e+30  ;;  %v6127_v29 = vsel %vm5959_vm6, %v6124_v26, -1e+30 }
0x34e2   : > { %6134 = vmax.xlane.f32.xlu0 %v6129_v63  ;;  %6132 = vmax.xlane.f32.xlu2 %v6128_v7 }
0x34e3   : > { %6130 = vmax.xlane.f32.xlu1 %v6127_v29 }
0x3555   : > { %v6135_v31 = vpop.xlane.xlu0 %6134  ;;  %v6133_v50 = vpop.xlane.xlu2 %6132 }
0x3556   : > { %v6138_v49 = vsub.f32 %v6129_v63, %v6135_v31  ;;  %v6137_v38 = vsub.f32 %v6128_v7, %v6133_v50  ;;  %v6131_v10 = vpop.xlane.xlu1 %6130 }
0x3557   : > { %v6136_v21 = vsub.f32 %v6127_v29, %v6131_v10 }
0x3558   : > { %v6143_v14 = vmul.f32 1.442695, %v6138_v49  ;;  %v6141_v3 = vmul.f32 1.442695, %v6137_v38 }
0x3559   : > { %v6139_v46 = vmul.f32 1.442695, %v6136_v21 }
0x355a   : > { %7978 = vpow2.f32 %v6143_v14  ;;  %v6219_v14 = vsub.f32 0.0, %v6213_v17 }
0x355b   : > { %7980 = vpow2.f32 %v6141_v3 }
0x355c   : > { %7982 = vpow2.f32 %v6139_v46 }
0x3560   : > { %v7979_v33 = vpop.eup %7978 }
0x3561   : > { %v7981_v27 = vpop.eup %7980  ;;  %6149 = vadd.xlane.f32.xlu0 %v7979_v33 }
0x3562   : > { %v7983_v36 = vpop.eup %7982  ;;  %6147 = vadd.xlane.f32.xlu2 %v7981_v27 }
0x3563   : > { %6145 = vadd.xlane.f32.xlu1 %v7983_v36 }
0x3569   : > { %6244 = vadd.xlane.f32.xlu0 %v6213_v17 }
0x3571   : > { %6248 = vadd.xlane.f32.xlu0 %v6215_v19 }
0x35d4   : > { %v6150_v53 = vpop.xlane.xlu0 %6149 }
0x35d5   : > { %7984 = vlog2.f32 %v6150_v53  ;;  %v6148_v59 = vpop.xlane.xlu2 %6147 }
0x35d6   : > { %7986 = vlog2.f32 %v6148_v59  ;;  %v6146_v35 = vpop.xlane.xlu1 %6145 }
0x35d7   : > { %7988 = vlog2.f32 %v6146_v35 }
0x35db   : > { %v7985_v28 = vpop.eup %7984 }
0x35dc   : > { %v7987_v42 = vpop.eup %7986  ;;  %v6156_v11 = vmul.f32 0.6931472, %v7985_v28 }
0x35dd   : > { %v7989_v44 = vpop.eup %7988  ;;  %v6154_v15 = vmul.f32 0.6931472, %v7987_v42 }
0x35de   : > { %v6159_v5 = vadd.f32 %v6156_v11, %v6135_v31  ;;  %v6152_v34 = vmul.f32 0.6931472, %v7989_v44  ;;  %v6221_v11 = vsub.f32 0.0, %v6215_v19 }
0x35df   : > { %v6158_v0 = vadd.f32 %v6154_v15, %v6133_v50  ;;  %v6214_v50 = vld [vmem:[%s8805_s7 + $0x8] sm:$0xff]  ;;  %s10137_s7 = scalar_lea.vmem [#allocation23], %s10323_s11 }
0x35e0   : > { %v6162_v43 = vsub.f32 %v10079_v41, %v6159_v5  ;;  %v6157_v62 = vadd.f32 %v6152_v34, %v6131_v10  ;;  %v6220_v38 = vsub.f32 0.0, %v6214_v50 }
0x35e1   : > { %v6161_v37 = vsub.f32 -3.1780539, %v6158_v0 }
0x35e2   : > { %v6165_v6 = vadd.f32 %v6162_v43, %v10058_v4  ;;  %v6160_v54 = vsub.f32 -3.1780539, %v6157_v62 }
0x35e3   : > { %v6164_v40 = vadd.f32 %v6161_v37, %v10068_v47 }
0x35e4   : > { %v6163_v22 = vadd.f32 %v6160_v54, %v10062_v23  ;;  %v6168_v2 = vsel %vm5958_vm15, %v6165_v6, -1e+30 }
0x35e6   : > { %v6169_v8 = vmax.f32 %v6163_v22, %v6164_v40 }
0x35e8   : > { %v6170_v1 = vmax.f32 %v6169_v8, %v6168_v2 }
0x35ea   : > { %v6171_v25 = vrot.slane %v6170_v1, 4 }
0x35ec   : > { %v6172_v58 = vmax.f32 %v6170_v1, %v6171_v25 }
0x35ee   : > { %v6173_v60 = vrot.slane %v6172_v58, 2 }
0x35f0   : > { %v6174_v52 = vmax.f32 %v6172_v58, %v6173_v60 }
0x35f2   : > { %v6175_v41 = vrot.slane %v6174_v52, 1 }
0x35f4   : > { %v6176_v56 = vmax.f32 %v6174_v52, %v6175_v41 }
0x35f6   : > { %v6177_v39 = vsub.f32 %v6163_v22, %v6176_v56  ;;  %v6178_v57 = vsub.f32 %v6164_v40, %v6176_v56  ;;  %v6179_v4 = vsub.f32 %v6168_v2, %v6176_v56 }
0x35f8   : > { %v6180_v32 = vmul.f32 1.442695, %v6177_v39  ;;  %v6182_v61 = vmul.f32 1.442695, %v6178_v57  ;;  %v6184_v47 = vmul.f32 1.442695, %v6179_v4 }
0x35fa   : > { %7990 = vpow2.f32 %v6180_v32 }
0x35fb   : > { %7992 = vpow2.f32 %v6182_v61 }
0x35fc   : > { %7994 = vpow2.f32 %v6184_v47 }
0x3600   : > { %v7991_v23 = vpop.eup %7990 }
0x3601   : > { %v7993_v18 = vpop.eup %7992 }
0x3602   : > { %v6186_v9 = vadd.f32 %v7993_v18, %v7991_v23  ;;  %v7995_v24 = vpop.eup %7994 }
0x3604   : > { %v6187_v13 = vadd.f32 %v7995_v24, %v6186_v9 }
0x3606   : > { %v6188_v51 = vrot.slane %v6187_v13, 4 }
0x3608   : > { %v6189_v30 = vadd.f32 %v6188_v51, %v6187_v13 }
0x360a   : > { %v6190_v20 = vrot.slane %v6189_v30, 2 }
0x360c   : > { %v6191_v16 = vadd.f32 %v6190_v20, %v6189_v30 }
0x360e   : > { %v6192_v26 = vrot.slane %v6191_v16, 1 }
0x3610   : > { %v6193_v63 = vadd.f32 %v6192_v26, %v6191_v16 }
0x3612   : > { %7996 = vlog2.f32 %v6193_v63 }
0x3618   : > { %v7997_v7 = vpop.eup %7996 }
0x3619   : > { %v6195_v29 = vmul.f32 0.6931472, %v7997_v7 }
0x361b   : > { %v6196_v31 = vadd.f32 %v6195_v29, %v6176_v56 }
0x361d   : > { %v6197_v49 = vsub.f32 %v10089_v55, %v6196_v31 }
0x361f   : > { %v6199_v10 = vadd.f32 %v6197_v49, %v6164_v40  ;;  %v6198_v21 = vadd.f32 %v6197_v49, %v6163_v22  ;;  %v6200_v3 = vadd.f32 %v6197_v49, %v6165_v6 }
0x3621   : > { %v7209_v46 = vadd.f32 3.1780539, %v6199_v10  ;;  %v7208_v33 = vadd.f32 3.1780539, %v6198_v21  ;;  %v7210_v27 = vadd.f32 3.1780539, %v6200_v3 }
0x3623   : > { %v6223_v36 = vmul.f32 %v7209_v46, %v6220_v38  ;;  %v6206_v53 = vmul.f32 1.442695, %v7209_v46  ;;  %v6222_v59 = vmul.f32 %v7208_v33, %v6219_v14  ;;  %v6204_v35 = vmul.f32 1.442695, %v7208_v33 }
0x3624   : > { %v6208_v28 = vmul.f32 1.442695, %v7210_v27  ;;  %v6224_v44 = vmul.f32 %v7210_v27, %v6221_v11 }
0x3625   : > { %v6226_v42 = vsel %vm5959_vm6, %v6223_v36, 0.0  ;;  %7998 = vpow2.f32 %v6206_v53  ;;  %v6225_v55 = vsel %vm5959_vm6, %v6222_v59, 0.0 }
0x3626   : > { %6230 = vadd.xlane.f32.xlu2 %v6226_v42  ;;  %6228 = vadd.xlane.f32.xlu1 %v6225_v55  ;;  %8000 = vpow2.f32 %v6204_v35  ;;  %v6227_v0 = vsel %vm6218_vm2, %v6224_v44, 0.0 }
0x3627   : > { %8002 = vpow2.f32 %v6208_v28 }
0x362b   : > { %v7999_v15 = vpop.eup %7998 }
0x362c   : > { %v8001_v5 = vpop.eup %8000  ;;  %6211 = vst [vmem:[%s10137_s7 + $0x8] sm:$0xff] %v7999_v15 }
0x362d   : > { %v8003_v34 = vpop.eup %8002  ;;  %6210 = vst [vmem:[%s10137_s7] sm:$0xff] %v8001_v5 }
0x362e   : > { %6212 = vst [vmem:[%s10137_s7 + $0x10] sm:$0xff] %v8003_v34  ;;  %6232 = vadd.xlane.f32.xlu2 %v6227_v0  ;;  %6246 = vadd.xlane.f32.xlu1 %v6214_v50 }
0x362f   : > { %8332 = shalt.err (!%p8329_p9)
}
0x3630   : > { %7340 = dma.vmem_to_hbm [thread:$0]  (%p8669_p0), %s6306_s23, 128, %s6308_s5, %s10150_s17  }
0x3631   : > { %s7300_s30 = sshll.u32 %s8608_s29, 4  ;;  %s6288_s26 = sshll.u32 %s9969_s18, 4  ;;  %s6289_s26 = int_to_ptr.vmem [resolvable:$true] %s6288_s26 }
0x3632   : > { %s10327_s11 = sld [smem:[#allocation51_spill]]  ;;  %s6260_s1 = scalar_lea.sflag [#allocation5], %s8780_s24 }
0x3633   : > { %s10328_s27 = sld [smem:[#allocation53_spill]] }
0x3638   : > { %s6287_s0 = scalar_lea.hbm %s10327_s11, %s7300_s30  ;;  %s8353_s5 = scalar_lea.hbm %s10327_s11, 32 }
0x3639   : > { %s6290_s22 = sshll.u32 %s6287_s0, 4  ;;  %s6318_s15 = scalar_lea.hbm %s10328_s27, %s7304_s25  ;;  %s6291_s22 = int_to_ptr.hbm [resolvable:$true] %s6290_s22 }
0x363a   : > { %s8347_s6 = sshra.s32 %s6291_s22, 4  ;;  %s8348_s6 = int_to_ptr.hbm [resolvable:$true] %s8347_s6 }
0x363b   : > { %s8349_s8 = scalar_lea.hbm %s8348_s6, 16  ;;  %p8354_p1 = scmp.lt.s32.totalorder %s8348_s6, %s10327_s11 }
0x363c   : > { %p8350_p2 = scmp.ne.s32.totalorder %s8348_s6, %s8349_s8  ;;  %p8355_p7 = scmp.lt.s32.totalorder %s8353_s5, %s8349_s8 }
0x363e   : > { %p8351_p13 = pnand %p8350_p2, %p8669_p0  ;;  %p8356_p10 = por %p8355_p7, %p8354_p1 }
0x3640   : > { %p8352_p4 = pneg %p8351_p13 }
0x3642   : > { %p8357_p6 = pnand %p8356_p10, %p8352_p4 }
0x3644   : > { %8360 = shalt.err (!%p8357_p6)
}
0x3645   : > { %s8475_s24 = smov 128   ;;  %s10329_s0 = smov 8  }
0x3646   : > { %7339 = dma.vmem_to_hbm [thread:$0]  (%p8669_p0), %s6289_s26, 256, %s6291_s22, %s6260_s1, %s8475_s24, %s8475_s24, %s10329_s0  }
0x3647   : > { %s6319_s25 = sshll.u32 %s10137_s7, 4  ;;  %s6321_s28 = sshll.u32 %s6318_s15, 4  ;;  %s6320_s25 = int_to_ptr.vmem [resolvable:$true] %s6319_s25  ;;  %s6322_s28 = int_to_ptr.hbm [resolvable:$true] %s6321_s28 }
0x3648   : > { %s8375_s19 = sshra.s32 %s6322_s28, 4  ;;  %s8381_s18 = scalar_lea.hbm %s10328_s27, 48  ;;  %s8376_s19 = int_to_ptr.hbm [resolvable:$true] %s8375_s19 }
0x3649   : > { %s8377_s13 = scalar_lea.hbm %s8376_s19, 24  ;;  %p8382_p8 = scmp.lt.s32.totalorder %s8376_s19, %s10328_s27 }
0x364a   : > { %p8378_p11 = scmp.ne.s32.totalorder %s8376_s19, %s8377_s13  ;;  %p8383_p9 = scmp.lt.s32.totalorder %s8381_s18, %s8377_s13 }
0x364c   : > { %p8379_p12 = pnand %p8378_p11, %p8669_p0  ;;  %p8384_p2 = por %p8383_p9, %p8382_p8 }
0x364e   : > { %p8380_p3 = pneg %p8379_p12 }
0x3650   : > { %p8385_p13 = pnand %p8384_p2, %p8380_p3 }
0x3652   : > { %8388 = shalt.err (!%p8385_p13)
}
0x3653   : > { %7341 = dma.vmem_to_hbm [thread:$0]  (%p8669_p0), %s6320_s25, 384, %s6322_s28, %s10150_s17, %s8475_s24, %s8475_s24, %s10329_s0   ;;  %v5931_v48 = vpop.f32.mrf.mxu0  ;;  %v6245_v43 = vpop.xlane.xlu0 %6244  ;;  %vm6242_vm3 = vcmask 0  }
0x3654   : > { %p873_p4 = scmp.lt.s32.totalorder %s8608_s29, 1  ;;  %s10330_s4 = sld [smem:[#allocation54_spill]] }
0x3655   : > { %s10331_s15 = sld [smem:[#allocation55_spill]] }
0x3656   : > { %s10342_s29 = smov (!%p873_p4, %s8608_s29), 1 }
0x365a   : > { %s875_s17 = scalar_lea.vmem %s10330_s4, %s10342_s29 }
0x365b   : > { %v5933_v45 = vpop.f32.mrf.mxu0  ;;  %v6249_v54 = vpop.xlane.xlu0 %6248  ;;  %s878_s30 = scalar_lea.vmem %s10331_s15, %s10342_s29 }
0x3699   : > { %v6231_v62 = vpop.xlane.xlu2 %6230  ;;  %v6229_v37 = vpop.xlane.xlu1 %6228 }
0x369a   : > { %v6234_v6 = vadd.f32 %v6231_v62, %v6229_v37 }
0x36a1   : > { %v6233_v40 = vpop.xlane.xlu2 %6232  ;;  %v6247_v22 = vpop.xlane.xlu1 %6246 }
0x36a2   : > { %v6235_v2 = vadd.f32 %v6234_v6, %v6233_v40  ;;  %v6250_v8 = vadd.f32 %v6247_v22, %v6245_v43 }
0x36a4   : > { %v6236_v1 = vrot.slane %v6235_v2, 4  ;;  %v6251_v25 = vadd.f32 %v6250_v8, %v6249_v54 }
0x36a6   : > { %v6237_v58 = vadd.f32 %v6236_v1, %v6235_v2  ;;  %v6252_v60 = vrot.slane %v6251_v25, 4 }
0x36a8   : > { %v6238_v52 = vrot.slane %v6237_v58, 2  ;;  %v6253_v41 = vadd.f32 %v6252_v60, %v6251_v25 }
0x36aa   : > { %v6239_v56 = vadd.f32 %v6238_v52, %v6237_v58  ;;  %v6254_v39 = vrot.slane %v6253_v41, 2 }
0x36ac   : > { %v6240_v57 = vrot.slane %v6239_v56, 1  ;;  %v6255_v4 = vadd.f32 %v6254_v39, %v6253_v41 }
0x36ae   : > { %v6241_v32 = vadd.f32 %v6240_v57, %v6239_v56  ;;  %v6256_v61 = vrot.slane %v6255_v4, 1 }
0x36b0   : > { %6243 = vst.msk [vmem:[%s875_s17] sm:$0x1] %vm6242_vm3, %v6241_v32  ;;  %v6257_v47 = vadd.f32 %v6256_v61, %v6255_v4 }
0x36b2   : > { %6258 = vst.msk [vmem:[%s878_s30] sm:$0x1] %vm6242_vm3, %v6257_v47 }
0x36b3 PF: > { %s10332_s20 = sld [smem:[#allocation32_spill]]  ;;  %p10334_p0 = scmp.ge.s32.totalorder %s8451_s3, 2 }
0x36b5   : > { %p7378_p1 = pnand %p10334_p0, %p8679_p5 }
0x36b7   : > { %p7379_p7 = pneg %p7378_p1 }
0x36b9   : > { %s6342_s0 = sand.u32 1, %s10332_s20  }
0x36ba   : > { %s6343_s25 = scalar_lea.sflag [#allocation5], %s6342_s0 }
0x36bb   : > { %8430 = dma.done.wait (%p7379_p7), %s6343_s25, 256  }
0x36bc   : > { %8432 = vsyncadd (%p7379_p7), %s6343_s25, 4294967040  ;;  %s10335_s28 = sadd.s32 4294967294, %s8451_s3  }
0x36bd   : > { %s6352_s19 = sand.u32 1, %s10335_s28  }
0x36be   : > { %s6353_s13 = scalar_lea.sflag [#allocation22], %s6352_s19 }
0x36bf   : > { %8434 = dma.done.wait (%p7379_p7), %s6353_s13, 512  }
0x36c0   : > { %8436 = vsyncadd (%p7379_p7), %s6353_s13, 4294966784  ;;  %s10336_s3 = sld [smem:[#allocation34_spill]]  ;;  %s10339_s24 = smov %s8443_s2 }
0x36c1   : > { %s10337_s29 = sld [smem:[#allocation33_spill]] }
0x36c2   : > { %s10338_s25 = sld [smem:[#allocation35_spill]] }
0x36c6   : > { %p45_p10 = scmp.ge.s32.totalorder %s10336_s3, 4  }
0x36c7   : > { %s10340_s2 = smov %s10337_s29 }
0x36c8   :  { %47 = sbr.rel (!%p45_p10) target bundleno = 39 (0x27), region = 321 }
0x36cd   :  { %6381 = vsyncpa [#allocation4], 1 }
0x36ce   :  { %6383 = vsyncpa [#allocation4 + $0x1], 1 }
0x36cf   :  { %6384 = vsyncpa [#allocation7], 1 }
0x36d0   :  { %6386 = vsyncpa [#allocation7 + $0x1], 1 }
0x36d1   :  { %6387 = vsyncpa [#allocation10], 1 }
0x36d2   :  { %6388 = vsyncpa [#allocation13], 1 }
0x36d3   :  { %6389 = vsyncpa [#allocation16], 1 }
0x36d4   :  { %6390 = vsyncpa [#allocation19], 1 }
0x36d5   :  { %6391 = vsyncpa [#allocation5], 1 }
0x36d6   :  { %6393 = vsyncpa [#allocation5 + $0x1], 1 }
0x36d7   :  { %6394 = vsyncpa [#allocation22], 1 }
0x36d8   :  { %6396 = vsyncpa [#allocation22 + $0x1], 1 }

</bundles_post_ra>
